<compile_context>
chip_gen: v6e
topology: v6e:2x2x1
jax: 0.10.0
libtpu: 0.0.40
codegen_flags: <defaults>
</compile_context>

<pallas_src>
import jax
import jax.numpy as jnp
from jax.experimental import pallas as pl
from jax.experimental.pallas import tpu as pltpu

D_IN, D_H1, D_H2, D_OUT = 2048, 1024, 512, 5
D_OUT_PAD = 128  # lane-dense padded logits width (minimum unmasked vst width)


def _round_up(v, m):
    return ((v + m - 1) // m) * m


# -----------------------------------------------------------------------------
# Kernel
# -----------------------------------------------------------------------------
def mlp_kernel(x_ref, w1_ref, b1_ref, w2_ref, b2_ref, w3_ref, b3_ref,
               out_ref, hid_ref):
    # x is read as f32 from HBM and cast to bf16 in-VMEM (MXU-native input).
    x = x_ref[...].astype(jnp.bfloat16)
    # fc1 + relu  (bf16 MXU inputs, f32 accumulation + f32 epilogue)
    h1 = jnp.dot(x, w1_ref[...], preferred_element_type=jnp.float32)
    h1 = jnp.maximum(h1 + b1_ref[...], 0.0)
    # fc2 + relu  (this is x_hidden)
    h2 = jnp.dot(h1.astype(jnp.bfloat16), w2_ref[...],
                 preferred_element_type=jnp.float32)
    h2 = jnp.maximum(h2 + b2_ref[...], 0.0)
    hid_ref[...] = h2.astype(hid_ref.dtype)
    # fc3 (no activation) -> lane-dense (tb, 128) store; real logits are [:, :5]
    o = jnp.dot(h2.astype(jnp.bfloat16), w3_ref[...],
                preferred_element_type=jnp.float32)
    out_ref[...] = (o + b3_ref[...]).astype(out_ref.dtype)


# -----------------------------------------------------------------------------
# Hardware-aware configuration helpers
# -----------------------------------------------------------------------------
def _tpu_topology():
    """Best-effort query: (vmem_capacity_bytes, two_tensorcores_per_chip).

    Conservative fallback (64 MiB, single-TC behaviour for tiling, no forced
    split) is legal on every TPU generation."""
    vmem = 64 * 1024 * 1024
    two_core = False
    try:
        info = pltpu.get_tpu_info()
        vmem = int(getattr(info, "vmem_capacity_bytes", vmem))
        cores = None
        for attr in ("num_cores", "tensorcores_per_chip", "num_tensorcores"):
            cores = getattr(info, attr, None)
            if cores is not None:
                break
        if cores is not None:
            two_core = int(cores) > 1
        else:
            # v7x is the (only) part with <= 64 MiB VMEM per TensorCore.
            two_core = vmem <= 64 * 1024 * 1024
    except Exception:
        pass
    return vmem, two_core


def _choose_batch_tile(B, target, two_core):
    """Multiple of 8, <= round_up(B, 8), <= target. On two-TC parts, split into
    at least 2 'parallel' grid steps (when the batch allows) so both
    TensorCores get work; on single-TC parts never split (it only shrinks the
    MXU M dimension and adds per-step overhead)."""
    b8 = _round_up(B, 8)
    tb = max(8, min((target // 8) * 8, b8))
    if two_core and b8 >= 16 and pl.cdiv(b8, tb) < 2:
        tb = _round_up(pl.cdiv(b8, 2), 8)   # exactly two parallel steps
    return tb


_SINGLE_BUFFER_WEIGHTS_OK = None


def _single_buffer_supported():
    """Probe once whether pipeline_mode=pl.Buffered(1) lowers on this JAX/TPU."""
    global _SINGLE_BUFFER_WEIGHTS_OK
    if _SINGLE_BUFFER_WEIGHTS_OK is None:
        def _copy_kernel(x_ref, o_ref):
            o_ref[...] = x_ref[...]
        try:
            probe = pl.pallas_call(
                _copy_kernel,
                out_shape=jax.ShapeDtypeStruct((8, 128), jnp.float32),
                grid_spec=pltpu.PrefetchScalarGridSpec(
                    num_scalar_prefetch=0,
                    grid=(1,),
                    in_specs=[pl.BlockSpec((8, 128), lambda i: (0, 0),
                                           pipeline_mode=pl.Buffered(1))],
                    out_specs=pl.BlockSpec((8, 128), lambda i: (0, 0)),
                ),
            )
            jax.block_until_ready(probe(jnp.zeros((8, 128), jnp.float32)))
            _SINGLE_BUFFER_WEIGHTS_OK = True
        except Exception:
            _SINGLE_BUFFER_WEIGHTS_OK = False
    return _SINGLE_BUFFER_WEIGHTS_OK


# -----------------------------------------------------------------------------
# Wrapper
# -----------------------------------------------------------------------------
def custom_net_forward(x, params, *, batch_tile=None):
    """x: (B, 2048) f32. Returns (logits (B, 5) f32, x_hidden (B, 512) f32)."""
    w1, b1, w2, b2, w3p, b3p = params
    B = x.shape[0]

    vmem_cap, two_core = _tpu_topology()
    big_vmem_single_tc = (not two_core) and vmem_cap >= 128 * 1024 * 1024
    if batch_tile is None:
        batch_tile = 1024 if big_vmem_single_tc else 512
    # Leave headroom below physical VMEM; 48 MiB on 64-MiB parts, 96 MiB on
    # 128-MiB parts. Footprint at tb=1024 (single-buffered bf16 weights + f32 x
    # double-buffered + f32/bf16 intermediates) is ~36 MiB; ~21 MiB at tb=512.
    vmem_limit = min(96 * 1024 * 1024, (vmem_cap * 3) // 4)

    tb = _choose_batch_tile(B, batch_tile, two_core)
    grid = (pl.cdiv(B, tb),)

    single_buf = _single_buffer_supported()
    wkw = {"pipeline_mode": pl.Buffered(1)} if single_buf else {}
    const = lambda shape: pl.BlockSpec(shape, lambda i: (0, 0), **wkw)

    out, hid = pl.pallas_call(
        mlp_kernel,
        out_shape=(
            jax.ShapeDtypeStruct((B, D_OUT_PAD), jnp.float32),
            jax.ShapeDtypeStruct((B, D_H2), jnp.float32),
        ),
        grid_spec=pltpu.PrefetchScalarGridSpec(
            num_scalar_prefetch=0,
            grid=grid,
            in_specs=[
                pl.BlockSpec((tb, D_IN), lambda i: (i, 0)),   # x tile (f32)
                const((D_IN, D_H1)),                          # w1 (bf16, resident)
                const((1, D_H1)),                             # b1 (f32)
                const((D_H1, D_H2)),                          # w2 (bf16, resident)
                const((1, D_H2)),                             # b2 (f32)
                const((D_H2, D_OUT_PAD)),                     # w3 padded (bf16)
                const((1, D_OUT_PAD)),                        # b3 padded (f32)
            ],
            out_specs=[
                pl.BlockSpec((tb, D_OUT_PAD), lambda i: (i, 0)),  # logits (padded)
                pl.BlockSpec((tb, D_H2), lambda i: (i, 0)),       # x_hidden
            ],
        ),
        compiler_params=pltpu.CompilerParams(
            dimension_semantics=("parallel",),
            vmem_limit_bytes=vmem_limit,
        ),
    )(x, w1, b1, w2, b2, w3p, b3p)
    # Only the tiny lane-slice remains on the wrapper side (20 B/row).
    return out[:, :D_OUT], hid


# -----------------------------------------------------------------------------
# Params + reference
# -----------------------------------------------------------------------------
def init_params(key):
    """Deterministic init mimicking nn.Linear: weight (out, in), bias (out,)."""
    ks = jax.random.split(key, 6)

    def linear(kw, kb, fan_in, fan_out):
        bound = 1.0 / jnp.sqrt(fan_in)
        w = jax.random.uniform(kw, (fan_out, fan_in), jnp.float32, -bound, bound)
        b = jax.random.uniform(kb, (fan_out,), jnp.float32, -bound, bound)
        return w, b

    w1, b1 = linear(ks[0], ks[1], D_IN, D_H1)
    w2, b2 = linear(ks[2], ks[3], D_H1, D_H2)
    w3, b3 = linear(ks[4], ks[5], D_H2, D_OUT)

    # Glue: transpose to (in, out), cast weights to bf16 (MXU-native), pad fc3 to
    # a lane-dense 128-wide output; biases stay f32 so the epilogue stays f32.
    w1k = w1.T.astype(jnp.bfloat16)
    w2k = w2.T.astype(jnp.bfloat16)
    w3k = jnp.zeros((D_H2, D_OUT_PAD), jnp.float32).at[:, :D_OUT].set(w3.T)
    w3k = w3k.astype(jnp.bfloat16)
    b3k = jnp.zeros((1, D_OUT_PAD), jnp.float32).at[:, :D_OUT].set(b3.reshape(1, -1))
    return (w1k, b1.reshape(1, -1), w2k, b2.reshape(1, -1), w3k, b3k)


def reference_forward(x, params):
    """Pure-JAX reference with identical dtype handling (bf16 MXU inputs, f32 accum)."""
    w1, b1, w2, b2, w3p, b3p = params
    h1 = jnp.maximum(
        jnp.dot(x.astype(jnp.bfloat16), w1, preferred_element_type=jnp.float32) + b1,
        0.0)
    h2 = jnp.maximum(
        jnp.dot(h1.astype(jnp.bfloat16), w2, preferred_element_type=jnp.float32) + b2,
        0.0)
    o = jnp.dot(h2.astype(jnp.bfloat16), w3p, preferred_element_type=jnp.float32) + b3p
    return o[:, :D_OUT], h2


if __name__ == "__main__":
    key = jax.random.PRNGKey(0)
    kx, kp = jax.random.split(key)
    B = 32  # small batch; no padding, ragged blocks handled by Pallas masking
    x = jax.random.normal(kx, (B, D_IN), jnp.float32)
    params = init_params(kp)

    out, hid = custom_net_forward(x, params)
    jax.block_until_ready((out, hid))

    ref_out, ref_hid = reference_forward(x, params)
    assert out.shape == (B, D_OUT) and hid.shape == (B, D_H2)
    assert jnp.allclose(out, ref_out, atol=1e-2, rtol=1e-2)
    assert jnp.allclose(hid, ref_hid, atol=1e-2, rtol=1e-2)
    print("KERNEL_OK")
</pallas_src>

<mosaic_0001>
module attributes {stable_mosaic.version = 11 : i64} {
  func.func @_copy_kernel(%arg0: i32, %arg1: memref<8x128xf32, #tpu.memory_space<vmem>>, %arg2: memref<8x128xf32, #tpu.memory_space<vmem>>) attributes {dimension_semantics = [#tpu.dimension_semantics<arbitrary>], iteration_bounds = array<i64: 1>, scalar_prefetch = 0 : i64, scratch_operands = 0 : i64, tpu.core_type = #tpu.core_type<tc>, window_params = [{pipeline_mode = #tpu.pipeline_mode<synchronous>, transform_indices = @transform_0, window_bounds = array<i64: 8, 128>}, {pipeline_mode = #tpu.pipeline_mode<synchronous>, transform_indices = @transform_1, window_bounds = array<i64: 8, 128>}]} {
    %c0 = arith.constant 0 : index
    %c0_0 = arith.constant 0 : index
    %0 = vector.load %arg1[%c0, %c0_0] : memref<8x128xf32, #tpu.memory_space<vmem>>, vector<8x128xf32>
    %c0_1 = arith.constant 0 : index
    %c0_2 = arith.constant 0 : index
    %1 = vector.load %arg2[%c0_1, %c0_2] : memref<8x128xf32, #tpu.memory_space<vmem>>, vector<8x128xf32>
    tpu.vector_store %arg2[%c0_1, %c0_2], %0 {strides = array<i32>} : memref<8x128xf32, #tpu.memory_space<vmem>>, vector<8x128xf32>,
    return
  }
  func.func @transform_0(%arg0: i32) -> (i32, i32) {
    %c0_i32 = arith.constant 0 : i32
    %c0_i32_0 = arith.constant 0 : i32
    %c0_i32_1 = arith.constant 0 : i32
    return %c0_i32, %c0_i32_0 : i32, i32
  }
  func.func @transform_1(%arg0: i32) -> (i32, i32) {
    %c0_i32 = arith.constant 0 : i32
    %c0_i32_0 = arith.constant 0 : i32
    %c0_i32_1 = arith.constant 0 : i32
    return %c0_i32, %c0_i32_0 : i32, i32
  }
}

module attributes {stable_mosaic.version = 11 : i64} {
  func.func @mlp_kernel(%arg0: i32, %arg1: memref<32x2048xf32, #tpu.memory_space<vmem>>, %arg2: memref<2048x1024xbf16, #tpu.memory_space<vmem>>, %arg3: memref<1x1024xf32, #tpu.memory_space<vmem>>, %arg4: memref<1024x512xbf16, #tpu.memory_space<vmem>>, %arg5: memref<1x512xf32, #tpu.memory_space<vmem>>, %arg6: memref<512x128xbf16, #tpu.memory_space<vmem>>, %arg7: memref<1x128xf32, #tpu.memory_space<vmem>>, %arg8: memref<32x128xf32, #tpu.memory_space<vmem>>, %arg9: memref<32x512xf32, #tpu.memory_space<vmem>>) attributes {dimension_semantics = [#tpu.dimension_semantics<parallel>], iteration_bounds = array<i64: 1>, scalar_prefetch = 0 : i64, scratch_operands = 0 : i64, tpu.core_type = #tpu.core_type<tc>, window_params = [{transform_indices = @transform_0, window_bounds = array<i64: 32, 2048>}, {pipeline_mode = #tpu.pipeline_mode<synchronous>, transform_indices = @transform_1, window_bounds = array<i64: 2048, 1024>}, {pipeline_mode = #tpu.pipeline_mode<synchronous>, transform_indices = @transform_2, window_bounds = array<i64: 1, 1024>}, {pipeline_mode = #tpu.pipeline_mode<synchronous>, transform_indices = @transform_3, window_bounds = array<i64: 1024, 512>}, {pipeline_mode = #tpu.pipeline_mode<synchronous>, transform_indices = @transform_4, window_bounds = array<i64: 1, 512>}, {pipeline_mode = #tpu.pipeline_mode<synchronous>, transform_indices = @transform_5, window_bounds = array<i64: 512, 128>}, {pipeline_mode = #tpu.pipeline_mode<synchronous>, transform_indices = @transform_6, window_bounds = array<i64: 1, 128>}, {transform_indices = @transform_7, window_bounds = array<i64: 32, 128>}, {transform_indices = @transform_8, window_bounds = array<i64: 32, 512>}]} {
    %c0 = arith.constant 0 : index
    %c0_0 = arith.constant 0 : index
    %0 = vector.load %arg1[%c0, %c0_0] : memref<32x2048xf32, #tpu.memory_space<vmem>>, vector<32x2048xf32>
    %1 = arith.truncf %0 : vector<32x2048xf32> to vector<32x2048xbf16>
    %c0_1 = arith.constant 0 : index
    %c0_2 = arith.constant 0 : index
    %2 = vector.load %arg2[%c0_1, %c0_2] : memref<2048x1024xbf16, #tpu.memory_space<vmem>>, vector<2048x1024xbf16>
    %cst = arith.constant dense<0.000000e+00> : vector<32x1024xf32>
    %3 = tpu.matmul %1, %2, %cst {dimension_numbers = #tpu.dot_dimension_numbers<[1], [0], [0], [1], [0, 0, 1, 1], [], []>} : vector<32x2048xbf16>, vector<2048x1024xbf16>, vector<32x1024xf32> -> vector<32x1024xf32>
    %c0_3 = arith.constant 0 : index
    %c0_4 = arith.constant 0 : index
    %4 = vector.load %arg3[%c0_3, %c0_4] : memref<1x1024xf32, #tpu.memory_space<vmem>>, vector<1x1024xf32>
    %5 = vector.broadcast %4 : vector<1x1024xf32> to vector<32x1024xf32>
    %6 = arith.addf %3, %5 : vector<32x1024xf32>
    %cst_5 = arith.constant 0.000000e+00 : f32
    %7 = vector.broadcast %cst_5 : f32 to vector<32x1024xf32>
    %8 = arith.maximumf %6, %7 : vector<32x1024xf32>
    %9 = arith.truncf %8 : vector<32x1024xf32> to vector<32x1024xbf16>
    %c0_6 = arith.constant 0 : index
    %c0_7 = arith.constant 0 : index
    %10 = vector.load %arg4[%c0_6, %c0_7] : memref<1024x512xbf16, #tpu.memory_space<vmem>>, vector<1024x512xbf16>
    %cst_8 = arith.constant dense<0.000000e+00> : vector<32x512xf32>
    %11 = tpu.matmul %9, %10, %cst_8 {dimension_numbers = #tpu.dot_dimension_numbers<[1], [0], [0], [1], [0, 0, 1, 1], [], []>} : vector<32x1024xbf16>, vector<1024x512xbf16>, vector<32x512xf32> -> vector<32x512xf32>
    %c0_9 = arith.constant 0 : index
    %c0_10 = arith.constant 0 : index
    %12 = vector.load %arg5[%c0_9, %c0_10] : memref<1x512xf32, #tpu.memory_space<vmem>>, vector<1x512xf32>
    %13 = vector.broadcast %12 : vector<1x512xf32> to vector<32x512xf32>
    %14 = arith.addf %11, %13 : vector<32x512xf32>
    %cst_11 = arith.constant 0.000000e+00 : f32
    %15 = vector.broadcast %cst_11 : f32 to vector<32x512xf32>
    %16 = arith.maximumf %14, %15 : vector<32x512xf32>
    %c0_12 = arith.constant 0 : index
    %c0_13 = arith.constant 0 : index
    %17 = vector.load %arg9[%c0_12, %c0_13] : memref<32x512xf32, #tpu.memory_space<vmem>>, vector<32x512xf32>
    tpu.vector_store %arg9[%c0_12, %c0_13], %16 {strides = array<i32>} : memref<32x512xf32, #tpu.memory_space<vmem>>, vector<32x512xf32>,
    %18 = arith.truncf %16 : vector<32x512xf32> to vector<32x512xbf16>
    %c0_14 = arith.constant 0 : index
    %c0_15 = arith.constant 0 : index
    %19 = vector.load %arg6[%c0_14, %c0_15] : memref<512x128xbf16, #tpu.memory_space<vmem>>, vector<512x128xbf16>
    %cst_16 = arith.constant dense<0.000000e+00> : vector<32x128xf32>
    %20 = tpu.matmul %18, %19, %cst_16 {dimension_numbers = #tpu.dot_dimension_numbers<[1], [0], [0], [1], [0, 0, 1, 1], [], []>} : vector<32x512xbf16>, vector<512x128xbf16>, vector<32x128xf32> -> vector<32x128xf32>
    %c0_17 = arith.constant 0 : index
    %c0_18 = arith.constant 0 : index
    %21 = vector.load %arg7[%c0_17, %c0_18] : memref<1x128xf32, #tpu.memory_space<vmem>>, vector<1x128xf32>
    %22 = vector.broadcast %21 : vector<1x128xf32> to vector<32x128xf32>
    %23 = arith.addf %20, %22 : vector<32x128xf32>
    %c0_19 = arith.constant 0 : index
    %c0_20 = arith.constant 0 : index
    %24 = vector.load %arg8[%c0_19, %c0_20] : memref<32x128xf32, #tpu.memory_space<vmem>>, vector<32x128xf32>
    tpu.vector_store %arg8[%c0_19, %c0_20], %23 {strides = array<i32>} : memref<32x128xf32, #tpu.memory_space<vmem>>, vector<32x128xf32>,
    return
  }
  func.func @transform_0(%arg0: i32) -> (i32, i32) {
    %c0_i32 = arith.constant 0 : i32
    %c0_i32_0 = arith.constant 0 : i32
    return %arg0, %c0_i32 : i32, i32
  }
  func.func @transform_1(%arg0: i32) -> (i32, i32) {
    %c0_i32 = arith.constant 0 : i32
    %c0_i32_0 = arith.constant 0 : i32
    %c0_i32_1 = arith.constant 0 : i32
    return %c0_i32, %c0_i32_0 : i32, i32
  }
  func.func @transform_2(%arg0: i32) -> (i32, i32) {
    %c0_i32 = arith.constant 0 : i32
    %c0_i32_0 = arith.constant 0 : i32
    %c0_i32_1 = arith.constant 0 : i32
    return %c0_i32, %c0_i32_0 : i32, i32
  }
  func.func @transform_3(%arg0: i32) -> (i32, i32) {
    %c0_i32 = arith.constant 0 : i32
    %c0_i32_0 = arith.constant 0 : i32
    %c0_i32_1 = arith.constant 0 : i32
    return %c0_i32, %c0_i32_0 : i32, i32
  }
  func.func @transform_4(%arg0: i32) -> (i32, i32) {
    %c0_i32 = arith.constant 0 : i32
    %c0_i32_0 = arith.constant 0 : i32
    %c0_i32_1 = arith.constant 0 : i32
    return %c0_i32, %c0_i32_0 : i32, i32
  }
  func.func @transform_5(%arg0: i32) -> (i32, i32) {
    %c0_i32 = arith.constant 0 : i32
    %c0_i32_0 = arith.constant 0 : i32
    %c0_i32_1 = arith.constant 0 : i32
    return %c0_i32, %c0_i32_0 : i32, i32
  }
  func.func @transform_6(%arg0: i32) -> (i32, i32) {
    %c0_i32 = arith.constant 0 : i32
    %c0_i32_0 = arith.constant 0 : i32
    %c0_i32_1 = arith.constant 0 : i32
    return %c0_i32, %c0_i32_0 : i32, i32
  }
  func.func @transform_7(%arg0: i32) -> (i32, i32) {
    %c0_i32 = arith.constant 0 : i32
    %c0_i32_0 = arith.constant 0 : i32
    return %arg0, %c0_i32 : i32, i32
  }
  func.func @transform_8(%arg0: i32) -> (i32, i32) {
    %c0_i32 = arith.constant 0 : i32
    %c0_i32_0 = arith.constant 0 : i32
    return %arg0, %c0_i32 : i32, i32
  }
}

</mosaic_0001>

<bundles_post_ra>
// kernel: tpu_custom_call.1
= control target key start
LH: loop header
LB: loop body
LE: loop exit
PB: predicated region body
PF: predicated region fallthrough
CT: control target
= control target key end

     0   :  { %6 = vsyncpa [#allocation3], 0  ;;  %s102_s0 = inlined_call_operand.hbm [shape: f32[8,128], index: 0, kind: input, shape index: {}]   ;;  %s103_s1 = inlined_call_operand.hbm [shape: f32[8,128], index: 1, kind: output, shape index: {}]  }
   0x1   :  { %7 = vsyncpa [#allocation4], 0  ;;  %s84_s6 = smov [#allocation2]  }
   0x2   :  { %s14_s7 = sshll.u32 %s84_s6, 4  ;;  %s15_s7 = int_to_ptr.vmem [resolvable:$true] %s14_s7 }
   0x3   :  { %s48_s8 = scalar_lea.vmem %s15_s7, 128  ;;  %p53_p1 = scmp.lt.s32.totalorder %s15_s7, %s15_s7 }
   0x4   :  { %p49_p0 = scmp.ne.s32.totalorder %s15_s7, %s48_s8  ;;  %p54_p2 = scmp.lt.s32.totalorder %s48_s8, %s48_s8 }
   0x6   :  { %p55_p3 = por %p54_p2, %p53_p1 }
   0x8   :  { %p56_p4 = pnand %p55_p3, %p49_p0 }
   0xa   :  { %59 = shalt.err (!%p56_p4)
}
   0xb   :  { %17 = dma.hbm_to_vmem [thread:$0]  %s102_s0, 128, %s15_s7, [#allocation3]  }
   0xc   :  { %80 = dma.done.wait [#allocation3], 128  }
   0xd   :  { %81 = vsyncadd [#allocation3], 4294967168  ;;  %s85_s11 = smov [#allocation5]   ;;  %v21_v0 = vld [vmem:[#allocation2] sm:$0xff] }
   0xe   :  { %s29_s12 = sshll.u32 %s85_s11, 4  ;;  %22 = vst [vmem:[#allocation5] sm:$0xff] %v21_v0  ;;  %s30_s12 = int_to_ptr.vmem [resolvable:$true] %s29_s12 }
   0xf   :  { %s60_s13 = scalar_lea.vmem %s30_s12, 128  ;;  %p65_p6 = scmp.lt.s32.totalorder %s30_s12, %s30_s12 }
  0x10   :  { %p61_p5 = scmp.ne.s32.totalorder %s30_s12, %s60_s13  ;;  %p66_p7 = scmp.lt.s32.totalorder %s60_s13, %s60_s13 }
  0x12   :  { %p67_p8 = por %p66_p7, %p65_p6 }
  0x14   :  { %p68_p9 = pnand %p67_p8, %p61_p5 }
  0x16   :  { %71 = shalt.err (!%p68_p9)
}
  0x17   :  { %32 = dma.vmem_to_hbm [thread:$0]  %s30_s12, 128, %s103_s1, [#allocation4]  }
  0x18   :  { %82 = dma.done.wait [#allocation4], 128  }
  0x19   :  { %83 = vsyncadd [#allocation4], 4294967168 }
  0x1a   :  { %36 = vsyncpa [#allocation3], 1 }
  0x1b   :  { %37 = vsyncpa [#allocation4], 1 }

// kernel: tpu_custom_call.1
= control target key start
LH: loop header
LB: loop body
LE: loop exit
PB: predicated region body
PF: predicated region fallthrough
CT: control target
= control target key end

     0   :  { %14 = vsyncpa [#allocation3], 0  ;;  %s13460_s0 = inlined_call_operand.hbm [shape: f32[32,2048], index: 0, kind: input, shape index: {}]   ;;  %s13461_s1 = inlined_call_operand.hbm [shape: bf16[2048,1024], index: 1, kind: input, shape index: {}]   ;;  %s13462_s2 = inlined_call_operand.hbm [shape: f32[1,1024], index: 2, kind: input, shape index: {}]   ;;  %s13463_s3 = inlined_call_operand.hbm [shape: bf16[1024,512], index: 3, kind: input, shape index: {}]   ;;  %s13464_s4 = inlined_call_operand.hbm [shape: f32[1,512], index: 4, kind: input, shape index: {}]   ;;  %s13465_s5 = inlined_call_operand.hbm [shape: bf16[512,128], index: 5, kind: input, shape index: {}]   ;;  %s13466_s6 = inlined_call_operand.hbm [shape: f32[1,128], index: 6, kind: input, shape index: {}]   ;;  %s13467_s7 = inlined_call_operand.hbm [shape: f32[32,128], index: 7, kind: output, shape index: {0}]   ;;  %s13468_s8 = inlined_call_operand.hbm [shape: f32[32,512], index: 8, kind: output, shape index: {1}]  }
   0x1   :  { %15 = vsyncpa [#allocation6], 0 }
   0x2   :  { %16 = vsyncpa [#allocation9], 0 }
   0x3   :  { %17 = vsyncpa [#allocation12], 0 }
   0x4   :  { %18 = vsyncpa [#allocation4], 0 }
   0x5   :  { %19 = vsyncpa [#allocation16], 0  ;;  %s12567_s27 = smov [#allocation5]  }
   0x6   :  { %s37_s28 = sshll.u32 %s12567_s27, 4  ;;  %s38_s28 = int_to_ptr.vmem [resolvable:$true] %s37_s28 }
   0x7   :  { %s12383_s29 = scalar_lea.vmem %s38_s28, 131072  ;;  %p12388_p1 = scmp.lt.s32.totalorder %s38_s28, %s38_s28 }
   0x8   :  { %p12384_p0 = scmp.ne.s32.totalorder %s38_s28, %s12383_s29  ;;  %p12389_p2 = scmp.lt.s32.totalorder %s12383_s29, %s12383_s29 }
   0xa   :  { %p12390_p3 = por %p12389_p2, %p12388_p1 }
   0xc   :  { %p12391_p4 = pnand %p12390_p3, %p12384_p0 }
   0xe   :  { %12394 = shalt.err (!%p12391_p4)
}
   0xf   :  { %s12568_s30 = smov 512   ;;  %s12569_s9 = smov 32  }
  0x10   :  { %43 = dma.hbm_to_vmem [thread:$0]  %s13461_s1, 131072, %s38_s28, [#allocation6], %s12568_s30, %s12568_s30, %s12569_s9  }
  0x11   :  { %s12570_s12 = smov [#allocation8]  }
  0x12   :  { %s59_s13 = sshll.u32 %s12570_s12, 4  ;;  %s60_s13 = int_to_ptr.vmem [resolvable:$true] %s59_s13 }
  0x13   :  { %s12403_s14 = scalar_lea.vmem %s60_s13, 32768  ;;  %p12408_p6 = scmp.lt.s32.totalorder %s60_s13, %s60_s13 }
  0x14   :  { %p12404_p5 = scmp.ne.s32.totalorder %s60_s13, %s12403_s14  ;;  %p12409_p7 = scmp.lt.s32.totalorder %s12403_s14, %s12403_s14 }
  0x16   :  { %p12410_p8 = por %p12409_p7, %p12408_p6 }
  0x18   :  { %p12411_p9 = pnand %p12410_p8, %p12404_p5 }
  0x1a   :  { %12414 = shalt.err (!%p12411_p9)
}
  0x1b   :  { %s12571_s15 = smov 256   ;;  %s12572_s16 = smov 16  }
  0x1c   :  { %65 = dma.hbm_to_vmem [thread:$0]  %s13463_s3, 32768, %s60_s13, [#allocation9], %s12571_s15, %s12571_s15, %s12572_s16  }
  0x1d   :  { %s12573_s19 = smov [#allocation11]  }
  0x1e   :  { %s81_s20 = sshll.u32 %s12573_s19, 4  ;;  %s82_s20 = int_to_ptr.vmem [resolvable:$true] %s81_s20 }
  0x1f   :  { %s12423_s1 = scalar_lea.vmem %s82_s20, 4096  ;;  %p12428_p11 = scmp.lt.s32.totalorder %s82_s20, %s82_s20 }
  0x20   :  { %p12424_p10 = scmp.ne.s32.totalorder %s82_s20, %s12423_s1  ;;  %p12429_p12 = scmp.lt.s32.totalorder %s12423_s1, %s12423_s1 }
  0x22   :  { %p12430_p13 = por %p12429_p12, %p12428_p11 }
  0x24   :  { %p12431_p0 = pnand %p12430_p13, %p12424_p10 }
  0x26   :  { %12434 = shalt.err (!%p12431_p0)
}
  0x27   :  { %s12574_s21 = smov 64   ;;  %s12575_s22 = smov 4  }
  0x28   :  { %87 = dma.hbm_to_vmem [thread:$0]  %s13465_s5, 4096, %s82_s20, [#allocation12], %s12574_s21, %s12574_s21, %s12575_s22  }
  0x29   :  { %s12576_s25 = smov [#allocation2]  }
  0x2a   :  { %s25_s26 = sshll.u32 %s12576_s25, 4  ;;  %s26_s26 = int_to_ptr.vmem [resolvable:$true] %s25_s26 }
  0x2b   :  { %s12443_s3 = scalar_lea.vmem %s26_s26, 8192  ;;  %p12448_p2 = scmp.lt.s32.totalorder %s26_s26, %s26_s26 }
  0x2c   :  { %p12444_p1 = scmp.ne.s32.totalorder %s26_s26, %s12443_s3  ;;  %p12449_p3 = scmp.lt.s32.totalorder %s12443_s3, %s12443_s3 }
  0x2e   :  { %p12450_p4 = por %p12449_p3, %p12448_p2 }
  0x30   :  { %p12451_p5 = pnand %p12450_p4, %p12444_p1 }
  0x32   :  { %12454 = shalt.err (!%p12451_p5)
}
  0x33   :  { %s12577_s27 = smov 2048   ;;  %s12578_s28 = smov 128  }
  0x34   :  { %31 = dma.hbm_to_vmem [thread:$0]  %s13460_s0, 8192, %s26_s26, [#allocation3], %s12577_s27, %s12577_s27, %s12578_s28  }
  0x35   :  { %s12579_s11 = smov [#allocation7]   ;;  %s12580_s5 = smov [#allocation10]  }
  0x36   :  { %s50_s12 = sshll.u32 %s12579_s11, 4  ;;  %s72_s13 = sshll.u32 %s12580_s5, 4  ;;  %s51_s12 = int_to_ptr.vmem [resolvable:$true] %s50_s12  ;;  %s73_s13 = int_to_ptr.vmem [resolvable:$true] %s72_s13 }
  0x37   :  { %s12463_s14 = scalar_lea.vmem %s51_s12, 128  ;;  %p12468_p7 = scmp.lt.s32.totalorder %s51_s12, %s51_s12 }
  0x38   :  { %p12464_p6 = scmp.ne.s32.totalorder %s51_s12, %s12463_s14  ;;  %p12469_p8 = scmp.lt.s32.totalorder %s12463_s14, %s12463_s14 }
  0x3a   :  { %p12470_p9 = por %p12469_p8, %p12468_p7 }
  0x3c   :  { %p12471_p10 = pnand %p12470_p9, %p12464_p6 }
  0x3e   :  { %12474 = shalt.err (!%p12471_p10)
}
  0x3f   :  { %53 = dma.hbm_to_vmem [thread:$0]  %s13462_s2, 128, %s51_s12, [#allocation6]  }
  0x40   :  { %s12483_s17 = scalar_lea.vmem %s73_s13, 64  ;;  %p12488_p12 = scmp.lt.s32.totalorder %s73_s13, %s73_s13 }
  0x41   :  { %p12484_p11 = scmp.ne.s32.totalorder %s73_s13, %s12483_s17  ;;  %p12489_p13 = scmp.lt.s32.totalorder %s12483_s17, %s12483_s17 }
  0x43   :  { %p12490_p0 = por %p12489_p13, %p12488_p12 }
  0x45   :  { %p12491_p1 = pnand %p12490_p0, %p12484_p11 }
  0x47   :  { %12494 = shalt.err (!%p12491_p1)
}
  0x48   :  { %75 = dma.hbm_to_vmem [thread:$0]  %s13464_s4, 64, %s73_s13, [#allocation9]  }
  0x49   :  { %s12581_s19 = smov [#allocation13]  }
  0x4a   :  { %s94_s20 = sshll.u32 %s12581_s19, 4  ;;  %s95_s20 = int_to_ptr.vmem [resolvable:$true] %s94_s20 }
  0x4b   :  { %s12503_s1 = scalar_lea.vmem %s95_s20, 16  ;;  %s12507_s21 = scalar_lea.vmem %s95_s20, 32 }
  0x4c   :  { %p12504_p2 = scmp.ne.s32.totalorder %s95_s20, %s12503_s1  ;;  %p12508_p3 = scmp.lt.s32.totalorder %s95_s20, %s95_s20 }
  0x4d   :  { %p12509_p4 = scmp.lt.s32.totalorder %s12507_s21, %s12503_s1 }
  0x4f   :  { %p12510_p5 = por %p12509_p4, %p12508_p3 }
  0x51   :  { %p12511_p6 = pnand %p12510_p5, %p12504_p2 }
  0x53   :  { %12514 = shalt.err (!%p12511_p6)
}
  0x54   :  { %97 = dma.hbm_to_vmem [thread:$0]  %s13466_s6, 16, %s95_s20, [#allocation12]  }
  0x55   :  { %12555 = dma.done.wait [#allocation3], 8192  }
  0x56   :  { %12556 = vsyncadd [#allocation3], 4294959104 }
  0x57   :  { %12557 = dma.done.wait [#allocation6], 131200  }
  0x58   :  { %12558 = vsyncadd [#allocation6], 4294836096 }
  0x59   :  { %12559 = dma.done.wait [#allocation9], 32832  }
  0x5a   :  { %12560 = vsyncadd [#allocation9], 4294934464 }
  0x5b   :  { %12561 = dma.done.wait [#allocation12], 4112  }
  0x5c   :  { %12562 = vsyncadd [#allocation12], 4294963184  ;;  %v272_v0 = vld [vmem:[#allocation5 + $0x1c0] sm:$0xff]  ;;  %v121_v54 = vld [vmem:[#allocation2 + $0x8] sm:$0xff]  ;;  %s12582_s4 = smov [#allocation15]  }
  0x5d   :  { %v276_v1 = vld [vmem:[#allocation5 + $0x1e0] sm:$0xff]  ;;  %v137_v55 = vld [vmem:[#allocation2 + $0x88] sm:$0xff]  ;;  %v123_v59 = vld [vmem:[#allocation2 + $0x18] sm:$0xff]  ;;  %s10550_s6 = sshll.u32 %s12582_s4, 4  ;;  %s10551_s6 = int_to_ptr.vmem [resolvable:$true] %s10550_s6 }
  0x5e   :  { %v400_v2 = vld [vmem:[#allocation5 + $0x5c0] sm:$0xff]  ;;  %v10626_v3 = vcombine.high %v272_v0, %v276_v1  ;;  %v10625_v5 = vcombine.low %v272_v0, %v276_v1  ;;  %v12655_v58 = vpack.c.bf16 %v137_v55, %v121_v54  ;;  %v139_v60 = vld [vmem:[#allocation2 + $0x98] sm:$0xff]  ;;  %s12515_s23 = scalar_lea.vmem %s10551_s6, 2048  ;;  %p12520_p8 = scmp.lt.s32.totalorder %s10551_s6, %s10551_s6 }
  0x5f   :  { %v404_v4 = vld [vmem:[#allocation5 + $0x5e0] sm:$0xff]  ;;  %v12657_v63 = vpack.c.bf16 %v139_v60, %v123_v59  ;;  %p12516_p7 = scmp.ne.s32.totalorder %s10551_s6, %s12515_s23  ;;  %p12521_p9 = scmp.lt.s32.totalorder %s12515_s23, %s12515_s23 }
  0x60   :  { %v264_v6 = vld [vmem:[#allocation5 + $0x180] sm:$0xff]  ;;  %v10754_v8 = vcombine.high %v400_v2, %v404_v4  ;;  %v10753_v9 = vcombine.low %v400_v2, %v404_v4  ;;  %6402 = vmatprep.subr.bf16.mxu0 %v10626_v3  ;;  %13488 = vst [vmem:[#allocation23_spill] sm:$0xff] %v12655_v58  ;;  %6434 = vmatprep.mubr.bf16.mxu0 %v12655_v58 }
  0x61   :  { %v268_v7 = vld [vmem:[#allocation5 + $0x1a0] sm:$0xff]  ;;  %6403 = vmatpush1.bf16.msra.mxu0 %v10625_v5  ;;  %6487 = vmatprep.mubr.bf16.mxu1 %v12657_v63  ;;  %p12522_p10 = por %p12521_p9, %p12520_p8 }
  0x62   :  { %v10618_v10 = vcombine.high %v264_v6, %v268_v7  ;;  %v392_v11 = vld [vmem:[#allocation5 + $0x580] sm:$0xff]  ;;  %6455 = vmatprep.subr.bf16.mxu1 %v10754_v8  ;;  %v10617_v18 = vcombine.low %v264_v6, %v268_v7 }
  0x63   :  { %v396_v12 = vld [vmem:[#allocation5 + $0x5a0] sm:$0xff]  ;;  %6456 = vmatpush1.bf16.msra.mxu1 %v10753_v9  ;;  %p12523_p11 = pnand %p12522_p10, %p12516_p7 }
  0x64   :  { %v256_v13 = vld [vmem:[#allocation5 + $0x140] sm:$0xff]  ;;  %v10746_v14 = vcombine.high %v392_v11, %v396_v12  ;;  %6404 = vmatprep.subr.bf16.mxu0 %v10618_v10  ;;  %v10745_v19 = vcombine.low %v392_v11, %v396_v12 }
  0x65   :  { %v260_v15 = vld [vmem:[#allocation5 + $0x160] sm:$0xff]  ;;  %6405 = vmatpush1.bf16.msra.mxu0 %v10617_v18 }
  0x66   :  { %v384_v16 = vld [vmem:[#allocation5 + $0x540] sm:$0xff]  ;;  %v10610_v20 = vcombine.high %v256_v13, %v260_v15  ;;  %6457 = vmatprep.subr.bf16.mxu1 %v10746_v14  ;;  %v10609_v26 = vcombine.low %v256_v13, %v260_v15 }
  0x67   :  { %v388_v17 = vld [vmem:[#allocation5 + $0x560] sm:$0xff]  ;;  %6458 = vmatpush1.bf16.msra.mxu1 %v10745_v19 }
  0x68   :  { %v10738_v21 = vcombine.high %v384_v16, %v388_v17  ;;  %v248_v22 = vld [vmem:[#allocation5 + $0x100] sm:$0xff]  ;;  %6406 = vmatprep.subr.bf16.mxu0 %v10610_v20  ;;  %v10737_v27 = vcombine.low %v384_v16, %v388_v17 }
  0x69   :  { %v252_v23 = vld [vmem:[#allocation5 + $0x120] sm:$0xff]  ;;  %6407 = vmatpush1.bf16.msra.mxu0 %v10609_v26 }
  0x6a   :  { %v376_v24 = vld [vmem:[#allocation5 + $0x500] sm:$0xff]  ;;  %v10602_v28 = vcombine.high %v248_v22, %v252_v23  ;;  %6459 = vmatprep.subr.bf16.mxu1 %v10738_v21  ;;  %v10601_v34 = vcombine.low %v248_v22, %v252_v23 }
  0x6b   :  { %v380_v25 = vld [vmem:[#allocation5 + $0x520] sm:$0xff]  ;;  %6460 = vmatpush1.bf16.msra.mxu1 %v10737_v27 }
  0x6c   :  { %v10730_v29 = vcombine.high %v376_v24, %v380_v25  ;;  %v240_v30 = vld [vmem:[#allocation5 + $0xc0] sm:$0xff]  ;;  %6408 = vmatprep.subr.bf16.mxu0 %v10602_v28  ;;  %v10729_v35 = vcombine.low %v376_v24, %v380_v25 }
  0x6d   :  { %v244_v31 = vld [vmem:[#allocation5 + $0xe0] sm:$0xff]  ;;  %6409 = vmatpush1.bf16.msra.mxu0 %v10601_v34 }
  0x6e   :  { %v368_v32 = vld [vmem:[#allocation5 + $0x4c0] sm:$0xff]  ;;  %v10594_v36 = vcombine.high %v240_v30, %v244_v31  ;;  %6461 = vmatprep.subr.bf16.mxu1 %v10730_v29  ;;  %v10593_v42 = vcombine.low %v240_v30, %v244_v31 }
  0x6f   :  { %v372_v33 = vld [vmem:[#allocation5 + $0x4e0] sm:$0xff]  ;;  %6462 = vmatpush1.bf16.msra.mxu1 %v10729_v35 }
  0x70   :  { %v10722_v37 = vcombine.high %v368_v32, %v372_v33  ;;  %v232_v38 = vld [vmem:[#allocation5 + $0x80] sm:$0xff]  ;;  %6410 = vmatprep.subr.bf16.mxu0 %v10594_v36  ;;  %v10721_v43 = vcombine.low %v368_v32, %v372_v33 }
  0x71   :  { %v236_v39 = vld [vmem:[#allocation5 + $0xa0] sm:$0xff]  ;;  %6411 = vmatpush1.bf16.msra.mxu0 %v10593_v42 }
  0x72   :  { %v360_v40 = vld [vmem:[#allocation5 + $0x480] sm:$0xff]  ;;  %v10586_v44 = vcombine.high %v232_v38, %v236_v39  ;;  %6463 = vmatprep.subr.bf16.mxu1 %v10722_v37  ;;  %v10585_v50 = vcombine.low %v232_v38, %v236_v39 }
  0x73   :  { %v364_v41 = vld [vmem:[#allocation5 + $0x4a0] sm:$0xff]  ;;  %6464 = vmatpush1.bf16.msra.mxu1 %v10721_v43 }
  0x74   :  { %v10714_v45 = vcombine.high %v360_v40, %v364_v41  ;;  %v224_v46 = vld [vmem:[#allocation5 + $0x40] sm:$0xff]  ;;  %6412 = vmatprep.subr.bf16.mxu0 %v10586_v44  ;;  %v10713_v51 = vcombine.low %v360_v40, %v364_v41 }
  0x75   :  { %v228_v47 = vld [vmem:[#allocation5 + $0x60] sm:$0xff]  ;;  %6413 = vmatpush1.bf16.msra.mxu0 %v10585_v50 }
  0x76   :  { %v352_v48 = vld [vmem:[#allocation5 + $0x440] sm:$0xff]  ;;  %v10578_v52 = vcombine.high %v224_v46, %v228_v47  ;;  %6465 = vmatprep.subr.bf16.mxu1 %v10714_v45  ;;  %v10577_v0 = vcombine.low %v224_v46, %v228_v47 }
  0x77   :  { %v356_v49 = vld [vmem:[#allocation5 + $0x460] sm:$0xff]  ;;  %6466 = vmatpush1.bf16.msra.mxu1 %v10713_v51 }
  0x78   :  { %v216_v53 = vld [vmem:[#allocation5] sm:$0xff]  ;;  %v10706_v56 = vcombine.high %v352_v48, %v356_v49  ;;  %6414 = vmatprep.subr.bf16.mxu0 %v10578_v52  ;;  %v10705_v1 = vcombine.low %v352_v48, %v356_v49 }
  0x79   :  { %v220_v57 = vld [vmem:[#allocation5 + $0x20] sm:$0xff]  ;;  %6415 = vmatpush1.bf16.msra.mxu0 %v10577_v0 }
  0x7a   :  { %v344_v61 = vld [vmem:[#allocation5 + $0x400] sm:$0xff]  ;;  %v10570_v2 = vcombine.high %v216_v53, %v220_v57  ;;  %6467 = vmatprep.subr.bf16.mxu1 %v10706_v56  ;;  %v10569_v8 = vcombine.low %v216_v53, %v220_v57 }
  0x7b   :  { %v348_v62 = vld [vmem:[#allocation5 + $0x420] sm:$0xff]  ;;  %6468 = vmatpush1.bf16.msra.mxu1 %v10705_v1 }
  0x7c   :  { %v10698_v3 = vcombine.high %v344_v61, %v348_v62  ;;  %v336_v4 = vld [vmem:[#allocation5 + $0x3c0] sm:$0xff]  ;;  %6416 = vmatprep.subr.bf16.mxu0 %v10570_v2  ;;  %v10697_v9 = vcombine.low %v344_v61, %v348_v62 }
  0x7d   :  { %v340_v5 = vld [vmem:[#allocation5 + $0x3e0] sm:$0xff]  ;;  %6417 = vmatpush1.bf16.msra.mxu0 %v10569_v8 }
  0x7e   :  { %v464_v6 = vld [vmem:[#allocation5 + $0x7c0] sm:$0xff]  ;;  %v10690_v10 = vcombine.high %v336_v4, %v340_v5  ;;  %6469 = vmatprep.subr.bf16.mxu1 %v10698_v3  ;;  %v10689_v16 = vcombine.low %v336_v4, %v340_v5 }
  0x7f   :  { %v468_v7 = vld [vmem:[#allocation5 + $0x7e0] sm:$0xff]  ;;  %6470 = vmatpush1.bf16.msra.mxu1 %v10697_v9 }
  0x80   :  { %v10818_v11 = vcombine.high %v464_v6, %v468_v7  ;;  %v328_v12 = vld [vmem:[#allocation5 + $0x380] sm:$0xff]  ;;  %6418 = vmatprep.subr.bf16.mxu0 %v10690_v10  ;;  %v10817_v17 = vcombine.low %v464_v6, %v468_v7 }
  0x81   :  { %v332_v13 = vld [vmem:[#allocation5 + $0x3a0] sm:$0xff]  ;;  %6419 = vmatpush2.bf16.msra.mxu0 %v10689_v16 }
  0x82   :  { %v456_v14 = vld [vmem:[#allocation5 + $0x780] sm:$0xff]  ;;  %v10682_v18 = vcombine.high %v328_v12, %v332_v13  ;;  %6471 = vmatprep.subr.bf16.mxu1 %v10818_v11  ;;  %v10681_v24 = vcombine.low %v328_v12, %v332_v13 }
  0x83   :  { %v460_v15 = vld [vmem:[#allocation5 + $0x7a0] sm:$0xff]  ;;  %6472 = vmatpush2.bf16.msra.mxu1 %v10817_v17 }
  0x84   :  { %v10810_v19 = vcombine.high %v456_v14, %v460_v15  ;;  %v320_v20 = vld [vmem:[#allocation5 + $0x340] sm:$0xff]  ;;  %6420 = vmatprep.subr.bf16.mxu0 %v10682_v18  ;;  %v10809_v25 = vcombine.low %v456_v14, %v460_v15  ;;  %v122_v14 = vld [vmem:[#allocation2 + $0x10] sm:$0xff] }
  0x85   :  { %v324_v21 = vld [vmem:[#allocation5 + $0x360] sm:$0xff]  ;;  %6421 = vmatpush2.bf16.msra.mxu0 %v10681_v24  ;;  %v138_v15 = vld [vmem:[#allocation2 + $0x90] sm:$0xff]  ;;  %v169_v24 = vld [vmem:[#allocation2 + $0x188] sm:$0xff] }
  0x86   :  { %v448_v22 = vld [vmem:[#allocation5 + $0x740] sm:$0xff]  ;;  %v10674_v26 = vcombine.high %v320_v20, %v324_v21  ;;  %6473 = vmatprep.subr.bf16.mxu1 %v10810_v19  ;;  %v10673_v32 = vcombine.low %v320_v20, %v324_v21 }
  0x87   :  { %v452_v23 = vld [vmem:[#allocation5 + $0x760] sm:$0xff]  ;;  %6474 = vmatpush2.bf16.msra.mxu1 %v10809_v25  ;;  %v12663_v25 = vpack.c.bf16 %v138_v15, %v122_v14 }
  0x88   :  { %v10802_v27 = vcombine.high %v448_v22, %v452_v23  ;;  %v312_v28 = vld [vmem:[#allocation5 + $0x300] sm:$0xff]  ;;  %6422 = vmatprep.subr.bf16.mxu0 %v10674_v26  ;;  %v10801_v33 = vcombine.low %v448_v22, %v452_v23  ;;  %v153_v23 = vld [vmem:[#allocation2 + $0x108] sm:$0xff] }
  0x89   :  { %v316_v29 = vld [vmem:[#allocation5 + $0x320] sm:$0xff]  ;;  %6423 = vmatpush2.bf16.msra.mxu0 %v10673_v32 }
  0x8a   :  { %v440_v30 = vld [vmem:[#allocation5 + $0x700] sm:$0xff]  ;;  %v10666_v34 = vcombine.high %v312_v28, %v316_v29  ;;  %6475 = vmatprep.subr.bf16.mxu1 %v10802_v27  ;;  %v10665_v40 = vcombine.low %v312_v28, %v316_v29  ;;  %v155_v27 = vld [vmem:[#allocation2 + $0x118] sm:$0xff] }
  0x8b   :  { %v444_v31 = vld [vmem:[#allocation5 + $0x720] sm:$0xff]  ;;  %6476 = vmatpush2.bf16.msra.mxu1 %v10801_v33  ;;  %v171_v28 = vld [vmem:[#allocation2 + $0x198] sm:$0xff] }
  0x8c   :  { %v10794_v35 = vcombine.high %v440_v30, %v444_v31  ;;  %v304_v36 = vld [vmem:[#allocation5 + $0x2c0] sm:$0xff]  ;;  %6424 = vmatprep.subr.bf16.mxu0 %v10666_v34  ;;  %v10793_v41 = vcombine.low %v440_v30, %v444_v31  ;;  %v12665_v34 = vpack.c.bf16 %v169_v24, %v153_v23 }
  0x8d   :  { %v308_v37 = vld [vmem:[#allocation5 + $0x2e0] sm:$0xff]  ;;  %6425 = vmatpush2.bf16.msra.mxu0 %v10665_v40 }
  0x8e   :  { %v432_v38 = vld [vmem:[#allocation5 + $0x6c0] sm:$0xff]  ;;  %v10658_v42 = vcombine.high %v304_v36, %v308_v37  ;;  %6477 = vmatprep.subr.bf16.mxu1 %v10794_v35  ;;  %v10657_v48 = vcombine.low %v304_v36, %v308_v37  ;;  %v12668_v37 = vpack.c.bf16 %v171_v28, %v155_v27 }
  0x8f   :  { %v436_v39 = vld [vmem:[#allocation5 + $0x6e0] sm:$0xff]  ;;  %6478 = vmatpush2.bf16.msra.mxu1 %v10793_v41 }
  0x90   :  { %v10786_v43 = vcombine.high %v432_v38, %v436_v39  ;;  %v296_v44 = vld [vmem:[#allocation5 + $0x280] sm:$0xff]  ;;  %6426 = vmatprep.subr.bf16.mxu0 %v10658_v42  ;;  %v10785_v49 = vcombine.low %v432_v38, %v436_v39 }
  0x91   :  { %v300_v45 = vld [vmem:[#allocation5 + $0x2a0] sm:$0xff]  ;;  %6427 = vmatpush2.bf16.msra.mxu0 %v10657_v48 }
  0x92   :  { %v424_v46 = vld [vmem:[#allocation5 + $0x680] sm:$0xff]  ;;  %v10650_v50 = vcombine.high %v296_v44, %v300_v45  ;;  %6479 = vmatprep.subr.bf16.mxu1 %v10786_v43  ;;  %v10649_v56 = vcombine.low %v296_v44, %v300_v45  ;;  %v154_v43 = vld [vmem:[#allocation2 + $0x110] sm:$0xff] }
  0x93   :  { %v428_v47 = vld [vmem:[#allocation5 + $0x6a0] sm:$0xff]  ;;  %6480 = vmatpush2.bf16.msra.mxu1 %v10785_v49  ;;  %v170_v44 = vld [vmem:[#allocation2 + $0x190] sm:$0xff] }
  0x94   :  { %v10778_v51 = vcombine.high %v424_v46, %v428_v47  ;;  %v288_v52 = vld [vmem:[#allocation5 + $0x240] sm:$0xff]  ;;  %6428 = vmatprep.subr.bf16.mxu0 %v10650_v50  ;;  %v10777_v57 = vcombine.low %v424_v46, %v428_v47 }
  0x95   :  { %v292_v53 = vld [vmem:[#allocation5 + $0x260] sm:$0xff]  ;;  %6429 = vmatpush2.bf16.msra.mxu0 %v10649_v56  ;;  %v143_v56 = vld [vmem:[#allocation2 + $0xb8] sm:$0xff] }
  0x96   :  { %v416_v54 = vld [vmem:[#allocation5 + $0x640] sm:$0xff]  ;;  %v10642_v59 = vcombine.high %v288_v52, %v292_v53  ;;  %6481 = vmatprep.subr.bf16.mxu1 %v10778_v51  ;;  %v10641_v2 = vcombine.low %v288_v52, %v292_v53  ;;  %v125_v51 = vld [vmem:[#allocation2 + $0x28] sm:$0xff] }
  0x97   :  { %v420_v55 = vld [vmem:[#allocation5 + $0x660] sm:$0xff]  ;;  %6482 = vmatpush2.bf16.msra.mxu1 %v10777_v57  ;;  %v141_v52 = vld [vmem:[#allocation2 + $0xa8] sm:$0xff] }
  0x98   :  { %v10770_v60 = vcombine.high %v416_v54, %v420_v55  ;;  %v280_v61 = vld [vmem:[#allocation5 + $0x200] sm:$0xff]  ;;  %6430 = vmatprep.subr.bf16.mxu0 %v10642_v59  ;;  %v10769_v3 = vcombine.low %v416_v54, %v420_v55  ;;  %v12675_v54 = vpack.c.bf16 %v170_v44, %v154_v43  ;;  %v127_v55 = vld [vmem:[#allocation2 + $0x38] sm:$0xff] }
  0x99   :  { %v284_v62 = vld [vmem:[#allocation5 + $0x220] sm:$0xff]  ;;  %6431 = vmatpush2.bf16.msra.mxu0 %v10641_v2 }
  0x9a   :  { %v408_v0 = vld [vmem:[#allocation5 + $0x600] sm:$0xff]  ;;  %v10634_v4 = vcombine.high %v280_v61, %v284_v62  ;;  %6483 = vmatprep.subr.bf16.mxu1 %v10770_v60  ;;  %v10633_v10 = vcombine.low %v280_v61, %v284_v62 }
  0x9b   :  { %v412_v1 = vld [vmem:[#allocation5 + $0x620] sm:$0xff]  ;;  %6484 = vmatpush2.bf16.msra.mxu1 %v10769_v3  ;;  %v12680_v3 = vpack.c.bf16 %v143_v56, %v127_v55 }
  0x9c   :  { %v10762_v5 = vcombine.high %v408_v0, %v412_v1  ;;  %v528_v6 = vld [vmem:[#allocation5 + $0x9c0] sm:$0xff]  ;;  %6432 = vmatprep.subr.bf16.mxu0 %v10634_v4  ;;  %v10761_v13 = vcombine.low %v408_v0, %v412_v1  ;;  %v12677_v0 = vpack.c.bf16 %v141_v52, %v125_v51 }
  0x9d   :  { %v532_v7 = vld [vmem:[#allocation5 + $0x9e0] sm:$0xff]  ;;  %6433 = vmatpush2.bf16.msra.mxu0 %v10633_v10  ;;  %13489 = vst [vmem:[#allocation24_spill] sm:$0xff] %v12680_v3 }
  0x9e   :  { %v656_v8 = vld [vmem:[#allocation5 + $0xdc0] sm:$0xff]  ;;  %v10882_v16 = vcombine.high %v528_v6, %v532_v7  ;;  %6485 = vmatprep.subr.bf16.mxu1 %v10762_v5  ;;  %v10881_v26 = vcombine.low %v528_v6, %v532_v7 }
  0x9f   :  { %v660_v9 = vld [vmem:[#allocation5 + $0xde0] sm:$0xff]  ;;  %6486 = vmatpush2.bf16.msra.mxu1 %v10761_v13 }
  0xa0   :  { %v120_v11 = vld [vmem:[#allocation2] sm:$0xff]  ;;  %v11010_v17 = vcombine.high %v656_v8, %v660_v9  ;;  %6508 = vmatprep.subr.bf16.mxu0 %v10882_v16  ;;  %v11009_v29 = vcombine.low %v656_v8, %v660_v9 }
  0xa1   :  { %v136_v12 = vld [vmem:[#allocation2 + $0x80] sm:$0xff] }
  0xa2   :  { %v520_v18 = vld [vmem:[#allocation5 + $0x980] sm:$0xff]  ;;  %v12661_v21 = vpack.c.bf16 %v136_v12, %v120_v11  ;;  %6561 = vmatprep.subr.bf16.mxu1 %v11010_v17  ;;  %6488 = vmatmul.mubr.bf16.vlgmr.msra.gmra.mxu1 %v12663_v25 }
  0xa3   :  { %v524_v19 = vld [vmem:[#allocation5 + $0x9a0] sm:$0xff]  ;;  %6562 = vmatpush1.bf16.msra.mxu1 %v11009_v29  ;;  %6497 = vmatprep.mubr.bf16.mxu1 %v12668_v37 }
  0xa4   :  { %v648_v20 = vld [vmem:[#allocation5 + $0xd80] sm:$0xff]  ;;  %v10874_v30 = vcombine.high %v520_v18, %v524_v19  ;;  %6435 = vmatmul.mubr.bf16.vlgmr.msra.gmra.mxu0 %v12661_v21  ;;  %v10873_v38 = vcombine.low %v520_v18, %v524_v19 }
  0xa5   :  { %v652_v22 = vld [vmem:[#allocation5 + $0xda0] sm:$0xff]  ;;  %6509 = vmatpush1.bf16.msra.mxu0 %v10881_v26  ;;  %6444 = vmatprep.mubr.bf16.mxu0 %v12665_v34 }
  0xa6   :  { %v11002_v31 = vcombine.high %v648_v20, %v652_v22  ;;  %v512_v32 = vld [vmem:[#allocation5 + $0x940] sm:$0xff]  ;;  %6510 = vmatprep.subr.bf16.mxu0 %v10874_v30  ;;  %v11001_v41 = vcombine.low %v648_v20, %v652_v22 }
  0xa7   :  { %v516_v33 = vld [vmem:[#allocation5 + $0x960] sm:$0xff] }
  0xa8   :  { %v640_v35 = vld [vmem:[#allocation5 + $0xd40] sm:$0xff]  ;;  %v10866_v42 = vcombine.high %v512_v32, %v516_v33  ;;  %6563 = vmatprep.subr.bf16.mxu1 %v11002_v31  ;;  %v10865_v53 = vcombine.low %v512_v32, %v516_v33 }
  0xa9   :  { %v644_v36 = vld [vmem:[#allocation5 + $0xd60] sm:$0xff]  ;;  %6511 = vmatpush1.bf16.msra.mxu0 %v10873_v38  ;;  %6564 = vmatpush1.bf16.msra.mxu1 %v11001_v41 }
  0xaa   :  { %v152_v39 = vld [vmem:[#allocation2 + $0x100] sm:$0xff]  ;;  %v10994_v45 = vcombine.high %v640_v35, %v644_v36  ;;  %6512 = vmatprep.subr.bf16.mxu0 %v10866_v42  ;;  %v10993_v57 = vcombine.low %v640_v35, %v644_v36  ;;  %6498 = vmatmul.mubr.bf16.gmra.mxu1 %v12675_v54 }
  0xab   :  { %v168_v40 = vld [vmem:[#allocation2 + $0x180] sm:$0xff]  ;;  %6593 = vmatprep.mubr.bf16.mxu1 %v12680_v3 }
  0xac   :  { %v504_v46 = vld [vmem:[#allocation5 + $0x900] sm:$0xff]  ;;  %v12672_v50 = vpack.c.bf16 %v168_v40, %v152_v39  ;;  %6565 = vmatprep.subr.bf16.mxu1 %v10994_v45 }
  0xad   :  { %v508_v47 = vld [vmem:[#allocation5 + $0x920] sm:$0xff]  ;;  %6513 = vmatpush1.bf16.msra.mxu0 %v10865_v53  ;;  %6566 = vmatpush1.bf16.msra.mxu1 %v10993_v57 }
  0xae   :  { %v632_v48 = vld [vmem:[#allocation5 + $0xd00] sm:$0xff]  ;;  %v10858_v59 = vcombine.high %v504_v46, %v508_v47  ;;  %6445 = vmatmul.mubr.bf16.gmra.mxu0 %v12672_v50  ;;  %v10857_v4 = vcombine.low %v504_v46, %v508_v47 }
  0xaf   :  { %v636_v49 = vld [vmem:[#allocation5 + $0xd20] sm:$0xff]  ;;  %6540 = vmatprep.mubr.bf16.mxu0 %v12677_v0 }
  0xb0   :  { %v10986_v60 = vcombine.high %v632_v48, %v636_v49  ;;  %v496_v61 = vld [vmem:[#allocation5 + $0x8c0] sm:$0xff]  ;;  %6514 = vmatprep.subr.bf16.mxu0 %v10858_v59  ;;  %v10985_v5 = vcombine.low %v632_v48, %v636_v49 }
  0xb1   :  { %v500_v62 = vld [vmem:[#allocation5 + $0x8e0] sm:$0xff]  ;;  %6515 = vmatpush1.bf16.msra.mxu0 %v10857_v4 }
  0xb2   :  { %v624_v1 = vld [vmem:[#allocation5 + $0xcc0] sm:$0xff]  ;;  %v10850_v6 = vcombine.high %v496_v61, %v500_v62  ;;  %6567 = vmatprep.subr.bf16.mxu1 %v10986_v60  ;;  %v10849_v12 = vcombine.low %v496_v61, %v500_v62 }
  0xb3   :  { %v628_v2 = vld [vmem:[#allocation5 + $0xce0] sm:$0xff]  ;;  %6568 = vmatpush1.bf16.msra.mxu1 %v10985_v5 }
  0xb4   :  { %v10978_v7 = vcombine.high %v624_v1, %v628_v2  ;;  %v488_v8 = vld [vmem:[#allocation5 + $0x880] sm:$0xff]  ;;  %6516 = vmatprep.subr.bf16.mxu0 %v10850_v6  ;;  %v10977_v13 = vcombine.low %v624_v1, %v628_v2 }
  0xb5   :  { %v492_v9 = vld [vmem:[#allocation5 + $0x8a0] sm:$0xff]  ;;  %6517 = vmatpush1.bf16.msra.mxu0 %v10849_v12 }
  0xb6   :  { %v616_v10 = vld [vmem:[#allocation5 + $0xc80] sm:$0xff]  ;;  %v10842_v14 = vcombine.high %v488_v8, %v492_v9  ;;  %6569 = vmatprep.subr.bf16.mxu1 %v10978_v7  ;;  %v10841_v20 = vcombine.low %v488_v8, %v492_v9 }
  0xb7   :  { %v620_v11 = vld [vmem:[#allocation5 + $0xca0] sm:$0xff]  ;;  %6570 = vmatpush1.bf16.msra.mxu1 %v10977_v13 }
  0xb8   :  { %v10970_v15 = vcombine.high %v616_v10, %v620_v11  ;;  %v480_v16 = vld [vmem:[#allocation5 + $0x840] sm:$0xff]  ;;  %6518 = vmatprep.subr.bf16.mxu0 %v10842_v14  ;;  %v10969_v22 = vcombine.low %v616_v10, %v620_v11 }
  0xb9   :  { %v484_v17 = vld [vmem:[#allocation5 + $0x860] sm:$0xff]  ;;  %6519 = vmatpush1.bf16.msra.mxu0 %v10841_v20 }
  0xba   :  { %v608_v18 = vld [vmem:[#allocation5 + $0xc40] sm:$0xff]  ;;  %v10834_v23 = vcombine.high %v480_v16, %v484_v17  ;;  %6571 = vmatprep.subr.bf16.mxu1 %v10970_v15  ;;  %v10833_v30 = vcombine.low %v480_v16, %v484_v17 }
  0xbb   :  { %v612_v19 = vld [vmem:[#allocation5 + $0xc60] sm:$0xff]  ;;  %6572 = vmatpush1.bf16.msra.mxu1 %v10969_v22 }
  0xbc   :  { %v10962_v24 = vcombine.high %v608_v18, %v612_v19  ;;  %v472_v26 = vld [vmem:[#allocation5 + $0x800] sm:$0xff]  ;;  %6520 = vmatprep.subr.bf16.mxu0 %v10834_v23  ;;  %v10961_v31 = vcombine.low %v608_v18, %v612_v19 }
  0xbd   :  { %v476_v27 = vld [vmem:[#allocation5 + $0x820] sm:$0xff]  ;;  %6521 = vmatpush1.bf16.msra.mxu0 %v10833_v30 }
  0xbe   :  { %v600_v28 = vld [vmem:[#allocation5 + $0xc00] sm:$0xff]  ;;  %v10826_v32 = vcombine.high %v472_v26, %v476_v27  ;;  %6573 = vmatprep.subr.bf16.mxu1 %v10962_v24  ;;  %v10825_v40 = vcombine.low %v472_v26, %v476_v27 }
  0xbf   :  { %v604_v29 = vld [vmem:[#allocation5 + $0xc20] sm:$0xff]  ;;  %6574 = vmatpush1.bf16.msra.mxu1 %v10961_v31 }
  0xc0   :  { %v592_v33 = vld [vmem:[#allocation5 + $0xbc0] sm:$0xff]  ;;  %v10954_v38 = vcombine.high %v600_v28, %v604_v29  ;;  %6522 = vmatprep.subr.bf16.mxu0 %v10826_v32  ;;  %v10953_v41 = vcombine.low %v600_v28, %v604_v29 }
  0xc1   :  { %v596_v35 = vld [vmem:[#allocation5 + $0xbe0] sm:$0xff]  ;;  %6523 = vmatpush1.bf16.msra.mxu0 %v10825_v40 }
  0xc2   :  { %v720_v36 = vld [vmem:[#allocation5 + $0xfc0] sm:$0xff]  ;;  %v10946_v42 = vcombine.high %v592_v33, %v596_v35  ;;  %6575 = vmatprep.subr.bf16.mxu1 %v10954_v38  ;;  %v10945_v48 = vcombine.low %v592_v33, %v596_v35 }
  0xc3   :  { %v724_v39 = vld [vmem:[#allocation5 + $0xfe0] sm:$0xff]  ;;  %6576 = vmatpush1.bf16.msra.mxu1 %v10953_v41 }
  0xc4   :  { %v584_v43 = vld [vmem:[#allocation5 + $0xb80] sm:$0xff]  ;;  %v11074_v46 = vcombine.high %v720_v36, %v724_v39  ;;  %6524 = vmatprep.subr.bf16.mxu0 %v10946_v42  ;;  %v11073_v49 = vcombine.low %v720_v36, %v724_v39 }
  0xc5   :  { %v588_v44 = vld [vmem:[#allocation5 + $0xba0] sm:$0xff]  ;;  %6525 = vmatpush2.bf16.msra.mxu0 %v10945_v48 }
  0xc6   :  { %v712_v45 = vld [vmem:[#allocation5 + $0xf80] sm:$0xff]  ;;  %v10938_v51 = vcombine.high %v584_v43, %v588_v44  ;;  %6577 = vmatprep.subr.bf16.mxu1 %v11074_v46  ;;  %v10937_v59 = vcombine.low %v584_v43, %v588_v44 }
  0xc7   :  { %v716_v47 = vld [vmem:[#allocation5 + $0xfa0] sm:$0xff]  ;;  %6578 = vmatpush2.bf16.msra.mxu1 %v11073_v49 }
  0xc8   :  { %v576_v52 = vld [vmem:[#allocation5 + $0xb40] sm:$0xff]  ;;  %v11066_v56 = vcombine.high %v712_v45, %v716_v47  ;;  %6526 = vmatprep.subr.bf16.mxu0 %v10938_v51  ;;  %v11065_v60 = vcombine.low %v712_v45, %v716_v47 }
  0xc9   :  { %v580_v53 = vld [vmem:[#allocation5 + $0xb60] sm:$0xff]  ;;  %6527 = vmatpush2.bf16.msra.mxu0 %v10937_v59 }
  0xca   :  { %v704_v55 = vld [vmem:[#allocation5 + $0xf40] sm:$0xff]  ;;  %v10930_v61 = vcombine.high %v576_v52, %v580_v53  ;;  %6579 = vmatprep.subr.bf16.mxu1 %v11066_v56  ;;  %v10929_v6 = vcombine.low %v576_v52, %v580_v53  ;;  %v126_v53 = vld [vmem:[#allocation2 + $0x30] sm:$0xff] }
  0xcb   :  { %v708_v57 = vld [vmem:[#allocation5 + $0xf60] sm:$0xff]  ;;  %6580 = vmatpush2.bf16.msra.mxu1 %v11065_v60 }
  0xcc   :  { %v568_v62 = vld [vmem:[#allocation5 + $0xb00] sm:$0xff]  ;;  %v11058_v4 = vcombine.high %v704_v55, %v708_v57  ;;  %6528 = vmatprep.subr.bf16.mxu0 %v10930_v61  ;;  %v11057_v7 = vcombine.low %v704_v55, %v708_v57  ;;  %v142_v55 = vld [vmem:[#allocation2 + $0xb0] sm:$0xff] }
  0xcd   :  { %v572_v1 = vld [vmem:[#allocation5 + $0xb20] sm:$0xff]  ;;  %6529 = vmatpush2.bf16.msra.mxu0 %v10929_v6 }
  0xce   :  { %v696_v2 = vld [vmem:[#allocation5 + $0xf00] sm:$0xff]  ;;  %v10922_v8 = vcombine.high %v568_v62, %v572_v1  ;;  %6581 = vmatprep.subr.bf16.mxu1 %v11058_v4  ;;  %v10921_v14 = vcombine.low %v568_v62, %v572_v1 }
  0xcf   :  { %v700_v5 = vld [vmem:[#allocation5 + $0xf20] sm:$0xff]  ;;  %6582 = vmatpush2.bf16.msra.mxu1 %v11057_v7  ;;  %v12687_v7 = vpack.c.bf16 %v142_v55, %v126_v53 }
  0xd0   :  { %v560_v9 = vld [vmem:[#allocation5 + $0xac0] sm:$0xff]  ;;  %v11050_v12 = vcombine.high %v696_v2, %v700_v5  ;;  %6530 = vmatprep.subr.bf16.mxu0 %v10922_v8  ;;  %v11049_v15 = vcombine.low %v696_v2, %v700_v5  ;;  %v157_v2 = vld [vmem:[#allocation2 + $0x128] sm:$0xff] }
  0xd1   :  { %v564_v10 = vld [vmem:[#allocation5 + $0xae0] sm:$0xff]  ;;  %6531 = vmatpush2.bf16.msra.mxu0 %v10921_v14  ;;  %v173_v5 = vld [vmem:[#allocation2 + $0x1a8] sm:$0xff] }
  0xd2   :  { %v688_v11 = vld [vmem:[#allocation5 + $0xec0] sm:$0xff]  ;;  %v10914_v16 = vcombine.high %v560_v9, %v564_v10  ;;  %6583 = vmatprep.subr.bf16.mxu1 %v11050_v12  ;;  %v10913_v23 = vcombine.low %v560_v9, %v564_v10  ;;  %v159_v9 = vld [vmem:[#allocation2 + $0x138] sm:$0xff]  ;;  %v12689_v14 = vpack.c.bf16 %v173_v5, %v157_v2 }
  0xd3   :  { %v692_v13 = vld [vmem:[#allocation5 + $0xee0] sm:$0xff]  ;;  %6584 = vmatpush2.bf16.msra.mxu1 %v11049_v15  ;;  %v175_v10 = vld [vmem:[#allocation2 + $0x1b8] sm:$0xff] }
  0xd4   :  { %v552_v17 = vld [vmem:[#allocation5 + $0xa80] sm:$0xff]  ;;  %v11042_v20 = vcombine.high %v688_v11, %v692_v13  ;;  %6532 = vmatprep.subr.bf16.mxu0 %v10914_v16  ;;  %v11041_v24 = vcombine.low %v688_v11, %v692_v13 }
  0xd5   :  { %v556_v18 = vld [vmem:[#allocation5 + $0xaa0] sm:$0xff]  ;;  %6533 = vmatpush2.bf16.msra.mxu0 %v10913_v23  ;;  %v158_v23 = vld [vmem:[#allocation2 + $0x130] sm:$0xff] }
  0xd6   :  { %v680_v19 = vld [vmem:[#allocation5 + $0xe80] sm:$0xff]  ;;  %v10906_v26 = vcombine.high %v552_v17, %v556_v18  ;;  %6585 = vmatprep.subr.bf16.mxu1 %v11042_v20  ;;  %v10905_v32 = vcombine.low %v552_v17, %v556_v18 }
  0xd7   :  { %v684_v22 = vld [vmem:[#allocation5 + $0xea0] sm:$0xff]  ;;  %6586 = vmatpush2.bf16.msra.mxu1 %v11041_v24  ;;  %v174_v24 = vld [vmem:[#allocation2 + $0x1b0] sm:$0xff] }
  0xd8   :  { %v544_v27 = vld [vmem:[#allocation5 + $0xa40] sm:$0xff]  ;;  %v11034_v30 = vcombine.high %v680_v19, %v684_v22  ;;  %6534 = vmatprep.subr.bf16.mxu0 %v10906_v26  ;;  %v11033_v33 = vcombine.low %v680_v19, %v684_v22  ;;  %v12692_v22 = vpack.c.bf16 %v175_v10, %v159_v9 }
  0xd9   :  { %v548_v28 = vld [vmem:[#allocation5 + $0xa60] sm:$0xff]  ;;  %6535 = vmatpush2.bf16.msra.mxu0 %v10905_v32 }
  0xda   :  { %v672_v29 = vld [vmem:[#allocation5 + $0xe40] sm:$0xff]  ;;  %v10898_v35 = vcombine.high %v544_v27, %v548_v28  ;;  %6587 = vmatprep.subr.bf16.mxu1 %v11034_v30  ;;  %v10897_v42 = vcombine.low %v544_v27, %v548_v28 }
  0xdb   :  { %v676_v31 = vld [vmem:[#allocation5 + $0xe60] sm:$0xff]  ;;  %6588 = vmatpush2.bf16.msra.mxu1 %v11033_v33  ;;  %v129_v33 = vld [vmem:[#allocation2 + $0x48] sm:$0xff] }
  0xdc   :  { %v536_v36 = vld [vmem:[#allocation5 + $0xa00] sm:$0xff]  ;;  %v11026_v40 = vcombine.high %v672_v29, %v676_v31  ;;  %6536 = vmatprep.subr.bf16.mxu0 %v10898_v35  ;;  %v11025_v43 = vcombine.low %v672_v29, %v676_v31 }
  0xdd   :  { %v540_v38 = vld [vmem:[#allocation5 + $0xa20] sm:$0xff]  ;;  %6537 = vmatpush2.bf16.msra.mxu0 %v10897_v42  ;;  %v147_v42 = vld [vmem:[#allocation2 + $0xd8] sm:$0xff] }
  0xde   :  { %v664_v39 = vld [vmem:[#allocation5 + $0xe00] sm:$0xff]  ;;  %v10890_v44 = vcombine.high %v536_v36, %v540_v38  ;;  %6589 = vmatprep.subr.bf16.mxu1 %v11026_v40  ;;  %v10889_v56 = vcombine.low %v536_v36, %v540_v38  ;;  %v145_v36 = vld [vmem:[#allocation2 + $0xc8] sm:$0xff]  ;;  %v12699_v40 = vpack.c.bf16 %v174_v24, %v158_v23 }
  0xdf   :  { %v668_v41 = vld [vmem:[#allocation5 + $0xe20] sm:$0xff]  ;;  %6590 = vmatpush2.bf16.msra.mxu1 %v11025_v43 }
  0xe0   :  { %v784_v45 = vld [vmem:[#allocation5 + $0x11c0] sm:$0xff]  ;;  %v11018_v48 = vcombine.high %v664_v39, %v668_v41  ;;  %6538 = vmatprep.subr.bf16.mxu0 %v10890_v44  ;;  %v11017_v60 = vcombine.low %v664_v39, %v668_v41  ;;  %v131_v41 = vld [vmem:[#allocation2 + $0x58] sm:$0xff] }
  0xe1   :  { %v788_v46 = vld [vmem:[#allocation5 + $0x11e0] sm:$0xff]  ;;  %6539 = vmatpush2.bf16.msra.mxu0 %v10889_v56 }
  0xe2   :  { %v912_v47 = vld [vmem:[#allocation5 + $0x15c0] sm:$0xff]  ;;  %v11138_v61 = vcombine.high %v784_v45, %v788_v46  ;;  %6591 = vmatprep.subr.bf16.mxu1 %v11018_v48  ;;  %v11137_v8 = vcombine.low %v784_v45, %v788_v46  ;;  %v12701_v48 = vpack.c.bf16 %v145_v36, %v129_v33 }
  0xe3   :  { %v124_v49 = vld [vmem:[#allocation2 + $0x20] sm:$0xff]  ;;  %6592 = vmatpush2.bf16.msra.mxu1 %v11017_v60 }
  0xe4   :  { %v140_v51 = vld [vmem:[#allocation2 + $0xa0] sm:$0xff]  ;;  %6614 = vmatprep.subr.bf16.mxu0 %v11138_v61 }
  0xe5   :  { %v916_v52 = vld [vmem:[#allocation5 + $0x15e0] sm:$0xff]  ;;  %v12685_v6 = vpack.c.bf16 %v140_v51, %v124_v49 }
  0xe6   :  { %v776_v57 = vld [vmem:[#allocation5 + $0x1180] sm:$0xff]  ;;  %v11266_v4 = vcombine.high %v912_v47, %v916_v52  ;;  %v11265_v11 = vcombine.low %v912_v47, %v916_v52  ;;  %6594 = vmatmul.mubr.bf16.vlgmr.msra.gmra.mxu1 %v12687_v7  ;;  %v12704_v52 = vpack.c.bf16 %v147_v42, %v131_v41 }
  0xe7   :  { %v780_v59 = vld [vmem:[#allocation5 + $0x11a0] sm:$0xff]  ;;  %6541 = vmatmul.mubr.bf16.vlgmr.msra.gmra.mxu0 %v12685_v6  ;;  %6603 = vmatprep.mubr.bf16.mxu1 %v12692_v22 }
  0xe8   :  { %v904_v62 = vld [vmem:[#allocation5 + $0x1580] sm:$0xff]  ;;  %v11130_v12 = vcombine.high %v776_v57, %v780_v59  ;;  %6667 = vmatprep.subr.bf16.mxu1 %v11266_v4  ;;  %6615 = vmatpush1.bf16.msra.mxu0 %v11137_v8  ;;  %v11129_v26 = vcombine.low %v776_v57, %v780_v59 }
  0xe9   :  { %v908_v1 = vld [vmem:[#allocation5 + $0x15a0] sm:$0xff]  ;;  %6668 = vmatpush1.bf16.msra.mxu1 %v11265_v11  ;;  %6550 = vmatprep.mubr.bf16.mxu0 %v12689_v14 }
  0xea   :  { %v11258_v13 = vcombine.high %v904_v62, %v908_v1  ;;  %v156_v15 = vld [vmem:[#allocation2 + $0x120] sm:$0xff]  ;;  %6616 = vmatprep.subr.bf16.mxu0 %v11130_v12  ;;  %v11257_v29 = vcombine.low %v904_v62, %v908_v1 }
  0xeb   :  { %v172_v16 = vld [vmem:[#allocation2 + $0x1a0] sm:$0xff] }
  0xec   :  { %v768_v17 = vld [vmem:[#allocation5 + $0x1140] sm:$0xff]  ;;  %6669 = vmatprep.subr.bf16.mxu1 %v11258_v13  ;;  %v12696_v38 = vpack.c.bf16 %v172_v16, %v156_v15  ;;  %6617 = vmatpush1.bf16.msra.mxu0 %v11129_v26 }
  0xed   :  { %v772_v18 = vld [vmem:[#allocation5 + $0x1160] sm:$0xff]  ;;  %6670 = vmatpush1.bf16.msra.mxu1 %v11257_v29 }
  0xee   :  { %v896_v19 = vld [vmem:[#allocation5 + $0x1540] sm:$0xff]  ;;  %v11122_v30 = vcombine.high %v768_v17, %v772_v18  ;;  %v11121_v39 = vcombine.low %v768_v17, %v772_v18  ;;  %6604 = vmatmul.mubr.bf16.gmra.mxu1 %v12699_v40 }
  0xef   :  { %v900_v20 = vld [vmem:[#allocation5 + $0x1560] sm:$0xff]  ;;  %6551 = vmatmul.mubr.bf16.gmra.mxu0 %v12696_v38  ;;  %6699 = vmatprep.mubr.bf16.mxu1 %v12704_v52 }
  0xf0   :  { %v760_v27 = vld [vmem:[#allocation5 + $0x1100] sm:$0xff]  ;;  %v11250_v35 = vcombine.high %v896_v19, %v900_v20  ;;  %6618 = vmatprep.subr.bf16.mxu0 %v11122_v30  ;;  %v11249_v43 = vcombine.low %v896_v19, %v900_v20  ;;  %6646 = vmatprep.mubr.bf16.mxu0 %v12701_v48 }
  0xf1   :  { %v764_v28 = vld [vmem:[#allocation5 + $0x1120] sm:$0xff]  ;;  %6619 = vmatpush1.bf16.msra.mxu0 %v11121_v39 }
  0xf2   :  { %v888_v31 = vld [vmem:[#allocation5 + $0x1500] sm:$0xff]  ;;  %v11114_v44 = vcombine.high %v760_v27, %v764_v28  ;;  %6671 = vmatprep.subr.bf16.mxu1 %v11250_v35  ;;  %v11113_v53 = vcombine.low %v760_v27, %v764_v28 }
  0xf3   :  { %v892_v32 = vld [vmem:[#allocation5 + $0x1520] sm:$0xff]  ;;  %6672 = vmatpush1.bf16.msra.mxu1 %v11249_v43 }
  0xf4   :  { %v11242_v45 = vcombine.high %v888_v31, %v892_v32  ;;  %v752_v46 = vld [vmem:[#allocation5 + $0x10c0] sm:$0xff]  ;;  %6620 = vmatprep.subr.bf16.mxu0 %v11114_v44  ;;  %v11241_v55 = vcombine.low %v888_v31, %v892_v32 }
  0xf5   :  { %v756_v47 = vld [vmem:[#allocation5 + $0x10e0] sm:$0xff]  ;;  %6621 = vmatpush1.bf16.msra.mxu0 %v11113_v53 }
  0xf6   :  { %v880_v49 = vld [vmem:[#allocation5 + $0x14c0] sm:$0xff]  ;;  %v11106_v56 = vcombine.high %v752_v46, %v756_v47  ;;  %6673 = vmatprep.subr.bf16.mxu1 %v11242_v45  ;;  %v11105_v1 = vcombine.low %v752_v46, %v756_v47 }
  0xf7   :  { %v884_v51 = vld [vmem:[#allocation5 + $0x14e0] sm:$0xff]  ;;  %6674 = vmatpush1.bf16.msra.mxu1 %v11241_v55 }
  0xf8   :  { %v744_v57 = vld [vmem:[#allocation5 + $0x1080] sm:$0xff]  ;;  %v11234_v61 = vcombine.high %v880_v49, %v884_v51  ;;  %6622 = vmatprep.subr.bf16.mxu0 %v11106_v56  ;;  %v11233_v2 = vcombine.low %v880_v49, %v884_v51 }
  0xf9   :  { %v748_v59 = vld [vmem:[#allocation5 + $0x10a0] sm:$0xff]  ;;  %6623 = vmatpush1.bf16.msra.mxu0 %v11105_v1 }
  0xfa   :  { %v872_v60 = vld [vmem:[#allocation5 + $0x1480] sm:$0xff]  ;;  %v11098_v4 = vcombine.high %v744_v57, %v748_v59  ;;  %6675 = vmatprep.subr.bf16.mxu1 %v11234_v61  ;;  %v11097_v12 = vcombine.low %v744_v57, %v748_v59 }
  0xfb   :  { %v876_v62 = vld [vmem:[#allocation5 + $0x14a0] sm:$0xff]  ;;  %6676 = vmatpush1.bf16.msra.mxu1 %v11233_v2 }
  0xfc   :  { %v736_v5 = vld [vmem:[#allocation5 + $0x1040] sm:$0xff]  ;;  %v11226_v10 = vcombine.high %v872_v60, %v876_v62  ;;  %6624 = vmatprep.subr.bf16.mxu0 %v11098_v4  ;;  %v11225_v13 = vcombine.low %v872_v60, %v876_v62 }
  0xfd   :  { %v740_v8 = vld [vmem:[#allocation5 + $0x1060] sm:$0xff]  ;;  %6625 = vmatpush1.bf16.msra.mxu0 %v11097_v12 }
  0xfe   :  { %v864_v9 = vld [vmem:[#allocation5 + $0x1440] sm:$0xff]  ;;  %v11090_v15 = vcombine.high %v736_v5, %v740_v8  ;;  %6677 = vmatprep.subr.bf16.mxu1 %v11226_v10  ;;  %v11089_v23 = vcombine.low %v736_v5, %v740_v8 }
  0xff   :  { %v868_v11 = vld [vmem:[#allocation5 + $0x1460] sm:$0xff]  ;;  %6678 = vmatpush1.bf16.msra.mxu1 %v11225_v13 }
 0x100   :  { %v728_v16 = vld [vmem:[#allocation5 + $0x1000] sm:$0xff]  ;;  %v11218_v19 = vcombine.high %v864_v9, %v868_v11  ;;  %6626 = vmatprep.subr.bf16.mxu0 %v11090_v15  ;;  %v11217_v24 = vcombine.low %v864_v9, %v868_v11 }
 0x101   :  { %v732_v17 = vld [vmem:[#allocation5 + $0x1020] sm:$0xff]  ;;  %6627 = vmatpush1.bf16.msra.mxu0 %v11089_v23 }
 0x102   :  { %v856_v18 = vld [vmem:[#allocation5 + $0x1400] sm:$0xff]  ;;  %v11082_v26 = vcombine.high %v728_v16, %v732_v17  ;;  %6679 = vmatprep.subr.bf16.mxu1 %v11218_v19  ;;  %v11081_v32 = vcombine.low %v728_v16, %v732_v17 }
 0x103   :  { %v860_v20 = vld [vmem:[#allocation5 + $0x1420] sm:$0xff]  ;;  %6680 = vmatpush1.bf16.msra.mxu1 %v11217_v24 }
 0x104   :  { %v848_v27 = vld [vmem:[#allocation5 + $0x13c0] sm:$0xff]  ;;  %v11210_v30 = vcombine.high %v856_v18, %v860_v20  ;;  %6628 = vmatprep.subr.bf16.mxu0 %v11082_v26  ;;  %v11209_v33 = vcombine.low %v856_v18, %v860_v20 }
 0x105   :  { %v852_v28 = vld [vmem:[#allocation5 + $0x13e0] sm:$0xff]  ;;  %6629 = vmatpush1.bf16.msra.mxu0 %v11081_v32 }
 0x106   :  { %v976_v29 = vld [vmem:[#allocation5 + $0x17c0] sm:$0xff]  ;;  %v11202_v35 = vcombine.high %v848_v27, %v852_v28  ;;  %6681 = vmatprep.subr.bf16.mxu1 %v11210_v30  ;;  %v11201_v44 = vcombine.low %v848_v27, %v852_v28 }
 0x107   :  { %v980_v31 = vld [vmem:[#allocation5 + $0x17e0] sm:$0xff]  ;;  %6682 = vmatpush1.bf16.msra.mxu1 %v11209_v33 }
 0x108   :  { %v840_v36 = vld [vmem:[#allocation5 + $0x1380] sm:$0xff]  ;;  %v11330_v42 = vcombine.high %v976_v29, %v980_v31  ;;  %6630 = vmatprep.subr.bf16.mxu0 %v11202_v35  ;;  %v11329_v45 = vcombine.low %v976_v29, %v980_v31 }
 0x109   :  { %v844_v39 = vld [vmem:[#allocation5 + $0x13a0] sm:$0xff]  ;;  %6631 = vmatpush2.bf16.msra.mxu0 %v11201_v44 }
 0x10a   :  { %v968_v41 = vld [vmem:[#allocation5 + $0x1780] sm:$0xff]  ;;  %v11194_v46 = vcombine.high %v840_v36, %v844_v39  ;;  %6683 = vmatprep.subr.bf16.mxu1 %v11330_v42  ;;  %v11193_v56 = vcombine.low %v840_v36, %v844_v39 }
 0x10b   :  { %v972_v43 = vld [vmem:[#allocation5 + $0x17a0] sm:$0xff]  ;;  %6684 = vmatpush2.bf16.msra.mxu1 %v11329_v45 }
 0x10c   :  { %v832_v47 = vld [vmem:[#allocation5 + $0x1340] sm:$0xff]  ;;  %v11322_v53 = vcombine.high %v968_v41, %v972_v43  ;;  %6632 = vmatprep.subr.bf16.mxu0 %v11194_v46  ;;  %v11321_v57 = vcombine.low %v968_v41, %v972_v43 }
 0x10d   :  { %v836_v49 = vld [vmem:[#allocation5 + $0x1360] sm:$0xff]  ;;  %6633 = vmatpush2.bf16.msra.mxu0 %v11193_v56 }
 0x10e   :  { %v960_v51 = vld [vmem:[#allocation5 + $0x1740] sm:$0xff]  ;;  %v11186_v59 = vcombine.high %v832_v47, %v836_v49  ;;  %6685 = vmatprep.subr.bf16.mxu1 %v11322_v53  ;;  %v11185_v4 = vcombine.low %v832_v47, %v836_v49 }
 0x10f   :  { %v964_v55 = vld [vmem:[#allocation5 + $0x1760] sm:$0xff]  ;;  %6686 = vmatpush2.bf16.msra.mxu1 %v11321_v57 }
 0x110   :  { %v824_v60 = vld [vmem:[#allocation5 + $0x1300] sm:$0xff]  ;;  %v11314_v1 = vcombine.high %v960_v51, %v964_v55  ;;  %6634 = vmatprep.subr.bf16.mxu0 %v11186_v59  ;;  %v11313_v5 = vcombine.low %v960_v51, %v964_v55 }
 0x111   :  { %v828_v61 = vld [vmem:[#allocation5 + $0x1320] sm:$0xff]  ;;  %6635 = vmatpush2.bf16.msra.mxu0 %v11185_v4 }
 0x112   :  { %v952_v62 = vld [vmem:[#allocation5 + $0x1700] sm:$0xff]  ;;  %v11178_v8 = vcombine.high %v824_v60, %v828_v61  ;;  %6687 = vmatprep.subr.bf16.mxu1 %v11314_v1  ;;  %v11177_v15 = vcombine.low %v824_v60, %v828_v61  ;;  %v130_v61 = vld [vmem:[#allocation2 + $0x50] sm:$0xff] }
 0x113   :  { %v956_v2 = vld [vmem:[#allocation5 + $0x1720] sm:$0xff]  ;;  %6688 = vmatpush2.bf16.msra.mxu1 %v11313_v5 }
 0x114   :  { %v816_v9 = vld [vmem:[#allocation5 + $0x12c0] sm:$0xff]  ;;  %v11306_v12 = vcombine.high %v952_v62, %v956_v2  ;;  %6636 = vmatprep.subr.bf16.mxu0 %v11178_v8  ;;  %v11305_v16 = vcombine.low %v952_v62, %v956_v2  ;;  %v146_v62 = vld [vmem:[#allocation2 + $0xd0] sm:$0xff] }
 0x115   :  { %v820_v10 = vld [vmem:[#allocation5 + $0x12e0] sm:$0xff]  ;;  %6637 = vmatpush2.bf16.msra.mxu0 %v11177_v15  ;;  %v163_v15 = vld [vmem:[#allocation2 + $0x158] sm:$0xff] }
 0x116   :  { %v944_v11 = vld [vmem:[#allocation5 + $0x16c0] sm:$0xff]  ;;  %v11170_v17 = vcombine.high %v816_v9, %v820_v10  ;;  %6689 = vmatprep.subr.bf16.mxu1 %v11306_v12  ;;  %v11169_v26 = vcombine.low %v816_v9, %v820_v10  ;;  %v177_v12 = vld [vmem:[#allocation2 + $0x1c8] sm:$0xff] }
 0x117   :  { %v948_v13 = vld [vmem:[#allocation5 + $0x16e0] sm:$0xff]  ;;  %6690 = vmatpush2.bf16.msra.mxu1 %v11305_v16  ;;  %v179_v16 = vld [vmem:[#allocation2 + $0x1d8] sm:$0xff] }
 0x118   :  { %v808_v18 = vld [vmem:[#allocation5 + $0x1280] sm:$0xff]  ;;  %v11298_v23 = vcombine.high %v944_v11, %v948_v13  ;;  %6638 = vmatprep.subr.bf16.mxu0 %v11170_v17  ;;  %v11297_v27 = vcombine.low %v944_v11, %v948_v13  ;;  %v161_v11 = vld [vmem:[#allocation2 + $0x148] sm:$0xff] }
 0x119   :  { %v812_v19 = vld [vmem:[#allocation5 + $0x12a0] sm:$0xff]  ;;  %6639 = vmatpush2.bf16.msra.mxu0 %v11169_v26 }
 0x11a   :  { %v936_v20 = vld [vmem:[#allocation5 + $0x1680] sm:$0xff]  ;;  %v11162_v28 = vcombine.high %v808_v18, %v812_v19  ;;  %6691 = vmatprep.subr.bf16.mxu1 %v11298_v23  ;;  %v11161_v35 = vcombine.low %v808_v18, %v812_v19  ;;  %v12711_v18 = vpack.c.bf16 %v146_v62, %v130_v61 }
 0x11b   :  { %v940_v24 = vld [vmem:[#allocation5 + $0x16a0] sm:$0xff]  ;;  %6692 = vmatpush2.bf16.msra.mxu1 %v11297_v27 }
 0x11c   :  { %v800_v29 = vld [vmem:[#allocation5 + $0x1240] sm:$0xff]  ;;  %v11290_v32 = vcombine.high %v936_v20, %v940_v24  ;;  %6640 = vmatprep.subr.bf16.mxu0 %v11162_v28  ;;  %v11289_v36 = vcombine.low %v936_v20, %v940_v24 }
 0x11d   :  { %v804_v30 = vld [vmem:[#allocation5 + $0x1260] sm:$0xff]  ;;  %6641 = vmatpush2.bf16.msra.mxu0 %v11161_v35  ;;  %v162_v35 = vld [vmem:[#allocation2 + $0x150] sm:$0xff] }
 0x11e   :  { %v928_v31 = vld [vmem:[#allocation5 + $0x1640] sm:$0xff]  ;;  %v11154_v39 = vcombine.high %v800_v29, %v804_v30  ;;  %6693 = vmatprep.subr.bf16.mxu1 %v11290_v32  ;;  %v11153_v46 = vcombine.low %v800_v29, %v804_v30  ;;  %v12713_v29 = vpack.c.bf16 %v177_v12, %v161_v11 }
 0x11f   :  { %v932_v33 = vld [vmem:[#allocation5 + $0x1660] sm:$0xff]  ;;  %6694 = vmatpush2.bf16.msra.mxu1 %v11289_v36  ;;  %v178_v36 = vld [vmem:[#allocation2 + $0x1d0] sm:$0xff] }
 0x120   :  { %v792_v41 = vld [vmem:[#allocation5 + $0x1200] sm:$0xff]  ;;  %v11282_v44 = vcombine.high %v928_v31, %v932_v33  ;;  %6642 = vmatprep.subr.bf16.mxu0 %v11154_v39  ;;  %v11281_v47 = vcombine.low %v928_v31, %v932_v33  ;;  %v12716_v33 = vpack.c.bf16 %v179_v16, %v163_v15 }
 0x121   :  { %v796_v42 = vld [vmem:[#allocation5 + $0x1220] sm:$0xff]  ;;  %6643 = vmatpush2.bf16.msra.mxu0 %v11153_v46 }
 0x122   :  { %v920_v43 = vld [vmem:[#allocation5 + $0x1600] sm:$0xff]  ;;  %v11146_v49 = vcombine.high %v792_v41, %v796_v42  ;;  %6695 = vmatprep.subr.bf16.mxu1 %v11282_v44  ;;  %v11145_v1 = vcombine.low %v792_v41, %v796_v42 }
 0x123   :  { %v924_v45 = vld [vmem:[#allocation5 + $0x1620] sm:$0xff]  ;;  %6696 = vmatpush2.bf16.msra.mxu1 %v11281_v47  ;;  %v133_v47 = vld [vmem:[#allocation2 + $0x68] sm:$0xff] }
 0x124   :  { %v1040_v51 = vld [vmem:[#allocation5 + $0x19c0] sm:$0xff]  ;;  %v11274_v56 = vcombine.high %v920_v43, %v924_v45  ;;  %6644 = vmatprep.subr.bf16.mxu0 %v11146_v49  ;;  %v11273_v5 = vcombine.low %v920_v43, %v924_v45  ;;  %v149_v49 = vld [vmem:[#allocation2 + $0xe8] sm:$0xff] }
 0x125   :  { %v1044_v53 = vld [vmem:[#allocation5 + $0x19e0] sm:$0xff]  ;;  %6645 = vmatpush2.bf16.msra.mxu0 %v11145_v1 }
 0x126   :  { %v1168_v55 = vld [vmem:[#allocation5 + $0x1dc0] sm:$0xff]  ;;  %v11394_v8 = vcombine.high %v1040_v51, %v1044_v53  ;;  %6697 = vmatprep.subr.bf16.mxu1 %v11274_v56  ;;  %v11393_v19 = vcombine.low %v1040_v51, %v1044_v53  ;;  %v135_v53 = vld [vmem:[#allocation2 + $0x78] sm:$0xff] }
 0x127   :  { %v128_v57 = vld [vmem:[#allocation2 + $0x40] sm:$0xff]  ;;  %6698 = vmatpush2.bf16.msra.mxu1 %v11273_v5 }
 0x128   :  { %v144_v59 = vld [vmem:[#allocation2 + $0xc0] sm:$0xff]  ;;  %6720 = vmatprep.subr.bf16.mxu0 %v11394_v8  ;;  %v12725_v8 = vpack.c.bf16 %v149_v49, %v133_v47 }
 0x129   :  { %v1172_v60 = vld [vmem:[#allocation5 + $0x1de0] sm:$0xff]  ;;  %v12709_v17 = vpack.c.bf16 %v144_v59, %v128_v57  ;;  %v12723_v59 = vpack.c.bf16 %v178_v36, %v162_v35 }
 0x12a   :  { %v1032_v2 = vld [vmem:[#allocation5 + $0x1980] sm:$0xff]  ;;  %v11522_v13 = vcombine.high %v1168_v55, %v1172_v60  ;;  %v11521_v20 = vcombine.low %v1168_v55, %v1172_v60  ;;  %6700 = vmatmul.mubr.bf16.vlgmr.msra.gmra.mxu1 %v12711_v18  ;;  %v151_v55 = vld [vmem:[#allocation2 + $0xf8] sm:$0xff] }
 0x12b   :  { %v1036_v4 = vld [vmem:[#allocation5 + $0x19a0] sm:$0xff]  ;;  %6647 = vmatmul.mubr.bf16.vlgmr.msra.gmra.mxu0 %v12709_v17  ;;  %6709 = vmatprep.mubr.bf16.mxu1 %v12716_v33 }
 0x12c   :  { %v1160_v9 = vld [vmem:[#allocation5 + $0x1d80] sm:$0xff]  ;;  %v11386_v23 = vcombine.high %v1032_v2, %v1036_v4  ;;  %6773 = vmatprep.subr.bf16.mxu1 %v11522_v13  ;;  %6721 = vmatpush1.bf16.msra.mxu0 %v11393_v19  ;;  %v11385_v39 = vcombine.low %v1032_v2, %v1036_v4 }
 0x12d   :  { %v1164_v10 = vld [vmem:[#allocation5 + $0x1da0] sm:$0xff]  ;;  %6774 = vmatpush1.bf16.msra.mxu1 %v11521_v20  ;;  %6656 = vmatprep.mubr.bf16.mxu0 %v12713_v29 }
 0x12e   :  { %v1024_v24 = vld [vmem:[#allocation5 + $0x1940] sm:$0xff]  ;;  %v11514_v28 = vcombine.high %v1160_v9, %v1164_v10  ;;  %6722 = vmatprep.subr.bf16.mxu0 %v11386_v23  ;;  %v11513_v43 = vcombine.low %v1160_v9, %v1164_v10  ;;  %v12728_v9 = vpack.c.bf16 %v151_v55, %v135_v53 }
 0x12f   :  { %v1028_v26 = vld [vmem:[#allocation5 + $0x1960] sm:$0xff] }
 0x130   :  { %v1152_v27 = vld [vmem:[#allocation5 + $0x1d40] sm:$0xff]  ;;  %v11378_v44 = vcombine.high %v1024_v24, %v1028_v26  ;;  %6775 = vmatprep.subr.bf16.mxu1 %v11514_v28  ;;  %6723 = vmatpush1.bf16.msra.mxu0 %v11385_v39  ;;  %v11377_v57 = vcombine.low %v1024_v24, %v1028_v26 }
 0x131   :  { %v160_v30 = vld [vmem:[#allocation2 + $0x140] sm:$0xff]  ;;  %6776 = vmatpush1.bf16.msra.mxu1 %v11513_v43 }
 0x132   :  { %v176_v31 = vld [vmem:[#allocation2 + $0x1c0] sm:$0xff]  ;;  %6724 = vmatprep.subr.bf16.mxu0 %v11378_v44  ;;  %6710 = vmatmul.mubr.bf16.gmra.mxu1 %v12723_v59 }
 0x133   :  { %v1156_v32 = vld [vmem:[#allocation5 + $0x1d60] sm:$0xff]  ;;  %v12720_v56 = vpack.c.bf16 %v176_v31, %v160_v30  ;;  %6805 = vmatprep.mubr.bf16.mxu1 %v12728_v9 }
 0x134   :  { %v1016_v41 = vld [vmem:[#allocation5 + $0x1900] sm:$0xff]  ;;  %v11506_v51 = vcombine.high %v1152_v27, %v1156_v32  ;;  %v11505_v60 = vcombine.low %v1152_v27, %v1156_v32  ;;  %6725 = vmatpush1.bf16.msra.mxu0 %v11377_v57 }
 0x135   :  { %v1020_v42 = vld [vmem:[#allocation5 + $0x1920] sm:$0xff]  ;;  %6657 = vmatmul.mubr.bf16.gmra.mxu0 %v12720_v56 }
 0x136   :  { %v1144_v45 = vld [vmem:[#allocation5 + $0x1d00] sm:$0xff]  ;;  %v11370_v61 = vcombine.high %v1016_v41, %v1020_v42  ;;  %6777 = vmatprep.subr.bf16.mxu1 %v11506_v51  ;;  %v11369_v10 = vcombine.low %v1016_v41, %v1020_v42  ;;  %6752 = vmatprep.mubr.bf16.mxu0 %v12725_v8 }
 0x137   :  { %v1148_v46 = vld [vmem:[#allocation5 + $0x1d20] sm:$0xff]  ;;  %6778 = vmatpush1.bf16.msra.mxu1 %v11505_v60 }
 0x138   :  { %v1008_v62 = vld [vmem:[#allocation5 + $0x18c0] sm:$0xff]  ;;  %v11498_v4 = vcombine.high %v1144_v45, %v1148_v46  ;;  %6726 = vmatprep.subr.bf16.mxu0 %v11370_v61  ;;  %v11497_v11 = vcombine.low %v1144_v45, %v1148_v46 }
 0x139   :  { %v1012_v1 = vld [vmem:[#allocation5 + $0x18e0] sm:$0xff]  ;;  %6727 = vmatpush1.bf16.msra.mxu0 %v11369_v10 }
 0x13a   :  { %v1136_v2 = vld [vmem:[#allocation5 + $0x1cc0] sm:$0xff]  ;;  %v11362_v12 = vcombine.high %v1008_v62, %v1012_v1  ;;  %6779 = vmatprep.subr.bf16.mxu1 %v11498_v4  ;;  %v11361_v23 = vcombine.low %v1008_v62, %v1012_v1 }
 0x13b   :  { %v1140_v5 = vld [vmem:[#allocation5 + $0x1ce0] sm:$0xff]  ;;  %6780 = vmatpush1.bf16.msra.mxu1 %v11497_v11 }
 0x13c   :  { %v1000_v13 = vld [vmem:[#allocation5 + $0x1880] sm:$0xff]  ;;  %v11490_v19 = vcombine.high %v1136_v2, %v1140_v5  ;;  %6728 = vmatprep.subr.bf16.mxu0 %v11362_v12  ;;  %v11489_v24 = vcombine.low %v1136_v2, %v1140_v5 }
 0x13d   :  { %v1004_v15 = vld [vmem:[#allocation5 + $0x18a0] sm:$0xff]  ;;  %6729 = vmatpush1.bf16.msra.mxu0 %v11361_v23 }
 0x13e   :  { %v1128_v16 = vld [vmem:[#allocation5 + $0x1c80] sm:$0xff]  ;;  %v11354_v26 = vcombine.high %v1000_v13, %v1004_v15  ;;  %6781 = vmatprep.subr.bf16.mxu1 %v11490_v19  ;;  %v11353_v35 = vcombine.low %v1000_v13, %v1004_v15 }
 0x13f   :  { %v1132_v20 = vld [vmem:[#allocation5 + $0x1ca0] sm:$0xff]  ;;  %6782 = vmatpush1.bf16.msra.mxu1 %v11489_v24 }
 0x140   :  { %v992_v27 = vld [vmem:[#allocation5 + $0x1840] sm:$0xff]  ;;  %v11482_v31 = vcombine.high %v1128_v16, %v1132_v20  ;;  %6730 = vmatprep.subr.bf16.mxu0 %v11354_v26  ;;  %v11481_v36 = vcombine.low %v1128_v16, %v1132_v20 }
 0x141   :  { %v996_v28 = vld [vmem:[#allocation5 + $0x1860] sm:$0xff]  ;;  %6731 = vmatpush1.bf16.msra.mxu0 %v11353_v35 }
 0x142   :  { %v1120_v30 = vld [vmem:[#allocation5 + $0x1c40] sm:$0xff]  ;;  %v11346_v39 = vcombine.high %v992_v27, %v996_v28  ;;  %6783 = vmatprep.subr.bf16.mxu1 %v11482_v31  ;;  %v11345_v46 = vcombine.low %v992_v27, %v996_v28 }
 0x143   :  { %v1124_v32 = vld [vmem:[#allocation5 + $0x1c60] sm:$0xff]  ;;  %6784 = vmatpush1.bf16.msra.mxu1 %v11481_v36 }
 0x144   :  { %v984_v41 = vld [vmem:[#allocation5 + $0x1800] sm:$0xff]  ;;  %v11474_v44 = vcombine.high %v1120_v30, %v1124_v32  ;;  %6732 = vmatprep.subr.bf16.mxu0 %v11346_v39  ;;  %v11473_v47 = vcombine.low %v1120_v30, %v1124_v32 }
 0x145   :  { %v988_v42 = vld [vmem:[#allocation5 + $0x1820] sm:$0xff]  ;;  %6733 = vmatpush1.bf16.msra.mxu0 %v11345_v46 }
 0x146   :  { %v1112_v43 = vld [vmem:[#allocation5 + $0x1c00] sm:$0xff]  ;;  %v11338_v49 = vcombine.high %v984_v41, %v988_v42  ;;  %6785 = vmatprep.subr.bf16.mxu1 %v11474_v44  ;;  %v11337_v61 = vcombine.low %v984_v41, %v988_v42 }
 0x147   :  { %v1116_v45 = vld [vmem:[#allocation5 + $0x1c20] sm:$0xff]  ;;  %6786 = vmatpush1.bf16.msra.mxu1 %v11473_v47 }
 0x148   :  { %v1104_v51 = vld [vmem:[#allocation5 + $0x1bc0] sm:$0xff]  ;;  %v11466_v57 = vcombine.high %v1112_v43, %v1116_v45  ;;  %6734 = vmatprep.subr.bf16.mxu0 %v11338_v49  ;;  %v11465_v62 = vcombine.low %v1112_v43, %v1116_v45 }
 0x149   :  { %v1108_v53 = vld [vmem:[#allocation5 + $0x1be0] sm:$0xff]  ;;  %6735 = vmatpush1.bf16.msra.mxu0 %v11337_v61 }
 0x14a   :  { %v1232_v55 = vld [vmem:[#allocation5 + $0x1fc0] sm:$0xff]  ;;  %v11458_v1 = vcombine.high %v1104_v51, %v1108_v53  ;;  %6787 = vmatprep.subr.bf16.mxu1 %v11466_v57  ;;  %v11457_v12 = vcombine.low %v1104_v51, %v1108_v53 }
 0x14b   :  { %v1236_v60 = vld [vmem:[#allocation5 + $0x1fe0] sm:$0xff]  ;;  %6788 = vmatpush1.bf16.msra.mxu1 %v11465_v62 }
 0x14c   :  { %v1096_v2 = vld [vmem:[#allocation5 + $0x1b80] sm:$0xff]  ;;  %v11586_v10 = vcombine.high %v1232_v55, %v1236_v60  ;;  %6736 = vmatprep.subr.bf16.mxu0 %v11458_v1  ;;  %v11585_v13 = vcombine.low %v1232_v55, %v1236_v60 }
 0x14d   :  { %v1100_v4 = vld [vmem:[#allocation5 + $0x1ba0] sm:$0xff]  ;;  %6737 = vmatpush2.bf16.msra.mxu0 %v11457_v12 }
 0x14e   :  { %v1224_v5 = vld [vmem:[#allocation5 + $0x1f80] sm:$0xff]  ;;  %v11450_v15 = vcombine.high %v1096_v2, %v1100_v4  ;;  %6789 = vmatprep.subr.bf16.mxu1 %v11586_v10  ;;  %v11449_v26 = vcombine.low %v1096_v2, %v1100_v4 }
 0x14f   :  { %v1228_v11 = vld [vmem:[#allocation5 + $0x1fa0] sm:$0xff]  ;;  %6790 = vmatpush2.bf16.msra.mxu1 %v11585_v13 }
 0x150   :  { %v1088_v16 = vld [vmem:[#allocation5 + $0x1b40] sm:$0xff]  ;;  %v11578_v23 = vcombine.high %v1224_v5, %v1228_v11  ;;  %6738 = vmatprep.subr.bf16.mxu0 %v11450_v15  ;;  %v11577_v27 = vcombine.low %v1224_v5, %v1228_v11  ;;  %v1242_v15 = vlaneseq }
 0x151   :  { %v1092_v19 = vld [vmem:[#allocation5 + $0x1b60] sm:$0xff]  ;;  %6739 = vmatpush2.bf16.msra.mxu0 %v11449_v26 }
 0x152   :  { %v1216_v20 = vld [vmem:[#allocation5 + $0x1f40] sm:$0xff]  ;;  %v11442_v28 = vcombine.high %v1088_v16, %v1092_v19  ;;  %6791 = vmatprep.subr.bf16.mxu1 %v11578_v23  ;;  %v11441_v39 = vcombine.low %v1088_v16, %v1092_v19 }
 0x153   :  { %v1220_v24 = vld [vmem:[#allocation5 + $0x1f60] sm:$0xff]  ;;  %6792 = vmatpush2.bf16.msra.mxu1 %v11577_v27 }
 0x154   :  { %v1080_v30 = vld [vmem:[#allocation5 + $0x1b00] sm:$0xff]  ;;  %v11570_v35 = vcombine.high %v1216_v20, %v1220_v24  ;;  %6740 = vmatprep.subr.bf16.mxu0 %v11442_v28  ;;  %v11569_v41 = vcombine.low %v1216_v20, %v1220_v24 }
 0x155   :  { %v1084_v31 = vld [vmem:[#allocation5 + $0x1b20] sm:$0xff]  ;;  %6741 = vmatpush2.bf16.msra.mxu0 %v11441_v39  ;;  %v277_v39 = vld [vmem:[#allocation5 + $0x1e8] sm:$0xff] }
 0x156   :  { %v1208_v32 = vld [vmem:[#allocation5 + $0x1f00] sm:$0xff]  ;;  %v11434_v42 = vcombine.high %v1080_v30, %v1084_v31  ;;  %6793 = vmatprep.subr.bf16.mxu1 %v11570_v35  ;;  %v11433_v49 = vcombine.low %v1080_v30, %v1084_v31  ;;  %v12733_v30 = vshrl.u32 %v1242_v15, 7 }
 0x157   :  { %v1212_v36 = vld [vmem:[#allocation5 + $0x1f20] sm:$0xff]  ;;  %6794 = vmatpush2.bf16.msra.mxu1 %v11569_v41  ;;  %v401_v41 = vld [vmem:[#allocation5 + $0x5c8] sm:$0xff] }
 0x158   :  { %v1072_v43 = vld [vmem:[#allocation5 + $0x1ac0] sm:$0xff]  ;;  %v11562_v46 = vcombine.high %v1208_v32, %v1212_v36  ;;  %6742 = vmatprep.subr.bf16.mxu0 %v11434_v42  ;;  %v11561_v51 = vcombine.low %v1208_v32, %v1212_v36  ;;  %13490 = vst [vmem:[#allocation25_spill] sm:$0xff] %v12733_v30  ;;  %v273_v36 = vld [vmem:[#allocation5 + $0x1c8] sm:$0xff] }
 0x159   :  { %v1076_v44 = vld [vmem:[#allocation5 + $0x1ae0] sm:$0xff]  ;;  %6743 = vmatpush2.bf16.msra.mxu0 %v11433_v49  ;;  %v134_v49 = vld [vmem:[#allocation2 + $0x70] sm:$0xff]  ;;  %v10627_v15 = vcombine.low %v273_v36, %v277_v39 }
 0x15a   :  { %v1200_v45 = vld [vmem:[#allocation5 + $0x1ec0] sm:$0xff]  ;;  %v11426_v53 = vcombine.high %v1072_v43, %v1076_v44  ;;  %6795 = vmatprep.subr.bf16.mxu1 %v11562_v46  ;;  %v11425_v1 = vcombine.low %v1072_v43, %v1076_v44  ;;  %v13470_v43 = vsub.s32 0, %v12733_v30  ;;  %v405_v46 = vld [vmem:[#allocation5 + $0x5e8] sm:$0xff] }
 0x15b   :  { %v1204_v47 = vld [vmem:[#allocation5 + $0x1ee0] sm:$0xff]  ;;  %6796 = vmatpush2.bf16.msra.mxu1 %v11561_v51  ;;  %v150_v51 = vld [vmem:[#allocation2 + $0xf0] sm:$0xff] }
 0x15c   :  { %v1064_v55 = vld [vmem:[#allocation5 + $0x1a80] sm:$0xff]  ;;  %v11554_v61 = vcombine.high %v1200_v45, %v1204_v47  ;;  %6744 = vmatprep.subr.bf16.mxu0 %v11426_v53  ;;  %v11553_v2 = vcombine.low %v1200_v45, %v1204_v47 }
 0x15d   :  { %v1068_v57 = vld [vmem:[#allocation5 + $0x1aa0] sm:$0xff]  ;;  %6745 = vmatpush2.bf16.msra.mxu0 %v11425_v1  ;;  %v397_v1 = vld [vmem:[#allocation5 + $0x5a8] sm:$0xff] }
 0x15e   :  { %v1192_v60 = vld [vmem:[#allocation5 + $0x1e80] sm:$0xff]  ;;  %v11418_v4 = vcombine.high %v1064_v55, %v1068_v57  ;;  %6797 = vmatprep.subr.bf16.mxu1 %v11554_v61  ;;  %v11417_v16 = vcombine.low %v1064_v55, %v1068_v57  ;;  %v12736_v55 = vld [vmem:[#allocation5 + $0x188] sm:$0xff]  ;;  %v10628_v61 = vcombine.high %v273_v36, %v277_v39 }
 0x15f   :  { %v1196_v62 = vld [vmem:[#allocation5 + $0x1ea0] sm:$0xff]  ;;  %6798 = vmatpush2.bf16.msra.mxu1 %v11553_v2  ;;  %v12738_v57 = vld [vmem:[#allocation5 + $0x1a8] sm:$0xff] }
 0x160   :  { %v1056_v5 = vld [vmem:[#allocation5 + $0x1a40] sm:$0xff]  ;;  %v11546_v12 = vcombine.high %v1192_v60, %v1196_v62  ;;  %6746 = vmatprep.subr.bf16.mxu0 %v11418_v4  ;;  %v11545_v19 = vcombine.low %v1192_v60, %v1196_v62  ;;  %v393_v62 = vld [vmem:[#allocation5 + $0x588] sm:$0xff]  ;;  %v10756_v4 = vcombine.high %v401_v41, %v405_v46 }
 0x161   :  { %v1060_v10 = vld [vmem:[#allocation5 + $0x1a60] sm:$0xff]  ;;  %6747 = vmatpush2.bf16.msra.mxu0 %v11417_v16  ;;  %v165_v2 = vld [vmem:[#allocation2 + $0x168] sm:$0xff]  ;;  %v167_v16 = vld [vmem:[#allocation2 + $0x178] sm:$0xff] }
 0x162   :  { %v1184_v11 = vld [vmem:[#allocation5 + $0x1e40] sm:$0xff]  ;;  %v11410_v20 = vcombine.high %v1056_v5, %v1060_v10  ;;  %6799 = vmatprep.subr.bf16.mxu1 %v11546_v12  ;;  %v11409_v31 = vcombine.low %v1056_v5, %v1060_v10  ;;  %v13469_v5 = vsub.s32 1, %v12733_v30  ;;  %v181_v10 = vld [vmem:[#allocation2 + $0x1e8] sm:$0xff] }
 0x163   :  { %v1188_v13 = vld [vmem:[#allocation5 + $0x1e60] sm:$0xff]  ;;  %6800 = vmatpush2.bf16.msra.mxu1 %v11545_v19  ;;  %v183_v19 = vld [vmem:[#allocation2 + $0x1f8] sm:$0xff]  ;;  %v389_v36 = vld [vmem:[#allocation5 + $0x568] sm:$0xff] }
 0x164   :  { %v1048_v23 = vld [vmem:[#allocation5 + $0x1a00] sm:$0xff]  ;;  %v11538_v27 = vcombine.high %v1184_v11, %v1188_v13  ;;  %6748 = vmatprep.subr.bf16.mxu0 %v11410_v20  ;;  %v11537_v32 = vcombine.low %v1184_v11, %v1188_v13  ;;  %v12747_v13 = vpack.c.bf16 %v150_v51, %v134_v49  ;;  %v10755_v20 = vcombine.low %v401_v41, %v405_v46 }
 0x165   :  { %v1052_v24 = vld [vmem:[#allocation5 + $0x1a20] sm:$0xff]  ;;  %6749 = vmatpush2.bf16.msra.mxu0 %v11409_v31  ;;  %v261_v31 = vld [vmem:[#allocation5 + $0x168] sm:$0xff]  ;;  %v12758_v39 = vpack.c.bf16 %v183_v19, %v167_v16  ;;  %v10747_v49 = vcombine.low %v393_v62, %v397_v1 }
 0x166   :  { %v1176_v26 = vld [vmem:[#allocation5 + $0x1e00] sm:$0xff]  ;;  %v11402_v35 = vcombine.high %v1048_v23, %v1052_v24  ;;  %6801 = vmatprep.subr.bf16.mxu1 %v11538_v27  ;;  %v11401_v53 = vcombine.low %v1048_v23, %v1052_v24  ;;  %v10620_v23 = vcombine.high %v12736_v55, %v12738_v57  ;;  %v12755_v27 = vpack.c.bf16 %v181_v10, %v165_v2 }
 0x167   :  { %v1180_v28 = vld [vmem:[#allocation5 + $0x1e20] sm:$0xff]  ;;  %6802 = vmatpush2.bf16.msra.mxu1 %v11537_v32  ;;  %v6436_v32 = vpop.f32.mrf.mxu0 }
 0x168   :  { %v11530_v42 = vcombine.high %v1176_v26, %v1180_v28  ;;  %v132_v44 = vld [vmem:[#allocation2 + $0x60] sm:$0xff]  ;;  %6750 = vmatprep.subr.bf16.mxu0 %v11402_v35  ;;  %v11529_v60 = vcombine.low %v1176_v26, %v1180_v28  ;;  %v10748_v26 = vcombine.high %v393_v62, %v397_v1  ;;  %v257_v28 = vld [vmem:[#allocation5 + $0x148] sm:$0xff] }
 0x169   :  { %v148_v45 = vld [vmem:[#allocation2 + $0xe0] sm:$0xff]  ;;  %6751 = vmatpush2.bf16.msra.mxu0 %v11401_v53  ;;  %v385_v35 = vld [vmem:[#allocation5 + $0x548] sm:$0xff]  ;;  %v10612_v51 = vcombine.high %v257_v28, %v261_v31  ;;  %v166_v53 = vld [vmem:[#allocation2 + $0x170] sm:$0xff] }
 0x16a   :  { %v1240_v47 = vld [vmem:[#allocation7] sm:$0xff]  ;;  %6803 = vmatprep.subr.bf16.mxu1 %v11530_v42  ;;  %v12741_v11 = vpack.c.bf16 %v148_v45, %v132_v44  ;;  %6826 = vmatprep.subr.bf16.mxu0 %v10628_v61  ;;  %v6489_v42 = vpop.f32.mrf.mxu1  ;;  %v10619_v44 = vcombine.low %v12736_v55, %v12738_v57  ;;  %v10740_v10 = vcombine.high %v385_v35, %v389_v36  ;;  %v253_v55 = vld [vmem:[#allocation5 + $0x128] sm:$0xff] }
 0x16b   :  { %v12745_v12 = vrot.slane %v1240_v47, %v13470_v43  ;;  %6804 = vmatpush2.bf16.msra.mxu1 %v11529_v60  ;;  %v12753_v24 = vrot.slane %v1240_v47, %v13469_v5  ;;  %v164_v45 = vld [vmem:[#allocation2 + $0x160] sm:$0xff]  ;;  %v6438_v47 = vpop.f32.mrf.mxu0  ;;  %v182_v60 = vld [vmem:[#allocation2 + $0x1f0] sm:$0xff]  ;;  %v377_v62 = vld [vmem:[#allocation5 + $0x508] sm:$0xff] }
 0x16c   :  { %6879 = vmatprep.subr.bf16.mxu1 %v10756_v4  ;;  %6753 = vmatmul.mubr.bf16.vlgmr.msra.gmra.mxu0 %v12741_v11  ;;  %v180_v46 = vld [vmem:[#allocation2 + $0x1e0] sm:$0xff]  ;;  %v6491_v4 = vpop.f32.mrf.mxu1  ;;  %v381_v1 = vld [vmem:[#allocation5 + $0x528] sm:$0xff] }
 0x16d   :  { %13491 = vst [vmem:[#allocation26_spill] sm:$0xff] %v12753_v24  ;;  %v6437_v41 = vadd.f32 %v6436_v32, %v12745_v12  ;;  %6827 = vmatpush1.bf16.msra.mxu0 %v10627_v15  ;;  %v6439_v2 = vadd.f32 %v6438_v47, %v12753_v24  ;;  %6762 = vmatprep.mubr.bf16.mxu0 %v12755_v27  ;;  %v249_v15 = vld [vmem:[#allocation5 + $0x108] sm:$0xff]  ;;  %v6440_v57 = vpop.f32.mrf.mxu0 }
 0x16e   :  { %6806 = vmatmul.mubr.bf16.vlgmr.msra.gmra.mxu1 %v12747_v13  ;;  %6828 = vmatprep.subr.bf16.mxu0 %v10620_v23  ;;  %v12768_v16 = vpack.c.bf16 %v180_v46, %v164_v45  ;;  %v6493_v23 = vpop.f32.mrf.mxu1  ;;  %v10611_v32 = vcombine.low %v257_v28, %v261_v31  ;;  %v10604_v45 = vcombine.high %v249_v15, %v253_v55  ;;  %v245_v5 = vld [vmem:[#allocation5 + $0xe8] sm:$0xff] }
 0x16f   :  { %6880 = vmatpush1.bf16.msra.mxu1 %v10755_v20  ;;  %v12764_v61 = vadd.f32 %v6489_v42, %v6437_v41  ;;  %6815 = vmatprep.mubr.bf16.mxu1 %v12758_v39  ;;  %v12771_v19 = vadd.f32 %v6491_v4, %v6439_v2  ;;  %v6441_v20 = vadd.f32 %v6440_v57, %v12745_v12  ;;  %v12776_v41 = vpop.f32.mrf.mxu0  ;;  %v241_v4 = vld [vmem:[#allocation5 + $0xc8] sm:$0xff] }
 0x170   :  { %6881 = vmatprep.subr.bf16.mxu1 %v10748_v26  ;;  %v12774_v26 = vpack.c.bf16 %v182_v60, %v166_v53  ;;  %13492 = vst [vmem:[#allocation27_spill] sm:$0xff] %v12776_v41  ;;  %v10739_v42 = vcombine.low %v385_v35, %v389_v36  ;;  %v12780_v47 = vpop.f32.mrf.mxu1  ;;  %v10732_v2 = vcombine.high %v377_v62, %v381_v1  ;;  %v373_v28 = vld [vmem:[#allocation5 + $0x4e8] sm:$0xff] }
 0x171   :  { %6829 = vmatpush1.bf16.msra.mxu0 %v10619_v44  ;;  %v12778_v46 = vadd.f32 %v6493_v23, %v6441_v20  ;;  %13493 = vst [vmem:[#allocation28_spill] sm:$0xff] %v12780_v47  ;;  %v369_v44 = vld [vmem:[#allocation5 + $0x4c8] sm:$0xff]  ;;  %v6446_v31 = vpop.f32.mrf.mxu0  ;;  %v10596_v53 = vcombine.high %v241_v4, %v245_v5 }
 0x172   :  { %6830 = vmatprep.subr.bf16.mxu0 %v10612_v51  ;;  %v6447_v35 = vadd.f32 %v6446_v31, %v12745_v12  ;;  %v6499_v36 = vpop.f32.mrf.mxu1  ;;  %v10731_v51 = vcombine.low %v377_v62, %v381_v1  ;;  %v233_v57 = vld [vmem:[#allocation5 + $0x88] sm:$0xff]  ;;  %v10595_v62 = vcombine.low %v241_v4, %v245_v5 }
 0x173   :  { %6882 = vmatpush1.bf16.msra.mxu1 %v10747_v49  ;;  %v10603_v49 = vcombine.low %v249_v15, %v253_v55  ;;  %v6448_v60 = vpop.f32.mrf.mxu0  ;;  %v237_v20 = vld [vmem:[#allocation5 + $0xa8] sm:$0xff] }
 0x174   :  { %6883 = vmatprep.subr.bf16.mxu1 %v10740_v10  ;;  %6763 = vmatmul.mubr.bf16.gmra.mxu0 %v12768_v16  ;;  %v10724_v10 = vcombine.high %v369_v44, %v373_v28  ;;  %v6449_v23 = vadd.f32 %v6448_v60, %v12753_v24  ;;  %v12786_v43 = vadd.f32 %v6499_v36, %v6447_v35  ;;  %v361_v15 = vld [vmem:[#allocation5 + $0x488] sm:$0xff] }
 0x175   :  { %6831 = vmatpush1.bf16.msra.mxu0 %v10611_v32  ;;  %v6501_v32 = vpop.f32.mrf.mxu1  ;;  %6858 = vmatprep.mubr.bf16.mxu0 %v12655_v58  ;;  %v365_v55 = vld [vmem:[#allocation5 + $0x4a8] sm:$0xff]  ;;  %v6450_v31 = vpop.f32.mrf.mxu0 }
 0x176   :  { %6816 = vmatmul.mubr.bf16.gmra.mxu1 %v12774_v26  ;;  %6832 = vmatprep.subr.bf16.mxu0 %v10604_v45  ;;  %v6451_v1 = vadd.f32 %v6450_v31, %v12745_v12  ;;  %v10723_v45 = vcombine.low %v369_v44, %v373_v28  ;;  %v10716_v36 = vcombine.high %v361_v15, %v365_v55  ;;  %v225_v60 = vld [vmem:[#allocation5 + $0x48] sm:$0xff] }
 0x177   :  { %6884 = vmatpush1.bf16.msra.mxu1 %v10739_v42  ;;  %6911 = vmatprep.mubr.bf16.mxu1 %v12657_v63  ;;  %v12791_v42 = vadd.f32 %v6501_v32, %v6449_v23  ;;  %v6503_v35 = vpop.f32.mrf.mxu1  ;;  %v229_v47 = vld [vmem:[#allocation5 + $0x68] sm:$0xff]  ;;  %v10715_v5 = vcombine.low %v361_v15, %v365_v55 }
 0x178   :  { %6885 = vmatprep.subr.bf16.mxu1 %v10732_v2  ;;  %v10588_v2 = vcombine.high %v233_v57, %v237_v20  ;;  %v12793_v41 = vadd.f32 %v6503_v35, %v6451_v1  ;;  %v353_v24 = vld [vmem:[#allocation5 + $0x448] sm:$0xff]  ;;  %v10580_v12 = vcombine.high %v225_v60, %v229_v47 }
 0x179   :  { %6833 = vmatpush1.bf16.msra.mxu0 %v10603_v49  ;;  %v357_v58 = vld [vmem:[#allocation5 + $0x468] sm:$0xff]  ;;  %v10587_v49 = vcombine.low %v233_v57, %v237_v20 }
 0x17a   :  { %6834 = vmatprep.subr.bf16.mxu0 %v10596_v53  ;;  %v10708_v4 = vcombine.high %v353_v24, %v357_v58  ;;  %v221_v44 = vld [vmem:[#allocation5 + $0x28] sm:$0xff]  ;;  %v10707_v23 = vcombine.low %v353_v24, %v357_v58 }
 0x17b   :  { %6886 = vmatpush1.bf16.msra.mxu1 %v10731_v51  ;;  %v217_v51 = vld [vmem:[#allocation5 + $0x8] sm:$0xff] }
 0x17c   :  { %6887 = vmatprep.subr.bf16.mxu1 %v10724_v10  ;;  %v345_v28 = vld [vmem:[#allocation5 + $0x408] sm:$0xff]  ;;  %v10579_v10 = vcombine.low %v225_v60, %v229_v47  ;;  %v10572_v32 = vcombine.high %v217_v51, %v221_v44  ;;  %v10571_v15 = vcombine.low %v217_v51, %v221_v44 }
 0x17d   :  { %6835 = vmatpush1.bf16.msra.mxu0 %v10595_v62  ;;  %v349_v53 = vld [vmem:[#allocation5 + $0x428] sm:$0xff] }
 0x17e   :  { %6836 = vmatprep.subr.bf16.mxu0 %v10588_v2  ;;  %v10700_v31 = vcombine.high %v345_v28, %v349_v53  ;;  %v337_v62 = vld [vmem:[#allocation5 + $0x3c8] sm:$0xff]  ;;  %v10699_v55 = vcombine.low %v345_v28, %v349_v53 }
 0x17f   :  { %6888 = vmatpush1.bf16.msra.mxu1 %v10723_v45  ;;  %v341_v57 = vld [vmem:[#allocation5 + $0x3e8] sm:$0xff] }
 0x180   :  { %6889 = vmatprep.subr.bf16.mxu1 %v10716_v36  ;;  %v465_v20 = vld [vmem:[#allocation5 + $0x7c8] sm:$0xff]  ;;  %v10692_v45 = vcombine.high %v337_v62, %v341_v57  ;;  %v10691_v58 = vcombine.low %v337_v62, %v341_v57 }
 0x181   :  { %6837 = vmatpush1.bf16.msra.mxu0 %v10587_v49  ;;  %v469_v1 = vld [vmem:[#allocation5 + $0x7e8] sm:$0xff] }
 0x182   :  { %6838 = vmatprep.subr.bf16.mxu0 %v10580_v12  ;;  %v10820_v2 = vcombine.high %v465_v20, %v469_v1  ;;  %v329_v35 = vld [vmem:[#allocation5 + $0x388] sm:$0xff]  ;;  %v10819_v24 = vcombine.low %v465_v20, %v469_v1 }
 0x183   :  { %6890 = vmatpush1.bf16.msra.mxu1 %v10715_v5  ;;  %v333_v47 = vld [vmem:[#allocation5 + $0x3a8] sm:$0xff] }
 0x184   :  { %6891 = vmatprep.subr.bf16.mxu1 %v10708_v4  ;;  %v457_v36 = vld [vmem:[#allocation5 + $0x788] sm:$0xff]  ;;  %v10684_v49 = vcombine.high %v329_v35, %v333_v47  ;;  %v10683_v28 = vcombine.low %v329_v35, %v333_v47 }
 0x185   :  { %6839 = vmatpush1.bf16.msra.mxu0 %v10579_v10  ;;  %v461_v60 = vld [vmem:[#allocation5 + $0x7a8] sm:$0xff] }
 0x186   :  { %6840 = vmatprep.subr.bf16.mxu0 %v10572_v32  ;;  %v10812_v5 = vcombine.high %v457_v36, %v461_v60  ;;  %v321_v12 = vld [vmem:[#allocation5 + $0x348] sm:$0xff]  ;;  %v10811_v53 = vcombine.low %v457_v36, %v461_v60 }
 0x187   :  { %6892 = vmatpush1.bf16.msra.mxu1 %v10707_v23  ;;  %v325_v4 = vld [vmem:[#allocation5 + $0x368] sm:$0xff] }
 0x188   :  { %6893 = vmatprep.subr.bf16.mxu1 %v10700_v31  ;;  %v449_v51 = vld [vmem:[#allocation5 + $0x748] sm:$0xff]  ;;  %v10676_v10 = vcombine.high %v321_v12, %v325_v4  ;;  %v10675_v20 = vcombine.low %v321_v12, %v325_v4 }
 0x189   :  { %6841 = vmatpush1.bf16.msra.mxu0 %v10571_v15  ;;  %v453_v44 = vld [vmem:[#allocation5 + $0x768] sm:$0xff] }
 0x18a   :  { %6842 = vmatprep.subr.bf16.mxu0 %v10692_v45  ;;  %v10804_v23 = vcombine.high %v449_v51, %v453_v44  ;;  %v313_v32 = vld [vmem:[#allocation5 + $0x308] sm:$0xff]  ;;  %v10803_v1 = vcombine.low %v449_v51, %v453_v44 }
 0x18b   :  { %6894 = vmatpush1.bf16.msra.mxu1 %v10699_v55  ;;  %v317_v31 = vld [vmem:[#allocation5 + $0x328] sm:$0xff] }
 0x18c   :  { %6895 = vmatprep.subr.bf16.mxu1 %v10820_v2  ;;  %v441_v62 = vld [vmem:[#allocation5 + $0x708] sm:$0xff]  ;;  %v10668_v15 = vcombine.high %v313_v32, %v317_v31  ;;  %v10667_v36 = vcombine.low %v313_v32, %v317_v31 }
 0x18d   :  { %6843 = vmatpush2.bf16.msra.mxu0 %v10691_v58  ;;  %v445_v57 = vld [vmem:[#allocation5 + $0x728] sm:$0xff] }
 0x18e   :  { %6844 = vmatprep.subr.bf16.mxu0 %v10684_v49  ;;  %v10796_v55 = vcombine.high %v441_v62, %v445_v57  ;;  %v305_v45 = vld [vmem:[#allocation5 + $0x2c8] sm:$0xff]  ;;  %v10795_v60 = vcombine.low %v441_v62, %v445_v57 }
 0x18f   :  { %6896 = vmatpush2.bf16.msra.mxu1 %v10819_v24  ;;  %v309_v2 = vld [vmem:[#allocation5 + $0x2e8] sm:$0xff] }
 0x190   :  { %6897 = vmatprep.subr.bf16.mxu1 %v10812_v5  ;;  %v433_v35 = vld [vmem:[#allocation5 + $0x6c8] sm:$0xff]  ;;  %v10660_v58 = vcombine.high %v305_v45, %v309_v2  ;;  %v10659_v51 = vcombine.low %v305_v45, %v309_v2 }
 0x191   :  { %6845 = vmatpush2.bf16.msra.mxu0 %v10683_v28  ;;  %v437_v47 = vld [vmem:[#allocation5 + $0x6e8] sm:$0xff] }
 0x192   :  { %6846 = vmatprep.subr.bf16.mxu0 %v10676_v10  ;;  %v10788_v24 = vcombine.high %v433_v35, %v437_v47  ;;  %v297_v49 = vld [vmem:[#allocation5 + $0x288] sm:$0xff]  ;;  %v10787_v44 = vcombine.low %v433_v35, %v437_v47 }
 0x193   :  { %6898 = vmatpush2.bf16.msra.mxu1 %v10811_v53  ;;  %v301_v5 = vld [vmem:[#allocation5 + $0x2a8] sm:$0xff] }
 0x194   :  { %6899 = vmatprep.subr.bf16.mxu1 %v10804_v23  ;;  %v425_v12 = vld [vmem:[#allocation5 + $0x688] sm:$0xff]  ;;  %v10652_v28 = vcombine.high %v297_v49, %v301_v5  ;;  %v10651_v62 = vcombine.low %v297_v49, %v301_v5 }
 0x195   :  { %6847 = vmatpush2.bf16.msra.mxu0 %v10675_v20  ;;  %v429_v4 = vld [vmem:[#allocation5 + $0x6a8] sm:$0xff] }
 0x196   :  { %6848 = vmatprep.subr.bf16.mxu0 %v10668_v15  ;;  %v10780_v53 = vcombine.high %v425_v12, %v429_v4  ;;  %v289_v10 = vld [vmem:[#allocation5 + $0x248] sm:$0xff]  ;;  %v10779_v57 = vcombine.low %v425_v12, %v429_v4 }
 0x197   :  { %6900 = vmatpush2.bf16.msra.mxu1 %v10803_v1  ;;  %v293_v23 = vld [vmem:[#allocation5 + $0x268] sm:$0xff] }
 0x198   :  { %6901 = vmatprep.subr.bf16.mxu1 %v10796_v55  ;;  %v417_v32 = vld [vmem:[#allocation5 + $0x648] sm:$0xff]  ;;  %v10644_v20 = vcombine.high %v289_v10, %v293_v23  ;;  %v10643_v35 = vcombine.low %v289_v10, %v293_v23 }
 0x199   :  { %6849 = vmatpush2.bf16.msra.mxu0 %v10667_v36  ;;  %v421_v31 = vld [vmem:[#allocation5 + $0x668] sm:$0xff] }
 0x19a   :  { %6850 = vmatprep.subr.bf16.mxu0 %v10660_v58  ;;  %v10772_v1 = vcombine.high %v417_v32, %v421_v31  ;;  %v281_v15 = vld [vmem:[#allocation5 + $0x208] sm:$0xff]  ;;  %v10771_v47 = vcombine.low %v417_v32, %v421_v31  ;;  %v12795_v31 = vpop.f32.mrf.mxu0 }
 0x19b   :  { %6902 = vmatpush2.bf16.msra.mxu1 %v10795_v60  ;;  %v285_v55 = vld [vmem:[#allocation5 + $0x228] sm:$0xff]  ;;  %13494 = vst [vmem:[#allocation29_spill] sm:$0xff] %v12795_v31 }
 0x19c   :  { %6903 = vmatprep.subr.bf16.mxu1 %v10788_v24  ;;  %v409_v45 = vld [vmem:[#allocation5 + $0x608] sm:$0xff]  ;;  %v10636_v36 = vcombine.high %v281_v15, %v285_v55  ;;  %v10635_v12 = vcombine.low %v281_v15, %v285_v55 }
 0x19d   :  { %6851 = vmatpush2.bf16.msra.mxu0 %v10659_v51  ;;  %v413_v2 = vld [vmem:[#allocation5 + $0x628] sm:$0xff] }
 0x19e   :  { %6852 = vmatprep.subr.bf16.mxu0 %v10652_v28  ;;  %v10764_v60 = vcombine.high %v409_v45, %v413_v2  ;;  %v529_v58 = vld [vmem:[#allocation5 + $0x9c8] sm:$0xff]  ;;  %v10763_v4 = vcombine.low %v409_v45, %v413_v2 }
 0x19f   :  { %6904 = vmatpush2.bf16.msra.mxu1 %v10787_v44  ;;  %v533_v24 = vld [vmem:[#allocation5 + $0x9e8] sm:$0xff] }
 0x1a0   :  { %6905 = vmatprep.subr.bf16.mxu1 %v10780_v53  ;;  %v657_v49 = vld [vmem:[#allocation5 + $0xdc8] sm:$0xff]  ;;  %v10884_v51 = vcombine.high %v529_v58, %v533_v24  ;;  %v10883_v32 = vcombine.low %v529_v58, %v533_v24 }
 0x1a1   :  { %6853 = vmatpush2.bf16.msra.mxu0 %v10651_v62  ;;  %v661_v5 = vld [vmem:[#allocation5 + $0xde8] sm:$0xff] }
 0x1a2   :  { %6854 = vmatprep.subr.bf16.mxu0 %v10644_v20  ;;  %v11012_v44 = vcombine.high %v657_v49, %v661_v5  ;;  %v521_v28 = vld [vmem:[#allocation5 + $0x988] sm:$0xff]  ;;  %v11011_v62 = vcombine.low %v657_v49, %v661_v5  ;;  %v12797_v20 = vpop.f32.mrf.mxu1 }
 0x1a3   :  { %6906 = vmatpush2.bf16.msra.mxu1 %v10779_v57  ;;  %v525_v53 = vld [vmem:[#allocation5 + $0x9a8] sm:$0xff]  ;;  %13495 = vst [vmem:[#allocation30_spill] sm:$0xff] %v12797_v20 }
 0x1a4   :  { %6907 = vmatprep.subr.bf16.mxu1 %v10772_v1  ;;  %v649_v10 = vld [vmem:[#allocation5 + $0xd88] sm:$0xff]  ;;  %v10876_v57 = vcombine.high %v521_v28, %v525_v53 }
 0x1a5   :  { %6855 = vmatpush2.bf16.msra.mxu0 %v10643_v35  ;;  %v653_v23 = vld [vmem:[#allocation5 + $0xda8] sm:$0xff] }
 0x1a6   :  { %6856 = vmatprep.subr.bf16.mxu0 %v10636_v36  ;;  %v11004_v1 = vcombine.high %v649_v10, %v653_v23  ;;  %v513_v15 = vld [vmem:[#allocation5 + $0x948] sm:$0xff]  ;;  %v6595_v36 = vpop.f32.mrf.mxu1  ;;  %v11003_v24 = vcombine.low %v649_v10, %v653_v23 }
 0x1a7   :  { %6908 = vmatpush2.bf16.msra.mxu1 %v10771_v47  ;;  %v517_v55 = vld [vmem:[#allocation5 + $0x968] sm:$0xff]  ;;  %v6542_v45 = vpop.f32.mrf.mxu0 }
 0x1a8   :  { %6909 = vmatprep.subr.bf16.mxu1 %v10764_v60  ;;  %v641_v2 = vld [vmem:[#allocation5 + $0xd48] sm:$0xff]  ;;  %v6543_v47 = vadd.f32 %v6542_v45, %v12764_v61  ;;  %v10875_v60 = vcombine.low %v521_v28, %v525_v53  ;;  %v10868_v49 = vcombine.high %v513_v15, %v517_v55  ;;  %v10867_v23 = vcombine.low %v513_v15, %v517_v55 }
 0x1a9   :  { %6857 = vmatpush2.bf16.msra.mxu0 %v10635_v12  ;;  %v645_v35 = vld [vmem:[#allocation5 + $0xd68] sm:$0xff]  ;;  %v6544_v58 = vpop.f32.mrf.mxu0 }
 0x1aa   :  { %6932 = vmatprep.subr.bf16.mxu0 %v10884_v51  ;;  %v12802_v5 = vadd.f32 %v6595_v36, %v6543_v47  ;;  %v6545_v12 = vadd.f32 %v6544_v58, %v12771_v19  ;;  %v10996_v51 = vcombine.high %v641_v2, %v645_v35  ;;  %v509_v20 = vld [vmem:[#allocation5 + $0x928] sm:$0xff] }
 0x1ab   :  { %6910 = vmatpush2.bf16.msra.mxu1 %v10763_v4  ;;  %v6597_v4 = vpop.f32.mrf.mxu1  ;;  %v6546_v61 = vpop.f32.mrf.mxu0  ;;  %v633_v45 = vld [vmem:[#allocation5 + $0xd08] sm:$0xff] }
 0x1ac   :  { %6985 = vmatprep.subr.bf16.mxu1 %v11012_v44  ;;  %6859 = vmatmul.mubr.bf16.vlgmr.msra.gmra.mxu0 %v12661_v21  ;;  %v505_v44 = vld [vmem:[#allocation5 + $0x908] sm:$0xff]  ;;  %v12807_v28 = vadd.f32 %v6597_v4, %v6545_v12  ;;  %v6547_v53 = vadd.f32 %v6546_v61, %v12778_v46 }
 0x1ad   :  { %6933 = vmatpush1.bf16.msra.mxu0 %v10883_v32  ;;  %6868 = vmatprep.mubr.bf16.mxu0 %v12665_v34  ;;  %v637_v32 = vld [vmem:[#allocation5 + $0xd28] sm:$0xff]  ;;  %v6599_v10 = vpop.f32.mrf.mxu1  ;;  %v12810_v19 = vpop.f32.mrf.mxu0 }
 0x1ae   :  { %6912 = vmatmul.mubr.bf16.vlgmr.msra.gmra.mxu1 %v12663_v25  ;;  %6934 = vmatprep.subr.bf16.mxu0 %v10876_v57  ;;  %13496 = vst [vmem:[#allocation31_spill] sm:$0xff] %v12810_v19  ;;  %v10860_v57 = vcombine.high %v505_v44, %v509_v20  ;;  %v10988_v36 = vcombine.high %v633_v45, %v637_v32  ;;  %v497_v58 = vld [vmem:[#allocation5 + $0x8c8] sm:$0xff] }
 0x1af   :  { %6986 = vmatpush1.bf16.msra.mxu1 %v11011_v62  ;;  %6921 = vmatprep.mubr.bf16.mxu1 %v12668_v37  ;;  %v10995_v62 = vcombine.low %v641_v2, %v645_v35  ;;  %v12814_v47 = vpop.f32.mrf.mxu1  ;;  %v501_v12 = vld [vmem:[#allocation5 + $0x8e8] sm:$0xff]  ;;  %v6552_v4 = vpop.f32.mrf.mxu0  ;;  %v10987_v35 = vcombine.low %v633_v45, %v637_v32 }
 0x1b0   :  { %6987 = vmatprep.subr.bf16.mxu1 %v11004_v1  ;;  %v12812_v1 = vadd.f32 %v6599_v10, %v6547_v53  ;;  %13497 = vst [vmem:[#allocation32_spill] sm:$0xff] %v12814_v47  ;;  %v625_v31 = vld [vmem:[#allocation5 + $0xcc8] sm:$0xff]  ;;  %v6553_v15 = vadd.f32 %v6552_v4, %v12786_v43  ;;  %v10851_v32 = vcombine.low %v497_v58, %v501_v12 }
 0x1b1   :  { %6935 = vmatpush1.bf16.msra.mxu0 %v10875_v60  ;;  %v629_v46 = vld [vmem:[#allocation5 + $0xce8] sm:$0xff]  ;;  %v6605_v55 = vpop.f32.mrf.mxu1  ;;  %v10859_v60 = vcombine.low %v505_v44, %v509_v20  ;;  %v6554_v2 = vpop.f32.mrf.mxu0 }
 0x1b2   :  { %6936 = vmatprep.subr.bf16.mxu0 %v10868_v49  ;;  %v6555_v49 = vadd.f32 %v6554_v2, %v12791_v42  ;;  %v10980_v53 = vcombine.high %v625_v31, %v629_v46  ;;  %v489_v10 = vld [vmem:[#allocation5 + $0x888] sm:$0xff] }
 0x1b3   :  { %6988 = vmatpush1.bf16.msra.mxu1 %v11003_v24  ;;  %v10852_v24 = vcombine.high %v497_v58, %v501_v12  ;;  %v6607_v61 = vpop.f32.mrf.mxu1  ;;  %v493_v47 = vld [vmem:[#allocation5 + $0x8a8] sm:$0xff]  ;;  %v6556_v43 = vpop.f32.mrf.mxu0 }
 0x1b4   :  { %6989 = vmatprep.subr.bf16.mxu1 %v10996_v51  ;;  %6869 = vmatmul.mubr.bf16.gmra.mxu0 %v12672_v50  ;;  %v12820_v51 = vadd.f32 %v6605_v55, %v6553_v15  ;;  %v617_v20 = vld [vmem:[#allocation5 + $0xc88] sm:$0xff]  ;;  %v12825_v45 = vadd.f32 %v6607_v61, %v6555_v49 }
 0x1b5   :  { %6937 = vmatpush1.bf16.msra.mxu0 %v10867_v23  ;;  %6964 = vmatprep.mubr.bf16.mxu0 %v12677_v0  ;;  %v621_v44 = vld [vmem:[#allocation5 + $0xca8] sm:$0xff]  ;;  %v6557_v23 = vadd.f32 %v6556_v43, %v12793_v41  ;;  %v6609_v42 = vpop.f32.mrf.mxu1 }
 0x1b6   :  { %6922 = vmatmul.mubr.bf16.gmra.mxu1 %v12675_v54  ;;  %6938 = vmatprep.subr.bf16.mxu0 %v10860_v57  ;;  %v10844_v57 = vcombine.high %v489_v10, %v493_v47  ;;  %v10972_v4 = vcombine.high %v617_v20, %v621_v44  ;;  %v481_v15 = vld [vmem:[#allocation5 + $0x848] sm:$0xff]  ;;  %v10971_v41 = vcombine.low %v617_v20, %v621_v44 }
 0x1b7   :  { %6990 = vmatpush1.bf16.msra.mxu1 %v10995_v62  ;;  %7017 = vmatprep.mubr.bf16.mxu1 %v12680_v3  ;;  %v10979_v62 = vcombine.low %v625_v31, %v629_v46  ;;  %v485_v55 = vld [vmem:[#allocation5 + $0x868] sm:$0xff]  ;;  %v10843_v3 = vcombine.low %v489_v10, %v493_v47 }
 0x1b8   :  { %6991 = vmatprep.subr.bf16.mxu1 %v10988_v36  ;;  %v12827_v36 = vadd.f32 %v6609_v42, %v6557_v23  ;;  %v609_v2 = vld [vmem:[#allocation5 + $0xc48] sm:$0xff] }
 0x1b9   :  { %6939 = vmatpush1.bf16.msra.mxu0 %v10859_v60  ;;  %v613_v19 = vld [vmem:[#allocation5 + $0xc68] sm:$0xff]  ;;  %v10836_v60 = vcombine.high %v481_v15, %v485_v55 }
 0x1ba   :  { %6940 = vmatprep.subr.bf16.mxu0 %v10852_v24  ;;  %v10964_v58 = vcombine.high %v609_v2, %v613_v19  ;;  %v473_v12 = vld [vmem:[#allocation5 + $0x808] sm:$0xff]  ;;  %v10835_v24 = vcombine.low %v481_v15, %v485_v55  ;;  %v10963_v49 = vcombine.low %v609_v2, %v613_v19 }
 0x1bb   :  { %6992 = vmatpush1.bf16.msra.mxu1 %v10987_v35  ;;  %v477_v35 = vld [vmem:[#allocation5 + $0x828] sm:$0xff] }
 0x1bc   :  { %6993 = vmatprep.subr.bf16.mxu1 %v10980_v53  ;;  %v601_v31 = vld [vmem:[#allocation5 + $0xc08] sm:$0xff]  ;;  %v10828_v61 = vcombine.high %v473_v12, %v477_v35  ;;  %v10827_v20 = vcombine.low %v473_v12, %v477_v35 }
 0x1bd   :  { %6941 = vmatpush1.bf16.msra.mxu0 %v10851_v32  ;;  %v605_v46 = vld [vmem:[#allocation5 + $0xc28] sm:$0xff] }
 0x1be   :  { %6942 = vmatprep.subr.bf16.mxu0 %v10844_v57  ;;  %v10956_v53 = vcombine.high %v601_v31, %v605_v46  ;;  %v593_v43 = vld [vmem:[#allocation5 + $0xbc8] sm:$0xff]  ;;  %v10955_v44 = vcombine.low %v601_v31, %v605_v46 }
 0x1bf   :  { %6994 = vmatpush1.bf16.msra.mxu1 %v10979_v62  ;;  %v597_v47 = vld [vmem:[#allocation5 + $0xbe8] sm:$0xff] }
 0x1c0   :  { %6995 = vmatprep.subr.bf16.mxu1 %v10972_v4  ;;  %v721_v10 = vld [vmem:[#allocation5 + $0xfc8] sm:$0xff]  ;;  %v10948_v42 = vcombine.high %v593_v43, %v597_v47  ;;  %v10947_v19 = vcombine.low %v593_v43, %v597_v47 }
 0x1c1   :  { %6943 = vmatpush1.bf16.msra.mxu0 %v10843_v3  ;;  %v725_v23 = vld [vmem:[#allocation5 + $0xfe8] sm:$0xff] }
 0x1c2   :  { %6944 = vmatprep.subr.bf16.mxu0 %v10836_v60  ;;  %v11076_v32 = vcombine.high %v721_v10, %v725_v23  ;;  %v585_v3 = vld [vmem:[#allocation5 + $0xb88] sm:$0xff]  ;;  %v11075_v15 = vcombine.low %v721_v10, %v725_v23 }
 0x1c3   :  { %6996 = vmatpush1.bf16.msra.mxu1 %v10971_v41  ;;  %v589_v62 = vld [vmem:[#allocation5 + $0xba8] sm:$0xff] }
 0x1c4   :  { %6997 = vmatprep.subr.bf16.mxu1 %v10964_v58  ;;  %v713_v57 = vld [vmem:[#allocation5 + $0xf88] sm:$0xff]  ;;  %v10940_v55 = vcombine.high %v585_v3, %v589_v62  ;;  %v10939_v35 = vcombine.low %v585_v3, %v589_v62 }
 0x1c5   :  { %6945 = vmatpush1.bf16.msra.mxu0 %v10835_v24  ;;  %v717_v4 = vld [vmem:[#allocation5 + $0xfa8] sm:$0xff] }
 0x1c6   :  { %6946 = vmatprep.subr.bf16.mxu0 %v10828_v61  ;;  %v11068_v2 = vcombine.high %v713_v57, %v717_v4  ;;  %v577_v41 = vld [vmem:[#allocation5 + $0xb48] sm:$0xff]  ;;  %v11067_v31 = vcombine.low %v713_v57, %v717_v4 }
 0x1c7   :  { %6998 = vmatpush1.bf16.msra.mxu1 %v10963_v49  ;;  %v581_v60 = vld [vmem:[#allocation5 + $0xb68] sm:$0xff] }
 0x1c8   :  { %6999 = vmatprep.subr.bf16.mxu1 %v10956_v53  ;;  %v705_v58 = vld [vmem:[#allocation5 + $0xf48] sm:$0xff]  ;;  %v10932_v46 = vcombine.high %v577_v41, %v581_v60  ;;  %v10931_v47 = vcombine.low %v577_v41, %v581_v60 }
 0x1c9   :  { %6947 = vmatpush1.bf16.msra.mxu0 %v10827_v20  ;;  %v709_v12 = vld [vmem:[#allocation5 + $0xf68] sm:$0xff] }
 0x1ca   :  { %6948 = vmatprep.subr.bf16.mxu0 %v10948_v42  ;;  %v11060_v24 = vcombine.high %v705_v58, %v709_v12  ;;  %v569_v49 = vld [vmem:[#allocation5 + $0xb08] sm:$0xff]  ;;  %v11059_v10 = vcombine.low %v705_v58, %v709_v12 }
 0x1cb   :  { %7000 = vmatpush1.bf16.msra.mxu1 %v10955_v44  ;;  %v573_v61 = vld [vmem:[#allocation5 + $0xb28] sm:$0xff] }
 0x1cc   :  { %7001 = vmatprep.subr.bf16.mxu1 %v11076_v32  ;;  %v697_v53 = vld [vmem:[#allocation5 + $0xf08] sm:$0xff]  ;;  %v10924_v23 = vcombine.high %v569_v49, %v573_v61  ;;  %v10923_v62 = vcombine.low %v569_v49, %v573_v61 }
 0x1cd   :  { %6949 = vmatpush2.bf16.msra.mxu0 %v10947_v19  ;;  %v701_v43 = vld [vmem:[#allocation5 + $0xf28] sm:$0xff] }
 0x1ce   :  { %6950 = vmatprep.subr.bf16.mxu0 %v10940_v55  ;;  %v11052_v20 = vcombine.high %v697_v53, %v701_v43  ;;  %v561_v44 = vld [vmem:[#allocation5 + $0xac8] sm:$0xff]  ;;  %v11051_v57 = vcombine.low %v697_v53, %v701_v43 }
 0x1cf   :  { %7002 = vmatpush2.bf16.msra.mxu1 %v11075_v15  ;;  %v565_v42 = vld [vmem:[#allocation5 + $0xae8] sm:$0xff] }
 0x1d0   :  { %7003 = vmatprep.subr.bf16.mxu1 %v11068_v2  ;;  %v689_v32 = vld [vmem:[#allocation5 + $0xec8] sm:$0xff]  ;;  %v10916_v4 = vcombine.high %v561_v44, %v565_v42  ;;  %v10915_v60 = vcombine.low %v561_v44, %v565_v42 }
 0x1d1   :  { %6951 = vmatpush2.bf16.msra.mxu0 %v10939_v35  ;;  %v693_v3 = vld [vmem:[#allocation5 + $0xee8] sm:$0xff] }
 0x1d2   :  { %6952 = vmatprep.subr.bf16.mxu0 %v10932_v46  ;;  %v11044_v19 = vcombine.high %v689_v32, %v693_v3  ;;  %v553_v15 = vld [vmem:[#allocation5 + $0xa88] sm:$0xff]  ;;  %v11043_v58 = vcombine.low %v689_v32, %v693_v3 }
 0x1d3   :  { %7004 = vmatpush2.bf16.msra.mxu1 %v11067_v31  ;;  %v557_v55 = vld [vmem:[#allocation5 + $0xaa8] sm:$0xff] }
 0x1d4   :  { %7005 = vmatprep.subr.bf16.mxu1 %v11060_v24  ;;  %v681_v2 = vld [vmem:[#allocation5 + $0xe88] sm:$0xff]  ;;  %v10908_v12 = vcombine.high %v553_v15, %v557_v55  ;;  %v10907_v61 = vcombine.low %v553_v15, %v557_v55 }
 0x1d5   :  { %6953 = vmatpush2.bf16.msra.mxu0 %v10931_v47  ;;  %v685_v41 = vld [vmem:[#allocation5 + $0xea8] sm:$0xff] }
 0x1d6   :  { %6954 = vmatprep.subr.bf16.mxu0 %v10924_v23  ;;  %v11036_v35 = vcombine.high %v681_v2, %v685_v41  ;;  %v545_v31 = vld [vmem:[#allocation5 + $0xa48] sm:$0xff]  ;;  %v11035_v53 = vcombine.low %v681_v2, %v685_v41 }
 0x1d7   :  { %7006 = vmatpush2.bf16.msra.mxu1 %v11059_v10  ;;  %v549_v46 = vld [vmem:[#allocation5 + $0xa68] sm:$0xff] }
 0x1d8   :  { %7007 = vmatprep.subr.bf16.mxu1 %v11052_v20  ;;  %v673_v24 = vld [vmem:[#allocation5 + $0xe48] sm:$0xff]  ;;  %v10900_v43 = vcombine.high %v545_v31, %v549_v46  ;;  %v10899_v42 = vcombine.low %v545_v31, %v549_v46 }
 0x1d9   :  { %6955 = vmatpush2.bf16.msra.mxu0 %v10923_v62  ;;  %v677_v49 = vld [vmem:[#allocation5 + $0xe68] sm:$0xff] }
 0x1da   :  { %6956 = vmatprep.subr.bf16.mxu0 %v10916_v4  ;;  %v11028_v47 = vcombine.high %v673_v24, %v677_v49  ;;  %v537_v10 = vld [vmem:[#allocation5 + $0xa08] sm:$0xff]  ;;  %v11027_v32 = vcombine.low %v673_v24, %v677_v49  ;;  %v12829_v24 = vpop.f32.mrf.mxu0 }
 0x1db   :  { %7008 = vmatpush2.bf16.msra.mxu1 %v11051_v57  ;;  %v541_v23 = vld [vmem:[#allocation5 + $0xa28] sm:$0xff]  ;;  %13498 = vst [vmem:[#allocation33_spill] sm:$0xff] %v12829_v24 }
 0x1dc   :  { %7009 = vmatprep.subr.bf16.mxu1 %v11044_v19  ;;  %v665_v20 = vld [vmem:[#allocation5 + $0xe08] sm:$0xff]  ;;  %v10892_v3 = vcombine.high %v537_v10, %v541_v23  ;;  %v10891_v55 = vcombine.low %v537_v10, %v541_v23 }
 0x1dd   :  { %6957 = vmatpush2.bf16.msra.mxu0 %v10915_v60  ;;  %v669_v44 = vld [vmem:[#allocation5 + $0xe28] sm:$0xff] }
 0x1de   :  { %6958 = vmatprep.subr.bf16.mxu0 %v10908_v12  ;;  %v11020_v62 = vcombine.high %v665_v20, %v669_v44  ;;  %v785_v57 = vld [vmem:[#allocation5 + $0x11c8] sm:$0xff]  ;;  %v11019_v2 = vcombine.low %v665_v20, %v669_v44 }
 0x1df   :  { %7010 = vmatpush2.bf16.msra.mxu1 %v11043_v58  ;;  %v789_v4 = vld [vmem:[#allocation5 + $0x11e8] sm:$0xff] }
 0x1e0   :  { %7011 = vmatprep.subr.bf16.mxu1 %v11036_v35  ;;  %v913_v19 = vld [vmem:[#allocation5 + $0x15c8] sm:$0xff]  ;;  %v11140_v41 = vcombine.high %v785_v57, %v789_v4  ;;  %v11139_v46 = vcombine.low %v785_v57, %v789_v4 }
 0x1e1   :  { %6959 = vmatpush2.bf16.msra.mxu0 %v10907_v61  ;;  %v917_v15 = vld [vmem:[#allocation5 + $0x15e8] sm:$0xff] }
 0x1e2   :  { %6960 = vmatprep.subr.bf16.mxu0 %v10900_v43  ;;  %v11268_v60 = vcombine.high %v913_v19, %v917_v15  ;;  %v777_v58 = vld [vmem:[#allocation5 + $0x1188] sm:$0xff]  ;;  %v11267_v49 = vcombine.low %v913_v19, %v917_v15 }
 0x1e3   :  { %7012 = vmatpush2.bf16.msra.mxu1 %v11035_v53  ;;  %v781_v12 = vld [vmem:[#allocation5 + $0x11a8] sm:$0xff]  ;;  %v12831_v53 = vpop.f32.mrf.mxu1 }
 0x1e4   :  { %7013 = vmatprep.subr.bf16.mxu1 %v11028_v47  ;;  %v905_v35 = vld [vmem:[#allocation5 + $0x1588] sm:$0xff]  ;;  %v11132_v61 = vcombine.high %v777_v58, %v781_v12  ;;  %13499 = vst [vmem:[#allocation34_spill] sm:$0xff] %v12831_v53 }
 0x1e5   :  { %6961 = vmatpush2.bf16.msra.mxu0 %v10899_v42  ;;  %v909_v31 = vld [vmem:[#allocation5 + $0x15a8] sm:$0xff] }
 0x1e6   :  { %6962 = vmatprep.subr.bf16.mxu0 %v10892_v3  ;;  %v11260_v43 = vcombine.high %v905_v35, %v909_v31  ;;  %v769_v47 = vld [vmem:[#allocation5 + $0x1148] sm:$0xff]  ;;  %v11131_v3 = vcombine.low %v777_v58, %v781_v12  ;;  %v11259_v57 = vcombine.low %v905_v35, %v909_v31 }
 0x1e7   :  { %7014 = vmatpush2.bf16.msra.mxu1 %v11027_v32  ;;  %v773_v10 = vld [vmem:[#allocation5 + $0x1168] sm:$0xff] }
 0x1e8   :  { %7015 = vmatprep.subr.bf16.mxu1 %v11020_v62  ;;  %v897_v20 = vld [vmem:[#allocation5 + $0x1548] sm:$0xff]  ;;  %v11124_v4 = vcombine.high %v769_v47, %v773_v10 }
 0x1e9   :  { %6963 = vmatpush2.bf16.msra.mxu0 %v10891_v55  ;;  %v901_v44 = vld [vmem:[#allocation5 + $0x1568] sm:$0xff] }
 0x1ea   :  { %7038 = vmatprep.subr.bf16.mxu0 %v11140_v41  ;;  %v6701_v32 = vpop.f32.mrf.mxu1  ;;  %v765_v41 = vld [vmem:[#allocation5 + $0x1128] sm:$0xff] }
 0x1eb   :  { %7016 = vmatpush2.bf16.msra.mxu1 %v11019_v2  ;;  %v6648_v23 = vpop.f32.mrf.mxu0  ;;  %v11252_v2 = vcombine.high %v897_v20, %v901_v44  ;;  %v889_v58 = vld [vmem:[#allocation5 + $0x1508] sm:$0xff] }
 0x1ec   :  { %7091 = vmatprep.subr.bf16.mxu1 %v11268_v60  ;;  %6965 = vmatmul.mubr.bf16.vlgmr.msra.gmra.mxu0 %v12685_v6  ;;  %v6649_v42 = vadd.f32 %v6648_v23, %v12802_v5  ;;  %v6703_v55 = vpop.f32.mrf.mxu1  ;;  %v761_v5 = vld [vmem:[#allocation5 + $0x1108] sm:$0xff] }
 0x1ed   :  { %7039 = vmatpush1.bf16.msra.mxu0 %v11139_v46  ;;  %v6650_v62 = vpop.f32.mrf.mxu0  ;;  %6974 = vmatprep.mubr.bf16.mxu0 %v12689_v14  ;;  %v893_v12 = vld [vmem:[#allocation5 + $0x1528] sm:$0xff] }
 0x1ee   :  { %7018 = vmatmul.mubr.bf16.vlgmr.msra.gmra.mxu1 %v12687_v7  ;;  %7040 = vmatprep.subr.bf16.mxu0 %v11132_v61  ;;  %v12836_v19 = vadd.f32 %v6701_v32, %v6649_v42  ;;  %v6651_v15 = vadd.f32 %v6650_v62, %v12807_v28  ;;  %v6705_v31 = vpop.f32.mrf.mxu1  ;;  %v11251_v61 = vcombine.low %v897_v20, %v901_v44  ;;  %v753_v62 = vld [vmem:[#allocation5 + $0x10c8] sm:$0xff] }
 0x1ef   :  { %7092 = vmatpush1.bf16.msra.mxu1 %v11267_v49  ;;  %v6652_v60 = vpop.f32.mrf.mxu0  ;;  %7027 = vmatprep.mubr.bf16.mxu1 %v12692_v22  ;;  %v11123_v49 = vcombine.low %v769_v47, %v773_v10  ;;  %v11244_v32 = vcombine.high %v889_v58, %v893_v12  ;;  %v11115_v20 = vcombine.low %v761_v5, %v765_v41  ;;  %v745_v53 = vld [vmem:[#allocation5 + $0x1088] sm:$0xff] }
 0x1f0   :  { %7093 = vmatprep.subr.bf16.mxu1 %v11260_v43  ;;  %v12841_v46 = vadd.f32 %v6703_v55, %v6651_v15  ;;  %v6653_v35 = vadd.f32 %v6652_v60, %v12812_v1  ;;  %v11116_v43 = vcombine.high %v761_v5, %v765_v41  ;;  %v12848_v42 = vpop.f32.mrf.mxu1  ;;  %v757_v15 = vld [vmem:[#allocation5 + $0x10e8] sm:$0xff] }
 0x1f1   :  { %7041 = vmatpush1.bf16.msra.mxu0 %v11131_v3  ;;  %v12844_v28 = vpop.f32.mrf.mxu0  ;;  %13501 = vst [vmem:[#allocation36_spill] sm:$0xff] %v12848_v42  ;;  %v881_v1 = vld [vmem:[#allocation5 + $0x14c8] sm:$0xff] }
 0x1f2   :  { %13500 = vst [vmem:[#allocation35_spill] sm:$0xff] %v12844_v28  ;;  %7042 = vmatprep.subr.bf16.mxu0 %v11124_v4  ;;  %v12846_v23 = vadd.f32 %v6705_v31, %v6653_v35  ;;  %v885_v3 = vld [vmem:[#allocation5 + $0x14e8] sm:$0xff]  ;;  %v6711_v10 = vpop.f32.mrf.mxu1  ;;  %v11108_v4 = vcombine.high %v753_v62, %v757_v15 }
 0x1f3   :  { %7094 = vmatpush1.bf16.msra.mxu1 %v11259_v57  ;;  %v11243_v57 = vcombine.low %v889_v58, %v893_v12  ;;  %v11236_v31 = vcombine.high %v881_v1, %v885_v3  ;;  %v749_v24 = vld [vmem:[#allocation5 + $0x10a8] sm:$0xff]  ;;  %v11107_v58 = vcombine.low %v753_v62, %v757_v15  ;;  %v11235_v12 = vcombine.low %v881_v1, %v885_v3 }
 0x1f4   :  { %7095 = vmatprep.subr.bf16.mxu1 %v11252_v2  ;;  %6975 = vmatmul.mubr.bf16.gmra.mxu0 %v12696_v38  ;;  %v6713_v35 = vpop.f32.mrf.mxu1  ;;  %v869_v42 = vld [vmem:[#allocation5 + $0x1468] sm:$0xff]  ;;  %v11099_v28 = vcombine.low %v745_v53, %v749_v24 }
 0x1f5   :  { %v6658_v55 = vpop.f32.mrf.mxu0  ;;  %7043 = vmatpush1.bf16.msra.mxu0 %v11123_v49  ;;  %7070 = vmatprep.mubr.bf16.mxu0 %v12701_v48  ;;  %v873_v49 = vld [vmem:[#allocation5 + $0x1488] sm:$0xff] }
 0x1f6   :  { %v6659_v47 = vadd.f32 %v6658_v55, %v12820_v51  ;;  %7028 = vmatmul.mubr.bf16.gmra.mxu1 %v12699_v40  ;;  %7044 = vmatprep.subr.bf16.mxu0 %v11116_v43  ;;  %v877_v55 = vld [vmem:[#allocation5 + $0x14a8] sm:$0xff] }
 0x1f7   :  { %7096 = vmatpush1.bf16.msra.mxu1 %v11251_v61  ;;  %v6660_v44 = vpop.f32.mrf.mxu0  ;;  %7123 = vmatprep.mubr.bf16.mxu1 %v12704_v52  ;;  %v11100_v61 = vcombine.high %v745_v53, %v749_v24  ;;  %v729_v15 = vld [vmem:[#allocation5 + $0x1008] sm:$0xff] }
 0x1f8   :  { %v6661_v2 = vadd.f32 %v6660_v44, %v12825_v45  ;;  %v12854_v60 = vadd.f32 %v6711_v10, %v6659_v47  ;;  %7097 = vmatprep.subr.bf16.mxu1 %v11244_v32  ;;  %v6715_v45 = vpop.f32.mrf.mxu1  ;;  %v11228_v32 = vcombine.high %v873_v49, %v877_v55  ;;  %v737_v47 = vld [vmem:[#allocation5 + $0x1048] sm:$0xff] }
 0x1f9   :  { %v6662_v51 = vpop.f32.mrf.mxu0  ;;  %7045 = vmatpush1.bf16.msra.mxu0 %v11115_v20  ;;  %v741_v10 = vld [vmem:[#allocation5 + $0x1068] sm:$0xff] }
 0x1fa   :  { %v6663_v5 = vadd.f32 %v6662_v51, %v12827_v36  ;;  %v12859_v41 = vadd.f32 %v6713_v35, %v6661_v2  ;;  %7046 = vmatprep.subr.bf16.mxu0 %v11108_v4  ;;  %v865_v44 = vld [vmem:[#allocation5 + $0x1448] sm:$0xff]  ;;  %v11227_v36 = vcombine.low %v873_v49, %v877_v55  ;;  %v11092_v20 = vcombine.high %v737_v47, %v741_v10 }
 0x1fb   :  { %7098 = vmatpush1.bf16.msra.mxu1 %v11243_v57  ;;  %v11220_v62 = vcombine.high %v865_v44, %v869_v42  ;;  %v733_v57 = vld [vmem:[#allocation5 + $0x1028] sm:$0xff]  ;;  %v11091_v4 = vcombine.low %v737_v47, %v741_v10  ;;  %v11219_v2 = vcombine.low %v865_v44, %v869_v42 }
 0x1fc   :  { %v12861_v43 = vadd.f32 %v6715_v45, %v6663_v5  ;;  %7099 = vmatprep.subr.bf16.mxu1 %v11236_v31  ;;  %v857_v1 = vld [vmem:[#allocation5 + $0x1408] sm:$0xff]  ;;  %v11084_v35 = vcombine.high %v729_v15, %v733_v57  ;;  %v11083_v49 = vcombine.low %v729_v15, %v733_v57 }
 0x1fd   :  { %7047 = vmatpush1.bf16.msra.mxu0 %v11107_v58  ;;  %v861_v3 = vld [vmem:[#allocation5 + $0x1428] sm:$0xff] }
 0x1fe   :  { %7048 = vmatprep.subr.bf16.mxu0 %v11100_v61  ;;  %v11212_v31 = vcombine.high %v857_v1, %v861_v3  ;;  %v849_v51 = vld [vmem:[#allocation5 + $0x13c8] sm:$0xff]  ;;  %v11211_v55 = vcombine.low %v857_v1, %v861_v3 }
 0x1ff   :  { %7100 = vmatpush1.bf16.msra.mxu1 %v11235_v12  ;;  %v853_v24 = vld [vmem:[#allocation5 + $0x13e8] sm:$0xff] }
 0x200   :  { %7101 = vmatprep.subr.bf16.mxu1 %v11228_v32  ;;  %v977_v53 = vld [vmem:[#allocation5 + $0x17c8] sm:$0xff]  ;;  %v11204_v45 = vcombine.high %v849_v51, %v853_v24  ;;  %v11203_v42 = vcombine.low %v849_v51, %v853_v24 }
 0x201   :  { %7049 = vmatpush1.bf16.msra.mxu0 %v11099_v28  ;;  %v981_v5 = vld [vmem:[#allocation5 + $0x17e8] sm:$0xff] }
 0x202   :  { %7050 = vmatprep.subr.bf16.mxu0 %v11092_v20  ;;  %v11332_v58 = vcombine.high %v977_v53, %v981_v5  ;;  %v841_v28 = vld [vmem:[#allocation5 + $0x1388] sm:$0xff]  ;;  %v11331_v47 = vcombine.low %v977_v53, %v981_v5 }
 0x203   :  { %7102 = vmatpush1.bf16.msra.mxu1 %v11227_v36  ;;  %v845_v12 = vld [vmem:[#allocation5 + $0x13a8] sm:$0xff] }
 0x204   :  { %7103 = vmatprep.subr.bf16.mxu1 %v11220_v62  ;;  %v969_v61 = vld [vmem:[#allocation5 + $0x1788] sm:$0xff]  ;;  %v11196_v10 = vcombine.high %v841_v28, %v845_v12  ;;  %v11195_v57 = vcombine.low %v841_v28, %v845_v12 }
 0x205   :  { %7051 = vmatpush1.bf16.msra.mxu0 %v11091_v4  ;;  %v973_v32 = vld [vmem:[#allocation5 + $0x17a8] sm:$0xff] }
 0x206   :  { %7052 = vmatprep.subr.bf16.mxu0 %v11084_v35  ;;  %v11324_v44 = vcombine.high %v969_v61, %v973_v32  ;;  %v833_v36 = vld [vmem:[#allocation5 + $0x1348] sm:$0xff]  ;;  %v11323_v1 = vcombine.low %v969_v61, %v973_v32 }
 0x207   :  { %7104 = vmatpush1.bf16.msra.mxu1 %v11219_v2  ;;  %v837_v20 = vld [vmem:[#allocation5 + $0x1368] sm:$0xff] }
 0x208   :  { %7105 = vmatprep.subr.bf16.mxu1 %v11212_v31  ;;  %v961_v62 = vld [vmem:[#allocation5 + $0x1748] sm:$0xff]  ;;  %v11188_v3 = vcombine.high %v833_v36, %v837_v20  ;;  %v11187_v24 = vcombine.low %v833_v36, %v837_v20 }
 0x209   :  { %7053 = vmatpush1.bf16.msra.mxu0 %v11083_v49  ;;  %v965_v15 = vld [vmem:[#allocation5 + $0x1768] sm:$0xff] }
 0x20a   :  { %7054 = vmatprep.subr.bf16.mxu0 %v11204_v45  ;;  %v11316_v4 = vcombine.high %v961_v62, %v965_v15  ;;  %v825_v2 = vld [vmem:[#allocation5 + $0x1308] sm:$0xff]  ;;  %v11315_v53 = vcombine.low %v961_v62, %v965_v15 }
 0x20b   :  { %7106 = vmatpush1.bf16.msra.mxu1 %v11211_v55  ;;  %v829_v35 = vld [vmem:[#allocation5 + $0x1328] sm:$0xff] }
 0x20c   :  { %7107 = vmatprep.subr.bf16.mxu1 %v11332_v58  ;;  %v953_v31 = vld [vmem:[#allocation5 + $0x1708] sm:$0xff]  ;;  %v11180_v5 = vcombine.high %v825_v2, %v829_v35  ;;  %v11179_v12 = vcombine.low %v825_v2, %v829_v35 }
 0x20d   :  { %7055 = vmatpush2.bf16.msra.mxu0 %v11203_v42  ;;  %v957_v51 = vld [vmem:[#allocation5 + $0x1728] sm:$0xff] }
 0x20e   :  { %7056 = vmatprep.subr.bf16.mxu0 %v11196_v10  ;;  %v11308_v49 = vcombine.high %v953_v31, %v957_v51  ;;  %v817_v55 = vld [vmem:[#allocation5 + $0x12c8] sm:$0xff]  ;;  %v11307_v61 = vcombine.low %v953_v31, %v957_v51 }
 0x20f   :  { %7108 = vmatpush2.bf16.msra.mxu1 %v11331_v47  ;;  %v821_v45 = vld [vmem:[#allocation5 + $0x12e8] sm:$0xff] }
 0x210   :  { %7109 = vmatprep.subr.bf16.mxu1 %v11324_v44  ;;  %v945_v58 = vld [vmem:[#allocation5 + $0x16c8] sm:$0xff]  ;;  %v11172_v32 = vcombine.high %v817_v55, %v821_v45  ;;  %v11171_v20 = vcombine.low %v817_v55, %v821_v45 }
 0x211   :  { %7057 = vmatpush2.bf16.msra.mxu0 %v11195_v57  ;;  %v949_v28 = vld [vmem:[#allocation5 + $0x16e8] sm:$0xff] }
 0x212   :  { %7058 = vmatprep.subr.bf16.mxu0 %v11188_v3  ;;  %v11300_v42 = vcombine.high %v945_v58, %v949_v28  ;;  %v809_v47 = vld [vmem:[#allocation5 + $0x1288] sm:$0xff]  ;;  %v11299_v62 = vcombine.low %v945_v58, %v949_v28 }
 0x213   :  { %7110 = vmatpush2.bf16.msra.mxu1 %v11323_v1  ;;  %v813_v10 = vld [vmem:[#allocation5 + $0x12a8] sm:$0xff] }
 0x214   :  { %7111 = vmatprep.subr.bf16.mxu1 %v11316_v4  ;;  %v937_v44 = vld [vmem:[#allocation5 + $0x1688] sm:$0xff]  ;;  %v11164_v15 = vcombine.high %v809_v47, %v813_v10  ;;  %v11163_v35 = vcombine.low %v809_v47, %v813_v10 }
 0x215   :  { %7059 = vmatpush2.bf16.msra.mxu0 %v11187_v24  ;;  %v941_v36 = vld [vmem:[#allocation5 + $0x16a8] sm:$0xff] }
 0x216   :  { %7060 = vmatprep.subr.bf16.mxu0 %v11180_v5  ;;  %v11292_v57 = vcombine.high %v937_v44, %v941_v36  ;;  %v801_v1 = vld [vmem:[#allocation5 + $0x1248] sm:$0xff]  ;;  %v11291_v31 = vcombine.low %v937_v44, %v941_v36 }
 0x217   :  { %7112 = vmatpush2.bf16.msra.mxu1 %v11315_v53  ;;  %v805_v3 = vld [vmem:[#allocation5 + $0x1268] sm:$0xff] }
 0x218   :  { %7113 = vmatprep.subr.bf16.mxu1 %v11308_v49  ;;  %v929_v4 = vld [vmem:[#allocation5 + $0x1648] sm:$0xff]  ;;  %v11156_v51 = vcombine.high %v801_v1, %v805_v3  ;;  %v11155_v45 = vcombine.low %v801_v1, %v805_v3 }
 0x219   :  { %7061 = vmatpush2.bf16.msra.mxu0 %v11179_v12  ;;  %v933_v2 = vld [vmem:[#allocation5 + $0x1668] sm:$0xff] }
 0x21a   :  { %7062 = vmatprep.subr.bf16.mxu0 %v11172_v32  ;;  %v11284_v24 = vcombine.high %v929_v4, %v933_v2  ;;  %v793_v53 = vld [vmem:[#allocation5 + $0x1208] sm:$0xff]  ;;  %v11283_v58 = vcombine.low %v929_v4, %v933_v2  ;;  %v12863_v4 = vpop.f32.mrf.mxu0 }
 0x21b   :  { %7114 = vmatpush2.bf16.msra.mxu1 %v11307_v61  ;;  %v797_v5 = vld [vmem:[#allocation5 + $0x1228] sm:$0xff]  ;;  %13502 = vst [vmem:[#allocation37_spill] sm:$0xff] %v12863_v4 }
 0x21c   :  { %7115 = vmatprep.subr.bf16.mxu1 %v11300_v42  ;;  %v921_v49 = vld [vmem:[#allocation5 + $0x1608] sm:$0xff]  ;;  %v11148_v28 = vcombine.high %v793_v53, %v797_v5  ;;  %v11147_v10 = vcombine.low %v793_v53, %v797_v5 }
 0x21d   :  { %7063 = vmatpush2.bf16.msra.mxu0 %v11171_v20  ;;  %v925_v55 = vld [vmem:[#allocation5 + $0x1628] sm:$0xff] }
 0x21e   :  { %7064 = vmatprep.subr.bf16.mxu0 %v11164_v15  ;;  %v11276_v12 = vcombine.high %v921_v49, %v925_v55  ;;  %v1041_v61 = vld [vmem:[#allocation5 + $0x19c8] sm:$0xff]  ;;  %v11275_v44 = vcombine.low %v921_v49, %v925_v55 }
 0x21f   :  { %7116 = vmatpush2.bf16.msra.mxu1 %v11299_v62  ;;  %v1045_v32 = vld [vmem:[#allocation5 + $0x19e8] sm:$0xff] }
 0x220   :  { %7117 = vmatprep.subr.bf16.mxu1 %v11292_v57  ;;  %v1169_v42 = vld [vmem:[#allocation5 + $0x1dc8] sm:$0xff]  ;;  %v11396_v36 = vcombine.high %v1041_v61, %v1045_v32  ;;  %v11395_v3 = vcombine.low %v1041_v61, %v1045_v32 }
 0x221   :  { %7065 = vmatpush2.bf16.msra.mxu0 %v11163_v35  ;;  %v1173_v47 = vld [vmem:[#allocation5 + $0x1de8] sm:$0xff] }
 0x222   :  { %7066 = vmatprep.subr.bf16.mxu0 %v11156_v51  ;;  %v11524_v20 = vcombine.high %v1169_v42, %v1173_v47  ;;  %v1033_v62 = vld [vmem:[#allocation5 + $0x1988] sm:$0xff]  ;;  %v11523_v2 = vcombine.low %v1169_v42, %v1173_v47 }
 0x223   :  { %7118 = vmatpush2.bf16.msra.mxu1 %v11291_v31  ;;  %v1037_v15 = vld [vmem:[#allocation5 + $0x19a8] sm:$0xff]  ;;  %v12865_v31 = vpop.f32.mrf.mxu1 }
 0x224   :  { %7119 = vmatprep.subr.bf16.mxu1 %v11284_v24  ;;  %v1161_v57 = vld [vmem:[#allocation5 + $0x1d88] sm:$0xff]  ;;  %v11388_v35 = vcombine.high %v1033_v62, %v1037_v15  ;;  %13503 = vst [vmem:[#allocation38_spill] sm:$0xff] %v12865_v31 }
 0x225   :  { %7067 = vmatpush2.bf16.msra.mxu0 %v11155_v45  ;;  %v1165_v1 = vld [vmem:[#allocation5 + $0x1da8] sm:$0xff] }
 0x226   :  { %7068 = vmatprep.subr.bf16.mxu0 %v11148_v28  ;;  %v11516_v51 = vcombine.high %v1161_v57, %v1165_v1  ;;  %v1025_v24 = vld [vmem:[#allocation5 + $0x1948] sm:$0xff]  ;;  %v11387_v28 = vcombine.low %v1033_v62, %v1037_v15  ;;  %v11515_v61 = vcombine.low %v1161_v57, %v1165_v1 }
 0x227   :  { %7120 = vmatpush2.bf16.msra.mxu1 %v11283_v58  ;;  %v1029_v53 = vld [vmem:[#allocation5 + $0x1968] sm:$0xff] }
 0x228   :  { %7121 = vmatprep.subr.bf16.mxu1 %v11276_v12  ;;  %v1153_v49 = vld [vmem:[#allocation5 + $0x1d48] sm:$0xff]  ;;  %v11380_v32 = vcombine.high %v1025_v24, %v1029_v53 }
 0x229   :  { %7069 = vmatpush2.bf16.msra.mxu0 %v11147_v10  ;;  %v1157_v55 = vld [vmem:[#allocation5 + $0x1d68] sm:$0xff] }
 0x22a   :  { %7144 = vmatprep.subr.bf16.mxu0 %v11396_v36  ;;  %v1017_v36 = vld [vmem:[#allocation5 + $0x1908] sm:$0xff] }
 0x22b   :  { %7122 = vmatpush2.bf16.msra.mxu1 %v11275_v44  ;;  %v11508_v44 = vcombine.high %v1153_v49, %v1157_v55  ;;  %v1149_v62 = vld [vmem:[#allocation5 + $0x1d28] sm:$0xff] }
 0x22c   :  { %7197 = vmatprep.subr.bf16.mxu1 %v11524_v20  ;;  %v6754_v5 = vpop.f32.mrf.mxu0  ;;  %7071 = vmatmul.mubr.bf16.vlgmr.msra.gmra.mxu0 %v12709_v17  ;;  %v1013_v31 = vld [vmem:[#allocation5 + $0x18e8] sm:$0xff] }
 0x22d   :  { %v6755_v45 = vadd.f32 %v6754_v5, %v12836_v19  ;;  %7145 = vmatpush1.bf16.msra.mxu0 %v11395_v3  ;;  %7080 = vmatprep.mubr.bf16.mxu0 %v12713_v29  ;;  %v1021_v19 = vld [vmem:[#allocation5 + $0x1928] sm:$0xff] }
 0x22e   :  { %v6807_v58 = vpop.f32.mrf.mxu1  ;;  %7124 = vmatmul.mubr.bf16.vlgmr.msra.gmra.mxu1 %v12711_v18  ;;  %v6756_v12 = vpop.f32.mrf.mxu0  ;;  %7146 = vmatprep.subr.bf16.mxu0 %v11388_v35  ;;  %v1145_v3 = vld [vmem:[#allocation5 + $0x1d08] sm:$0xff]  ;;  %v11507_v35 = vcombine.low %v1153_v49, %v1157_v55  ;;  %v11371_v49 = vcombine.low %v1017_v36, %v1021_v19 }
 0x22f   :  { %7198 = vmatpush1.bf16.msra.mxu1 %v11523_v2  ;;  %v6808_v42 = vadd.f32 %v6807_v58, %v6755_v45  ;;  %v6757_v47 = vadd.f32 %v6756_v12, %v12841_v46  ;;  %7133 = vmatprep.mubr.bf16.mxu1 %v12716_v33  ;;  %v11379_v2 = vcombine.low %v1025_v24, %v1029_v53  ;;  %v1009_v5 = vld [vmem:[#allocation5 + $0x18c8] sm:$0xff] }
 0x230   :  { %v6809_v10 = vpop.f32.mrf.mxu1  ;;  %7199 = vmatprep.subr.bf16.mxu1 %v11516_v51  ;;  %v6758_v20 = vpop.f32.mrf.mxu0  ;;  %v11372_v51 = vcombine.high %v1017_v36, %v1021_v19  ;;  %v11500_v12 = vcombine.high %v1145_v3, %v1149_v62  ;;  %v1133_v36 = vld [vmem:[#allocation5 + $0x1ca8] sm:$0xff] }
 0x231   :  { %v12873_v15 = vadd.f32 %v6809_v10, %v6757_v47  ;;  %v6759_v57 = vadd.f32 %v6758_v20, %v12846_v23  ;;  %7147 = vmatpush1.bf16.msra.mxu0 %v11387_v28  ;;  %v1137_v47 = vld [vmem:[#allocation5 + $0x1cc8] sm:$0xff]  ;;  %v8098_v23 = vmax.f32 %v6808_v42, 0.0 }
 0x232   :  { %v6811_v1 = vpop.f32.mrf.mxu1  ;;  %v12876_v46 = vpop.f32.mrf.mxu0  ;;  %7148 = vmatprep.subr.bf16.mxu0 %v11380_v32  ;;  %v1141_v10 = vld [vmem:[#allocation5 + $0x1ce8] sm:$0xff]  ;;  %v11364_v32 = vcombine.high %v1009_v5, %v1013_v31 }
 0x233   :  { %13504 = vst [vmem:[#allocation39_spill] sm:$0xff] %v12873_v15  ;;  %7200 = vmatpush1.bf16.msra.mxu1 %v11515_v61  ;;  %13505 = vst [vmem:[#allocation40_spill] sm:$0xff] %v12876_v46  ;;  %v6812_v45 = vadd.f32 %v6811_v1, %v6759_v57  ;;  %v11499_v61 = vcombine.low %v1145_v3, %v1149_v62 }
 0x234   :  { %v12878_v58 = vpop.f32.mrf.mxu1  ;;  %7201 = vmatprep.subr.bf16.mxu1 %v11508_v44  ;;  %v6764_v4 = vpop.f32.mrf.mxu0  ;;  %7081 = vmatmul.mubr.bf16.gmra.mxu0 %v12720_v56  ;;  %v11492_v44 = vcombine.high %v1137_v47, %v1141_v10 }
 0x235   :  { %13506 = vst [vmem:[#allocation41_spill] sm:$0xff] %v12878_v58  ;;  %v8106_v24 = vmax.f32 %v6812_v45, 0.0  ;;  %v6765_v53 = vadd.f32 %v6764_v4, %v12854_v60  ;;  %7149 = vmatpush1.bf16.msra.mxu0 %v11379_v2  ;;  %v1001_v45 = vld [vmem:[#allocation5 + $0x1888] sm:$0xff]  ;;  %7176 = vmatprep.mubr.bf16.mxu0 %v12725_v8  ;;  %v238_v58 = vld [vmem:[#allocation5 + $0xb0] sm:$0xff] }
 0x236   :  { %v6817_v28 = vpop.f32.mrf.mxu1  ;;  %7134 = vmatmul.mubr.bf16.gmra.mxu1 %v12723_v59  ;;  %v6766_v55 = vpop.f32.mrf.mxu0  ;;  %7150 = vmatprep.subr.bf16.mxu0 %v11372_v51  ;;  %v1005_v60 = vld [vmem:[#allocation5 + $0x18a8] sm:$0xff] }
 0x237   :  { %7202 = vmatpush1.bf16.msra.mxu1 %v11507_v35  ;;  %v12883_v20 = vpack.c.bf16 %v8106_v24, %v8098_v23  ;;  %v6767_v57 = vadd.f32 %v6766_v55, %v12859_v41  ;;  %v6818_v1 = vadd.f32 %v6817_v28, %v6765_v53  ;;  %v1129_v2 = vld [vmem:[#allocation5 + $0x1c88] sm:$0xff]  ;;  %7229 = vmatprep.mubr.bf16.mxu1 %v12728_v9 }
 0x238   :  { %v6819_v42 = vpop.f32.mrf.mxu1  ;;  %7203 = vmatprep.subr.bf16.mxu1 %v11500_v12  ;;  %v6768_v4 = vpop.f32.mrf.mxu0  ;;  %v11363_v35 = vcombine.low %v1009_v5, %v1013_v31  ;;  %v11491_v41 = vcombine.low %v1137_v47, %v1141_v10  ;;  %v11356_v51 = vcombine.high %v1001_v45, %v1005_v60  ;;  %v11484_v23 = vcombine.high %v1129_v2, %v1133_v36  ;;  %v993_v24 = vld [vmem:[#allocation5 + $0x1848] sm:$0xff] }
 0x239   :  { %13507 = vst [vmem:[#allocation42_spill] sm:$0xff] %v12883_v20  ;;  %v6769_v19 = vadd.f32 %v6768_v4, %v12861_v43  ;;  %v12889_v3 = vadd.f32 %v6819_v42, %v6767_v57  ;;  %7151 = vmatpush1.bf16.msra.mxu0 %v11371_v49  ;;  %v997_v53 = vld [vmem:[#allocation5 + $0x1868] sm:$0xff]  ;;  %v8114_v20 = vmax.f32 %v6818_v1, 0.0  ;;  %v11355_v43 = vcombine.low %v1001_v45, %v1005_v60 }
 0x23a   :  { %v6821_v62 = vpop.f32.mrf.mxu1  ;;  %7152 = vmatprep.subr.bf16.mxu0 %v11364_v32  ;;  %v1121_v28 = vld [vmem:[#allocation5 + $0x1c48] sm:$0xff]  ;;  %v11483_v49 = vcombine.low %v1129_v2, %v1133_v36  ;;  %v11348_v57 = vcombine.high %v993_v24, %v997_v53 }
 0x23b   :  { %13508 = vst [vmem:[#allocation43_spill] sm:$0xff] %v12889_v3  ;;  %7204 = vmatpush1.bf16.msra.mxu1 %v11499_v61  ;;  %v6822_v12 = vadd.f32 %v6821_v62, %v6769_v19  ;;  %v1125_v55 = vld [vmem:[#allocation5 + $0x1c68] sm:$0xff]  ;;  %v242_v3 = vld [vmem:[#allocation5 + $0xd0] sm:$0xff] }
 0x23c   :  { %7205 = vmatprep.subr.bf16.mxu1 %v11492_v44  ;;  %v11476_v5 = vcombine.high %v1121_v28, %v1125_v55  ;;  %v985_v47 = vld [vmem:[#allocation5 + $0x1808] sm:$0xff]  ;;  %v11347_v44 = vcombine.low %v993_v24, %v997_v53  ;;  %v11475_v1 = vcombine.low %v1121_v28, %v1125_v55 }
 0x23d   :  { %v8122_v15 = vmax.f32 %v6822_v12, 0.0  ;;  %7153 = vmatpush1.bf16.msra.mxu0 %v11363_v35  ;;  %v989_v10 = vld [vmem:[#allocation5 + $0x1828] sm:$0xff] }
 0x23e   :  { %7154 = vmatprep.subr.bf16.mxu0 %v11356_v51  ;;  %v1113_v61 = vld [vmem:[#allocation5 + $0x1c08] sm:$0xff]  ;;  %v11340_v42 = vcombine.high %v985_v47, %v989_v10 }
 0x23f   :  { %7206 = vmatpush1.bf16.msra.mxu1 %v11491_v41  ;;  %v12891_v31 = vpack.c.bf16 %v8122_v15, %v8114_v20  ;;  %v1117_v32 = vld [vmem:[#allocation5 + $0x1c28] sm:$0xff]  ;;  %v11339_v15 = vcombine.low %v985_v47, %v989_v10 }
 0x240   :  { %7207 = vmatprep.subr.bf16.mxu1 %v11484_v23  ;;  %v11468_v45 = vcombine.high %v1113_v61, %v1117_v32  ;;  %v1105_v60 = vld [vmem:[#allocation5 + $0x1bc8] sm:$0xff]  ;;  %v11467_v20 = vcombine.low %v1113_v61, %v1117_v32 }
 0x241   :  { %13509 = vst [vmem:[#allocation44_spill] sm:$0xff] %v12891_v31  ;;  %7155 = vmatpush1.bf16.msra.mxu0 %v11355_v43  ;;  %v1109_v4 = vld [vmem:[#allocation5 + $0x1be8] sm:$0xff] }
 0x242   :  { %7156 = vmatprep.subr.bf16.mxu0 %v11348_v57  ;;  %v1233_v2 = vld [vmem:[#allocation5 + $0x1fc8] sm:$0xff]  ;;  %v11460_v19 = vcombine.high %v1105_v60, %v1109_v4  ;;  %v11459_v23 = vcombine.low %v1105_v60, %v1109_v4 }
 0x243   :  { %7208 = vmatpush1.bf16.msra.mxu1 %v11483_v49  ;;  %v1237_v36 = vld [vmem:[#allocation5 + $0x1fe8] sm:$0xff] }
 0x244   :  { %7209 = vmatprep.subr.bf16.mxu1 %v11476_v5  ;;  %v11588_v62 = vcombine.high %v1233_v2, %v1237_v36  ;;  %v1097_v35 = vld [vmem:[#allocation5 + $0x1b88] sm:$0xff]  ;;  %v11587_v24 = vcombine.low %v1233_v2, %v1237_v36 }
 0x245   :  { %7157 = vmatpush1.bf16.msra.mxu0 %v11347_v44  ;;  %v1101_v41 = vld [vmem:[#allocation5 + $0x1ba8] sm:$0xff] }
 0x246   :  { %7158 = vmatprep.subr.bf16.mxu0 %v11340_v42  ;;  %v1225_v51 = vld [vmem:[#allocation5 + $0x1f88] sm:$0xff]  ;;  %v11452_v53 = vcombine.high %v1097_v35, %v1101_v41  ;;  %v11451_v5 = vcombine.low %v1097_v35, %v1101_v41 }
 0x247   :  { %7210 = vmatpush1.bf16.msra.mxu1 %v11475_v1  ;;  %v1229_v12 = vld [vmem:[#allocation5 + $0x1fa8] sm:$0xff] }
 0x248   :  { %7211 = vmatprep.subr.bf16.mxu1 %v11468_v45  ;;  %v11580_v28 = vcombine.high %v1225_v51, %v1229_v12  ;;  %v1089_v55 = vld [vmem:[#allocation5 + $0x1b48] sm:$0xff]  ;;  %v11579_v47 = vcombine.low %v1225_v51, %v1229_v12 }
 0x249   :  { %7159 = vmatpush1.bf16.msra.mxu0 %v11339_v15  ;;  %v1093_v43 = vld [vmem:[#allocation5 + $0x1b68] sm:$0xff] }
 0x24a   :  { %7160 = vmatprep.subr.bf16.mxu0 %v11460_v19  ;;  %v1217_v49 = vld [vmem:[#allocation5 + $0x1f48] sm:$0xff]  ;;  %v11444_v10 = vcombine.high %v1089_v55, %v1093_v43  ;;  %v11443_v45 = vcombine.low %v1089_v55, %v1093_v43 }
 0x24b   :  { %7212 = vmatpush1.bf16.msra.mxu1 %v11467_v20  ;;  %v1221_v57 = vld [vmem:[#allocation5 + $0x1f68] sm:$0xff] }
 0x24c   :  { %7213 = vmatprep.subr.bf16.mxu1 %v11588_v62  ;;  %v11572_v61 = vcombine.high %v1217_v49, %v1221_v57  ;;  %v1081_v32 = vld [vmem:[#allocation5 + $0x1b08] sm:$0xff]  ;;  %v11571_v60 = vcombine.low %v1217_v49, %v1221_v57 }
 0x24d   :  { %7161 = vmatpush2.bf16.msra.mxu0 %v11459_v23  ;;  %v1085_v44 = vld [vmem:[#allocation5 + $0x1b28] sm:$0xff] }
 0x24e   :  { %7162 = vmatprep.subr.bf16.mxu0 %v11452_v53  ;;  %v1209_v1 = vld [vmem:[#allocation5 + $0x1f08] sm:$0xff]  ;;  %v11436_v4 = vcombine.high %v1081_v32, %v1085_v44  ;;  %v11435_v62 = vcombine.low %v1081_v32, %v1085_v44 }
 0x24f   :  { %7214 = vmatpush2.bf16.msra.mxu1 %v11587_v24  ;;  %v1213_v42 = vld [vmem:[#allocation5 + $0x1f28] sm:$0xff] }
 0x250   :  { %7215 = vmatprep.subr.bf16.mxu1 %v11580_v28  ;;  %v11564_v2 = vcombine.high %v1209_v1, %v1213_v42  ;;  %v1073_v36 = vld [vmem:[#allocation5 + $0x1ac8] sm:$0xff]  ;;  %v11563_v35 = vcombine.low %v1209_v1, %v1213_v42 }
 0x251   :  { %7163 = vmatpush2.bf16.msra.mxu0 %v11451_v5  ;;  %v1077_v15 = vld [vmem:[#allocation5 + $0x1ae8] sm:$0xff] }
 0x252   :  { %7164 = vmatprep.subr.bf16.mxu0 %v11444_v10  ;;  %v1201_v20 = vld [vmem:[#allocation5 + $0x1ec8] sm:$0xff]  ;;  %v11428_v41 = vcombine.high %v1073_v36, %v1077_v15  ;;  %v11427_v28 = vcombine.low %v1073_v36, %v1077_v15 }
 0x253   :  { %7216 = vmatpush2.bf16.msra.mxu1 %v11579_v47  ;;  %v1205_v19 = vld [vmem:[#allocation5 + $0x1ee8] sm:$0xff] }
 0x254   :  { %7217 = vmatprep.subr.bf16.mxu1 %v11572_v61  ;;  %v11556_v51 = vcombine.high %v1201_v20, %v1205_v19  ;;  %v1065_v12 = vld [vmem:[#allocation5 + $0x1a88] sm:$0xff]  ;;  %v11555_v55 = vcombine.low %v1201_v20, %v1205_v19  ;;  %v274_v19 = vld [vmem:[#allocation5 + $0x1d0] sm:$0xff] }
 0x255   :  { %7165 = vmatpush2.bf16.msra.mxu0 %v11443_v45  ;;  %v1069_v23 = vld [vmem:[#allocation5 + $0x1aa8] sm:$0xff] }
 0x256   :  { %7166 = vmatprep.subr.bf16.mxu0 %v11436_v4  ;;  %v1193_v24 = vld [vmem:[#allocation5 + $0x1e88] sm:$0xff]  ;;  %v11420_v43 = vcombine.high %v1065_v12, %v1069_v23  ;;  %v11419_v61 = vcombine.low %v1065_v12, %v1069_v23  ;;  %v13478_v12 = vsub.s32 2, %v12733_v30 }
 0x257   :  { %7218 = vmatpush2.bf16.msra.mxu1 %v11571_v60  ;;  %v1197_v53 = vld [vmem:[#allocation5 + $0x1ea8] sm:$0xff] }
 0x258   :  { %7219 = vmatprep.subr.bf16.mxu1 %v11564_v2  ;;  %v11548_v49 = vcombine.high %v1193_v24, %v1197_v53  ;;  %v1057_v57 = vld [vmem:[#allocation5 + $0x1a48] sm:$0xff]  ;;  %v11547_v32 = vcombine.low %v1193_v24, %v1197_v53 }
 0x259   :  { %7167 = vmatpush2.bf16.msra.mxu0 %v11435_v62  ;;  %v1061_v5 = vld [vmem:[#allocation5 + $0x1a68] sm:$0xff]  ;;  %v278_v62 = vld [vmem:[#allocation5 + $0x1f0] sm:$0xff] }
 0x25a   :  { %7168 = vmatprep.subr.bf16.mxu0 %v11428_v41  ;;  %v1185_v47 = vld [vmem:[#allocation5 + $0x1e48] sm:$0xff]  ;;  %v11412_v44 = vcombine.high %v1057_v57, %v1061_v5  ;;  %v11411_v2 = vcombine.low %v1057_v57, %v1061_v5  ;;  %v406_v41 = vld [vmem:[#allocation5 + $0x5f0] sm:$0xff]  ;;  %v10630_v24 = vcombine.high %v274_v19, %v278_v62  ;;  %v12372_v57 = vld [vmem:[#allocation7] sm:$0xff] }
 0x25b   :  { %7220 = vmatpush2.bf16.msra.mxu1 %v11563_v35  ;;  %v1189_v10 = vld [vmem:[#allocation5 + $0x1e68] sm:$0xff]  ;;  %v402_v35 = vld [vmem:[#allocation5 + $0x5d0] sm:$0xff]  ;;  %v12896_v5 = vrot.slane %v12372_v57, %v13478_v12 }
 0x25c   :  { %7221 = vmatprep.subr.bf16.mxu1 %v11556_v51  ;;  %v11540_v1 = vcombine.high %v1185_v47, %v1189_v10  ;;  %v1049_v42 = vld [vmem:[#allocation5 + $0x1a08] sm:$0xff]  ;;  %v11539_v36 = vcombine.low %v1185_v47, %v1189_v10  ;;  %v10758_v53 = vcombine.high %v402_v35, %v406_v41  ;;  %v10629_v47 = vcombine.low %v274_v19, %v278_v62  ;;  %v12898_v10 = vpop.f32.mrf.mxu0 }
 0x25d   :  { %7169 = vmatpush2.bf16.msra.mxu0 %v11427_v28  ;;  %v1053_v45 = vld [vmem:[#allocation5 + $0x1a28] sm:$0xff]  ;;  %v266_v28 = vld [vmem:[#allocation5 + $0x190] sm:$0xff]  ;;  %13510 = vst [vmem:[#allocation45_spill] sm:$0xff] %v12898_v10 }
 0x25e   :  { %7170 = vmatprep.subr.bf16.mxu0 %v11420_v43  ;;  %v1177_v60 = vld [vmem:[#allocation5 + $0x1e08] sm:$0xff]  ;;  %v11404_v15 = vcombine.high %v1049_v42, %v1053_v45  ;;  %v11403_v51 = vcombine.low %v1049_v42, %v1053_v45  ;;  %v394_v43 = vld [vmem:[#allocation5 + $0x590] sm:$0xff] }
 0x25f   :  { %7222 = vmatpush2.bf16.msra.mxu1 %v11555_v55  ;;  %v1181_v4 = vld [vmem:[#allocation5 + $0x1e28] sm:$0xff]  ;;  %v270_v55 = vld [vmem:[#allocation5 + $0x1b0] sm:$0xff] }
 0x260   :  { %7223 = vmatprep.subr.bf16.mxu1 %v11548_v49  ;;  %v11532_v20 = vcombine.high %v1177_v60, %v1181_v4  ;;  %v11531_v23 = vcombine.low %v1177_v60, %v1181_v4  ;;  %v398_v49 = vld [vmem:[#allocation5 + $0x5b0] sm:$0xff] }
 0x261   :  { %7171 = vmatpush2.bf16.msra.mxu0 %v11419_v61  ;;  %v10757_v61 = vcombine.low %v402_v35, %v406_v41  ;;  %v258_v42 = vld [vmem:[#allocation5 + $0x150] sm:$0xff]  ;;  %v10749_v62 = vcombine.low %v394_v43, %v398_v49 }
 0x262   :  { %7172 = vmatprep.subr.bf16.mxu0 %v11412_v44  ;;  %v12900_v44 = vpop.f32.mrf.mxu1  ;;  %v262_v45 = vld [vmem:[#allocation5 + $0x170] sm:$0xff] }
 0x263   :  { %7224 = vmatpush2.bf16.msra.mxu1 %v11547_v32  ;;  %v10622_v32 = vcombine.high %v266_v28, %v270_v55  ;;  %13511 = vst [vmem:[#allocation46_spill] sm:$0xff] %v12900_v44  ;;  %v386_v4 = vld [vmem:[#allocation5 + $0x550] sm:$0xff]  ;;  %v10614_v35 = vcombine.high %v258_v42, %v262_v45 }
 0x264   :  { %7225 = vmatprep.subr.bf16.mxu1 %v11540_v1  ;;  %v10750_v1 = vcombine.high %v394_v43, %v398_v49  ;;  %v246_v44 = vld [vmem:[#allocation5 + $0xf0] sm:$0xff] }
 0x265   :  { %7173 = vmatpush2.bf16.msra.mxu0 %v11411_v2  ;;  %v390_v2 = vld [vmem:[#allocation5 + $0x570] sm:$0xff] }
 0x266   :  { %7174 = vmatprep.subr.bf16.mxu0 %v11404_v15  ;;  %v234_v10 = vld [vmem:[#allocation5 + $0x90] sm:$0xff] }
 0x267   :  { %7226 = vmatpush2.bf16.msra.mxu1 %v11539_v36 }
 0x268   :  { %7227 = vmatprep.subr.bf16.mxu1 %v11532_v20  ;;  %v10621_v20 = vcombine.low %v266_v28, %v270_v55  ;;  %v378_v28 = vld [vmem:[#allocation5 + $0x510] sm:$0xff] }
 0x269   :  { %7175 = vmatpush2.bf16.msra.mxu0 %v11403_v51  ;;  %v382_v55 = vld [vmem:[#allocation5 + $0x530] sm:$0xff] }
 0x26a   :  { %7250 = vmatprep.subr.bf16.mxu0 %v10630_v24  ;;  %v250_v24 = vld [vmem:[#allocation5 + $0x110] sm:$0xff]  ;;  %v10734_v31 = vcombine.high %v378_v28, %v382_v55 }
 0x26b   :  { %7228 = vmatpush2.bf16.msra.mxu1 %v11531_v23  ;;  %v10742_v23 = vcombine.high %v386_v4, %v390_v2 }
 0x26c   :  { %7303 = vmatprep.subr.bf16.mxu1 %v10758_v53  ;;  %v6860_v60 = vpop.f32.mrf.mxu0  ;;  %7177 = vmatmul.mubr.bf16.vlgmr.msra.gmra.mxu0 %v12741_v11  ;;  %v254_v53 = vld [vmem:[#allocation5 + $0x130] sm:$0xff] }
 0x26d   :  { %v6861_v36 = vadd.f32 %v6860_v60, %v12896_v5  ;;  %7251 = vmatpush1.bf16.msra.mxu0 %v10629_v47  ;;  %7186 = vmatprep.mubr.bf16.mxu0 %v12755_v27  ;;  %v374_v47 = vld [vmem:[#allocation5 + $0x4f0] sm:$0xff] }
 0x26e   :  { %v6913_v15 = vpop.f32.mrf.mxu1  ;;  %7230 = vmatmul.mubr.bf16.vlgmr.msra.gmra.mxu1 %v12747_v13  ;;  %v12905_v19 = vpop.f32.mrf.mxu0  ;;  %7252 = vmatprep.subr.bf16.mxu0 %v10622_v32 }
 0x26f   :  { %7304 = vmatpush1.bf16.msra.mxu1 %v10757_v61  ;;  %13512 = vst [vmem:[#allocation47_spill] sm:$0xff] %v12905_v19  ;;  %v12907_v41 = vadd.f32 %v6913_v15, %v6861_v36  ;;  %7239 = vmatprep.mubr.bf16.mxu1 %v12758_v39  ;;  %v10613_v61 = vcombine.low %v258_v42, %v262_v45  ;;  %v13516_v42 = vsub.s32 3, %v12733_v30  ;;  %v354_v19 = vld [vmem:[#allocation5 + $0x450] sm:$0xff] }
 0x270   :  { %v12909_v51 = vpop.f32.mrf.mxu1  ;;  %7305 = vmatprep.subr.bf16.mxu1 %v10750_v1  ;;  %v6864_v60 = vpop.f32.mrf.mxu0  ;;  %v10741_v1 = vcombine.low %v386_v4, %v390_v2  ;;  %v10606_v36 = vcombine.high %v250_v24, %v254_v53  ;;  %v10605_v4 = vcombine.low %v250_v24, %v254_v53  ;;  %v362_v24 = vld [vmem:[#allocation5 + $0x490] sm:$0xff] }
 0x271   :  { %13513 = vst [vmem:[#allocation48_spill] sm:$0xff] %v12909_v51  ;;  %v6865_v43 = vadd.f32 %v6864_v60, %v12896_v5  ;;  %7253 = vmatpush1.bf16.msra.mxu0 %v10621_v20  ;;  %v370_v60 = vld [vmem:[#allocation5 + $0x4d0] sm:$0xff]  ;;  %v12924_v45 = vrot.slane %v12372_v57, %v13516_v42 }
 0x272   :  { %v6917_v49 = vpop.f32.mrf.mxu1  ;;  %v12915_v32 = vpop.f32.mrf.mxu0  ;;  %7254 = vmatprep.subr.bf16.mxu0 %v10614_v35  ;;  %v10733_v35 = vcombine.low %v378_v28, %v382_v55  ;;  %v13518_v42 = vld [vmem:[#allocation23_spill] sm:$0xff]  ;;  %v10597_v28 = vcombine.low %v242_v3, %v246_v44 }
 0x273   :  { %7306 = vmatpush1.bf16.msra.mxu1 %v10749_v62  ;;  %13514 = vst [vmem:[#allocation49_spill] sm:$0xff] %v12915_v32  ;;  %v12917_v15 = vadd.f32 %v6917_v49, %v6865_v43  ;;  %13517 = vst [vmem:[#allocation51_spill] sm:$0xff] %v12924_v45  ;;  %v10726_v49 = vcombine.high %v370_v60, %v374_v47  ;;  %v366_v53 = vld [vmem:[#allocation5 + $0x4b0] sm:$0xff] }
 0x274   :  { %v12919_v12 = vpop.f32.mrf.mxu1  ;;  %7307 = vmatprep.subr.bf16.mxu1 %v10742_v23  ;;  %7187 = vmatmul.mubr.bf16.gmra.mxu0 %v12768_v16  ;;  %v6870_v20 = vpop.f32.mrf.mxu0  ;;  %v10598_v23 = vcombine.high %v242_v3, %v246_v44  ;;  %v230_v51 = vld [vmem:[#allocation5 + $0x70] sm:$0xff]  ;;  %v10717_v3 = vcombine.low %v362_v24, %v366_v53 }
 0x275   :  { %13515 = vst [vmem:[#allocation50_spill] sm:$0xff] %v12919_v12  ;;  %7255 = vmatpush1.bf16.msra.mxu0 %v10613_v61  ;;  %v6871_v2 = vadd.f32 %v6870_v20, %v12896_v5  ;;  %7282 = vmatprep.mubr.bf16.mxu0 %v13518_v42  ;;  %v358_v32 = vld [vmem:[#allocation5 + $0x470] sm:$0xff] }
 0x276   :  { %7240 = vmatmul.mubr.bf16.gmra.mxu1 %v12774_v26  ;;  %v6923_v62 = vpop.f32.mrf.mxu1  ;;  %7256 = vmatprep.subr.bf16.mxu0 %v10606_v36  ;;  %v6872_v43 = vpop.f32.mrf.mxu0  ;;  %v10590_v36 = vcombine.high %v234_v10, %v238_v58  ;;  %v218_v44 = vld [vmem:[#allocation5 + $0x10] sm:$0xff] }
 0x277   :  { %7308 = vmatpush1.bf16.msra.mxu1 %v10741_v1  ;;  %v6873_v46 = vadd.f32 %v6872_v43, %v12924_v45  ;;  %v12929_v57 = vadd.f32 %v6923_v62, %v6871_v2  ;;  %7335 = vmatprep.mubr.bf16.mxu1 %v12657_v63  ;;  %v10725_v1 = vcombine.low %v370_v60, %v374_v47  ;;  %v226_v43 = vld [vmem:[#allocation5 + $0x50] sm:$0xff] }
 0x278   :  { %7309 = vmatprep.subr.bf16.mxu1 %v10734_v31  ;;  %v6925_v61 = vpop.f32.mrf.mxu1  ;;  %v6874_v20 = vpop.f32.mrf.mxu0  ;;  %v10718_v62 = vcombine.high %v362_v24, %v366_v53  ;;  %v222_v47 = vld [vmem:[#allocation5 + $0x30] sm:$0xff] }
 0x279   :  { %7257 = vmatpush1.bf16.msra.mxu0 %v10605_v4  ;;  %v6875_v55 = vadd.f32 %v6874_v20, %v12896_v5  ;;  %v12934_v31 = vadd.f32 %v6925_v61, %v6873_v46  ;;  %v10589_v4 = vcombine.low %v234_v10, %v238_v58  ;;  %v10582_v46 = vcombine.high %v226_v43, %v230_v51  ;;  %v346_v60 = vld [vmem:[#allocation5 + $0x410] sm:$0xff] }
 0x27a   :  { %7258 = vmatprep.subr.bf16.mxu0 %v10598_v23  ;;  %v6927_v2 = vpop.f32.mrf.mxu1  ;;  %v10710_v5 = vcombine.high %v354_v19, %v358_v32  ;;  %v10581_v23 = vcombine.low %v226_v43, %v230_v51  ;;  %v10574_v61 = vcombine.high %v218_v44, %v222_v47  ;;  %v342_v58 = vld [vmem:[#allocation5 + $0x3f0] sm:$0xff]  ;;  %v10573_v24 = vcombine.low %v218_v44, %v222_v47 }
 0x27b   :  { %7310 = vmatpush1.bf16.msra.mxu1 %v10733_v35  ;;  %v12936_v12 = vadd.f32 %v6927_v2, %v6875_v55  ;;  %v350_v35 = vld [vmem:[#allocation5 + $0x430] sm:$0xff] }
 0x27c   :  { %7311 = vmatprep.subr.bf16.mxu1 %v10726_v49  ;;  %v10709_v49 = vcombine.low %v354_v19, %v358_v32  ;;  %v10702_v20 = vcombine.high %v346_v60, %v350_v35  ;;  %v466_v10 = vld [vmem:[#allocation5 + $0x7d0] sm:$0xff]  ;;  %v10701_v53 = vcombine.low %v346_v60, %v350_v35 }
 0x27d   :  { %7259 = vmatpush1.bf16.msra.mxu0 %v10597_v28  ;;  %v338_v28 = vld [vmem:[#allocation5 + $0x3d0] sm:$0xff] }
 0x27e   :  { %7260 = vmatprep.subr.bf16.mxu0 %v10590_v36  ;;  %v470_v55 = vld [vmem:[#allocation5 + $0x7f0] sm:$0xff]  ;;  %v10693_v19 = vcombine.low %v338_v28, %v342_v58 }
 0x27f   :  { %7312 = vmatpush1.bf16.msra.mxu1 %v10725_v1  ;;  %v10694_v1 = vcombine.high %v338_v28, %v342_v58  ;;  %v10822_v36 = vcombine.high %v466_v10, %v470_v55  ;;  %v330_v2 = vld [vmem:[#allocation5 + $0x390] sm:$0xff]  ;;  %v10821_v32 = vcombine.low %v466_v10, %v470_v55 }
 0x280   :  { %7313 = vmatprep.subr.bf16.mxu1 %v10718_v62  ;;  %v334_v51 = vld [vmem:[#allocation5 + $0x3b0] sm:$0xff] }
 0x281   :  { %7261 = vmatpush1.bf16.msra.mxu0 %v10589_v4  ;;  %v458_v62 = vld [vmem:[#allocation5 + $0x790] sm:$0xff]  ;;  %v10686_v4 = vcombine.high %v330_v2, %v334_v51  ;;  %v10685_v60 = vcombine.low %v330_v2, %v334_v51 }
 0x282   :  { %7262 = vmatprep.subr.bf16.mxu0 %v10582_v46  ;;  %v462_v43 = vld [vmem:[#allocation5 + $0x7b0] sm:$0xff] }
 0x283   :  { %7314 = vmatpush1.bf16.msra.mxu1 %v10717_v3  ;;  %v10814_v3 = vcombine.high %v458_v62, %v462_v43  ;;  %v322_v46 = vld [vmem:[#allocation5 + $0x350] sm:$0xff]  ;;  %v10813_v35 = vcombine.low %v458_v62, %v462_v43 }
 0x284   :  { %7315 = vmatprep.subr.bf16.mxu1 %v10710_v5  ;;  %v326_v5 = vld [vmem:[#allocation5 + $0x370] sm:$0xff] }
 0x285   :  { %7263 = vmatpush1.bf16.msra.mxu0 %v10581_v23  ;;  %v450_v44 = vld [vmem:[#allocation5 + $0x750] sm:$0xff]  ;;  %v10678_v23 = vcombine.high %v322_v46, %v326_v5  ;;  %v10677_v10 = vcombine.low %v322_v46, %v326_v5 }
 0x286   :  { %7264 = vmatprep.subr.bf16.mxu0 %v10574_v61  ;;  %v454_v47 = vld [vmem:[#allocation5 + $0x770] sm:$0xff] }
 0x287   :  { %7316 = vmatpush1.bf16.msra.mxu1 %v10709_v49  ;;  %v10806_v49 = vcombine.high %v450_v44, %v454_v47  ;;  %v314_v61 = vld [vmem:[#allocation5 + $0x310] sm:$0xff]  ;;  %v10805_v55 = vcombine.low %v450_v44, %v454_v47 }
 0x288   :  { %7317 = vmatprep.subr.bf16.mxu1 %v10702_v20  ;;  %v318_v20 = vld [vmem:[#allocation5 + $0x330] sm:$0xff] }
 0x289   :  { %7265 = vmatpush1.bf16.msra.mxu0 %v10573_v24  ;;  %v442_v28 = vld [vmem:[#allocation5 + $0x710] sm:$0xff]  ;;  %v10670_v24 = vcombine.high %v314_v61, %v318_v20  ;;  %v10669_v62 = vcombine.low %v314_v61, %v318_v20 }
 0x28a   :  { %7266 = vmatprep.subr.bf16.mxu0 %v10694_v1  ;;  %v446_v58 = vld [vmem:[#allocation5 + $0x730] sm:$0xff] }
 0x28b   :  { %7318 = vmatpush1.bf16.msra.mxu1 %v10701_v53  ;;  %v10798_v53 = vcombine.high %v442_v28, %v446_v58  ;;  %v306_v1 = vld [vmem:[#allocation5 + $0x2d0] sm:$0xff]  ;;  %v10797_v43 = vcombine.low %v442_v28, %v446_v58 }
 0x28c   :  { %7319 = vmatprep.subr.bf16.mxu1 %v10822_v36  ;;  %v310_v36 = vld [vmem:[#allocation5 + $0x2f0] sm:$0xff] }
 0x28d   :  { %7267 = vmatpush2.bf16.msra.mxu0 %v10693_v19  ;;  %v434_v2 = vld [vmem:[#allocation5 + $0x6d0] sm:$0xff]  ;;  %v10662_v19 = vcombine.high %v306_v1, %v310_v36  ;;  %v10661_v44 = vcombine.low %v306_v1, %v310_v36 }
 0x28e   :  { %7268 = vmatprep.subr.bf16.mxu0 %v10686_v4  ;;  %v438_v51 = vld [vmem:[#allocation5 + $0x6f0] sm:$0xff] }
 0x28f   :  { %7320 = vmatpush2.bf16.msra.mxu1 %v10821_v32  ;;  %v10790_v32 = vcombine.high %v434_v2, %v438_v51  ;;  %v298_v4 = vld [vmem:[#allocation5 + $0x290] sm:$0xff]  ;;  %v10789_v47 = vcombine.low %v434_v2, %v438_v51 }
 0x290   :  { %7321 = vmatprep.subr.bf16.mxu1 %v10814_v3  ;;  %v302_v3 = vld [vmem:[#allocation5 + $0x2b0] sm:$0xff] }
 0x291   :  { %7269 = vmatpush2.bf16.msra.mxu0 %v10685_v60  ;;  %v426_v46 = vld [vmem:[#allocation5 + $0x690] sm:$0xff]  ;;  %v10654_v60 = vcombine.high %v298_v4, %v302_v3  ;;  %v10653_v28 = vcombine.low %v298_v4, %v302_v3 }
 0x292   :  { %7270 = vmatprep.subr.bf16.mxu0 %v10678_v23  ;;  %v430_v5 = vld [vmem:[#allocation5 + $0x6b0] sm:$0xff] }
 0x293   :  { %7322 = vmatpush2.bf16.msra.mxu1 %v10813_v35  ;;  %v10782_v35 = vcombine.high %v426_v46, %v430_v5  ;;  %v290_v23 = vld [vmem:[#allocation5 + $0x250] sm:$0xff]  ;;  %v10781_v58 = vcombine.low %v426_v46, %v430_v5 }
 0x294   :  { %7323 = vmatprep.subr.bf16.mxu1 %v10806_v49  ;;  %v294_v49 = vld [vmem:[#allocation5 + $0x270] sm:$0xff] }
 0x295   :  { %7271 = vmatpush2.bf16.msra.mxu0 %v10677_v10  ;;  %v418_v61 = vld [vmem:[#allocation5 + $0x650] sm:$0xff]  ;;  %v10646_v10 = vcombine.high %v290_v23, %v294_v49  ;;  %v10645_v2 = vcombine.low %v290_v23, %v294_v49 }
 0x296   :  { %7272 = vmatprep.subr.bf16.mxu0 %v10670_v24  ;;  %v422_v20 = vld [vmem:[#allocation5 + $0x670] sm:$0xff] }
 0x297   :  { %7324 = vmatpush2.bf16.msra.mxu1 %v10805_v55  ;;  %v10774_v55 = vcombine.high %v418_v61, %v422_v20  ;;  %v282_v24 = vld [vmem:[#allocation5 + $0x210] sm:$0xff]  ;;  %v10773_v51 = vcombine.low %v418_v61, %v422_v20  ;;  %v12938_v20 = vpop.f32.mrf.mxu0 }
 0x298   :  { %7325 = vmatprep.subr.bf16.mxu1 %v10798_v53  ;;  %v286_v53 = vld [vmem:[#allocation5 + $0x230] sm:$0xff]  ;;  %13519 = vst [vmem:[#allocation23_spill] sm:$0xff] %v12938_v20 }
 0x299   :  { %7273 = vmatpush2.bf16.msra.mxu0 %v10669_v62  ;;  %v410_v1 = vld [vmem:[#allocation5 + $0x610] sm:$0xff]  ;;  %v10638_v62 = vcombine.high %v282_v24, %v286_v53  ;;  %v10637_v46 = vcombine.low %v282_v24, %v286_v53 }
 0x29a   :  { %7274 = vmatprep.subr.bf16.mxu0 %v10662_v19  ;;  %v414_v36 = vld [vmem:[#allocation5 + $0x630] sm:$0xff] }
 0x29b   :  { %7326 = vmatpush2.bf16.msra.mxu1 %v10797_v43  ;;  %v10766_v43 = vcombine.high %v410_v1, %v414_v36  ;;  %v530_v19 = vld [vmem:[#allocation5 + $0x9d0] sm:$0xff]  ;;  %v10765_v5 = vcombine.low %v410_v1, %v414_v36 }
 0x29c   :  { %7327 = vmatprep.subr.bf16.mxu1 %v10790_v32  ;;  %v534_v32 = vld [vmem:[#allocation5 + $0x9f0] sm:$0xff] }
 0x29d   :  { %7275 = vmatpush2.bf16.msra.mxu0 %v10661_v44  ;;  %v658_v4 = vld [vmem:[#allocation5 + $0xdd0] sm:$0xff]  ;;  %v10886_v44 = vcombine.high %v530_v19, %v534_v32  ;;  %v10885_v61 = vcombine.low %v530_v19, %v534_v32 }
 0x29e   :  { %7276 = vmatprep.subr.bf16.mxu0 %v10654_v60  ;;  %v662_v3 = vld [vmem:[#allocation5 + $0xdf0] sm:$0xff] }
 0x29f   :  { %7328 = vmatpush2.bf16.msra.mxu1 %v10789_v47  ;;  %v11014_v47 = vcombine.high %v658_v4, %v662_v3  ;;  %v522_v60 = vld [vmem:[#allocation5 + $0x990] sm:$0xff] }
 0x2a0   :  { %7329 = vmatprep.subr.bf16.mxu1 %v10782_v35  ;;  %v526_v35 = vld [vmem:[#allocation5 + $0x9b0] sm:$0xff] }
 0x2a1   :  { %7277 = vmatpush2.bf16.msra.mxu0 %v10653_v28  ;;  %v650_v23 = vld [vmem:[#allocation5 + $0xd90] sm:$0xff]  ;;  %v11013_v28 = vcombine.low %v658_v4, %v662_v3 }
 0x2a2   :  { %7278 = vmatprep.subr.bf16.mxu0 %v10646_v10  ;;  %v654_v49 = vld [vmem:[#allocation5 + $0xdb0] sm:$0xff]  ;;  %v12940_v10 = vpop.f32.mrf.mxu1 }
 0x2a3   :  { %7330 = vmatpush2.bf16.msra.mxu1 %v10781_v58  ;;  %v10878_v58 = vcombine.high %v522_v60, %v526_v35  ;;  %13520 = vst [vmem:[#allocation52_spill] sm:$0xff] %v12940_v10  ;;  %v514_v24 = vld [vmem:[#allocation5 + $0x950] sm:$0xff]  ;;  %v11005_v32 = vcombine.low %v650_v23, %v654_v49 }
 0x2a4   :  { %7331 = vmatprep.subr.bf16.mxu1 %v10774_v55  ;;  %v11006_v55 = vcombine.high %v650_v23, %v654_v49  ;;  %v518_v53 = vld [vmem:[#allocation5 + $0x970] sm:$0xff] }
 0x2a5   :  { %7279 = vmatpush2.bf16.msra.mxu0 %v10645_v2  ;;  %v642_v36 = vld [vmem:[#allocation5 + $0xd50] sm:$0xff]  ;;  %v10870_v4 = vcombine.high %v514_v24, %v518_v53  ;;  %v10869_v23 = vcombine.low %v514_v24, %v518_v53 }
 0x2a6   :  { %7280 = vmatprep.subr.bf16.mxu0 %v10638_v62  ;;  %v646_v2 = vld [vmem:[#allocation5 + $0xd70] sm:$0xff] }
 0x2a7   :  { %7332 = vmatpush2.bf16.msra.mxu1 %v10773_v51  ;;  %v498_v10 = vld [vmem:[#allocation5 + $0x8d0] sm:$0xff] }
 0x2a8   :  { %7333 = vmatprep.subr.bf16.mxu1 %v10766_v43  ;;  %v10877_v43 = vcombine.low %v522_v60, %v526_v35  ;;  %v502_v20 = vld [vmem:[#allocation5 + $0x8f0] sm:$0xff] }
 0x2a9   :  { %7281 = vmatpush2.bf16.msra.mxu0 %v10637_v46  ;;  %v614_v45 = vld [vmem:[#allocation5 + $0xc70] sm:$0xff] }
 0x2aa   :  { %7356 = vmatprep.subr.bf16.mxu0 %v10886_v44  ;;  %v506_v44 = vld [vmem:[#allocation5 + $0x910] sm:$0xff] }
 0x2ab   :  { %7334 = vmatpush2.bf16.msra.mxu1 %v10765_v5  ;;  %v10998_v5 = vcombine.high %v642_v36, %v646_v2 }
 0x2ac   :  { %7409 = vmatprep.subr.bf16.mxu1 %v11014_v47  ;;  %v6966_v1 = vpop.f32.mrf.mxu0  ;;  %7283 = vmatmul.mubr.bf16.vlgmr.msra.gmra.mxu0 %v12661_v21  ;;  %v510_v47 = vld [vmem:[#allocation5 + $0x930] sm:$0xff] }
 0x2ad   :  { %v6967_v51 = vadd.f32 %v6966_v1, %v12907_v41  ;;  %7357 = vmatpush1.bf16.msra.mxu0 %v10885_v61  ;;  %7292 = vmatprep.mubr.bf16.mxu0 %v12665_v34  ;;  %v634_v1 = vld [vmem:[#allocation5 + $0xd10] sm:$0xff] }
 0x2ae   :  { %v7019_v62 = vpop.f32.mrf.mxu1  ;;  %7336 = vmatmul.mubr.bf16.vlgmr.msra.gmra.mxu1 %v12663_v25  ;;  %v12945_v19 = vpop.f32.mrf.mxu0  ;;  %7358 = vmatprep.subr.bf16.mxu0 %v10878_v58  ;;  %v638_v61 = vld [vmem:[#allocation5 + $0xd30] sm:$0xff]  ;;  %v10862_v58 = vcombine.high %v506_v44, %v510_v47 }
 0x2af   :  { %7410 = vmatpush1.bf16.msra.mxu1 %v11013_v28  ;;  %13521 = vst [vmem:[#allocation53_spill] sm:$0xff] %v12945_v19  ;;  %v12947_v3 = vadd.f32 %v7019_v62, %v6967_v51  ;;  %7345 = vmatprep.mubr.bf16.mxu1 %v12668_v37  ;;  %v10997_v28 = vcombine.low %v642_v36, %v646_v2  ;;  %v626_v19 = vld [vmem:[#allocation5 + $0xcd0] sm:$0xff] }
 0x2b0   :  { %v12949_v46 = vpop.f32.mrf.mxu1  ;;  %7411 = vmatprep.subr.bf16.mxu1 %v11006_v55  ;;  %v6970_v41 = vpop.f32.mrf.mxu0  ;;  %v10990_v62 = vcombine.high %v634_v1, %v638_v61  ;;  %v10989_v2 = vcombine.low %v634_v1, %v638_v61  ;;  %v10853_v61 = vcombine.low %v498_v10, %v502_v20 }
 0x2b1   :  { %13522 = vst [vmem:[#allocation54_spill] sm:$0xff] %v12949_v46  ;;  %v6971_v60 = vadd.f32 %v6970_v41, %v12917_v15  ;;  %7359 = vmatpush1.bf16.msra.mxu0 %v10877_v43  ;;  %v630_v15 = vld [vmem:[#allocation5 + $0xcf0] sm:$0xff]  ;;  %v10861_v43 = vcombine.low %v506_v44, %v510_v47 }
 0x2b2   :  { %v7023_v35 = vpop.f32.mrf.mxu1  ;;  %v12954_v49 = vpop.f32.mrf.mxu0  ;;  %7360 = vmatprep.subr.bf16.mxu0 %v10870_v4  ;;  %v622_v44 = vld [vmem:[#allocation5 + $0xcb0] sm:$0xff] }
 0x2b3   :  { %7412 = vmatpush1.bf16.msra.mxu1 %v11005_v32  ;;  %13523 = vst [vmem:[#allocation55_spill] sm:$0xff] %v12954_v49  ;;  %v12956_v55 = vadd.f32 %v7023_v35, %v6971_v60  ;;  %v10854_v32 = vcombine.high %v498_v10, %v502_v20  ;;  %v10982_v60 = vcombine.high %v626_v19, %v630_v15  ;;  %v490_v35 = vld [vmem:[#allocation5 + $0x890] sm:$0xff] }
 0x2b4   :  { %v12958_v51 = vpop.f32.mrf.mxu1  ;;  %7413 = vmatprep.subr.bf16.mxu1 %v10998_v5  ;;  %v6976_v46 = vpop.f32.mrf.mxu0  ;;  %7293 = vmatmul.mubr.bf16.gmra.mxu0 %v12672_v50  ;;  %v13525_v47 = vld [vmem:[#allocation24_spill] sm:$0xff] }
 0x2b5   :  { %13524 = vst [vmem:[#allocation56_spill] sm:$0xff] %v12958_v51  ;;  %v6977_v24 = vadd.f32 %v6976_v46, %v12929_v57  ;;  %7361 = vmatpush1.bf16.msra.mxu0 %v10869_v23  ;;  %v494_v51 = vld [vmem:[#allocation5 + $0x8b0] sm:$0xff]  ;;  %7388 = vmatprep.mubr.bf16.mxu0 %v12677_v0 }
 0x2b6   :  { %v7029_v53 = vpop.f32.mrf.mxu1  ;;  %7346 = vmatmul.mubr.bf16.gmra.mxu1 %v12675_v54  ;;  %v6978_v36 = vpop.f32.mrf.mxu0  ;;  %7362 = vmatprep.subr.bf16.mxu0 %v10862_v58  ;;  %v618_v46 = vld [vmem:[#allocation5 + $0xc90] sm:$0xff]  ;;  %v10846_v58 = vcombine.high %v490_v35, %v494_v51 }
 0x2b7   :  { %7414 = vmatpush1.bf16.msra.mxu1 %v10997_v28  ;;  %v6979_v4 = vadd.f32 %v6978_v36, %v12934_v31  ;;  %v12964_v5 = vadd.f32 %v7029_v53, %v6977_v24  ;;  %7441 = vmatprep.mubr.bf16.mxu1 %v13525_v47  ;;  %v10981_v28 = vcombine.low %v626_v19, %v630_v15  ;;  %v482_v53 = vld [vmem:[#allocation5 + $0x850] sm:$0xff] }
 0x2b8   :  { %v7031_v41 = vpop.f32.mrf.mxu1  ;;  %7415 = vmatprep.subr.bf16.mxu1 %v10990_v62  ;;  %v6980_v57 = vpop.f32.mrf.mxu0  ;;  %v10974_v24 = vcombine.high %v618_v46, %v622_v44  ;;  %v486_v36 = vld [vmem:[#allocation5 + $0x870] sm:$0xff]  ;;  %v10845_v47 = vcombine.low %v490_v35, %v494_v51 }
 0x2b9   :  { %v6981_v23 = vadd.f32 %v6980_v57, %v12936_v12  ;;  %v12969_v1 = vadd.f32 %v7031_v41, %v6979_v4  ;;  %7363 = vmatpush1.bf16.msra.mxu0 %v10861_v43  ;;  %v610_v49 = vld [vmem:[#allocation5 + $0xc50] sm:$0xff]  ;;  %v10973_v12 = vcombine.low %v618_v46, %v622_v44  ;;  %v10838_v43 = vcombine.high %v482_v53, %v486_v36 }
 0x2ba   :  { %v7033_v31 = vpop.f32.mrf.mxu1  ;;  %7364 = vmatprep.subr.bf16.mxu0 %v10854_v32  ;;  %v10966_v20 = vcombine.high %v610_v49, %v614_v45  ;;  %v474_v10 = vld [vmem:[#allocation5 + $0x810] sm:$0xff]  ;;  %v10837_v32 = vcombine.low %v482_v53, %v486_v36  ;;  %v10965_v4 = vcombine.low %v610_v49, %v614_v45 }
 0x2bb   :  { %7416 = vmatpush1.bf16.msra.mxu1 %v10989_v2  ;;  %v12971_v62 = vadd.f32 %v7033_v31, %v6981_v23  ;;  %v478_v2 = vld [vmem:[#allocation5 + $0x830] sm:$0xff] }
 0x2bc   :  { %7417 = vmatprep.subr.bf16.mxu1 %v10982_v60  ;;  %v602_v19 = vld [vmem:[#allocation5 + $0xc10] sm:$0xff]  ;;  %v10830_v41 = vcombine.high %v474_v10, %v478_v2  ;;  %v10829_v46 = vcombine.low %v474_v10, %v478_v2 }
 0x2bd   :  { %7365 = vmatpush1.bf16.msra.mxu0 %v10853_v61  ;;  %v606_v15 = vld [vmem:[#allocation5 + $0xc30] sm:$0xff] }
 0x2be   :  { %7366 = vmatprep.subr.bf16.mxu0 %v10846_v58  ;;  %v10958_v60 = vcombine.high %v602_v19, %v606_v15  ;;  %v594_v57 = vld [vmem:[#allocation5 + $0xbd0] sm:$0xff]  ;;  %v10957_v44 = vcombine.low %v602_v19, %v606_v15 }
 0x2bf   :  { %7418 = vmatpush1.bf16.msra.mxu1 %v10981_v28  ;;  %v598_v51 = vld [vmem:[#allocation5 + $0xbf0] sm:$0xff] }
 0x2c0   :  { %7419 = vmatprep.subr.bf16.mxu1 %v10974_v24  ;;  %v722_v35 = vld [vmem:[#allocation5 + $0xfd0] sm:$0xff]  ;;  %v10950_v31 = vcombine.high %v594_v57, %v598_v51  ;;  %v10949_v45 = vcombine.low %v594_v57, %v598_v51 }
 0x2c1   :  { %7367 = vmatpush1.bf16.msra.mxu0 %v10845_v47  ;;  %v726_v23 = vld [vmem:[#allocation5 + $0xff0] sm:$0xff] }
 0x2c2   :  { %7368 = vmatprep.subr.bf16.mxu0 %v10838_v43  ;;  %v11078_v61 = vcombine.high %v722_v35, %v726_v23  ;;  %v586_v47 = vld [vmem:[#allocation5 + $0xb90] sm:$0xff]  ;;  %v11077_v49 = vcombine.low %v722_v35, %v726_v23 }
 0x2c3   :  { %7420 = vmatpush1.bf16.msra.mxu1 %v10973_v12  ;;  %v590_v28 = vld [vmem:[#allocation5 + $0xbb0] sm:$0xff] }
 0x2c4   :  { %7421 = vmatprep.subr.bf16.mxu1 %v10966_v20  ;;  %v714_v58 = vld [vmem:[#allocation5 + $0xf90] sm:$0xff]  ;;  %v10942_v53 = vcombine.high %v586_v47, %v590_v28  ;;  %v10941_v2 = vcombine.low %v586_v47, %v590_v28 }
 0x2c5   :  { %7369 = vmatpush1.bf16.msra.mxu0 %v10837_v32  ;;  %v718_v24 = vld [vmem:[#allocation5 + $0xfb0] sm:$0xff] }
 0x2c6   :  { %7370 = vmatprep.subr.bf16.mxu0 %v10830_v41  ;;  %v11070_v36 = vcombine.high %v714_v58, %v718_v24  ;;  %v578_v12 = vld [vmem:[#allocation5 + $0xb50] sm:$0xff]  ;;  %v11069_v19 = vcombine.low %v714_v58, %v718_v24 }
 0x2c7   :  { %7422 = vmatpush1.bf16.msra.mxu1 %v10965_v4  ;;  %v582_v43 = vld [vmem:[#allocation5 + $0xb70] sm:$0xff] }
 0x2c8   :  { %7423 = vmatprep.subr.bf16.mxu1 %v10958_v60  ;;  %v706_v20 = vld [vmem:[#allocation5 + $0xf50] sm:$0xff]  ;;  %v10934_v15 = vcombine.high %v578_v12, %v582_v43  ;;  %v10933_v51 = vcombine.low %v578_v12, %v582_v43 }
 0x2c9   :  { %7371 = vmatpush1.bf16.msra.mxu0 %v10829_v46  ;;  %v710_v10 = vld [vmem:[#allocation5 + $0xf70] sm:$0xff] }
 0x2ca   :  { %7372 = vmatprep.subr.bf16.mxu0 %v10950_v31  ;;  %v11062_v32 = vcombine.high %v706_v20, %v710_v10  ;;  %v570_v4 = vld [vmem:[#allocation5 + $0xb10] sm:$0xff]  ;;  %v11061_v35 = vcombine.low %v706_v20, %v710_v10 }
 0x2cb   :  { %7424 = vmatpush1.bf16.msra.mxu1 %v10957_v44  ;;  %v574_v41 = vld [vmem:[#allocation5 + $0xb30] sm:$0xff] }
 0x2cc   :  { %7425 = vmatprep.subr.bf16.mxu1 %v11078_v61  ;;  %v698_v60 = vld [vmem:[#allocation5 + $0xf10] sm:$0xff]  ;;  %v10926_v23 = vcombine.high %v570_v4, %v574_v41  ;;  %v10925_v28 = vcombine.low %v570_v4, %v574_v41 }
 0x2cd   :  { %7373 = vmatpush2.bf16.msra.mxu0 %v10949_v45  ;;  %v702_v57 = vld [vmem:[#allocation5 + $0xf30] sm:$0xff] }
 0x2ce   :  { %7374 = vmatprep.subr.bf16.mxu0 %v10942_v53  ;;  %v11054_v46 = vcombine.high %v698_v60, %v702_v57  ;;  %v562_v44 = vld [vmem:[#allocation5 + $0xad0] sm:$0xff]  ;;  %v11053_v58 = vcombine.low %v698_v60, %v702_v57 }
 0x2cf   :  { %7426 = vmatpush2.bf16.msra.mxu1 %v11077_v49  ;;  %v566_v31 = vld [vmem:[#allocation5 + $0xaf0] sm:$0xff] }
 0x2d0   :  { %7427 = vmatprep.subr.bf16.mxu1 %v11070_v36  ;;  %v690_v61 = vld [vmem:[#allocation5 + $0xed0] sm:$0xff]  ;;  %v10918_v24 = vcombine.high %v562_v44, %v566_v31  ;;  %v10917_v43 = vcombine.low %v562_v44, %v566_v31 }
 0x2d1   :  { %7375 = vmatpush2.bf16.msra.mxu0 %v10941_v2  ;;  %v694_v47 = vld [vmem:[#allocation5 + $0xef0] sm:$0xff] }
 0x2d2   :  { %7376 = vmatprep.subr.bf16.mxu0 %v10934_v15  ;;  %v11046_v45 = vcombine.high %v690_v61, %v694_v47  ;;  %v554_v49 = vld [vmem:[#allocation5 + $0xa90] sm:$0xff]  ;;  %v11045_v20 = vcombine.low %v690_v61, %v694_v47 }
 0x2d3   :  { %7428 = vmatpush2.bf16.msra.mxu1 %v11069_v19  ;;  %v558_v53 = vld [vmem:[#allocation5 + $0xab0] sm:$0xff] }
 0x2d4   :  { %7429 = vmatprep.subr.bf16.mxu1 %v11062_v32  ;;  %v682_v36 = vld [vmem:[#allocation5 + $0xe90] sm:$0xff]  ;;  %v10910_v10 = vcombine.high %v554_v49, %v558_v53  ;;  %v10909_v41 = vcombine.low %v554_v49, %v558_v53 }
 0x2d5   :  { %7377 = vmatpush2.bf16.msra.mxu0 %v10933_v51  ;;  %v686_v12 = vld [vmem:[#allocation5 + $0xeb0] sm:$0xff] }
 0x2d6   :  { %7378 = vmatprep.subr.bf16.mxu0 %v10926_v23  ;;  %v11038_v2 = vcombine.high %v682_v36, %v686_v12  ;;  %v546_v19 = vld [vmem:[#allocation5 + $0xa50] sm:$0xff]  ;;  %v11037_v60 = vcombine.low %v682_v36, %v686_v12 }
 0x2d7   :  { %7430 = vmatpush2.bf16.msra.mxu1 %v11061_v35  ;;  %v550_v15 = vld [vmem:[#allocation5 + $0xa70] sm:$0xff] }
 0x2d8   :  { %7431 = vmatprep.subr.bf16.mxu1 %v11054_v46  ;;  %v674_v32 = vld [vmem:[#allocation5 + $0xe50] sm:$0xff]  ;;  %v10902_v57 = vcombine.high %v546_v19, %v550_v15  ;;  %v10901_v31 = vcombine.low %v546_v19, %v550_v15 }
 0x2d9   :  { %7379 = vmatpush2.bf16.msra.mxu0 %v10925_v28  ;;  %v678_v4 = vld [vmem:[#allocation5 + $0xe70] sm:$0xff] }
 0x2da   :  { %7380 = vmatprep.subr.bf16.mxu0 %v10918_v24  ;;  %v11030_v51 = vcombine.high %v674_v32, %v678_v4  ;;  %v538_v35 = vld [vmem:[#allocation5 + $0xa10] sm:$0xff]  ;;  %v11029_v61 = vcombine.low %v674_v32, %v678_v4  ;;  %v12973_v32 = vpop.f32.mrf.mxu0 }
 0x2db   :  { %7432 = vmatpush2.bf16.msra.mxu1 %v11053_v58  ;;  %v542_v23 = vld [vmem:[#allocation5 + $0xa30] sm:$0xff]  ;;  %13526 = vst [vmem:[#allocation57_spill] sm:$0xff] %v12973_v32 }
 0x2dc   :  { %7433 = vmatprep.subr.bf16.mxu1 %v11046_v45  ;;  %v666_v46 = vld [vmem:[#allocation5 + $0xe10] sm:$0xff]  ;;  %v10894_v47 = vcombine.high %v538_v35, %v542_v23  ;;  %v10893_v53 = vcombine.low %v538_v35, %v542_v23 }
 0x2dd   :  { %7381 = vmatpush2.bf16.msra.mxu0 %v10917_v43  ;;  %v670_v44 = vld [vmem:[#allocation5 + $0xe30] sm:$0xff] }
 0x2de   :  { %7382 = vmatprep.subr.bf16.mxu0 %v10910_v10  ;;  %v11022_v28 = vcombine.high %v666_v46, %v670_v44  ;;  %v786_v58 = vld [vmem:[#allocation5 + $0x11d0] sm:$0xff]  ;;  %v11021_v36 = vcombine.low %v666_v46, %v670_v44 }
 0x2df   :  { %7434 = vmatpush2.bf16.msra.mxu1 %v11045_v20  ;;  %v790_v24 = vld [vmem:[#allocation5 + $0x11f0] sm:$0xff] }
 0x2e0   :  { %7435 = vmatprep.subr.bf16.mxu1 %v11038_v2  ;;  %v914_v45 = vld [vmem:[#allocation5 + $0x15d0] sm:$0xff]  ;;  %v11142_v12 = vcombine.high %v786_v58, %v790_v24  ;;  %v11141_v15 = vcombine.low %v786_v58, %v790_v24 }
 0x2e1   :  { %7383 = vmatpush2.bf16.msra.mxu0 %v10909_v41  ;;  %v918_v49 = vld [vmem:[#allocation5 + $0x15f0] sm:$0xff] }
 0x2e2   :  { %7384 = vmatprep.subr.bf16.mxu0 %v10902_v57  ;;  %v11270_v43 = vcombine.high %v914_v45, %v918_v49  ;;  %v778_v20 = vld [vmem:[#allocation5 + $0x1190] sm:$0xff]  ;;  %v11269_v4 = vcombine.low %v914_v45, %v918_v49 }
 0x2e3   :  { %7436 = vmatpush2.bf16.msra.mxu1 %v11037_v60  ;;  %v782_v10 = vld [vmem:[#allocation5 + $0x11b0] sm:$0xff]  ;;  %v12975_v60 = vpop.f32.mrf.mxu1 }
 0x2e4   :  { %7437 = vmatprep.subr.bf16.mxu1 %v11030_v51  ;;  %v906_v2 = vld [vmem:[#allocation5 + $0x1590] sm:$0xff]  ;;  %v11134_v41 = vcombine.high %v778_v20, %v782_v10  ;;  %13527 = vst [vmem:[#allocation58_spill] sm:$0xff] %v12975_v60 }
 0x2e5   :  { %7385 = vmatpush2.bf16.msra.mxu0 %v10901_v31  ;;  %v910_v19 = vld [vmem:[#allocation5 + $0x15b0] sm:$0xff] }
 0x2e6   :  { %7386 = vmatprep.subr.bf16.mxu0 %v10894_v47  ;;  %v11262_v57 = vcombine.high %v906_v2, %v910_v19  ;;  %v770_v51 = vld [vmem:[#allocation5 + $0x1150] sm:$0xff]  ;;  %v11133_v47 = vcombine.low %v778_v20, %v782_v10  ;;  %v11261_v58 = vcombine.low %v906_v2, %v910_v19 }
 0x2e7   :  { %7438 = vmatpush2.bf16.msra.mxu1 %v11029_v61  ;;  %v774_v35 = vld [vmem:[#allocation5 + $0x1170] sm:$0xff] }
 0x2e8   :  { %7439 = vmatprep.subr.bf16.mxu1 %v11022_v28  ;;  %v898_v46 = vld [vmem:[#allocation5 + $0x1550] sm:$0xff]  ;;  %v11126_v24 = vcombine.high %v770_v51, %v774_v35  ;;  %v11125_v2 = vcombine.low %v770_v51, %v774_v35 }
 0x2e9   :  { %7387 = vmatpush2.bf16.msra.mxu0 %v10893_v53  ;;  %v902_v44 = vld [vmem:[#allocation5 + $0x1570] sm:$0xff] }
 0x2ea   :  { %7462 = vmatprep.subr.bf16.mxu0 %v11142_v12  ;;  %v11254_v53 = vcombine.high %v898_v46, %v902_v44  ;;  %v894_v20 = vld [vmem:[#allocation5 + $0x1530] sm:$0xff] }
 0x2eb   :  { %7440 = vmatpush2.bf16.msra.mxu1 %v11021_v36  ;;  %v766_v36 = vld [vmem:[#allocation5 + $0x1130] sm:$0xff] }
 0x2ec   :  { %7515 = vmatprep.subr.bf16.mxu1 %v11270_v43  ;;  %v7072_v23 = vpop.f32.mrf.mxu0  ;;  %7389 = vmatmul.mubr.bf16.vlgmr.msra.gmra.mxu0 %v12685_v6  ;;  %v890_v43 = vld [vmem:[#allocation5 + $0x1510] sm:$0xff] }
 0x2ed   :  { %v7073_v31 = vadd.f32 %v7072_v23, %v12947_v3  ;;  %7463 = vmatpush1.bf16.msra.mxu0 %v11141_v15  ;;  %7398 = vmatprep.mubr.bf16.mxu0 %v12689_v14  ;;  %v762_v3 = vld [vmem:[#allocation5 + $0x1110] sm:$0xff] }
 0x2ee   :  { %v7125_v61 = vpop.f32.mrf.mxu1  ;;  %7442 = vmatmul.mubr.bf16.vlgmr.msra.gmra.mxu1 %v12687_v7  ;;  %v12980_v28 = vpop.f32.mrf.mxu0  ;;  %7464 = vmatprep.subr.bf16.mxu0 %v11134_v41  ;;  %v11118_v41 = vcombine.high %v762_v3, %v766_v36  ;;  %v758_v60 = vld [vmem:[#allocation5 + $0x10f0] sm:$0xff] }
 0x2ef   :  { %7516 = vmatpush1.bf16.msra.mxu1 %v11269_v4  ;;  %13528 = vst [vmem:[#allocation59_spill] sm:$0xff] %v12980_v28  ;;  %v12982_v45 = vadd.f32 %v7125_v61, %v7073_v31  ;;  %7451 = vmatprep.mubr.bf16.mxu1 %v12692_v22  ;;  %v11253_v4 = vcombine.low %v898_v46, %v902_v44  ;;  %v754_v61 = vld [vmem:[#allocation5 + $0x10d0] sm:$0xff] }
 0x2f0   :  { %v12984_v49 = vpop.f32.mrf.mxu1  ;;  %7517 = vmatprep.subr.bf16.mxu1 %v11262_v57  ;;  %v7076_v12 = vpop.f32.mrf.mxu0  ;;  %v11246_v31 = vcombine.high %v890_v43, %v894_v20  ;;  %v11117_v46 = vcombine.low %v762_v3, %v766_v36  ;;  %v870_v28 = vld [vmem:[#allocation5 + $0x1470] sm:$0xff] }
 0x2f1   :  { %13529 = vst [vmem:[#allocation60_spill] sm:$0xff] %v12984_v49  ;;  %v7077_v10 = vadd.f32 %v7076_v12, %v12956_v55  ;;  %7465 = vmatpush1.bf16.msra.mxu0 %v11133_v47  ;;  %v882_v55 = vld [vmem:[#allocation5 + $0x14d0] sm:$0xff] }
 0x2f2   :  { %v7129_v15 = vpop.f32.mrf.mxu1  ;;  %v12989_v19 = vpop.f32.mrf.mxu0  ;;  %7466 = vmatprep.subr.bf16.mxu0 %v11126_v24  ;;  %v886_v47 = vld [vmem:[#allocation5 + $0x14f0] sm:$0xff]  ;;  %v11110_v24 = vcombine.high %v754_v61, %v758_v60 }
 0x2f3   :  { %7518 = vmatpush1.bf16.msra.mxu1 %v11261_v58  ;;  %13530 = vst [vmem:[#allocation61_spill] sm:$0xff] %v12989_v19  ;;  %v12991_v57 = vadd.f32 %v7129_v15, %v7077_v10  ;;  %v11245_v58 = vcombine.low %v890_v43, %v894_v20  ;;  %v11238_v15 = vcombine.high %v882_v55, %v886_v47  ;;  %v746_v49 = vld [vmem:[#allocation5 + $0x1090] sm:$0xff] }
 0x2f4   :  { %v12993_v23 = vpop.f32.mrf.mxu1  ;;  %7519 = vmatprep.subr.bf16.mxu1 %v11254_v53  ;;  %v7082_v32 = vpop.f32.mrf.mxu0  ;;  %7399 = vmatmul.mubr.bf16.gmra.mxu0 %v12696_v38  ;;  %v11109_v43 = vcombine.low %v754_v61, %v758_v60  ;;  %v11237_v20 = vcombine.low %v882_v55, %v886_v47  ;;  %v730_v61 = vld [vmem:[#allocation5 + $0x1010] sm:$0xff] }
 0x2f5   :  { %13531 = vst [vmem:[#allocation62_spill] sm:$0xff] %v12993_v23  ;;  %v7083_v51 = vadd.f32 %v7082_v32, %v12964_v5  ;;  %7467 = vmatpush1.bf16.msra.mxu0 %v11125_v2  ;;  %v750_v23 = vld [vmem:[#allocation5 + $0x10b0] sm:$0xff]  ;;  %7494 = vmatprep.mubr.bf16.mxu0 %v12701_v48 }
 0x2f6   :  { %v7135_v35 = vpop.f32.mrf.mxu1  ;;  %7452 = vmatmul.mubr.bf16.gmra.mxu1 %v12699_v40  ;;  %v7084_v44 = vpop.f32.mrf.mxu0  ;;  %7468 = vmatprep.subr.bf16.mxu0 %v11118_v41  ;;  %v874_v32 = vld [vmem:[#allocation5 + $0x1490] sm:$0xff]  ;;  %v11101_v19 = vcombine.low %v746_v49, %v750_v23 }
 0x2f7   :  { %7520 = vmatpush1.bf16.msra.mxu1 %v11253_v4  ;;  %v7085_v53 = vadd.f32 %v7084_v44, %v12969_v1  ;;  %v12999_v12 = vadd.f32 %v7135_v35, %v7083_v51  ;;  %v878_v2 = vld [vmem:[#allocation5 + $0x14b0] sm:$0xff]  ;;  %7547 = vmatprep.mubr.bf16.mxu1 %v12704_v52  ;;  %v11102_v4 = vcombine.high %v746_v49, %v750_v23 }
 0x2f8   :  { %v7137_v10 = vpop.f32.mrf.mxu1  ;;  %7521 = vmatprep.subr.bf16.mxu1 %v11246_v31  ;;  %v7086_v5 = vpop.f32.mrf.mxu0  ;;  %v11230_v31 = vcombine.high %v874_v32, %v878_v2  ;;  %v738_v51 = vld [vmem:[#allocation5 + $0x1050] sm:$0xff] }
 0x2f9   :  { %v7087_v3 = vadd.f32 %v7086_v5, %v12971_v62  ;;  %v13004_v36 = vadd.f32 %v7137_v10, %v7085_v53  ;;  %7469 = vmatpush1.bf16.msra.mxu0 %v11117_v46  ;;  %v742_v35 = vld [vmem:[#allocation5 + $0x1070] sm:$0xff]  ;;  %v11229_v62 = vcombine.low %v874_v32, %v878_v2 }
 0x2fa   :  { %v7139_v1 = vpop.f32.mrf.mxu1  ;;  %7470 = vmatprep.subr.bf16.mxu0 %v11110_v24  ;;  %v866_v44 = vld [vmem:[#allocation5 + $0x1450] sm:$0xff]  ;;  %v11094_v46 = vcombine.high %v738_v51, %v742_v35  ;;  %v11093_v24 = vcombine.low %v738_v51, %v742_v35 }
 0x2fb   :  { %13532 = vst [vmem:[#allocation63_spill] sm:$0xff] %v13004_v36  ;;  %7522 = vmatpush1.bf16.msra.mxu1 %v11245_v58  ;;  %v13006_v41 = vadd.f32 %v7139_v1, %v7087_v3  ;;  %v11222_v60 = vcombine.high %v866_v44, %v870_v28  ;;  %v734_v58 = vld [vmem:[#allocation5 + $0x1030] sm:$0xff]  ;;  %v11221_v53 = vcombine.low %v866_v44, %v870_v28 }
 0x2fc   :  { %7523 = vmatprep.subr.bf16.mxu1 %v11238_v15  ;;  %v858_v55 = vld [vmem:[#allocation5 + $0x1410] sm:$0xff]  ;;  %v11086_v10 = vcombine.high %v730_v61, %v734_v58  ;;  %v11085_v32 = vcombine.low %v730_v61, %v734_v58 }
 0x2fd   :  { %7471 = vmatpush1.bf16.msra.mxu0 %v11109_v43  ;;  %v862_v47 = vld [vmem:[#allocation5 + $0x1430] sm:$0xff] }
 0x2fe   :  { %7472 = vmatprep.subr.bf16.mxu0 %v11102_v4  ;;  %v11214_v15 = vcombine.high %v858_v55, %v862_v47  ;;  %v850_v5 = vld [vmem:[#allocation5 + $0x13d0] sm:$0xff]  ;;  %v11213_v2 = vcombine.low %v858_v55, %v862_v47 }
 0x2ff   :  { %7524 = vmatpush1.bf16.msra.mxu1 %v11237_v20  ;;  %v854_v49 = vld [vmem:[#allocation5 + $0x13f0] sm:$0xff] }
 0x300   :  { %7525 = vmatprep.subr.bf16.mxu1 %v11230_v31  ;;  %v978_v23 = vld [vmem:[#allocation5 + $0x17d0] sm:$0xff]  ;;  %v11206_v1 = vcombine.high %v850_v5, %v854_v49  ;;  %v11205_v28 = vcombine.low %v850_v5, %v854_v49 }
 0x301   :  { %7473 = vmatpush1.bf16.msra.mxu0 %v11101_v19  ;;  %v982_v3 = vld [vmem:[#allocation5 + $0x17f0] sm:$0xff] }
 0x302   :  { %7474 = vmatprep.subr.bf16.mxu0 %v11094_v46  ;;  %v11334_v43 = vcombine.high %v978_v23, %v982_v3  ;;  %v842_v19 = vld [vmem:[#allocation5 + $0x1390] sm:$0xff]  ;;  %v11333_v51 = vcombine.low %v978_v23, %v982_v3 }
 0x303   :  { %7526 = vmatpush1.bf16.msra.mxu1 %v11229_v62  ;;  %v846_v20 = vld [vmem:[#allocation5 + $0x13b0] sm:$0xff] }
 0x304   :  { %7527 = vmatprep.subr.bf16.mxu1 %v11222_v60  ;;  %v970_v4 = vld [vmem:[#allocation5 + $0x1790] sm:$0xff]  ;;  %v11198_v35 = vcombine.high %v842_v19, %v846_v20  ;;  %v11197_v58 = vcombine.low %v842_v19, %v846_v20 }
 0x305   :  { %7475 = vmatpush1.bf16.msra.mxu0 %v11093_v24  ;;  %v974_v31 = vld [vmem:[#allocation5 + $0x17b0] sm:$0xff] }
 0x306   :  { %7476 = vmatprep.subr.bf16.mxu0 %v11086_v10  ;;  %v11326_v44 = vcombine.high %v970_v4, %v974_v31  ;;  %v834_v62 = vld [vmem:[#allocation5 + $0x1350] sm:$0xff]  ;;  %v11325_v55 = vcombine.low %v970_v4, %v974_v31 }
 0x307   :  { %7528 = vmatpush1.bf16.msra.mxu1 %v11221_v53  ;;  %v838_v46 = vld [vmem:[#allocation5 + $0x1370] sm:$0xff] }
 0x308   :  { %7529 = vmatprep.subr.bf16.mxu1 %v11214_v15  ;;  %v962_v60 = vld [vmem:[#allocation5 + $0x1750] sm:$0xff]  ;;  %v11190_v47 = vcombine.high %v834_v62, %v838_v46  ;;  %v11189_v49 = vcombine.low %v834_v62, %v838_v46 }
 0x309   :  { %7477 = vmatpush1.bf16.msra.mxu0 %v11085_v32  ;;  %v966_v61 = vld [vmem:[#allocation5 + $0x1770] sm:$0xff] }
 0x30a   :  { %7478 = vmatprep.subr.bf16.mxu0 %v11206_v1  ;;  %v11318_v24 = vcombine.high %v962_v60, %v966_v61  ;;  %v826_v53 = vld [vmem:[#allocation5 + $0x1310] sm:$0xff]  ;;  %v11317_v23 = vcombine.low %v962_v60, %v966_v61 }
 0x30b   :  { %7530 = vmatpush1.bf16.msra.mxu1 %v11213_v2  ;;  %v830_v10 = vld [vmem:[#allocation5 + $0x1330] sm:$0xff] }
 0x30c   :  { %7531 = vmatprep.subr.bf16.mxu1 %v11334_v43  ;;  %v954_v15 = vld [vmem:[#allocation5 + $0x1710] sm:$0xff]  ;;  %v11182_v3 = vcombine.high %v826_v53, %v830_v10  ;;  %v11181_v20 = vcombine.low %v826_v53, %v830_v10 }
 0x30d   :  { %7479 = vmatpush2.bf16.msra.mxu0 %v11205_v28  ;;  %v958_v5 = vld [vmem:[#allocation5 + $0x1730] sm:$0xff] }
 0x30e   :  { %7480 = vmatprep.subr.bf16.mxu0 %v11198_v35  ;;  %v11310_v32 = vcombine.high %v954_v15, %v958_v5  ;;  %v818_v2 = vld [vmem:[#allocation5 + $0x12d0] sm:$0xff]  ;;  %v11309_v4 = vcombine.low %v954_v15, %v958_v5 }
 0x30f   :  { %7532 = vmatpush2.bf16.msra.mxu1 %v11333_v51  ;;  %v822_v1 = vld [vmem:[#allocation5 + $0x12f0] sm:$0xff] }
 0x310   :  { %7533 = vmatprep.subr.bf16.mxu1 %v11326_v44  ;;  %v946_v43 = vld [vmem:[#allocation5 + $0x16d0] sm:$0xff]  ;;  %v11174_v31 = vcombine.high %v818_v2, %v822_v1  ;;  %v11173_v46 = vcombine.low %v818_v2, %v822_v1 }
 0x311   :  { %7481 = vmatpush2.bf16.msra.mxu0 %v11197_v58  ;;  %v950_v19 = vld [vmem:[#allocation5 + $0x16f0] sm:$0xff] }
 0x312   :  { %7482 = vmatprep.subr.bf16.mxu0 %v11190_v47  ;;  %v11302_v28 = vcombine.high %v946_v43, %v950_v19  ;;  %v810_v51 = vld [vmem:[#allocation5 + $0x1290] sm:$0xff]  ;;  %v11301_v60 = vcombine.low %v946_v43, %v950_v19 }
 0x313   :  { %7534 = vmatpush2.bf16.msra.mxu1 %v11325_v55  ;;  %v814_v35 = vld [vmem:[#allocation5 + $0x12b0] sm:$0xff] }
 0x314   :  { %7535 = vmatprep.subr.bf16.mxu1 %v11318_v24  ;;  %v938_v44 = vld [vmem:[#allocation5 + $0x1690] sm:$0xff]  ;;  %v11166_v61 = vcombine.high %v810_v51, %v814_v35  ;;  %v11165_v10 = vcombine.low %v810_v51, %v814_v35 }
 0x315   :  { %7483 = vmatpush2.bf16.msra.mxu0 %v11189_v49  ;;  %v942_v62 = vld [vmem:[#allocation5 + $0x16b0] sm:$0xff] }
 0x316   :  { %7484 = vmatprep.subr.bf16.mxu0 %v11182_v3  ;;  %v11294_v58 = vcombine.high %v938_v44, %v942_v62  ;;  %v802_v55 = vld [vmem:[#allocation5 + $0x1250] sm:$0xff]  ;;  %v11293_v15 = vcombine.low %v938_v44, %v942_v62 }
 0x317   :  { %7536 = vmatpush2.bf16.msra.mxu1 %v11317_v23  ;;  %v806_v47 = vld [vmem:[#allocation5 + $0x1270] sm:$0xff] }
 0x318   :  { %7537 = vmatprep.subr.bf16.mxu1 %v11310_v32  ;;  %v930_v24 = vld [vmem:[#allocation5 + $0x1650] sm:$0xff]  ;;  %v11158_v5 = vcombine.high %v802_v55, %v806_v47  ;;  %v11157_v1 = vcombine.low %v802_v55, %v806_v47 }
 0x319   :  { %7485 = vmatpush2.bf16.msra.mxu0 %v11181_v20  ;;  %v934_v53 = vld [vmem:[#allocation5 + $0x1670] sm:$0xff] }
 0x31a   :  { %7486 = vmatprep.subr.bf16.mxu0 %v11174_v31  ;;  %v11286_v49 = vcombine.high %v930_v24, %v934_v53  ;;  %v794_v23 = vld [vmem:[#allocation5 + $0x1210] sm:$0xff]  ;;  %v11285_v43 = vcombine.low %v930_v24, %v934_v53  ;;  %v13008_v24 = vpop.f32.mrf.mxu0 }
 0x31b   :  { %7538 = vmatpush2.bf16.msra.mxu1 %v11309_v4  ;;  %v798_v3 = vld [vmem:[#allocation5 + $0x1230] sm:$0xff]  ;;  %13533 = vst [vmem:[#allocation64_spill] sm:$0xff] %v13008_v24 }
 0x31c   :  { %7539 = vmatprep.subr.bf16.mxu1 %v11302_v28  ;;  %v922_v32 = vld [vmem:[#allocation5 + $0x1610] sm:$0xff]  ;;  %v11150_v19 = vcombine.high %v794_v23, %v798_v3  ;;  %v11149_v35 = vcombine.low %v794_v23, %v798_v3 }
 0x31d   :  { %7487 = vmatpush2.bf16.msra.mxu0 %v11173_v46  ;;  %v926_v2 = vld [vmem:[#allocation5 + $0x1630] sm:$0xff] }
 0x31e   :  { %7488 = vmatprep.subr.bf16.mxu0 %v11166_v61  ;;  %v11278_v20 = vcombine.high %v922_v32, %v926_v2  ;;  %v1042_v4 = vld [vmem:[#allocation5 + $0x19d0] sm:$0xff]  ;;  %v11277_v44 = vcombine.low %v922_v32, %v926_v2 }
 0x31f   :  { %7540 = vmatpush2.bf16.msra.mxu1 %v11301_v60  ;;  %v1046_v31 = vld [vmem:[#allocation5 + $0x19f0] sm:$0xff] }
 0x320   :  { %7541 = vmatprep.subr.bf16.mxu1 %v11294_v58  ;;  %v1170_v28 = vld [vmem:[#allocation5 + $0x1dd0] sm:$0xff]  ;;  %v11398_v62 = vcombine.high %v1042_v4, %v1046_v31  ;;  %v11397_v47 = vcombine.low %v1042_v4, %v1046_v31 }
 0x321   :  { %7489 = vmatpush2.bf16.msra.mxu0 %v11165_v10  ;;  %v1174_v51 = vld [vmem:[#allocation5 + $0x1df0] sm:$0xff] }
 0x322   :  { %7490 = vmatprep.subr.bf16.mxu0 %v11158_v5  ;;  %v11526_v46 = vcombine.high %v1170_v28, %v1174_v51  ;;  %v1034_v60 = vld [vmem:[#allocation5 + $0x1990] sm:$0xff]  ;;  %v11525_v53 = vcombine.low %v1170_v28, %v1174_v51 }
 0x323   :  { %7542 = vmatpush2.bf16.msra.mxu1 %v11293_v15  ;;  %v1038_v61 = vld [vmem:[#allocation5 + $0x19b0] sm:$0xff]  ;;  %v13010_v15 = vpop.f32.mrf.mxu1 }
 0x324   :  { %7543 = vmatprep.subr.bf16.mxu1 %v11286_v49  ;;  %v1162_v58 = vld [vmem:[#allocation5 + $0x1d90] sm:$0xff]  ;;  %v11390_v10 = vcombine.high %v1034_v60, %v1038_v61  ;;  %13534 = vst [vmem:[#allocation65_spill] sm:$0xff] %v13010_v15 }
 0x325   :  { %7491 = vmatpush2.bf16.msra.mxu0 %v11157_v1  ;;  %v1166_v55 = vld [vmem:[#allocation5 + $0x1db0] sm:$0xff] }
 0x326   :  { %7492 = vmatprep.subr.bf16.mxu0 %v11150_v19  ;;  %v11518_v5 = vcombine.high %v1162_v58, %v1166_v55  ;;  %v1026_v49 = vld [vmem:[#allocation5 + $0x1950] sm:$0xff]  ;;  %v11389_v19 = vcombine.low %v1034_v60, %v1038_v61  ;;  %v11517_v4 = vcombine.low %v1162_v58, %v1166_v55 }
 0x327   :  { %7544 = vmatpush2.bf16.msra.mxu1 %v11285_v43  ;;  %v1030_v23 = vld [vmem:[#allocation5 + $0x1970] sm:$0xff] }
 0x328   :  { %7545 = vmatprep.subr.bf16.mxu1 %v11278_v20  ;;  %v1154_v32 = vld [vmem:[#allocation5 + $0x1d50] sm:$0xff]  ;;  %v11382_v31 = vcombine.high %v1026_v49, %v1030_v23  ;;  %v11381_v58 = vcombine.low %v1026_v49, %v1030_v23 }
 0x329   :  { %7493 = vmatpush2.bf16.msra.mxu0 %v11149_v35  ;;  %v1158_v2 = vld [vmem:[#allocation5 + $0x1d70] sm:$0xff] }
 0x32a   :  { %7568 = vmatprep.subr.bf16.mxu0 %v11398_v62  ;;  %v11510_v51 = vcombine.high %v1154_v32, %v1158_v2  ;;  %v1018_v35 = vld [vmem:[#allocation5 + $0x1910] sm:$0xff] }
 0x32b   :  { %7546 = vmatpush2.bf16.msra.mxu1 %v11277_v44  ;;  %v1022_v44 = vld [vmem:[#allocation5 + $0x1930] sm:$0xff] }
 0x32c   :  { %7621 = vmatprep.subr.bf16.mxu1 %v11526_v46  ;;  %v7178_v3 = vpop.f32.mrf.mxu0  ;;  %7495 = vmatmul.mubr.bf16.vlgmr.msra.gmra.mxu0 %v12709_v17  ;;  %v1146_v62 = vld [vmem:[#allocation5 + $0x1d10] sm:$0xff] }
 0x32d   :  { %v7179_v1 = vadd.f32 %v7178_v3, %v12982_v45  ;;  %7569 = vmatpush1.bf16.msra.mxu0 %v11397_v47  ;;  %7504 = vmatprep.mubr.bf16.mxu0 %v12713_v29  ;;  %v1150_v46 = vld [vmem:[#allocation5 + $0x1d30] sm:$0xff] }
 0x32e   :  { %v7231_v43 = vpop.f32.mrf.mxu1  ;;  %7548 = vmatmul.mubr.bf16.vlgmr.msra.gmra.mxu1 %v12711_v18  ;;  %v13015_v20 = vpop.f32.mrf.mxu0  ;;  %7570 = vmatprep.subr.bf16.mxu0 %v11390_v10  ;;  %v11374_v10 = vcombine.high %v1018_v35, %v1022_v44  ;;  %v11502_v36 = vcombine.high %v1146_v62, %v1150_v46  ;;  %v1010_v15 = vld [vmem:[#allocation5 + $0x18d0] sm:$0xff] }
 0x32f   :  { %7622 = vmatpush1.bf16.msra.mxu1 %v11525_v53  ;;  %7557 = vmatprep.mubr.bf16.mxu1 %v12716_v33  ;;  %v7232_v60 = vadd.f32 %v7231_v43, %v7179_v1  ;;  %v11509_v53 = vcombine.low %v1154_v32, %v1158_v2  ;;  %v1014_v24 = vld [vmem:[#allocation5 + $0x18f0] sm:$0xff]  ;;  %v11373_v32 = vcombine.low %v1018_v35, %v1022_v44 }
 0x330   :  { %v13017_v28 = vpop.f32.mrf.mxu1  ;;  %7623 = vmatprep.subr.bf16.mxu1 %v11518_v5  ;;  %v7182_v45 = vpop.f32.mrf.mxu0  ;;  %v1142_v1 = vld [vmem:[#allocation5 + $0x1cf0] sm:$0xff] }
 0x331   :  { %13535 = vst [vmem:[#allocation66_spill] sm:$0xff] %v13017_v28  ;;  %v7183_v61 = vadd.f32 %v7182_v45, %v12991_v57  ;;  %7571 = vmatpush1.bf16.msra.mxu0 %v11389_v19  ;;  %v1138_v57 = vld [vmem:[#allocation5 + $0x1cd0] sm:$0xff]  ;;  %v8100_v43 = vmax.f32 %v7232_v60, 0.0 }
 0x332   :  { %v7235_v47 = vpop.f32.mrf.mxu1  ;;  %v13022_v55 = vpop.f32.mrf.mxu0  ;;  %7572 = vmatprep.subr.bf16.mxu0 %v11382_v31  ;;  %v11366_v31 = vcombine.high %v1010_v15, %v1014_v24  ;;  %v11494_v60 = vcombine.high %v1138_v57, %v1142_v1 }
 0x333   :  { %7624 = vmatpush1.bf16.msra.mxu1 %v11517_v4  ;;  %v7236_v5 = vadd.f32 %v7235_v47, %v7183_v61  ;;  %v11501_v4 = vcombine.low %v1146_v62, %v1150_v46  ;;  %v1002_v61 = vld [vmem:[#allocation5 + $0x1890] sm:$0xff]  ;;  %v11365_v46 = vcombine.low %v1010_v15, %v1014_v24 }
 0x334   :  { %v13024_v3 = vpop.f32.mrf.mxu1  ;;  %7625 = vmatprep.subr.bf16.mxu1 %v11510_v51  ;;  %v7188_v28 = vpop.f32.mrf.mxu0  ;;  %7505 = vmatmul.mubr.bf16.gmra.mxu0 %v12720_v56  ;;  %v1006_v47 = vld [vmem:[#allocation5 + $0x18b0] sm:$0xff] }
 0x335   :  { %13536 = vst [vmem:[#allocation67_spill] sm:$0xff] %v13024_v3  ;;  %v8108_v49 = vmax.f32 %v7236_v5, 0.0  ;;  %v7189_v23 = vadd.f32 %v7188_v28, %v12999_v12  ;;  %7573 = vmatpush1.bf16.msra.mxu0 %v11381_v58  ;;  %7600 = vmatprep.mubr.bf16.mxu0 %v12725_v8  ;;  %v1130_v28 = vld [vmem:[#allocation5 + $0x1c90] sm:$0xff] }
 0x336   :  { %v7241_v19 = vpop.f32.mrf.mxu1  ;;  %7558 = vmatmul.mubr.bf16.gmra.mxu1 %v12723_v59  ;;  %v13029_v2 = vpop.f32.mrf.mxu0  ;;  %7574 = vmatprep.subr.bf16.mxu0 %v11374_v10  ;;  %v1134_v58 = vld [vmem:[#allocation5 + $0x1cb0] sm:$0xff] }
 0x337   :  { %7626 = vmatpush1.bf16.msra.mxu1 %v11509_v53  ;;  %13537 = vst [vmem:[#allocation68_spill] sm:$0xff] %v13029_v2  ;;  %v13031_v51 = vpack.c.bf16 %v8108_v49, %v8100_v43  ;;  %7653 = vmatprep.mubr.bf16.mxu1 %v12728_v9  ;;  %v7242_v35 = vadd.f32 %v7241_v19, %v7189_v23  ;;  %v994_v43 = vld [vmem:[#allocation5 + $0x1850] sm:$0xff] }
 0x338   :  { %v13033_v45 = vpop.f32.mrf.mxu1  ;;  %7627 = vmatprep.subr.bf16.mxu1 %v11502_v36  ;;  %v7192_v12 = vpop.f32.mrf.mxu0  ;;  %v11493_v53 = vcombine.low %v1138_v57, %v1142_v1  ;;  %v11358_v36 = vcombine.high %v1002_v61, %v1006_v47  ;;  %v11486_v5 = vcombine.high %v1130_v28, %v1134_v58  ;;  %v998_v49 = vld [vmem:[#allocation5 + $0x1870] sm:$0xff]  ;;  %v11357_v23 = vcombine.low %v1002_v61, %v1006_v47 }
 0x339   :  { %13538 = vst [vmem:[#allocation69_spill] sm:$0xff] %v13031_v51  ;;  %13539 = vst [vmem:[#allocation70_spill] sm:$0xff] %v13033_v45  ;;  %v7193_v44 = vadd.f32 %v7192_v12, %v13006_v41  ;;  %7575 = vmatpush1.bf16.msra.mxu0 %v11373_v32  ;;  %v1122_v51 = vld [vmem:[#allocation5 + $0x1c50] sm:$0xff]  ;;  %v8116_v2 = vmax.f32 %v7242_v35, 0.0  ;;  %v11485_v41 = vcombine.low %v1130_v28, %v1134_v58 }
 0x33a   :  { %v7245_v62 = vpop.f32.mrf.mxu1  ;;  %7576 = vmatprep.subr.bf16.mxu0 %v11366_v31  ;;  %v1126_v45 = vld [vmem:[#allocation5 + $0x1c70] sm:$0xff]  ;;  %v11350_v19 = vcombine.high %v994_v43, %v998_v49  ;;  %v11349_v31 = vcombine.low %v994_v43, %v998_v49 }
 0x33b   :  { %7628 = vmatpush1.bf16.msra.mxu1 %v11501_v4  ;;  %v7246_v10 = vadd.f32 %v7245_v62, %v7193_v44  ;;  %v11478_v15 = vcombine.high %v1122_v51, %v1126_v45  ;;  %v986_v57 = vld [vmem:[#allocation5 + $0x1810] sm:$0xff] }
 0x33c   :  { %7629 = vmatprep.subr.bf16.mxu1 %v11494_v60  ;;  %v990_v1 = vld [vmem:[#allocation5 + $0x1830] sm:$0xff]  ;;  %v11477_v60 = vcombine.low %v1122_v51, %v1126_v45 }
 0x33d   :  { %v8124_v3 = vmax.f32 %v7246_v10, 0.0  ;;  %7577 = vmatpush1.bf16.msra.mxu0 %v11365_v46  ;;  %v1114_v32 = vld [vmem:[#allocation5 + $0x1c10] sm:$0xff]  ;;  %v11342_v12 = vcombine.high %v986_v57, %v990_v1 }
 0x33e   :  { %7578 = vmatprep.subr.bf16.mxu0 %v11358_v36  ;;  %v1118_v4 = vld [vmem:[#allocation5 + $0x1c30] sm:$0xff] }
 0x33f   :  { %7630 = vmatpush1.bf16.msra.mxu1 %v11493_v53  ;;  %v13038_v24 = vpack.c.bf16 %v8124_v3, %v8116_v2  ;;  %v11470_v61 = vcombine.high %v1114_v32, %v1118_v4  ;;  %v1106_v47 = vld [vmem:[#allocation5 + $0x1bd0] sm:$0xff]  ;;  %v11341_v3 = vcombine.low %v986_v57, %v990_v1  ;;  %v11469_v2 = vcombine.low %v1114_v32, %v1118_v4 }
 0x340   :  { %7631 = vmatprep.subr.bf16.mxu1 %v11486_v5  ;;  %v1110_v35 = vld [vmem:[#allocation5 + $0x1bf0] sm:$0xff] }
 0x341   :  { %13540 = vst [vmem:[#allocation71_spill] sm:$0xff] %v13038_v24  ;;  %7579 = vmatpush1.bf16.msra.mxu0 %v11357_v23  ;;  %v1234_v28 = vld [vmem:[#allocation5 + $0x1fd0] sm:$0xff]  ;;  %v11462_v44 = vcombine.high %v1106_v47, %v1110_v35  ;;  %v11461_v51 = vcombine.low %v1106_v47, %v1110_v35 }
 0x342   :  { %7580 = vmatprep.subr.bf16.mxu0 %v11350_v19  ;;  %v1238_v58 = vld [vmem:[#allocation5 + $0x1ff0] sm:$0xff] }
 0x343   :  { %7632 = vmatpush1.bf16.msra.mxu1 %v11485_v41  ;;  %v11590_v62 = vcombine.high %v1234_v28, %v1238_v58  ;;  %v1098_v46 = vld [vmem:[#allocation5 + $0x1b90] sm:$0xff]  ;;  %v11589_v45 = vcombine.low %v1234_v28, %v1238_v58 }
 0x344   :  { %7633 = vmatprep.subr.bf16.mxu1 %v11478_v15  ;;  %v1102_v53 = vld [vmem:[#allocation5 + $0x1bb0] sm:$0xff] }
 0x345   :  { %7581 = vmatpush1.bf16.msra.mxu0 %v11349_v31  ;;  %v1226_v36 = vld [vmem:[#allocation5 + $0x1f90] sm:$0xff]  ;;  %v11454_v5 = vcombine.high %v1098_v46, %v1102_v53  ;;  %v11453_v15 = vcombine.low %v1098_v46, %v1102_v53 }
 0x346   :  { %7582 = vmatprep.subr.bf16.mxu0 %v11342_v12  ;;  %v1230_v10 = vld [vmem:[#allocation5 + $0x1fb0] sm:$0xff] }
 0x347   :  { %7634 = vmatpush1.bf16.msra.mxu1 %v11477_v60  ;;  %v11582_v43 = vcombine.high %v1226_v36, %v1230_v10  ;;  %v1090_v49 = vld [vmem:[#allocation5 + $0x1b50] sm:$0xff]  ;;  %v11581_v57 = vcombine.low %v1226_v36, %v1230_v10 }
 0x348   :  { %7635 = vmatprep.subr.bf16.mxu1 %v11470_v61  ;;  %v1094_v23 = vld [vmem:[#allocation5 + $0x1b70] sm:$0xff] }
 0x349   :  { %7583 = vmatpush1.bf16.msra.mxu0 %v11341_v3  ;;  %v1218_v41 = vld [vmem:[#allocation5 + $0x1f50] sm:$0xff]  ;;  %v11446_v1 = vcombine.high %v1090_v49, %v1094_v23  ;;  %v11445_v61 = vcombine.low %v1090_v49, %v1094_v23 }
 0x34a   :  { %7584 = vmatprep.subr.bf16.mxu0 %v11462_v44  ;;  %v1222_v19 = vld [vmem:[#allocation5 + $0x1f70] sm:$0xff] }
 0x34b   :  { %7636 = vmatpush1.bf16.msra.mxu1 %v11469_v2  ;;  %v11574_v32 = vcombine.high %v1218_v41, %v1222_v19  ;;  %v1082_v4 = vld [vmem:[#allocation5 + $0x1b10] sm:$0xff]  ;;  %v11573_v47 = vcombine.low %v1218_v41, %v1222_v19 }
 0x34c   :  { %7637 = vmatprep.subr.bf16.mxu1 %v11590_v62  ;;  %v1086_v31 = vld [vmem:[#allocation5 + $0x1b30] sm:$0xff] }
 0x34d   :  { %7585 = vmatpush2.bf16.msra.mxu0 %v11461_v51  ;;  %v1210_v60 = vld [vmem:[#allocation5 + $0x1f10] sm:$0xff]  ;;  %v11438_v35 = vcombine.high %v1082_v4, %v1086_v31  ;;  %v11437_v62 = vcombine.low %v1082_v4, %v1086_v31 }
 0x34e   :  { %7586 = vmatprep.subr.bf16.mxu0 %v11454_v5  ;;  %v1214_v12 = vld [vmem:[#allocation5 + $0x1f30] sm:$0xff] }
 0x34f   :  { %7638 = vmatpush2.bf16.msra.mxu1 %v11589_v45  ;;  %v11566_v28 = vcombine.high %v1210_v60, %v1214_v12  ;;  %v1074_v58 = vld [vmem:[#allocation5 + $0x1ad0] sm:$0xff]  ;;  %v11565_v46 = vcombine.low %v1210_v60, %v1214_v12 }
 0x350   :  { %7639 = vmatprep.subr.bf16.mxu1 %v11582_v43  ;;  %v1078_v3 = vld [vmem:[#allocation5 + $0x1af0] sm:$0xff] }
 0x351   :  { %7587 = vmatpush2.bf16.msra.mxu0 %v11453_v15  ;;  %v1202_v2 = vld [vmem:[#allocation5 + $0x1ed0] sm:$0xff]  ;;  %v11430_v53 = vcombine.high %v1074_v58, %v1078_v3  ;;  %v11429_v43 = vcombine.low %v1074_v58, %v1078_v3 }
 0x352   :  { %7588 = vmatprep.subr.bf16.mxu0 %v11446_v1  ;;  %v1206_v44 = vld [vmem:[#allocation5 + $0x1ef0] sm:$0xff] }
 0x353   :  { %7640 = vmatpush2.bf16.msra.mxu1 %v11581_v57  ;;  %v11558_v36 = vcombine.high %v1202_v2, %v1206_v44  ;;  %v1066_v10 = vld [vmem:[#allocation5 + $0x1a90] sm:$0xff]  ;;  %v11557_v49 = vcombine.low %v1202_v2, %v1206_v44  ;;  %v275_v44 = vld [vmem:[#allocation5 + $0x1d8] sm:$0xff] }
 0x354   :  { %7641 = vmatprep.subr.bf16.mxu1 %v11574_v32  ;;  %v1070_v51 = vld [vmem:[#allocation5 + $0x1ab0] sm:$0xff] }
 0x355   :  { %7589 = vmatpush2.bf16.msra.mxu0 %v11445_v61  ;;  %v1194_v45 = vld [vmem:[#allocation5 + $0x1e90] sm:$0xff]  ;;  %v11422_v23 = vcombine.high %v1066_v10, %v1070_v51  ;;  %v11421_v32 = vcombine.low %v1066_v10, %v1070_v51  ;;  %v1260_v10 = vsub.s32 4, %v12733_v30 }
 0x356   :  { %7590 = vmatprep.subr.bf16.mxu0 %v11438_v35  ;;  %v1198_v5 = vld [vmem:[#allocation5 + $0x1eb0] sm:$0xff] }
 0x357   :  { %7642 = vmatpush2.bf16.msra.mxu1 %v11573_v47  ;;  %v11550_v41 = vcombine.high %v1194_v45, %v1198_v5  ;;  %v1058_v19 = vld [vmem:[#allocation5 + $0x1a50] sm:$0xff]  ;;  %v11549_v4 = vcombine.low %v1194_v45, %v1198_v5 }
 0x358   :  { %7643 = vmatprep.subr.bf16.mxu1 %v11566_v28  ;;  %v1062_v15 = vld [vmem:[#allocation5 + $0x1a70] sm:$0xff] }
 0x359   :  { %7591 = vmatpush2.bf16.msra.mxu0 %v11437_v62  ;;  %v1186_v57 = vld [vmem:[#allocation5 + $0x1e50] sm:$0xff]  ;;  %v11414_v31 = vcombine.high %v1058_v19, %v1062_v15  ;;  %v11413_v28 = vcombine.low %v1058_v19, %v1062_v15  ;;  %v279_v62 = vld [vmem:[#allocation5 + $0x1f8] sm:$0xff]  ;;  %v12373_v19 = vld [vmem:[#allocation7] sm:$0xff] }
 0x35a   :  { %7592 = vmatprep.subr.bf16.mxu0 %v11430_v53  ;;  %v1190_v1 = vld [vmem:[#allocation5 + $0x1e70] sm:$0xff]  ;;  %v407_v53 = vld [vmem:[#allocation5 + $0x5f8] sm:$0xff]  ;;  %v10632_v45 = vcombine.high %v275_v44, %v279_v62  ;;  %v13041_v15 = vrot.slane %v12373_v19, %v1260_v10 }
 0x35b   :  { %7644 = vmatpush2.bf16.msra.mxu1 %v11565_v46  ;;  %v11542_v60 = vcombine.high %v1186_v57, %v1190_v1  ;;  %v1050_v12 = vld [vmem:[#allocation5 + $0x1a10] sm:$0xff]  ;;  %v11541_v58 = vcombine.low %v1186_v57, %v1190_v1  ;;  %v403_v46 = vld [vmem:[#allocation5 + $0x5d8] sm:$0xff]  ;;  %v10631_v57 = vcombine.low %v275_v44, %v279_v62  ;;  %v13043_v1 = vpop.f32.mrf.mxu0 }
 0x35c   :  { %7645 = vmatprep.subr.bf16.mxu1 %v11558_v36  ;;  %v1054_v61 = vld [vmem:[#allocation5 + $0x1a30] sm:$0xff]  ;;  %v10760_v5 = vcombine.high %v403_v46, %v407_v53  ;;  %13541 = vst [vmem:[#allocation72_spill] sm:$0xff] %v13043_v1  ;;  %v247_v1 = vld [vmem:[#allocation5 + $0xf8] sm:$0xff] }
 0x35d   :  { %7593 = vmatpush2.bf16.msra.mxu0 %v11429_v43  ;;  %v1178_v47 = vld [vmem:[#allocation5 + $0x1e10] sm:$0xff]  ;;  %v11406_v3 = vcombine.high %v1050_v12, %v1054_v61  ;;  %v11405_v36 = vcombine.low %v1050_v12, %v1054_v61  ;;  %v267_v43 = vld [vmem:[#allocation5 + $0x198] sm:$0xff] }
 0x35e   :  { %7594 = vmatprep.subr.bf16.mxu0 %v11422_v23  ;;  %v1182_v35 = vld [vmem:[#allocation5 + $0x1e30] sm:$0xff]  ;;  %v395_v23 = vld [vmem:[#allocation5 + $0x598] sm:$0xff] }
 0x35f   :  { %7646 = vmatpush2.bf16.msra.mxu1 %v11557_v49  ;;  %v11534_v2 = vcombine.high %v1178_v47, %v1182_v35  ;;  %v11533_v51 = vcombine.low %v1178_v47, %v1182_v35  ;;  %v271_v49 = vld [vmem:[#allocation5 + $0x1b8] sm:$0xff] }
 0x360   :  { %7647 = vmatprep.subr.bf16.mxu1 %v11550_v41  ;;  %v399_v41 = vld [vmem:[#allocation5 + $0x5b8] sm:$0xff] }
 0x361   :  { %7595 = vmatpush2.bf16.msra.mxu0 %v11421_v32  ;;  %v10759_v32 = vcombine.low %v403_v46, %v407_v53  ;;  %v259_v12 = vld [vmem:[#allocation5 + $0x158] sm:$0xff]  ;;  %v10751_v62 = vcombine.low %v395_v23, %v399_v41 }
 0x362   :  { %7596 = vmatprep.subr.bf16.mxu0 %v11414_v31  ;;  %v13045_v31 = vpop.f32.mrf.mxu1  ;;  %v263_v61 = vld [vmem:[#allocation5 + $0x178] sm:$0xff] }
 0x363   :  { %7648 = vmatpush2.bf16.msra.mxu1 %v11549_v4  ;;  %v10624_v4 = vcombine.high %v267_v43, %v271_v49  ;;  %13542 = vst [vmem:[#allocation73_spill] sm:$0xff] %v13045_v31  ;;  %v387_v35 = vld [vmem:[#allocation5 + $0x558] sm:$0xff]  ;;  %v10616_v46 = vcombine.high %v259_v12, %v263_v61 }
 0x364   :  { %7649 = vmatprep.subr.bf16.mxu1 %v11542_v60  ;;  %v10752_v60 = vcombine.high %v395_v23, %v399_v41  ;;  %v243_v31 = vld [vmem:[#allocation5 + $0xd8] sm:$0xff] }
 0x365   :  { %7597 = vmatpush2.bf16.msra.mxu0 %v11413_v28  ;;  %v391_v28 = vld [vmem:[#allocation5 + $0x578] sm:$0xff] }
 0x366   :  { %7598 = vmatprep.subr.bf16.mxu0 %v11406_v3  ;;  %v10744_v10 = vcombine.high %v387_v35, %v391_v28 }
 0x367   :  { %7650 = vmatpush2.bf16.msra.mxu1 %v11541_v58 }
 0x368   :  { %7651 = vmatprep.subr.bf16.mxu1 %v11534_v2  ;;  %v10623_v2 = vcombine.low %v267_v43, %v271_v49  ;;  %v379_v43 = vld [vmem:[#allocation5 + $0x518] sm:$0xff] }
 0x369   :  { %7599 = vmatpush2.bf16.msra.mxu0 %v11405_v36  ;;  %v383_v49 = vld [vmem:[#allocation5 + $0x538] sm:$0xff] }
 0x36a   :  { %7674 = vmatprep.subr.bf16.mxu0 %v10632_v45  ;;  %v255_v45 = vld [vmem:[#allocation5 + $0x138] sm:$0xff]  ;;  %v10736_v24 = vcombine.high %v379_v43, %v383_v49 }
 0x36b   :  { %7652 = vmatpush2.bf16.msra.mxu1 %v11533_v51  ;;  %v251_v51 = vld [vmem:[#allocation5 + $0x118] sm:$0xff] }
 0x36c   :  { %7727 = vmatprep.subr.bf16.mxu1 %v10760_v5  ;;  %v7284_v47 = vpop.f32.mrf.mxu0  ;;  %7601 = vmatmul.mubr.bf16.vlgmr.msra.gmra.mxu0 %v12741_v11 }
 0x36d   :  { %v7285_v58 = vadd.f32 %v7284_v47, %v13041_v15  ;;  %7675 = vmatpush1.bf16.msra.mxu0 %v10631_v57  ;;  %7610 = vmatprep.mubr.bf16.mxu0 %v12755_v27  ;;  %v1264_v57 = vsub.s32 5, %v12733_v30  ;;  %v10608_v47 = vcombine.high %v251_v51, %v255_v45  ;;  %v375_v30 = vld [vmem:[#allocation5 + $0x4f8] sm:$0xff] }
 0x36e   :  { %v7337_v3 = vpop.f32.mrf.mxu1  ;;  %7654 = vmatmul.mubr.bf16.vlgmr.msra.gmra.mxu1 %v12747_v13  ;;  %v13050_v44 = vpop.f32.mrf.mxu0  ;;  %7676 = vmatprep.subr.bf16.mxu0 %v10624_v4 }
 0x36f   :  { %7728 = vmatpush1.bf16.msra.mxu1 %v10759_v32  ;;  %13543 = vst [vmem:[#allocation74_spill] sm:$0xff] %v13050_v44  ;;  %v13052_v53 = vadd.f32 %v7337_v3, %v7285_v58  ;;  %7663 = vmatprep.mubr.bf16.mxu1 %v12758_v39  ;;  %v10615_v32 = vcombine.low %v259_v12, %v263_v61 }
 0x370   :  { %v13054_v36 = vpop.f32.mrf.mxu1  ;;  %7729 = vmatprep.subr.bf16.mxu1 %v10752_v60  ;;  %v7288_v5 = vpop.f32.mrf.mxu0  ;;  %v10743_v60 = vcombine.low %v387_v35, %v391_v28  ;;  %v13067_v12 = vrot.slane %v12373_v19, %v1264_v57  ;;  %v10607_v61 = vcombine.low %v251_v51, %v255_v45  ;;  %v363_v51 = vld [vmem:[#allocation5 + $0x498] sm:$0xff] }
 0x371   :  { %13544 = vst [vmem:[#allocation75_spill] sm:$0xff] %v13054_v36  ;;  %v7289_v23 = vadd.f32 %v7288_v5, %v13041_v15  ;;  %7677 = vmatpush1.bf16.msra.mxu0 %v10623_v2  ;;  %v371_v5 = vld [vmem:[#allocation5 + $0x4d8] sm:$0xff] }
 0x372   :  { %v7341_v41 = vpop.f32.mrf.mxu1  ;;  %v13060_v4 = vpop.f32.mrf.mxu0  ;;  %7678 = vmatprep.subr.bf16.mxu0 %v10616_v46  ;;  %v10600_v46 = vcombine.high %v243_v31, %v247_v1  ;;  %v239_v36 = vld [vmem:[#allocation5 + $0xb8] sm:$0xff] }
 0x373   :  { %7730 = vmatpush1.bf16.msra.mxu1 %v10751_v62  ;;  %13545 = vst [vmem:[#allocation76_spill] sm:$0xff] %v13060_v4  ;;  %v13062_v58 = vadd.f32 %v7341_v41, %v7289_v23  ;;  %v10735_v62 = vcombine.low %v379_v43, %v383_v49  ;;  %v10728_v23 = vcombine.high %v371_v5, %v375_v30  ;;  %v235_v41 = vld [vmem:[#allocation5 + $0x98] sm:$0xff] }
 0x374   :  { %v13064_v3 = vpop.f32.mrf.mxu1  ;;  %7731 = vmatprep.subr.bf16.mxu1 %v10744_v10  ;;  %7611 = vmatmul.mubr.bf16.gmra.mxu0 %v12768_v16  ;;  %v7294_v2 = vpop.f32.mrf.mxu0  ;;  %v367_v45 = vld [vmem:[#allocation5 + $0x4b8] sm:$0xff]  ;;  %v10599_v43 = vcombine.low %v243_v31, %v247_v1 }
 0x375   :  { %13546 = vst [vmem:[#allocation77_spill] sm:$0xff] %v13064_v3  ;;  %7679 = vmatpush1.bf16.msra.mxu0 %v10615_v32  ;;  %v7295_v35 = vadd.f32 %v7294_v2, %v13041_v15  ;;  %7706 = vmatprep.mubr.bf16.mxu0 %v13518_v42  ;;  %v10592_v2 = vcombine.high %v235_v41, %v239_v36  ;;  %v227_v42 = vld [vmem:[#allocation5 + $0x58] sm:$0xff] }
 0x376   :  { %7664 = vmatmul.mubr.bf16.gmra.mxu1 %v12774_v26  ;;  %v7347_v28 = vpop.f32.mrf.mxu1  ;;  %7680 = vmatprep.subr.bf16.mxu0 %v10608_v47  ;;  %v7296_v10 = vpop.f32.mrf.mxu0  ;;  %v10727_v47 = vcombine.low %v371_v5, %v375_v30  ;;  %v355_v1 = vld [vmem:[#allocation5 + $0x458] sm:$0xff]  ;;  %v10719_v30 = vcombine.low %v363_v51, %v367_v45 }
 0x377   :  { %7732 = vmatpush1.bf16.msra.mxu1 %v10743_v60  ;;  %v7297_v3 = vadd.f32 %v7296_v10, %v13067_v12  ;;  %v13072_v19 = vadd.f32 %v7347_v28, %v7295_v35  ;;  %7759 = vmatprep.mubr.bf16.mxu1 %v12657_v63  ;;  %v10720_v28 = vcombine.high %v363_v51, %v367_v45  ;;  %v231_v10 = vld [vmem:[#allocation5 + $0x78] sm:$0xff] }
 0x378   :  { %7733 = vmatprep.subr.bf16.mxu1 %v10736_v24  ;;  %v7349_v57 = vpop.f32.mrf.mxu1  ;;  %v7298_v32 = vpop.f32.mrf.mxu0  ;;  %v359_v31 = vld [vmem:[#allocation5 + $0x478] sm:$0xff]  ;;  %v10584_v5 = vcombine.high %v227_v42, %v231_v10 }
 0x379   :  { %7681 = vmatpush1.bf16.msra.mxu0 %v10607_v61  ;;  %v7299_v49 = vadd.f32 %v7298_v32, %v13041_v15  ;;  %v13077_v24 = vadd.f32 %v7349_v57, %v7297_v3  ;;  %v10591_v15 = vcombine.low %v235_v41, %v239_v36  ;;  %v10712_v61 = vcombine.high %v355_v1, %v359_v31  ;;  %v351_v57 = vld [vmem:[#allocation5 + $0x438] sm:$0xff] }
 0x37a   :  { %v7351_v60 = vpop.f32.mrf.mxu1  ;;  %7682 = vmatprep.subr.bf16.mxu0 %v10600_v46  ;;  %v7300_v35 = vpop.f32.mrf.mxu0  ;;  %v223_v46 = vld [vmem:[#allocation5 + $0x38] sm:$0xff]  ;;  %v10583_v32 = vcombine.low %v227_v42, %v231_v10 }
 0x37b   :  { %7734 = vmatpush1.bf16.msra.mxu1 %v10735_v62  ;;  %v7301_v44 = vadd.f32 %v7300_v35, %v13067_v12  ;;  %v13080_v4 = vadd.f32 %v7351_v60, %v7299_v49  ;;  %v219_v62 = vld [vmem:[#allocation5 + $0x18] sm:$0xff]  ;;  %v10711_v49 = vcombine.low %v355_v1, %v359_v31 }
 0x37c   :  { %7735 = vmatprep.subr.bf16.mxu1 %v10728_v23  ;;  %v7353_v63 = vpop.f32.mrf.mxu1  ;;  %v347_v23 = vld [vmem:[#allocation5 + $0x418] sm:$0xff]  ;;  %v10576_v60 = vcombine.high %v219_v62, %v223_v46  ;;  %v10575_v51 = vcombine.low %v219_v62, %v223_v46 }
 0x37d   :  { %7683 = vmatpush1.bf16.msra.mxu0 %v10599_v43  ;;  %v13082_v3 = vadd.f32 %v7353_v63, %v7301_v44  ;;  %v10704_v36 = vcombine.high %v347_v23, %v351_v57  ;;  %v339_v44 = vld [vmem:[#allocation5 + $0x3d8] sm:$0xff]  ;;  %v10703_v45 = vcombine.low %v347_v23, %v351_v57 }
 0x37e   :  { %7684 = vmatprep.subr.bf16.mxu0 %v10592_v2  ;;  %v343_v41 = vld [vmem:[#allocation5 + $0x3f8] sm:$0xff] }
 0x37f   :  { %7736 = vmatpush1.bf16.msra.mxu1 %v10727_v47  ;;  %v467_v43 = vld [vmem:[#allocation5 + $0x7d8] sm:$0xff]  ;;  %v10696_v2 = vcombine.high %v339_v44, %v343_v41  ;;  %v10695_v1 = vcombine.low %v339_v44, %v343_v41 }
 0x380   :  { %7737 = vmatprep.subr.bf16.mxu1 %v10720_v28  ;;  %v471_v47 = vld [vmem:[#allocation5 + $0x7f8] sm:$0xff] }
 0x381   :  { %7685 = vmatpush1.bf16.msra.mxu0 %v10591_v15  ;;  %v10824_v35 = vcombine.high %v467_v43, %v471_v47  ;;  %v331_v28 = vld [vmem:[#allocation5 + $0x398] sm:$0xff]  ;;  %v10823_v31 = vcombine.low %v467_v43, %v471_v47 }
 0x382   :  { %7686 = vmatprep.subr.bf16.mxu0 %v10584_v5  ;;  %v335_v42 = vld [vmem:[#allocation5 + $0x3b8] sm:$0xff] }
 0x383   :  { %7738 = vmatpush1.bf16.msra.mxu1 %v10719_v30  ;;  %v459_v10 = vld [vmem:[#allocation5 + $0x798] sm:$0xff]  ;;  %v10688_v15 = vcombine.high %v331_v28, %v335_v42  ;;  %v10687_v23 = vcombine.low %v331_v28, %v335_v42 }
 0x384   :  { %7739 = vmatprep.subr.bf16.mxu1 %v10712_v61  ;;  %v463_v63 = vld [vmem:[#allocation5 + $0x7b8] sm:$0xff] }
 0x385   :  { %7687 = vmatpush1.bf16.msra.mxu0 %v10583_v32  ;;  %v10816_v30 = vcombine.high %v459_v10, %v463_v63  ;;  %v323_v5 = vld [vmem:[#allocation5 + $0x358] sm:$0xff]  ;;  %v10815_v57 = vcombine.low %v459_v10, %v463_v63 }
 0x386   :  { %7688 = vmatprep.subr.bf16.mxu0 %v10576_v60  ;;  %v327_v61 = vld [vmem:[#allocation5 + $0x378] sm:$0xff] }
 0x387   :  { %7740 = vmatpush1.bf16.msra.mxu1 %v10711_v49  ;;  %v451_v62 = vld [vmem:[#allocation5 + $0x758] sm:$0xff]  ;;  %v10680_v32 = vcombine.high %v323_v5, %v327_v61  ;;  %v10679_v43 = vcombine.low %v323_v5, %v327_v61 }
 0x388   :  { %7741 = vmatprep.subr.bf16.mxu1 %v10704_v36  ;;  %v455_v46 = vld [vmem:[#allocation5 + $0x778] sm:$0xff] }
 0x389   :  { %7689 = vmatpush1.bf16.msra.mxu0 %v10575_v51  ;;  %v10808_v49 = vcombine.high %v451_v62, %v455_v46  ;;  %v315_v60 = vld [vmem:[#allocation5 + $0x318] sm:$0xff]  ;;  %v10807_v47 = vcombine.low %v451_v62, %v455_v46 }
 0x38a   :  { %7690 = vmatprep.subr.bf16.mxu0 %v10696_v2  ;;  %v319_v36 = vld [vmem:[#allocation5 + $0x338] sm:$0xff] }
 0x38b   :  { %7742 = vmatpush1.bf16.msra.mxu1 %v10703_v45  ;;  %v443_v44 = vld [vmem:[#allocation5 + $0x718] sm:$0xff]  ;;  %v10672_v51 = vcombine.high %v315_v60, %v319_v36  ;;  %v10671_v10 = vcombine.low %v315_v60, %v319_v36 }
 0x38c   :  { %7743 = vmatprep.subr.bf16.mxu1 %v10824_v35  ;;  %v447_v41 = vld [vmem:[#allocation5 + $0x738] sm:$0xff] }
 0x38d   :  { %7691 = vmatpush2.bf16.msra.mxu0 %v10695_v1  ;;  %v10800_v45 = vcombine.high %v443_v44, %v447_v41  ;;  %v307_v2 = vld [vmem:[#allocation5 + $0x2d8] sm:$0xff]  ;;  %v10799_v63 = vcombine.low %v443_v44, %v447_v41 }
 0x38e   :  { %7692 = vmatprep.subr.bf16.mxu0 %v10688_v15  ;;  %v311_v35 = vld [vmem:[#allocation5 + $0x2f8] sm:$0xff] }
 0x38f   :  { %7744 = vmatpush2.bf16.msra.mxu1 %v10823_v31  ;;  %v435_v28 = vld [vmem:[#allocation5 + $0x6d8] sm:$0xff]  ;;  %v10664_v1 = vcombine.high %v307_v2, %v311_v35  ;;  %v10663_v62 = vcombine.low %v307_v2, %v311_v35 }
 0x390   :  { %7745 = vmatprep.subr.bf16.mxu1 %v10816_v30  ;;  %v439_v42 = vld [vmem:[#allocation5 + $0x6f8] sm:$0xff] }
 0x391   :  { %7693 = vmatpush2.bf16.msra.mxu0 %v10687_v23  ;;  %v10792_v31 = vcombine.high %v435_v28, %v439_v42  ;;  %v299_v15 = vld [vmem:[#allocation5 + $0x298] sm:$0xff]  ;;  %v10791_v46 = vcombine.low %v435_v28, %v439_v42 }
 0x392   :  { %7694 = vmatprep.subr.bf16.mxu0 %v10680_v32  ;;  %v303_v30 = vld [vmem:[#allocation5 + $0x2b8] sm:$0xff] }
 0x393   :  { %7746 = vmatpush2.bf16.msra.mxu1 %v10815_v57  ;;  %v427_v5 = vld [vmem:[#allocation5 + $0x698] sm:$0xff]  ;;  %v10656_v23 = vcombine.high %v299_v15, %v303_v30  ;;  %v10655_v44 = vcombine.low %v299_v15, %v303_v30 }
 0x394   :  { %7747 = vmatprep.subr.bf16.mxu1 %v10808_v49  ;;  %v431_v61 = vld [vmem:[#allocation5 + $0x6b8] sm:$0xff] }
 0x395   :  { %7695 = vmatpush2.bf16.msra.mxu0 %v10679_v43  ;;  %v10784_v57 = vcombine.high %v427_v5, %v431_v61  ;;  %v291_v32 = vld [vmem:[#allocation5 + $0x258] sm:$0xff]  ;;  %v10783_v41 = vcombine.low %v427_v5, %v431_v61 }
 0x396   :  { %7696 = vmatprep.subr.bf16.mxu0 %v10672_v51  ;;  %v295_v49 = vld [vmem:[#allocation5 + $0x278] sm:$0xff] }
 0x397   :  { %7748 = vmatpush2.bf16.msra.mxu1 %v10807_v47  ;;  %v419_v60 = vld [vmem:[#allocation5 + $0x658] sm:$0xff]  ;;  %v10648_v43 = vcombine.high %v291_v32, %v295_v49  ;;  %v10647_v28 = vcombine.low %v291_v32, %v295_v49 }
 0x398   :  { %7749 = vmatprep.subr.bf16.mxu1 %v10800_v45  ;;  %v423_v36 = vld [vmem:[#allocation5 + $0x678] sm:$0xff] }
 0x399   :  { %7697 = vmatpush2.bf16.msra.mxu0 %v10671_v10  ;;  %v10776_v47 = vcombine.high %v419_v60, %v423_v36  ;;  %v283_v51 = vld [vmem:[#allocation5 + $0x218] sm:$0xff]  ;;  %v10775_v42 = vcombine.low %v419_v60, %v423_v36 }
 0x39a   :  { %7698 = vmatprep.subr.bf16.mxu0 %v10664_v1  ;;  %v287_v45 = vld [vmem:[#allocation5 + $0x238] sm:$0xff] }
 0x39b   :  { %7750 = vmatpush2.bf16.msra.mxu1 %v10799_v63  ;;  %v411_v2 = vld [vmem:[#allocation5 + $0x618] sm:$0xff]  ;;  %v10640_v10 = vcombine.high %v283_v51, %v287_v45  ;;  %v10639_v5 = vcombine.low %v283_v51, %v287_v45 }
 0x39c   :  { %7751 = vmatprep.subr.bf16.mxu1 %v10792_v31  ;;  %v415_v35 = vld [vmem:[#allocation5 + $0x638] sm:$0xff] }
 0x39d   :  { %7699 = vmatpush2.bf16.msra.mxu0 %v10663_v62  ;;  %v10768_v63 = vcombine.high %v411_v2, %v415_v35  ;;  %v531_v1 = vld [vmem:[#allocation5 + $0x9d8] sm:$0xff]  ;;  %v10767_v61 = vcombine.low %v411_v2, %v415_v35 }
 0x39e   :  { %7700 = vmatprep.subr.bf16.mxu0 %v10656_v23  ;;  %v535_v31 = vld [vmem:[#allocation5 + $0x9f8] sm:$0xff] }
 0x39f   :  { %7752 = vmatpush2.bf16.msra.mxu1 %v10791_v46  ;;  %v659_v15 = vld [vmem:[#allocation5 + $0xdd8] sm:$0xff]  ;;  %v10888_v62 = vcombine.high %v531_v1, %v535_v31  ;;  %v10887_v60 = vcombine.low %v531_v1, %v535_v31 }
 0x3a0   :  { %7753 = vmatprep.subr.bf16.mxu1 %v10784_v57  ;;  %v663_v30 = vld [vmem:[#allocation5 + $0xdf8] sm:$0xff] }
 0x3a1   :  { %7701 = vmatpush2.bf16.msra.mxu0 %v10655_v44  ;;  %v11016_v46 = vcombine.high %v659_v15, %v663_v30  ;;  %v523_v23 = vld [vmem:[#allocation5 + $0x998] sm:$0xff]  ;;  %v11015_v36 = vcombine.low %v659_v15, %v663_v30 }
 0x3a2   :  { %7702 = vmatprep.subr.bf16.mxu0 %v10648_v43  ;;  %v527_v57 = vld [vmem:[#allocation5 + $0x9b8] sm:$0xff] }
 0x3a3   :  { %7754 = vmatpush2.bf16.msra.mxu1 %v10783_v41  ;;  %v651_v32 = vld [vmem:[#allocation5 + $0xd98] sm:$0xff]  ;;  %v10880_v44 = vcombine.high %v523_v23, %v527_v57 }
 0x3a4   :  { %7755 = vmatprep.subr.bf16.mxu1 %v10776_v47  ;;  %v655_v49 = vld [vmem:[#allocation5 + $0xdb8] sm:$0xff] }
 0x3a5   :  { %7703 = vmatpush2.bf16.msra.mxu0 %v10647_v28  ;;  %v11008_v41 = vcombine.high %v651_v32, %v655_v49  ;;  %v515_v43 = vld [vmem:[#allocation5 + $0x958] sm:$0xff] }
 0x3a6   :  { %7704 = vmatprep.subr.bf16.mxu0 %v10640_v10  ;;  %v519_v47 = vld [vmem:[#allocation5 + $0x978] sm:$0xff] }
 0x3a7   :  { %7756 = vmatpush2.bf16.msra.mxu1 %v10775_v42  ;;  %v643_v45 = vld [vmem:[#allocation5 + $0xd58] sm:$0xff]  ;;  %v10879_v42 = vcombine.low %v523_v23, %v527_v57  ;;  %v10872_v1 = vcombine.high %v515_v43, %v519_v47  ;;  %v10871_v23 = vcombine.low %v515_v43, %v519_v47 }
 0x3a8   :  { %7757 = vmatprep.subr.bf16.mxu1 %v10768_v63  ;;  %v647_v2 = vld [vmem:[#allocation5 + $0xd78] sm:$0xff]  ;;  %v11007_v63 = vcombine.low %v651_v32, %v655_v49 }
 0x3a9   :  { %7705 = vmatpush2.bf16.msra.mxu0 %v10639_v5  ;;  %v507_v30 = vld [vmem:[#allocation5 + $0x918] sm:$0xff]  ;;  %v10999_v32 = vcombine.low %v643_v45, %v647_v2 }
 0x3aa   :  { %7780 = vmatprep.subr.bf16.mxu0 %v10888_v62  ;;  %v511_v5 = vld [vmem:[#allocation5 + $0x938] sm:$0xff] }
 0x3ab   :  { %7758 = vmatpush2.bf16.msra.mxu1 %v10767_v61  ;;  %v639_v61 = vld [vmem:[#allocation5 + $0xd38] sm:$0xff]  ;;  %v10864_v49 = vcombine.high %v507_v30, %v511_v5 }
 0x3ac   :  { %7833 = vmatprep.subr.bf16.mxu1 %v11016_v46  ;;  %v7390_v51 = vpop.f32.mrf.mxu0  ;;  %7707 = vmatmul.mubr.bf16.vlgmr.msra.gmra.mxu0 %v12661_v21  ;;  %v11000_v21 = vcombine.high %v643_v45, %v647_v2 }
 0x3ad   :  { %v7391_v35 = vadd.f32 %v7390_v51, %v13052_v53  ;;  %7781 = vmatpush1.bf16.msra.mxu0 %v10887_v60  ;;  %7716 = vmatprep.mubr.bf16.mxu0 %v12665_v34  ;;  %v627_v51 = vld [vmem:[#allocation5 + $0xcd8] sm:$0xff] }
 0x3ae   :  { %v7443_v28 = vpop.f32.mrf.mxu1  ;;  %7760 = vmatmul.mubr.bf16.vlgmr.msra.gmra.mxu1 %v12663_v25  ;;  %v13087_v10 = vpop.f32.mrf.mxu0  ;;  %7782 = vmatprep.subr.bf16.mxu0 %v10880_v44  ;;  %v635_v25 = vld [vmem:[#allocation5 + $0xd18] sm:$0xff] }
 0x3af   :  { %7834 = vmatpush1.bf16.msra.mxu1 %v11015_v36  ;;  %v13089_v31 = vadd.f32 %v7443_v28, %v7391_v35  ;;  %7769 = vmatprep.mubr.bf16.mxu1 %v12668_v37  ;;  %v10992_v34 = vcombine.high %v635_v25, %v639_v61  ;;  %v499_v44 = vld [vmem:[#allocation5 + $0x8d8] sm:$0xff]  ;;  %v10863_v35 = vcombine.low %v507_v30, %v511_v5 }
 0x3b0   :  { %v13091_v15 = vpop.f32.mrf.mxu1  ;;  %7835 = vmatprep.subr.bf16.mxu1 %v11008_v41  ;;  %v7394_v53 = vpop.f32.mrf.mxu0  ;;  %v503_v41 = vld [vmem:[#allocation5 + $0x8f8] sm:$0xff]  ;;  %v10991_v2 = vcombine.low %v635_v25, %v639_v61 }
 0x3b1   :  { %v7395_v62 = vadd.f32 %v7394_v53, %v13062_v58  ;;  %7783 = vmatpush1.bf16.msra.mxu0 %v10879_v42  ;;  %v631_v58 = vld [vmem:[#allocation5 + $0xcf8] sm:$0xff]  ;;  %v10856_v28 = vcombine.high %v499_v44, %v503_v41  ;;  %v10855_v61 = vcombine.low %v499_v44, %v503_v41 }
 0x3b2   :  { %v7447_v46 = vpop.f32.mrf.mxu1  ;;  %v13096_v57 = vpop.f32.mrf.mxu0  ;;  %7784 = vmatprep.subr.bf16.mxu0 %v10872_v1  ;;  %v495_v53 = vld [vmem:[#allocation5 + $0x8b8] sm:$0xff] }
 0x3b3   :  { %7836 = vmatpush1.bf16.msra.mxu1 %v11007_v63  ;;  %v13098_v60 = vadd.f32 %v7447_v46, %v7395_v62  ;;  %v619_v30 = vld [vmem:[#allocation5 + $0xc98] sm:$0xff] }
 0x3b4   :  { %v13100_v36 = vpop.f32.mrf.mxu1  ;;  %7837 = vmatprep.subr.bf16.mxu1 %v11000_v21  ;;  %v7400_v37 = vpop.f32.mrf.mxu0  ;;  %7717 = vmatmul.mubr.bf16.gmra.mxu0 %v12672_v50  ;;  %v10984_v21 = vcombine.high %v627_v51, %v631_v58  ;;  %v491_v50 = vld [vmem:[#allocation5 + $0x898] sm:$0xff] }
 0x3b5   :  { %v7401_v43 = vadd.f32 %v7400_v37, %v13072_v19  ;;  %7785 = vmatpush1.bf16.msra.mxu0 %v10871_v23  ;;  %7812 = vmatprep.mubr.bf16.mxu0 %v12677_v0  ;;  %v623_v5 = vld [vmem:[#allocation5 + $0xcb8] sm:$0xff]  ;;  %v10983_v23 = vcombine.low %v627_v51, %v631_v58  ;;  %v10847_v44 = vcombine.low %v491_v50, %v495_v53 }
 0x3b6   :  { %v7453_v47 = vpop.f32.mrf.mxu1  ;;  %7770 = vmatmul.mubr.bf16.gmra.mxu1 %v12675_v54  ;;  %v7402_v45 = vpop.f32.mrf.mxu0  ;;  %7786 = vmatprep.subr.bf16.mxu0 %v10864_v49  ;;  %v13547_v54 = vld [vmem:[#allocation24_spill] sm:$0xff]  ;;  %v10976_v37 = vcombine.high %v619_v30, %v623_v5  ;;  %v10975_v41 = vcombine.low %v619_v30, %v623_v5 }
 0x3b7   :  { %7838 = vmatpush1.bf16.msra.mxu1 %v10999_v32  ;;  %v7403_v42 = vadd.f32 %v7402_v45, %v13077_v24  ;;  %v13106_v63 = vadd.f32 %v7453_v47, %v7401_v43  ;;  %7865 = vmatprep.mubr.bf16.mxu1 %v13547_v54  ;;  %v10848_v32 = vcombine.high %v491_v50, %v495_v53  ;;  %v483_v43 = vld [vmem:[#allocation5 + $0x858] sm:$0xff] }
 0x3b8   :  { %v7455_v1 = vpop.f32.mrf.mxu1  ;;  %7839 = vmatprep.subr.bf16.mxu1 %v10992_v34  ;;  %v7404_v19 = vpop.f32.mrf.mxu0  ;;  %v487_v47 = vld [vmem:[#allocation5 + $0x878] sm:$0xff] }
 0x3b9   :  { %v7405_v62 = vadd.f32 %v7404_v19, %v13080_v4  ;;  %v13111_v25 = vadd.f32 %v7455_v1, %v7403_v42  ;;  %7787 = vmatpush1.bf16.msra.mxu0 %v10863_v35  ;;  %v611_v4 = vld [vmem:[#allocation5 + $0xc58] sm:$0xff]  ;;  %v10840_v51 = vcombine.high %v483_v43, %v487_v47  ;;  %v10839_v1 = vcombine.low %v483_v43, %v487_v47 }
 0x3ba   :  { %v7457_v24 = vpop.f32.mrf.mxu1  ;;  %v7406_v46 = vpop.f32.mrf.mxu0  ;;  %7788 = vmatprep.subr.bf16.mxu0 %v10856_v28  ;;  %v615_v45 = vld [vmem:[#allocation5 + $0xc78] sm:$0xff] }
 0x3bb   :  { %7840 = vmatpush1.bf16.msra.mxu1 %v10991_v2  ;;  %v7407_v49 = vadd.f32 %v7406_v46, %v13082_v3  ;;  %v13114_v0 = vadd.f32 %v7457_v24, %v7405_v62  ;;  %v10968_v58 = vcombine.high %v611_v4, %v615_v45  ;;  %v475_v3 = vld [vmem:[#allocation5 + $0x818] sm:$0xff] }
 0x3bc   :  { %v7459_v34 = vpop.f32.mrf.mxu1  ;;  %7841 = vmatprep.subr.bf16.mxu1 %v10984_v21  ;;  %v479_v35 = vld [vmem:[#allocation5 + $0x838] sm:$0xff]  ;;  %v10967_v21 = vcombine.low %v611_v4, %v615_v45 }
 0x3bd   :  { %v13116_v42 = vadd.f32 %v7459_v34, %v7407_v49  ;;  %7789 = vmatpush1.bf16.msra.mxu0 %v10855_v61  ;;  %v603_v2 = vld [vmem:[#allocation5 + $0xc18] sm:$0xff]  ;;  %v10832_v19 = vcombine.high %v475_v3, %v479_v35  ;;  %v10831_v30 = vcombine.low %v475_v3, %v479_v35 }
 0x3be   :  { %7790 = vmatprep.subr.bf16.mxu0 %v10848_v32  ;;  %v607_v28 = vld [vmem:[#allocation5 + $0xc38] sm:$0xff] }
 0x3bf   :  { %7842 = vmatpush1.bf16.msra.mxu1 %v10983_v23  ;;  %v10960_v54 = vcombine.high %v603_v2, %v607_v28  ;;  %v595_v62 = vld [vmem:[#allocation5 + $0xbd8] sm:$0xff]  ;;  %v10959_v5 = vcombine.low %v603_v2, %v607_v28 }
 0x3c0   :  { %7843 = vmatprep.subr.bf16.mxu1 %v10976_v37  ;;  %v599_v50 = vld [vmem:[#allocation5 + $0xbf8] sm:$0xff] }
 0x3c1   :  { %7791 = vmatpush1.bf16.msra.mxu0 %v10847_v44  ;;  %v723_v53 = vld [vmem:[#allocation5 + $0xfd8] sm:$0xff]  ;;  %v10952_v61 = vcombine.high %v595_v62, %v599_v50  ;;  %v10951_v37 = vcombine.low %v595_v62, %v599_v50 }
 0x3c2   :  { %7792 = vmatprep.subr.bf16.mxu0 %v10840_v51  ;;  %v727_v24 = vld [vmem:[#allocation5 + $0xff8] sm:$0xff] }
 0x3c3   :  { %7844 = vmatpush1.bf16.msra.mxu1 %v10975_v41  ;;  %v11080_v46 = vcombine.high %v723_v53, %v727_v24  ;;  %v587_v23 = vld [vmem:[#allocation5 + $0xb98] sm:$0xff]  ;;  %v11079_v43 = vcombine.low %v723_v53, %v727_v24 }
 0x3c4   :  { %7845 = vmatprep.subr.bf16.mxu1 %v10968_v58  ;;  %v591_v32 = vld [vmem:[#allocation5 + $0xbb8] sm:$0xff] }
 0x3c5   :  { %7793 = vmatpush1.bf16.msra.mxu0 %v10839_v1  ;;  %v715_v49 = vld [vmem:[#allocation5 + $0xf98] sm:$0xff]  ;;  %v10944_v47 = vcombine.high %v587_v23, %v591_v32  ;;  %v10943_v58 = vcombine.low %v587_v23, %v591_v32 }
 0x3c6   :  { %7794 = vmatprep.subr.bf16.mxu0 %v10832_v19  ;;  %v719_v34 = vld [vmem:[#allocation5 + $0xfb8] sm:$0xff] }
 0x3c7   :  { %7846 = vmatpush1.bf16.msra.mxu1 %v10967_v21  ;;  %v11072_v4 = vcombine.high %v715_v49, %v719_v34  ;;  %v579_v45 = vld [vmem:[#allocation5 + $0xb58] sm:$0xff]  ;;  %v11071_v3 = vcombine.low %v715_v49, %v719_v34 }
 0x3c8   :  { %7847 = vmatprep.subr.bf16.mxu1 %v10960_v54  ;;  %v583_v44 = vld [vmem:[#allocation5 + $0xb78] sm:$0xff] }
 0x3c9   :  { %7795 = vmatpush1.bf16.msra.mxu0 %v10831_v30  ;;  %v707_v41 = vld [vmem:[#allocation5 + $0xf58] sm:$0xff]  ;;  %v10936_v35 = vcombine.high %v579_v45, %v583_v44  ;;  %v10935_v54 = vcombine.low %v579_v45, %v583_v44 }
 0x3ca   :  { %7796 = vmatprep.subr.bf16.mxu0 %v10952_v61  ;;  %v711_v51 = vld [vmem:[#allocation5 + $0xf78] sm:$0xff] }
 0x3cb   :  { %7848 = vmatpush1.bf16.msra.mxu1 %v10959_v5  ;;  %v11064_v2 = vcombine.high %v707_v41, %v711_v51  ;;  %v571_v28 = vld [vmem:[#allocation5 + $0xb18] sm:$0xff]  ;;  %v11063_v62 = vcombine.low %v707_v41, %v711_v51 }
 0x3cc   :  { %7849 = vmatprep.subr.bf16.mxu1 %v11080_v46  ;;  %v575_v1 = vld [vmem:[#allocation5 + $0xb38] sm:$0xff] }
 0x3cd   :  { %7797 = vmatpush2.bf16.msra.mxu0 %v10951_v37  ;;  %v699_v21 = vld [vmem:[#allocation5 + $0xf18] sm:$0xff]  ;;  %v10928_v50 = vcombine.high %v571_v28, %v575_v1  ;;  %v10927_v46 = vcombine.low %v571_v28, %v575_v1 }
 0x3ce   :  { %7798 = vmatprep.subr.bf16.mxu0 %v10944_v47  ;;  %v703_v19 = vld [vmem:[#allocation5 + $0xf38] sm:$0xff] }
 0x3cf   :  { %7850 = vmatpush2.bf16.msra.mxu1 %v11079_v43  ;;  %v11056_v53 = vcombine.high %v699_v21, %v703_v19  ;;  %v563_v24 = vld [vmem:[#allocation5 + $0xad8] sm:$0xff]  ;;  %v11055_v23 = vcombine.low %v699_v21, %v703_v19 }
 0x3d0   :  { %7851 = vmatprep.subr.bf16.mxu1 %v11072_v4  ;;  %v567_v30 = vld [vmem:[#allocation5 + $0xaf8] sm:$0xff] }
 0x3d1   :  { %7799 = vmatpush2.bf16.msra.mxu0 %v10943_v58  ;;  %v691_v5 = vld [vmem:[#allocation5 + $0xed8] sm:$0xff]  ;;  %v10920_v32 = vcombine.high %v563_v24, %v567_v30  ;;  %v10919_v4 = vcombine.low %v563_v24, %v567_v30 }
 0x3d2   :  { %7800 = vmatprep.subr.bf16.mxu0 %v10936_v35  ;;  %v695_v61 = vld [vmem:[#allocation5 + $0xef8] sm:$0xff] }
 0x3d3   :  { %7852 = vmatpush2.bf16.msra.mxu1 %v11071_v3  ;;  %v11048_v49 = vcombine.high %v691_v5, %v695_v61  ;;  %v555_v34 = vld [vmem:[#allocation5 + $0xa98] sm:$0xff]  ;;  %v11047_v45 = vcombine.low %v691_v5, %v695_v61 }
 0x3d4   :  { %7853 = vmatprep.subr.bf16.mxu1 %v11064_v2  ;;  %v559_v37 = vld [vmem:[#allocation5 + $0xab8] sm:$0xff] }
 0x3d5   :  { %7801 = vmatpush2.bf16.msra.mxu0 %v10935_v54  ;;  %v683_v43 = vld [vmem:[#allocation5 + $0xe98] sm:$0xff]  ;;  %v10912_v44 = vcombine.high %v555_v34, %v559_v37  ;;  %v10911_v2 = vcombine.low %v555_v34, %v559_v37 }
 0x3d6   :  { %7802 = vmatprep.subr.bf16.mxu0 %v10928_v50  ;;  %v687_v47 = vld [vmem:[#allocation5 + $0xeb8] sm:$0xff] }
 0x3d7   :  { %7854 = vmatpush2.bf16.msra.mxu1 %v11063_v62  ;;  %v11040_v41 = vcombine.high %v683_v43, %v687_v47  ;;  %v547_v51 = vld [vmem:[#allocation5 + $0xa58] sm:$0xff]  ;;  %v11039_v28 = vcombine.low %v683_v43, %v687_v47 }
 0x3d8   :  { %7855 = vmatprep.subr.bf16.mxu1 %v11056_v53  ;;  %v551_v58 = vld [vmem:[#allocation5 + $0xa78] sm:$0xff] }
 0x3d9   :  { %7803 = vmatpush2.bf16.msra.mxu0 %v10927_v46  ;;  %v675_v3 = vld [vmem:[#allocation5 + $0xe58] sm:$0xff]  ;;  %v10904_v1 = vcombine.high %v547_v51, %v551_v58  ;;  %v10903_v53 = vcombine.low %v547_v51, %v551_v58 }
 0x3da   :  { %7804 = vmatprep.subr.bf16.mxu0 %v10920_v32  ;;  %v679_v35 = vld [vmem:[#allocation5 + $0xe78] sm:$0xff] }
 0x3db   :  { %7856 = vmatpush2.bf16.msra.mxu1 %v11055_v23  ;;  %v11032_v21 = vcombine.high %v675_v3, %v679_v35  ;;  %v539_v19 = vld [vmem:[#allocation5 + $0xa18] sm:$0xff]  ;;  %v11031_v24 = vcombine.low %v675_v3, %v679_v35 }
 0x3dc   :  { %7857 = vmatprep.subr.bf16.mxu1 %v11048_v49  ;;  %v543_v54 = vld [vmem:[#allocation5 + $0xa38] sm:$0xff] }
 0x3dd   :  { %7805 = vmatpush2.bf16.msra.mxu0 %v10919_v4  ;;  %v667_v62 = vld [vmem:[#allocation5 + $0xe18] sm:$0xff]  ;;  %v10896_v30 = vcombine.high %v539_v19, %v543_v54  ;;  %v10895_v49 = vcombine.low %v539_v19, %v543_v54 }
 0x3de   :  { %7806 = vmatprep.subr.bf16.mxu0 %v10912_v44  ;;  %v671_v50 = vld [vmem:[#allocation5 + $0xe38] sm:$0xff] }
 0x3df   :  { %7858 = vmatpush2.bf16.msra.mxu1 %v11047_v45  ;;  %v11024_v5 = vcombine.high %v667_v62, %v671_v50  ;;  %v787_v61 = vld [vmem:[#allocation5 + $0x11d8] sm:$0xff]  ;;  %v11023_v34 = vcombine.low %v667_v62, %v671_v50 }
 0x3e0   :  { %7859 = vmatprep.subr.bf16.mxu1 %v11040_v41  ;;  %v791_v46 = vld [vmem:[#allocation5 + $0x11f8] sm:$0xff] }
 0x3e1   :  { %7807 = vmatpush2.bf16.msra.mxu0 %v10911_v2  ;;  %v915_v23 = vld [vmem:[#allocation5 + $0x15d8] sm:$0xff]  ;;  %v11144_v37 = vcombine.high %v787_v61, %v791_v46  ;;  %v11143_v41 = vcombine.low %v787_v61, %v791_v46 }
 0x3e2   :  { %7808 = vmatprep.subr.bf16.mxu0 %v10904_v1  ;;  %v919_v32 = vld [vmem:[#allocation5 + $0x15f8] sm:$0xff] }
 0x3e3   :  { %7860 = vmatpush2.bf16.msra.mxu1 %v11039_v28  ;;  %v11272_v43 = vcombine.high %v915_v23, %v919_v32  ;;  %v779_v47 = vld [vmem:[#allocation5 + $0x1198] sm:$0xff]  ;;  %v11271_v51 = vcombine.low %v915_v23, %v919_v32 }
 0x3e4   :  { %7861 = vmatprep.subr.bf16.mxu1 %v11032_v21  ;;  %v783_v4 = vld [vmem:[#allocation5 + $0x11b8] sm:$0xff] }
 0x3e5   :  { %7809 = vmatpush2.bf16.msra.mxu0 %v10903_v53  ;;  %v907_v45 = vld [vmem:[#allocation5 + $0x1598] sm:$0xff]  ;;  %v11136_v58 = vcombine.high %v779_v47, %v783_v4  ;;  %v11135_v62 = vcombine.low %v779_v47, %v783_v4 }
 0x3e6   :  { %7810 = vmatprep.subr.bf16.mxu0 %v10896_v30  ;;  %v911_v44 = vld [vmem:[#allocation5 + $0x15b8] sm:$0xff] }
 0x3e7   :  { %7862 = vmatpush2.bf16.msra.mxu1 %v11031_v24  ;;  %v11264_v3 = vcombine.high %v907_v45, %v911_v44  ;;  %v771_v35 = vld [vmem:[#allocation5 + $0x1158] sm:$0xff]  ;;  %v11263_v53 = vcombine.low %v907_v45, %v911_v44 }
 0x3e8   :  { %7863 = vmatprep.subr.bf16.mxu1 %v11024_v5  ;;  %v775_v2 = vld [vmem:[#allocation5 + $0x1178] sm:$0xff] }
 0x3e9   :  { %7811 = vmatpush2.bf16.msra.mxu0 %v10895_v49  ;;  %v899_v1 = vld [vmem:[#allocation5 + $0x1558] sm:$0xff]  ;;  %v11128_v24 = vcombine.high %v771_v35, %v775_v2 }
 0x3ea   :  { %7886 = vmatprep.subr.bf16.mxu0 %v11144_v37  ;;  %v903_v21 = vld [vmem:[#allocation5 + $0x1578] sm:$0xff] }
 0x3eb   :  { %7864 = vmatpush2.bf16.msra.mxu1 %v11023_v34  ;;  %v767_v61 = vld [vmem:[#allocation5 + $0x1138] sm:$0xff]  ;;  %v11127_v34 = vcombine.low %v771_v35, %v775_v2 }
 0x3ec   :  { %7939 = vmatprep.subr.bf16.mxu1 %v11272_v43  ;;  %v7496_v28 = vpop.f32.mrf.mxu0  ;;  %7813 = vmatmul.mubr.bf16.vlgmr.msra.gmra.mxu0 %v12685_v6  ;;  %v11256_v6 = vcombine.high %v899_v1, %v903_v21  ;;  %v895_v23 = vld [vmem:[#allocation5 + $0x1538] sm:$0xff]  ;;  %v11255_v43 = vcombine.low %v899_v1, %v903_v21 }
 0x3ed   :  { %v7497_v19 = vadd.f32 %v7496_v28, %v13089_v31  ;;  %7887 = vmatpush1.bf16.msra.mxu0 %v11143_v41  ;;  %7822 = vmatprep.mubr.bf16.mxu0 %v12689_v14  ;;  %v763_v31 = vld [vmem:[#allocation5 + $0x1118] sm:$0xff] }
 0x3ee   :  { %v7549_v54 = vpop.f32.mrf.mxu1  ;;  %7866 = vmatmul.mubr.bf16.vlgmr.msra.gmra.mxu1 %v12687_v7  ;;  %v13121_v50 = vpop.f32.mrf.mxu0  ;;  %7888 = vmatprep.subr.bf16.mxu0 %v11136_v58  ;;  %v891_v7 = vld [vmem:[#allocation5 + $0x1518] sm:$0xff]  ;;  %v11120_v47 = vcombine.high %v763_v31, %v767_v61  ;;  %v11119_v35 = vcombine.low %v763_v31, %v767_v61 }
 0x3ef   :  { %7940 = vmatpush1.bf16.msra.mxu1 %v11271_v51  ;;  %v13123_v30 = vadd.f32 %v7549_v54, %v7497_v19  ;;  %7875 = vmatprep.mubr.bf16.mxu1 %v12692_v22  ;;  %v11248_v45 = vcombine.high %v891_v7, %v895_v23  ;;  %v755_v22 = vld [vmem:[#allocation5 + $0x10d8] sm:$0xff]  ;;  %v11247_v28 = vcombine.low %v891_v7, %v895_v23 }
 0x3f0   :  { %v13125_v5 = vpop.f32.mrf.mxu1  ;;  %7941 = vmatprep.subr.bf16.mxu1 %v11264_v3  ;;  %v7500_v46 = vpop.f32.mrf.mxu0  ;;  %v759_v44 = vld [vmem:[#allocation5 + $0x10f8] sm:$0xff] }
 0x3f1   :  { %v7501_v32 = vadd.f32 %v7500_v46, %v13098_v60  ;;  %7889 = vmatpush1.bf16.msra.mxu0 %v11135_v62  ;;  %v883_v60 = vld [vmem:[#allocation5 + $0x14d8] sm:$0xff]  ;;  %v11112_v1 = vcombine.high %v755_v22, %v759_v44  ;;  %v11111_v61 = vcombine.low %v755_v22, %v759_v44 }
 0x3f2   :  { %v7553_v49 = vpop.f32.mrf.mxu1  ;;  %v13130_v37 = vpop.f32.mrf.mxu0  ;;  %7890 = vmatprep.subr.bf16.mxu0 %v11128_v24  ;;  %v887_v51 = vld [vmem:[#allocation5 + $0x14f8] sm:$0xff] }
 0x3f3   :  { %7942 = vmatpush1.bf16.msra.mxu1 %v11263_v53  ;;  %v13132_v14 = vadd.f32 %v7553_v49, %v7501_v32  ;;  %v747_v62 = vld [vmem:[#allocation5 + $0x1098] sm:$0xff]  ;;  %v11239_v46 = vcombine.low %v883_v60, %v887_v51 }
 0x3f4   :  { %v13134_v4 = vpop.f32.mrf.mxu1  ;;  %7943 = vmatprep.subr.bf16.mxu1 %v11256_v6  ;;  %v7506_v41 = vpop.f32.mrf.mxu0  ;;  %7823 = vmatmul.mubr.bf16.gmra.mxu0 %v12696_v38  ;;  %v11240_v38 = vcombine.high %v883_v60, %v887_v51  ;;  %v751_v53 = vld [vmem:[#allocation5 + $0x10b8] sm:$0xff] }
 0x3f5   :  { %v7507_v58 = vadd.f32 %v7506_v41, %v13106_v63  ;;  %7891 = vmatpush1.bf16.msra.mxu0 %v11127_v34  ;;  %7918 = vmatprep.mubr.bf16.mxu0 %v12701_v48  ;;  %v875_v24 = vld [vmem:[#allocation5 + $0x1498] sm:$0xff]  ;;  %v11104_v7 = vcombine.high %v747_v62, %v751_v53 }
 0x3f6   :  { %v7559_v3 = vpop.f32.mrf.mxu1  ;;  %7876 = vmatmul.mubr.bf16.gmra.mxu1 %v12699_v40  ;;  %v7508_v2 = vpop.f32.mrf.mxu0  ;;  %7892 = vmatprep.subr.bf16.mxu0 %v11120_v47  ;;  %v879_v40 = vld [vmem:[#allocation5 + $0x14b8] sm:$0xff] }
 0x3f7   :  { %7944 = vmatpush1.bf16.msra.mxu1 %v11255_v43  ;;  %v7509_v21 = vadd.f32 %v7508_v2, %v13111_v25  ;;  %v13140_v19 = vadd.f32 %v7559_v3, %v7507_v58  ;;  %7971 = vmatprep.mubr.bf16.mxu1 %v12704_v52  ;;  %v11232_v48 = vcombine.high %v875_v24, %v879_v40  ;;  %v739_v32 = vld [vmem:[#allocation5 + $0x1058] sm:$0xff] }
 0x3f8   :  { %v7561_v54 = vpop.f32.mrf.mxu1  ;;  %7945 = vmatprep.subr.bf16.mxu1 %v11248_v45  ;;  %v7510_v63 = vpop.f32.mrf.mxu0  ;;  %v743_v49 = vld [vmem:[#allocation5 + $0x1078] sm:$0xff]  ;;  %v11103_v52 = vcombine.low %v747_v62, %v751_v53 }
 0x3f9   :  { %v7511_v6 = vadd.f32 %v7510_v63, %v13114_v0  ;;  %v13145_v31 = vadd.f32 %v7561_v54, %v7509_v21  ;;  %7893 = vmatpush1.bf16.msra.mxu0 %v11119_v35  ;;  %v867_v34 = vld [vmem:[#allocation5 + $0x1458] sm:$0xff]  ;;  %v11231_v0 = vcombine.low %v875_v24, %v879_v40  ;;  %v11096_v47 = vcombine.high %v739_v32, %v743_v49 }
 0x3fa   :  { %v7563_v25 = vpop.f32.mrf.mxu1  ;;  %7894 = vmatprep.subr.bf16.mxu0 %v11112_v1  ;;  %v871_v43 = vld [vmem:[#allocation5 + $0x1478] sm:$0xff]  ;;  %v11095_v51 = vcombine.low %v739_v32, %v743_v49 }
 0x3fb   :  { %7946 = vmatpush1.bf16.msra.mxu1 %v11247_v28  ;;  %v13147_v23 = vadd.f32 %v7563_v25, %v7511_v6  ;;  %v11224_v45 = vcombine.high %v867_v34, %v871_v43  ;;  %v731_v22 = vld [vmem:[#allocation5 + $0x1018] sm:$0xff]  ;;  %v11223_v58 = vcombine.low %v867_v34, %v871_v43 }
 0x3fc   :  { %7947 = vmatprep.subr.bf16.mxu1 %v11240_v38  ;;  %v735_v44 = vld [vmem:[#allocation5 + $0x1038] sm:$0xff] }
 0x3fd   :  { %7895 = vmatpush1.bf16.msra.mxu0 %v11111_v61  ;;  %v859_v41 = vld [vmem:[#allocation5 + $0x1418] sm:$0xff]  ;;  %v11088_v3 = vcombine.high %v731_v22, %v735_v44  ;;  %v11087_v54 = vcombine.low %v731_v22, %v735_v44 }
 0x3fe   :  { %7896 = vmatprep.subr.bf16.mxu0 %v11104_v7  ;;  %v863_v60 = vld [vmem:[#allocation5 + $0x1438] sm:$0xff] }
 0x3ff   :  { %7948 = vmatpush1.bf16.msra.mxu1 %v11239_v46  ;;  %v11216_v35 = vcombine.high %v859_v41, %v863_v60  ;;  %v851_v2 = vld [vmem:[#allocation5 + $0x13d8] sm:$0xff]  ;;  %v11215_v38 = vcombine.low %v859_v41, %v863_v60 }
 0x400   :  { %7949 = vmatprep.subr.bf16.mxu1 %v11232_v48  ;;  %v855_v28 = vld [vmem:[#allocation5 + $0x13f8] sm:$0xff] }
 0x401   :  { %7897 = vmatpush1.bf16.msra.mxu0 %v11103_v52  ;;  %v979_v1 = vld [vmem:[#allocation5 + $0x17d8] sm:$0xff]  ;;  %v11208_v62 = vcombine.high %v851_v2, %v855_v28  ;;  %v11207_v25 = vcombine.low %v851_v2, %v855_v28 }
 0x402   :  { %7898 = vmatprep.subr.bf16.mxu0 %v11096_v47  ;;  %v983_v21 = vld [vmem:[#allocation5 + $0x17f8] sm:$0xff] }
 0x403   :  { %7950 = vmatpush1.bf16.msra.mxu1 %v11231_v0  ;;  %v11336_v53 = vcombine.high %v979_v1, %v983_v21  ;;  %v843_v63 = vld [vmem:[#allocation5 + $0x1398] sm:$0xff]  ;;  %v11335_v61 = vcombine.low %v979_v1, %v983_v21 }
 0x404   :  { %7951 = vmatprep.subr.bf16.mxu1 %v11224_v45  ;;  %v847_v24 = vld [vmem:[#allocation5 + $0x13b8] sm:$0xff] }
 0x405   :  { %7899 = vmatpush1.bf16.msra.mxu0 %v11095_v51  ;;  %v971_v40 = vld [vmem:[#allocation5 + $0x1798] sm:$0xff]  ;;  %v11200_v46 = vcombine.high %v843_v63, %v847_v24  ;;  %v11199_v43 = vcombine.low %v843_v63, %v847_v24 }
 0x406   :  { %7900 = vmatprep.subr.bf16.mxu0 %v11088_v3  ;;  %v975_v6 = vld [vmem:[#allocation5 + $0x17b8] sm:$0xff] }
 0x407   :  { %7952 = vmatpush1.bf16.msra.mxu1 %v11223_v58  ;;  %v11328_v7 = vcombine.high %v971_v40, %v975_v6  ;;  %v835_v48 = vld [vmem:[#allocation5 + $0x1358] sm:$0xff]  ;;  %v11327_v52 = vcombine.low %v971_v40, %v975_v6 }
 0x408   :  { %7953 = vmatprep.subr.bf16.mxu1 %v11216_v35  ;;  %v839_v32 = vld [vmem:[#allocation5 + $0x1378] sm:$0xff] }
 0x409   :  { %7901 = vmatpush1.bf16.msra.mxu0 %v11087_v54  ;;  %v963_v49 = vld [vmem:[#allocation5 + $0x1758] sm:$0xff]  ;;  %v11192_v0 = vcombine.high %v835_v48, %v839_v32  ;;  %v11191_v60 = vcombine.low %v835_v48, %v839_v32 }
 0x40a   :  { %7902 = vmatprep.subr.bf16.mxu0 %v11208_v62  ;;  %v967_v34 = vld [vmem:[#allocation5 + $0x1778] sm:$0xff] }
 0x40b   :  { %7954 = vmatpush1.bf16.msra.mxu1 %v11215_v38  ;;  %v11320_v47 = vcombine.high %v963_v49, %v967_v34  ;;  %v827_v45 = vld [vmem:[#allocation5 + $0x1318] sm:$0xff]  ;;  %v11319_v51 = vcombine.low %v963_v49, %v967_v34 }
 0x40c   :  { %7955 = vmatprep.subr.bf16.mxu1 %v11336_v53  ;;  %v831_v22 = vld [vmem:[#allocation5 + $0x1338] sm:$0xff] }
 0x40d   :  { %7903 = vmatpush2.bf16.msra.mxu0 %v11207_v25  ;;  %v955_v44 = vld [vmem:[#allocation5 + $0x1718] sm:$0xff]  ;;  %v11184_v58 = vcombine.high %v827_v45, %v831_v22  ;;  %v11183_v21 = vcombine.low %v827_v45, %v831_v22 }
 0x40e   :  { %7904 = vmatprep.subr.bf16.mxu0 %v11200_v46  ;;  %v959_v41 = vld [vmem:[#allocation5 + $0x1738] sm:$0xff] }
 0x40f   :  { %7956 = vmatpush2.bf16.msra.mxu1 %v11335_v61  ;;  %v11312_v3 = vcombine.high %v955_v44, %v959_v41  ;;  %v819_v35 = vld [vmem:[#allocation5 + $0x12d8] sm:$0xff]  ;;  %v11311_v54 = vcombine.low %v955_v44, %v959_v41 }
 0x410   :  { %7957 = vmatprep.subr.bf16.mxu1 %v11328_v7  ;;  %v823_v2 = vld [vmem:[#allocation5 + $0x12f8] sm:$0xff] }
 0x411   :  { %7905 = vmatpush2.bf16.msra.mxu0 %v11199_v43  ;;  %v947_v28 = vld [vmem:[#allocation5 + $0x16d8] sm:$0xff]  ;;  %v11176_v38 = vcombine.high %v819_v35, %v823_v2  ;;  %v11175_v6 = vcombine.low %v819_v35, %v823_v2 }
 0x412   :  { %7906 = vmatprep.subr.bf16.mxu0 %v11192_v0  ;;  %v951_v1 = vld [vmem:[#allocation5 + $0x16f8] sm:$0xff] }
 0x413   :  { %7958 = vmatpush2.bf16.msra.mxu1 %v11327_v52  ;;  %v11304_v62 = vcombine.high %v947_v28, %v951_v1  ;;  %v811_v53 = vld [vmem:[#allocation5 + $0x1298] sm:$0xff]  ;;  %v11303_v25 = vcombine.low %v947_v28, %v951_v1 }
 0x414   :  { %7959 = vmatprep.subr.bf16.mxu1 %v11320_v47  ;;  %v815_v63 = vld [vmem:[#allocation5 + $0x12b8] sm:$0xff] }
 0x415   :  { %7907 = vmatpush2.bf16.msra.mxu0 %v11191_v60  ;;  %v939_v24 = vld [vmem:[#allocation5 + $0x1698] sm:$0xff]  ;;  %v11168_v61 = vcombine.high %v811_v53, %v815_v63  ;;  %v11167_v34 = vcombine.low %v811_v53, %v815_v63 }
 0x416   :  { %7908 = vmatprep.subr.bf16.mxu0 %v11184_v58  ;;  %v943_v40 = vld [vmem:[#allocation5 + $0x16b8] sm:$0xff] }
 0x417   :  { %7960 = vmatpush2.bf16.msra.mxu1 %v11319_v51  ;;  %v11296_v46 = vcombine.high %v939_v24, %v943_v40  ;;  %v803_v7 = vld [vmem:[#allocation5 + $0x1258] sm:$0xff]  ;;  %v11295_v43 = vcombine.low %v939_v24, %v943_v40 }
 0x418   :  { %7961 = vmatprep.subr.bf16.mxu1 %v11312_v3  ;;  %v807_v48 = vld [vmem:[#allocation5 + $0x1278] sm:$0xff] }
 0x419   :  { %7909 = vmatpush2.bf16.msra.mxu0 %v11183_v21  ;;  %v931_v32 = vld [vmem:[#allocation5 + $0x1658] sm:$0xff]  ;;  %v11160_v52 = vcombine.high %v803_v7, %v807_v48  ;;  %v11159_v41 = vcombine.low %v803_v7, %v807_v48 }
 0x41a   :  { %7910 = vmatprep.subr.bf16.mxu0 %v11176_v38  ;;  %v935_v49 = vld [vmem:[#allocation5 + $0x1678] sm:$0xff] }
 0x41b   :  { %7962 = vmatpush2.bf16.msra.mxu1 %v11311_v54  ;;  %v11288_v0 = vcombine.high %v931_v32, %v935_v49  ;;  %v795_v47 = vld [vmem:[#allocation5 + $0x1218] sm:$0xff]  ;;  %v11287_v60 = vcombine.low %v931_v32, %v935_v49 }
 0x41c   :  { %7963 = vmatprep.subr.bf16.mxu1 %v11304_v62  ;;  %v799_v45 = vld [vmem:[#allocation5 + $0x1238] sm:$0xff] }
 0x41d   :  { %7911 = vmatpush2.bf16.msra.mxu0 %v11175_v6  ;;  %v923_v22 = vld [vmem:[#allocation5 + $0x1618] sm:$0xff]  ;;  %v11152_v51 = vcombine.high %v795_v47, %v799_v45  ;;  %v11151_v1 = vcombine.low %v795_v47, %v799_v45  ;;  %v7512_v6 = vpop.f32.mrf.mxu0 }
 0x41e   :  { %7912 = vmatprep.subr.bf16.mxu0 %v11168_v61  ;;  %v927_v44 = vld [vmem:[#allocation5 + $0x1638] sm:$0xff] }
 0x41f   :  { %7964 = vmatpush2.bf16.msra.mxu1 %v11303_v25  ;;  %v11280_v58 = vcombine.high %v923_v22, %v927_v44  ;;  %v1043_v3 = vld [vmem:[#allocation5 + $0x19d8] sm:$0xff]  ;;  %v11279_v21 = vcombine.low %v923_v22, %v927_v44 }
 0x420   :  { %7965 = vmatprep.subr.bf16.mxu1 %v11296_v46  ;;  %v1047_v35 = vld [vmem:[#allocation5 + $0x19f8] sm:$0xff]  ;;  %v13149_v46 = vpop.f32.mrf.mxu1 }
 0x421   :  { %7913 = vmatpush2.bf16.msra.mxu0 %v11167_v34  ;;  %v1171_v2 = vld [vmem:[#allocation5 + $0x1dd8] sm:$0xff]  ;;  %v11400_v54 = vcombine.high %v1043_v3, %v1047_v35  ;;  %v11399_v40 = vcombine.low %v1043_v3, %v1047_v35 }
 0x422   :  { %7914 = vmatprep.subr.bf16.mxu0 %v11160_v52  ;;  %v1175_v28 = vld [vmem:[#allocation5 + $0x1df8] sm:$0xff] }
 0x423   :  { %7966 = vmatpush2.bf16.msra.mxu1 %v11295_v43  ;;  %v11528_v38 = vcombine.high %v1171_v2, %v1175_v28  ;;  %v1035_v62 = vld [vmem:[#allocation5 + $0x1998] sm:$0xff]  ;;  %v11527_v25 = vcombine.low %v1171_v2, %v1175_v28 }
 0x424   :  { %7967 = vmatprep.subr.bf16.mxu1 %v11288_v0  ;;  %v1039_v53 = vld [vmem:[#allocation5 + $0x19b8] sm:$0xff] }
 0x425   :  { %7915 = vmatpush2.bf16.msra.mxu0 %v11159_v41  ;;  %v1163_v63 = vld [vmem:[#allocation5 + $0x1d98] sm:$0xff]  ;;  %v11392_v61 = vcombine.high %v1035_v62, %v1039_v53  ;;  %v11391_v47 = vcombine.low %v1035_v62, %v1039_v53 }
 0x426   :  { %7916 = vmatprep.subr.bf16.mxu0 %v11152_v51  ;;  %v1167_v24 = vld [vmem:[#allocation5 + $0x1db8] sm:$0xff] }
 0x427   :  { %7968 = vmatpush2.bf16.msra.mxu1 %v11287_v60  ;;  %v11520_v7 = vcombine.high %v1163_v63, %v1167_v24  ;;  %v1027_v48 = vld [vmem:[#allocation5 + $0x1958] sm:$0xff]  ;;  %v11519_v22 = vcombine.low %v1163_v63, %v1167_v24 }
 0x428   :  { %7969 = vmatprep.subr.bf16.mxu1 %v11280_v58  ;;  %v1031_v32 = vld [vmem:[#allocation5 + $0x1978] sm:$0xff] }
 0x429   :  { %7917 = vmatpush2.bf16.msra.mxu0 %v11151_v1  ;;  %v1155_v34 = vld [vmem:[#allocation5 + $0x1d58] sm:$0xff]  ;;  %v11384_v44 = vcombine.high %v1027_v48, %v1031_v32  ;;  %v11383_v28 = vcombine.low %v1027_v48, %v1031_v32 }
 0x42a   :  { %7992 = vmatprep.subr.bf16.mxu0 %v11400_v54  ;;  %v1159_v43 = vld [vmem:[#allocation5 + $0x1d78] sm:$0xff] }
 0x42b   :  { %7970 = vmatpush2.bf16.msra.mxu1 %v11279_v21  ;;  %v1019_v60 = vld [vmem:[#allocation5 + $0x1918] sm:$0xff]  ;;  %v11511_v21 = vcombine.low %v1155_v34, %v1159_v43 }
 0x42c   :  { %8045 = vmatprep.subr.bf16.mxu1 %v11528_v38  ;;  %v7602_v49 = vpop.f32.mrf.mxu0  ;;  %7919 = vmatmul.mubr.bf16.vlgmr.msra.gmra.mxu0 %v12709_v17  ;;  %v11512_v17 = vcombine.high %v1155_v34, %v1159_v43  ;;  %v1023_v51 = vld [vmem:[#allocation5 + $0x1938] sm:$0xff] }
 0x42d   :  { %v7603_v52 = vadd.f32 %v7602_v49, %v13123_v30  ;;  %7993 = vmatpush1.bf16.msra.mxu0 %v11399_v40  ;;  %7928 = vmatprep.mubr.bf16.mxu0 %v12713_v29  ;;  %v1151_v58 = vld [vmem:[#allocation5 + $0x1d38] sm:$0xff]  ;;  %v11376_v29 = vcombine.high %v1019_v60, %v1023_v51 }
 0x42e   :  { %v7655_v0 = vpop.f32.mrf.mxu1  ;;  %7972 = vmatmul.mubr.bf16.vlgmr.msra.gmra.mxu1 %v12711_v18  ;;  %v13154_v45 = vpop.f32.mrf.mxu0  ;;  %7994 = vmatprep.subr.bf16.mxu0 %v11392_v61  ;;  %v1147_v18 = vld [vmem:[#allocation5 + $0x1d18] sm:$0xff] }
 0x42f   :  { %8046 = vmatpush1.bf16.msra.mxu1 %v11527_v25  ;;  %7981 = vmatprep.mubr.bf16.mxu1 %v12716_v33  ;;  %v7656_v3 = vadd.f32 %v7655_v0, %v7603_v52  ;;  %v11504_v62 = vcombine.high %v1147_v18, %v1151_v58  ;;  %v1011_v33 = vld [vmem:[#allocation5 + $0x18d8] sm:$0xff]  ;;  %v7513_v25 = vadd.f32 %v7512_v6, %v13116_v42 }
 0x430   :  { %v13156_v41 = vpop.f32.mrf.mxu1  ;;  %8047 = vmatprep.subr.bf16.mxu1 %v11520_v7  ;;  %v7606_v30 = vpop.f32.mrf.mxu0  ;;  %v1015_v53 = vld [vmem:[#allocation5 + $0x18f8] sm:$0xff]  ;;  %v11503_v34 = vcombine.low %v1147_v18, %v1151_v58 }
 0x431   :  { %v7607_v35 = vadd.f32 %v7606_v30, %v13132_v14  ;;  %7995 = vmatpush1.bf16.msra.mxu0 %v11391_v47  ;;  %v11375_v14 = vcombine.low %v1019_v60, %v1023_v51  ;;  %v1139_v24 = vld [vmem:[#allocation5 + $0x1cd8] sm:$0xff]  ;;  %v8102_v61 = vmax.f32 %v7656_v3, 0.0  ;;  %v11368_v43 = vcombine.high %v1011_v33, %v1015_v53 }
 0x432   :  { %v7659_v2 = vpop.f32.mrf.mxu1  ;;  %v13161_v1 = vpop.f32.mrf.mxu0  ;;  %7996 = vmatprep.subr.bf16.mxu0 %v11384_v44  ;;  %v1143_v40 = vld [vmem:[#allocation5 + $0x1cf8] sm:$0xff] }
 0x433   :  { %8048 = vmatpush1.bf16.msra.mxu1 %v11519_v22  ;;  %v7660_v54 = vadd.f32 %v7659_v2, %v7607_v35  ;;  %v11496_v42 = vcombine.high %v1139_v24, %v1143_v40  ;;  %v1003_v6 = vld [vmem:[#allocation5 + $0x1898] sm:$0xff]  ;;  %v11495_v18 = vcombine.low %v1139_v24, %v1143_v40 }
 0x434   :  { %v13163_v38 = vpop.f32.mrf.mxu1  ;;  %8049 = vmatprep.subr.bf16.mxu1 %v11512_v17  ;;  %v7612_v63 = vpop.f32.mrf.mxu0  ;;  %7929 = vmatmul.mubr.bf16.gmra.mxu0 %v12720_v56  ;;  %v1007_v47 = vld [vmem:[#allocation5 + $0x18b8] sm:$0xff] }
 0x435   :  { %v8110_v7 = vmax.f32 %v7660_v54, 0.0  ;;  %v7613_v48 = vadd.f32 %v7612_v63, %v13140_v19  ;;  %7997 = vmatpush1.bf16.msra.mxu0 %v11383_v28  ;;  %8024 = vmatprep.mubr.bf16.mxu0 %v12725_v8  ;;  %v1131_v22 = vld [vmem:[#allocation5 + $0x1c98] sm:$0xff]  ;;  %v11360_v58 = vcombine.high %v1003_v6, %v1007_v47 }
 0x436   :  { %v7665_v32 = vpop.f32.mrf.mxu1  ;;  %7982 = vmatmul.mubr.bf16.gmra.mxu1 %v12723_v59  ;;  %v7614_v49 = vpop.f32.mrf.mxu0  ;;  %7998 = vmatprep.subr.bf16.mxu0 %v11376_v29  ;;  %v1135_v44 = vld [vmem:[#allocation5 + $0x1cb8] sm:$0xff]  ;;  %v7566_v59 = vadd.f32 %v13149_v46, %v7513_v25 }
 0x437   :  { %8050 = vmatpush1.bf16.msra.mxu1 %v11511_v21  ;;  %v13169_v52 = vpack.c.bf16 %v8110_v7, %v8102_v61  ;;  %v7615_v56 = vadd.f32 %v7614_v49, %v13145_v31  ;;  %8077 = vmatprep.mubr.bf16.mxu1 %v12728_v9  ;;  %v7666_v17 = vadd.f32 %v7665_v32, %v7613_v48  ;;  %v995_v9 = vld [vmem:[#allocation5 + $0x1858] sm:$0xff] }
 0x438   :  { %v7667_v0 = vpop.f32.mrf.mxu1  ;;  %8051 = vmatprep.subr.bf16.mxu1 %v11504_v62  ;;  %v7616_v19 = vpop.f32.mrf.mxu0  ;;  %v11367_v31 = vcombine.low %v1011_v33, %v1015_v53  ;;  %v11488_v28 = vcombine.high %v1131_v22, %v1135_v44  ;;  %v999_v21 = vld [vmem:[#allocation5 + $0x1878] sm:$0xff]  ;;  %v11359_v33 = vcombine.low %v1003_v6, %v1007_v47  ;;  %v11487_v53 = vcombine.low %v1131_v22, %v1135_v44 }
 0x439   :  { %v7617_v60 = vadd.f32 %v7616_v19, %v13147_v23  ;;  %7999 = vmatpush1.bf16.msra.mxu0 %v11375_v14  ;;  %v7668_v3 = vadd.f32 %v7667_v0, %v7615_v56  ;;  %v1123_v46 = vld [vmem:[#allocation5 + $0x1c58] sm:$0xff]  ;;  %v8118_v54 = vmax.f32 %v7666_v17, 0.0  ;;  %v11352_v63 = vcombine.high %v995_v9, %v999_v21 }
 0x43a   :  { %v7669_v51 = vpop.f32.mrf.mxu1  ;;  %v7618_v30 = vpop.f32.mrf.mxu0  ;;  %8000 = vmatprep.subr.bf16.mxu0 %v11368_v43  ;;  %v1127_v29 = vld [vmem:[#allocation5 + $0x1c78] sm:$0xff] }
 0x43b   :  { %8052 = vmatpush1.bf16.msra.mxu1 %v11503_v34  ;;  %v7619_v8 = vadd.f32 %v7618_v30, %v7566_v59  ;;  %v7670_v35 = vadd.f32 %v7669_v51, %v7617_v60  ;;  %v8119_v14 = vmax.f32 %v7668_v3, 0.0  ;;  %v11480_v25 = vcombine.high %v1123_v46, %v1127_v29  ;;  %v987_v61 = vld [vmem:[#allocation5 + $0x1818] sm:$0xff] }
 0x43c   :  { %v7671_v2 = vpop.f32.mrf.mxu1  ;;  %8053 = vmatprep.subr.bf16.mxu1 %v11496_v42  ;;  %v991_v7 = vld [vmem:[#allocation5 + $0x1838] sm:$0xff]  ;;  %v11351_v34 = vcombine.low %v995_v9, %v999_v21  ;;  %v11479_v43 = vcombine.low %v1123_v46, %v1127_v29 }
 0x43d   :  { %v8126_v23 = vmax.f32 %v7670_v35, 0.0  ;;  %v7672_v62 = vadd.f32 %v7671_v2, %v7619_v8  ;;  %8001 = vmatpush1.bf16.msra.mxu0 %v11367_v31  ;;  %v1115_v48 = vld [vmem:[#allocation5 + $0x1c18] sm:$0xff]  ;;  %v11344_v56 = vcombine.high %v987_v61, %v991_v7  ;;  %v11343_v22 = vcombine.low %v987_v61, %v991_v7 }
 0x43e   :  { %8002 = vmatprep.subr.bf16.mxu0 %v11360_v58  ;;  %v1119_v32 = vld [vmem:[#allocation5 + $0x1c38] sm:$0xff] }
 0x43f   :  { %8054 = vmatpush1.bf16.msra.mxu1 %v11495_v18  ;;  %v13176_v24 = vpack.c.bf16 %v8126_v23, %v8118_v54  ;;  %v8127_v40 = vmax.f32 %v7672_v62, 0.0  ;;  %v11472_v0 = vcombine.high %v1115_v48, %v1119_v32  ;;  %v1107_v42 = vld [vmem:[#allocation5 + $0x1bd8] sm:$0xff]  ;;  %v11471_v44 = vcombine.low %v1115_v48, %v1119_v32 }
 0x440   :  { %8055 = vmatprep.subr.bf16.mxu1 %v11488_v28  ;;  %v1111_v6 = vld [vmem:[#allocation5 + $0x1bf8] sm:$0xff] }
 0x441   :  { %v13178_v49 = vpack.c.bf16 %v8127_v40, %v8119_v14  ;;  %8003 = vmatpush1.bf16.msra.mxu0 %v11359_v33  ;;  %v1235_v47 = vld [vmem:[#allocation5 + $0x1fd8] sm:$0xff]  ;;  %v11464_v59 = vcombine.high %v1107_v42, %v1111_v6  ;;  %v11463_v18 = vcombine.low %v1107_v42, %v1111_v6 }
 0x442   :  { %8004 = vmatprep.subr.bf16.mxu0 %v11352_v63  ;;  %v1239_v19 = vld [vmem:[#allocation5 + $0x1ff8] sm:$0xff] }
 0x443   :  { %8056 = vmatpush1.bf16.msra.mxu1 %v11487_v53  ;;  %v11592_v17 = vcombine.high %v1235_v47, %v1239_v19  ;;  %v1099_v60 = vld [vmem:[#allocation5 + $0x1b98] sm:$0xff]  ;;  %v11591_v58 = vcombine.low %v1235_v47, %v1239_v19  ;;  %v13550_v47 = vld [vmem:[#allocation51_spill] sm:$0xff] }
 0x444   :  { %8057 = vmatprep.subr.bf16.mxu1 %v11480_v25  ;;  %v1103_v51 = vld [vmem:[#allocation5 + $0x1bb8] sm:$0xff] }
 0x445   :  { %8005 = vmatpush1.bf16.msra.mxu0 %v11351_v34  ;;  %v1227_v31 = vld [vmem:[#allocation5 + $0x1f98] sm:$0xff]  ;;  %v11456_v3 = vcombine.high %v1099_v60, %v1103_v51  ;;  %v11455_v21 = vcombine.low %v1099_v60, %v1103_v51 }
 0x446   :  { %8006 = vmatprep.subr.bf16.mxu0 %v11344_v56  ;;  %v1231_v30 = vld [vmem:[#allocation5 + $0x1fb8] sm:$0xff]  ;;  %v13549_v56 = vld [vmem:[#allocation27_spill] sm:$0xff] }
 0x447   :  { %8058 = vmatpush1.bf16.msra.mxu1 %v11479_v43  ;;  %v11584_v8 = vcombine.high %v1227_v31, %v1231_v30  ;;  %v1091_v35 = vld [vmem:[#allocation5 + $0x1b58] sm:$0xff]  ;;  %v11583_v46 = vcombine.low %v1227_v31, %v1231_v30  ;;  %v13548_v43 = vld [vmem:[#allocation26_spill] sm:$0xff]  ;;  %v13552_v31 = vld [vmem:[#allocation47_spill] sm:$0xff] }
 0x448   :  { %8059 = vmatprep.subr.bf16.mxu1 %v11472_v0  ;;  %v1095_v2 = vld [vmem:[#allocation5 + $0x1b78] sm:$0xff]  ;;  %v6443_v0 = vadd.f32 %v13549_v56, %v13548_v43  ;;  %v6863_v30 = vadd.f32 %v13552_v31, %v13550_v47 }
 0x449   :  { %8007 = vmatpush1.bf16.msra.mxu0 %v11343_v22  ;;  %v1219_v28 = vld [vmem:[#allocation5 + $0x1f58] sm:$0xff]  ;;  %v11448_v29 = vcombine.high %v1091_v35, %v1095_v2  ;;  %v11447_v63 = vcombine.low %v1091_v35, %v1095_v2  ;;  %v13554_v2 = vld [vmem:[#allocation50_spill] sm:$0xff] }
 0x44a   :  { %8008 = vmatprep.subr.bf16.mxu0 %v11464_v59  ;;  %v1223_v9 = vld [vmem:[#allocation5 + $0x1f78] sm:$0xff] }
 0x44b   :  { %8060 = vmatpush1.bf16.msra.mxu1 %v11471_v44  ;;  %v11576_v54 = vcombine.high %v1219_v28, %v1223_v9  ;;  %v1083_v23 = vld [vmem:[#allocation5 + $0x1b18] sm:$0xff]  ;;  %v11575_v14 = vcombine.low %v1219_v28, %v1223_v9 }
 0x44c   :  { %8061 = vmatprep.subr.bf16.mxu1 %v11592_v17  ;;  %v1087_v62 = vld [vmem:[#allocation5 + $0x1b38] sm:$0xff] }
 0x44d   :  { %8009 = vmatpush2.bf16.msra.mxu0 %v11463_v18  ;;  %v1211_v33 = vld [vmem:[#allocation5 + $0x1f18] sm:$0xff]  ;;  %v11440_v40 = vcombine.high %v1083_v23, %v1087_v62  ;;  %v11439_v34 = vcombine.low %v1083_v23, %v1087_v62 }
 0x44e   :  { %8010 = vmatprep.subr.bf16.mxu0 %v11456_v3  ;;  %v1215_v53 = vld [vmem:[#allocation5 + $0x1f38] sm:$0xff] }
 0x44f   :  { %8062 = vmatpush2.bf16.msra.mxu1 %v11591_v58  ;;  %v11568_v25 = vcombine.high %v1211_v33, %v1215_v53  ;;  %v1075_v61 = vld [vmem:[#allocation5 + $0x1ad8] sm:$0xff]  ;;  %v11567_v42 = vcombine.low %v1211_v33, %v1215_v53 }
 0x450   :  { %8063 = vmatprep.subr.bf16.mxu1 %v11584_v8  ;;  %v1079_v7 = vld [vmem:[#allocation5 + $0x1af8] sm:$0xff] }
 0x451   :  { %8011 = vmatpush2.bf16.msra.mxu0 %v11455_v21  ;;  %v1203_v48 = vld [vmem:[#allocation5 + $0x1ed8] sm:$0xff]  ;;  %v11432_v6 = vcombine.high %v1075_v61, %v1079_v7  ;;  %v11431_v18 = vcombine.low %v1075_v61, %v1079_v7 }
 0x452   :  { %8012 = vmatprep.subr.bf16.mxu0 %v11448_v29  ;;  %v1207_v32 = vld [vmem:[#allocation5 + $0x1ef8] sm:$0xff]  ;;  %v13555_v29 = vld [vmem:[#allocation31_spill] sm:$0xff] }
 0x453   :  { %8064 = vmatpush2.bf16.msra.mxu1 %v11583_v46  ;;  %v13551_v19 = vld [vmem:[#allocation49_spill] sm:$0xff]  ;;  %v11560_v44 = vcombine.high %v1203_v48, %v1207_v32  ;;  %v13553_v58 = vld [vmem:[#allocation28_spill] sm:$0xff]  ;;  %v11559_v8 = vcombine.low %v1203_v48, %v1207_v32 }
 0x454   :  { %8065 = vmatprep.subr.bf16.mxu1 %v11576_v54  ;;  %v6867_v22 = vadd.f32 %v13551_v19, %v13550_v47  ;;  %v1067_v59 = vld [vmem:[#allocation5 + $0x1a98] sm:$0xff]  ;;  %v6496_v3 = vadd.f32 %v13553_v58, %v6443_v0 }
 0x455   :  { %8013 = vmatpush2.bf16.msra.mxu0 %v11447_v63  ;;  %v1071_v17 = vld [vmem:[#allocation5 + $0x1ab8] sm:$0xff]  ;;  %v13557_v63 = vld [vmem:[#allocation55_spill] sm:$0xff] }
 0x456   :  { %8014 = vmatprep.subr.bf16.mxu0 %v11440_v40  ;;  %v1195_v60 = vld [vmem:[#allocation5 + $0x1e98] sm:$0xff]  ;;  %v11424_v35 = vcombine.high %v1067_v59, %v1071_v17  ;;  %v6920_v28 = vadd.f32 %v13554_v2, %v6867_v22  ;;  %v6549_v54 = vadd.f32 %v13555_v29, %v6496_v3  ;;  %v11423_v40 = vcombine.low %v1067_v59, %v1071_v17 }
 0x457   :  { %8066 = vmatpush2.bf16.msra.mxu1 %v11575_v14  ;;  %v1199_v51 = vld [vmem:[#allocation5 + $0x1eb8] sm:$0xff] }
 0x458   :  { %8067 = vmatprep.subr.bf16.mxu1 %v11568_v25  ;;  %v11552_v9 = vcombine.high %v1195_v60, %v1199_v51  ;;  %v1059_v21 = vld [vmem:[#allocation5 + $0x1a58] sm:$0xff]  ;;  %v6973_v14 = vadd.f32 %v13557_v63, %v6920_v28  ;;  %v11551_v25 = vcombine.low %v1195_v60, %v1199_v51  ;;  %v13562_v51 = vld [vmem:[#allocation54_spill] sm:$0xff] }
 0x459   :  { %8015 = vmatpush2.bf16.msra.mxu0 %v11439_v34  ;;  %v1063_v46 = vld [vmem:[#allocation5 + $0x1a78] sm:$0xff] }
 0x45a   :  { %8016 = vmatprep.subr.bf16.mxu0 %v11432_v6  ;;  %v1187_v23 = vld [vmem:[#allocation5 + $0x1e58] sm:$0xff]  ;;  %v11416_v61 = vcombine.high %v1059_v21, %v1063_v46  ;;  %v11415_v31 = vcombine.low %v1059_v21, %v1063_v46 }
 0x45b   :  { %8068 = vmatpush2.bf16.msra.mxu1 %v11567_v42  ;;  %v1191_v62 = vld [vmem:[#allocation5 + $0x1e78] sm:$0xff] }
 0x45c   :  { %8069 = vmatprep.subr.bf16.mxu1 %v11560_v44  ;;  %v13556_v33 = vld [vmem:[#allocation48_spill] sm:$0xff]  ;;  %v13558_v7 = vld [vmem:[#allocation53_spill] sm:$0xff]  ;;  %v11544_v32 = vcombine.high %v1187_v23, %v1191_v62  ;;  %v11543_v17 = vcombine.low %v1187_v23, %v1191_v62 }
 0x45d   :  { %v6916_v53 = vadd.f32 %v13556_v33, %v6863_v30  ;;  %8017 = vmatpush2.bf16.msra.mxu0 %v11431_v18  ;;  %v1051_v34 = vld [vmem:[#allocation5 + $0x1a18] sm:$0xff]  ;;  %v13561_v30 = vld [vmem:[#allocation35_spill] sm:$0xff] }
 0x45e   :  { %8018 = vmatprep.subr.bf16.mxu0 %v11424_v35  ;;  %v1055_v56 = vld [vmem:[#allocation5 + $0x1a38] sm:$0xff]  ;;  %v13564_v35 = vld [vmem:[#allocation59_spill] sm:$0xff] }
 0x45f   :  { %8070 = vmatpush2.bf16.msra.mxu1 %v11559_v8  ;;  %v6969_v48 = vadd.f32 %v13558_v7, %v6916_v53  ;;  %v13559_v0 = vld [vmem:[#allocation32_spill] sm:$0xff]  ;;  %v11408_v60 = vcombine.high %v1051_v34, %v1055_v56  ;;  %v13563_v58 = vld [vmem:[#allocation61_spill] sm:$0xff]  ;;  %v11407_v28 = vcombine.low %v1051_v34, %v1055_v56 }
 0x460   :  { %8071 = vmatprep.subr.bf16.mxu1 %v11552_v9  ;;  %v6602_v42 = vadd.f32 %v13559_v0, %v6549_v54  ;;  %v1179_v6 = vld [vmem:[#allocation5 + $0x1e18] sm:$0xff]  ;;  %v13566_v54 = vld [vmem:[#allocation62_spill] sm:$0xff]  ;;  %v13570_v0 = vld [vmem:[#allocation67_spill] sm:$0xff] }
 0x461   :  { %v1183_v19 = vld [vmem:[#allocation5 + $0x1e38] sm:$0xff]  ;;  %8019 = vmatpush2.bf16.msra.mxu0 %v11423_v40  ;;  %v7022_v18 = vadd.f32 %v13562_v51, %v6969_v48 }
 0x462   :  { %v13560_v22 = vld [vmem:[#allocation56_spill] sm:$0xff]  ;;  %v6655_v59 = vadd.f32 %v13561_v30, %v6602_v42  ;;  %8020 = vmatprep.subr.bf16.mxu0 %v11416_v61  ;;  %v11536_v8 = vcombine.high %v1179_v6, %v1183_v19  ;;  %v11535_v21 = vcombine.low %v1179_v6, %v1183_v19  ;;  %v13569_v34 = vld [vmem:[#allocation41_spill] sm:$0xff] }
 0x463   :  { %v7026_v44 = vadd.f32 %v13560_v22, %v6973_v14  ;;  %8072 = vmatpush2.bf16.msra.mxu1 %v11551_v25  ;;  %v7075_v2 = vadd.f32 %v13564_v35, %v7022_v18  ;;  %v13565_v9 = vld [vmem:[#allocation36_spill] sm:$0xff]  ;;  %v13571_v22 = vld [vmem:[#allocation66_spill] sm:$0xff] }
 0x464   :  { %8073 = vmatprep.subr.bf16.mxu1 %v11544_v32  ;;  %v6708_v29 = vadd.f32 %v13565_v9, %v6655_v59  ;;  %v11958_v46 = vld [vmem:[#allocation8 + $0xe4] ss:$16 sps:$4 sm:$0xff]   ;;  %v11956_v25 = vld [vmem:[#allocation8 + $0xe0] ss:$16 sps:$4 sm:$0xff]  }
 0x465   :  { %v7079_v3 = vadd.f32 %v13563_v58, %v7026_v44  ;;  %8021 = vmatpush2.bf16.msra.mxu0 %v11415_v31  ;;  %v11961_v23 = vld [vmem:[#allocation8 + $0x2e4] ss:$16 sps:$4 sm:$0xff]   ;;  %v11959_v61 = vld [vmem:[#allocation8 + $0x2e0] ss:$16 sps:$4 sm:$0xff]  }
 0x466   :  { %8022 = vmatprep.subr.bf16.mxu0 %v11408_v60  ;;  %v13567_v62 = vld [vmem:[#allocation40_spill] sm:$0xff]  ;;  %v13572_v59 = vld [vmem:[#allocation39_spill] sm:$0xff] }
 0x467   :  { %8074 = vmatpush2.bf16.msra.mxu1 %v11543_v17  ;;  %v7132_v33 = vadd.f32 %v13566_v54, %v7079_v3  ;;  %v6761_v53 = vadd.f32 %v13567_v62, %v6708_v29  ;;  %v13568_v63 = vld [vmem:[#allocation60_spill] sm:$0xff] }
 0x468   :  { %8075 = vmatprep.subr.bf16.mxu1 %v11536_v8  ;;  %v7128_v14 = vadd.f32 %v13568_v63, %v7075_v2  ;;  %v11964_v7 = vld [vmem:[#allocation8 + $0xc4] ss:$16 sps:$4 sm:$0xff]   ;;  %v11965_v6 = vld [vmem:[#allocation8 + $0x2c0] ss:$16 sps:$4 sm:$0xff]  }
 0x469   :  { %v7185_v40 = vadd.f32 %v13022_v55, %v7132_v33  ;;  %8023 = vmatpush2.bf16.msra.mxu0 %v11407_v28  ;;  %v11967_v32 = vld [vmem:[#allocation8 + $0x2c4] ss:$16 sps:$4 sm:$0xff]   ;;  %v6814_v56 = vadd.f32 %v13569_v34, %v6761_v53  ;;  %v11962_v55 = vld [vmem:[#allocation8 + $0xc0] ss:$16 sps:$4 sm:$0xff]  }
 0x46a   :  { %9704 = vmatprep.subr.bf16.mxu0 %v11958_v46  ;;  %v7181_v48 = vadd.f32 %v13015_v20, %v7128_v14  ;;  %v11970_v19 = vld [vmem:[#allocation8 + $0xa4] ss:$16 sps:$4 sm:$0xff]   ;;  %v11968_v30 = vld [vmem:[#allocation8 + $0xa0] ss:$16 sps:$4 sm:$0xff]  }
 0x46b   :  { %8076 = vmatpush2.bf16.msra.mxu1 %v11535_v21  ;;  %v7238_v42 = vadd.f32 %v13570_v0, %v7185_v40  ;;  %v11973_v20 = vld [vmem:[#allocation8 + $0x2a4] ss:$16 sps:$4 sm:$0xff]   ;;  %v8107_v31 = vmax.f32 %v6814_v56, 0.0  ;;  %v11971_v17 = vld [vmem:[#allocation8 + $0x2a0] ss:$16 sps:$4 sm:$0xff]  }
 0x46c   :  { %9757 = vmatprep.subr.bf16.mxu1 %v11961_v23  ;;  %8025 = vmatmul.mubr.bf16.vlgmr.msra.gmra.mxu0 %v12741_v11  ;;  %v7234_v44 = vadd.f32 %v13571_v22, %v7181_v48  ;;  %v11976_v51 = vld [vmem:[#allocation8 + $0x84] ss:$16 sps:$4 sm:$0xff]   ;;  %v11977_v3 = vld [vmem:[#allocation8 + $0x280] ss:$16 sps:$4 sm:$0xff]  }
 0x46d   :  { %9705 = vmatpush1.bf16.msra.mxu0 %v11956_v25  ;;  %8034 = vmatprep.mubr.bf16.mxu0 %v12755_v27  ;;  %v8109_v11 = vmax.f32 %v7238_v42, 0.0  ;;  %v11979_v27 = vld [vmem:[#allocation8 + $0x284] ss:$16 sps:$4 sm:$0xff]   ;;  %v11983_v2 = vld [vmem:[#allocation8 + $0x260] ss:$16 sps:$4 sm:$0xff]  }
 0x46e   :  { %8078 = vmatmul.mubr.bf16.vlgmr.msra.gmra.mxu1 %v12747_v13  ;;  %9706 = vmatprep.subr.bf16.mxu0 %v11964_v7  ;;  %v8099_v13 = vmax.f32 %v13572_v59, 0.0  ;;  %v8101_v60 = vmax.f32 %v7234_v44, 0.0  ;;  %v11982_v8 = vld [vmem:[#allocation8 + $0x64] ss:$16 sps:$4 sm:$0xff]   ;;  %v11986_v9 = vld [vmem:[#allocation8 + $0x40] ss:$16 sps:$4 sm:$0xff]  }
 0x46f   :  { %9758 = vmatpush1.bf16.msra.mxu1 %v11959_v61  ;;  %8087 = vmatprep.mubr.bf16.mxu1 %v12758_v39  ;;  %v11974_v39 = vld [vmem:[#allocation8 + $0x80] ss:$16 sps:$4 sm:$0xff]   ;;  %v11985_v35 = vld [vmem:[#allocation8 + $0x264] ss:$16 sps:$4 sm:$0xff]  }
 0x470   :  { %9759 = vmatprep.subr.bf16.mxu1 %v11967_v32  ;;  %v13213_v18 = vpack.c.bf16 %v8107_v31, %v8099_v13  ;;  %v13215_v58 = vpack.c.bf16 %v8109_v11, %v8101_v60  ;;  %v11988_v28 = vld [vmem:[#allocation8 + $0x44] ss:$16 sps:$4 sm:$0xff]   ;;  %v11989_v29 = vld [vmem:[#allocation8 + $0x240] ss:$16 sps:$4 sm:$0xff]  }
 0x471   :  { %9707 = vmatpush1.bf16.msra.mxu0 %v11962_v55  ;;  %v11994_v21 = vld [vmem:[#allocation8 + $0x24] ss:$16 sps:$4 sm:$0xff]   ;;  %v11992_v54 = vld [vmem:[#allocation8 + $0x20] ss:$16 sps:$4 sm:$0xff]  }
 0x472   :  { %9708 = vmatprep.subr.bf16.mxu0 %v11970_v19  ;;  %v11997_v46 = vld [vmem:[#allocation8 + $0x224] ss:$16 sps:$4 sm:$0xff]   ;;  %v11995_v33 = vld [vmem:[#allocation8 + $0x220] ss:$16 sps:$4 sm:$0xff]  }
 0x473   :  { %9760 = vmatpush1.bf16.msra.mxu1 %v11965_v6  ;;  %v12000_v23 = vld [vmem:[#allocation8 + $0x4] ss:$16 sps:$4 sm:$0xff]   ;;  %v11998_v53 = vld [vmem:[#allocation8] ss:$16 sps:$4 sm:$0xff]  }
 0x474   :  { %9761 = vmatprep.subr.bf16.mxu1 %v11973_v20  ;;  %8035 = vmatmul.mubr.bf16.gmra.mxu0 %v12768_v16  ;;  %v11980_v16 = vld [vmem:[#allocation8 + $0x60] ss:$16 sps:$4 sm:$0xff]   ;;  %v12003_v62 = vld [vmem:[#allocation8 + $0x204] ss:$16 sps:$4 sm:$0xff]  }
 0x475   :  { %9709 = vmatpush1.bf16.msra.mxu0 %v11968_v30  ;;  %9736 = vmatprep.mubr.bf16.mxu0 %v13213_v18  ;;  %v12001_v63 = vld [vmem:[#allocation8 + $0x200] ss:$16 sps:$4 sm:$0xff]   ;;  %v12006_v14 = vld [vmem:[#allocation8 + $0x1e4] ss:$16 sps:$4 sm:$0xff]  }
 0x476   :  { %8088 = vmatmul.mubr.bf16.gmra.mxu1 %v12774_v26  ;;  %9710 = vmatprep.subr.bf16.mxu0 %v11976_v51  ;;  %v11991_v26 = vld [vmem:[#allocation8 + $0x244] ss:$16 sps:$4 sm:$0xff]   ;;  %v12004_v25 = vld [vmem:[#allocation8 + $0x1e0] ss:$16 sps:$4 sm:$0xff]  }
 0x477   :  { %9762 = vmatpush1.bf16.msra.mxu1 %v11971_v17  ;;  %9789 = vmatprep.mubr.bf16.mxu1 %v13215_v58  ;;  %v12009_v40 = vld [vmem:[#allocation8 + $0x3e4] ss:$16 sps:$4 sm:$0xff]   ;;  %v12007_v61 = vld [vmem:[#allocation8 + $0x3e0] ss:$16 sps:$4 sm:$0xff]  }
 0x478   :  { %9763 = vmatprep.subr.bf16.mxu1 %v11979_v27  ;;  %v12012_v7 = vld [vmem:[#allocation8 + $0x1c4] ss:$16 sps:$4 sm:$0xff]   ;;  %v12010_v56 = vld [vmem:[#allocation8 + $0x1c0] ss:$16 sps:$4 sm:$0xff]  }
 0x479   :  { %9711 = vmatpush1.bf16.msra.mxu0 %v11974_v39  ;;  %v12015_v48 = vld [vmem:[#allocation8 + $0x3c4] ss:$16 sps:$4 sm:$0xff]   ;;  %v12013_v55 = vld [vmem:[#allocation8 + $0x3c0] ss:$16 sps:$4 sm:$0xff]  }
 0x47a   :  { %9712 = vmatprep.subr.bf16.mxu0 %v11982_v8  ;;  %v13573_v32 = vld [vmem:[#allocation29_spill] sm:$0xff]  ;;  %v13574_v0 = vld [vmem:[#allocation23_spill] sm:$0xff]  ;;  %v13575_v22 = vld [vmem:[#allocation30_spill] sm:$0xff] }
 0x47b   :  { %9764 = vmatpush1.bf16.msra.mxu1 %v11977_v3  ;;  %v6453_v34 = vadd.f32 %v13573_v32, %v13548_v43  ;;  %v6877_v42 = vadd.f32 %v13574_v0, %v13550_v47  ;;  %v12018_v6 = vld [vmem:[#allocation8 + $0x1a4] ss:$16 sps:$4 sm:$0xff]   ;;  %v12016_v20 = vld [vmem:[#allocation8 + $0x1a0] ss:$16 sps:$4 sm:$0xff]  }
 0x47c   :  { %9765 = vmatprep.subr.bf16.mxu1 %v11985_v35  ;;  %v12021_v19 = vld [vmem:[#allocation8 + $0x3a4] ss:$16 sps:$4 sm:$0xff]   ;;  %v12019_v43 = vld [vmem:[#allocation8 + $0x3a0] ss:$16 sps:$4 sm:$0xff]  }
 0x47d   :  { %9713 = vmatpush1.bf16.msra.mxu0 %v11980_v16  ;;  %v6506_v44 = vadd.f32 %v13575_v22, %v6453_v34  ;;  %v13576_v31 = vld [vmem:[#allocation52_spill] sm:$0xff]  ;;  %v13577_v59 = vld [vmem:[#allocation33_spill] sm:$0xff]  ;;  %v13580_v35 = vld [vmem:[#allocation34_spill] sm:$0xff] }
 0x47e   :  { %9714 = vmatprep.subr.bf16.mxu0 %v11988_v28  ;;  %v6930_v11 = vadd.f32 %v13576_v31, %v6877_v42  ;;  %v12024_v30 = vld [vmem:[#allocation8 + $0x184] ss:$16 sps:$4 sm:$0xff]   ;;  %v12022_v39 = vld [vmem:[#allocation8 + $0x180] ss:$16 sps:$4 sm:$0xff]  }
 0x47f   :  { %9766 = vmatpush1.bf16.msra.mxu1 %v11983_v2  ;;  %v6559_v13 = vadd.f32 %v13577_v59, %v6506_v44  ;;  %v12027_v47 = vld [vmem:[#allocation8 + $0x384] ss:$16 sps:$4 sm:$0xff]   ;;  %v12025_v3 = vld [vmem:[#allocation8 + $0x380] ss:$16 sps:$4 sm:$0xff]  }
 0x480   :  { %9767 = vmatprep.subr.bf16.mxu1 %v11991_v26  ;;  %v13578_v17 = vld [vmem:[#allocation57_spill] sm:$0xff]  ;;  %v13579_v51 = vld [vmem:[#allocation76_spill] sm:$0xff]  ;;  %v13581_v2 = vld [vmem:[#allocation74_spill] sm:$0xff] }
 0x481   :  { %9715 = vmatpush1.bf16.msra.mxu0 %v11986_v9  ;;  %v6983_v60 = vadd.f32 %v13578_v17, %v6930_v11  ;;  %v7291_v27 = vadd.f32 %v13579_v51, %v13067_v12  ;;  %v12030_v8 = vld [vmem:[#allocation8 + $0x164] ss:$16 sps:$4 sm:$0xff]   ;;  %v6612_v16 = vadd.f32 %v13580_v35, %v6559_v13  ;;  %v7287_v28 = vadd.f32 %v13581_v2, %v13067_v12  ;;  %v12034_v34 = vld [vmem:[#allocation8 + $0x140] ss:$16 sps:$4 sm:$0xff]  }
 0x482   :  { %9716 = vmatprep.subr.bf16.mxu0 %v11994_v21  ;;  %v12033_v26 = vld [vmem:[#allocation8 + $0x364] ss:$16 sps:$4 sm:$0xff]   ;;  %v12037_v42 = vld [vmem:[#allocation8 + $0x340] ss:$16 sps:$4 sm:$0xff]  }
 0x483   :  { %9768 = vmatpush1.bf16.msra.mxu1 %v11989_v29  ;;  %v13582_v9 = vld [vmem:[#allocation58_spill] sm:$0xff]  ;;  %v13583_v21 = vld [vmem:[#allocation37_spill] sm:$0xff]  ;;  %v13590_v44 = vld [vmem:[#allocation72_spill] sm:$0xff] }
 0x484   :  { %9769 = vmatprep.subr.bf16.mxu1 %v11997_v46  ;;  %v7036_v29 = vadd.f32 %v13582_v9, %v6983_v60  ;;  %v6665_v46 = vadd.f32 %v13583_v21, %v6612_v16  ;;  %v12040_v11 = vld [vmem:[#allocation8 + $0x120] ss:$16 sps:$4 sm:$0xff]   ;;  %v12051_v51 = vld [vmem:[#allocation8 + $0x304] ss:$16 sps:$4 sm:$0xff]  }
 0x485   :  { %9717 = vmatpush1.bf16.msra.mxu0 %v11992_v54  ;;  %v13584_v54 = vld [vmem:[#allocation77_spill] sm:$0xff]  ;;  %v12043_v13 = vld [vmem:[#allocation8 + $0x320] ss:$16 sps:$4 sm:$0xff]  }
 0x486   :  { %9718 = vmatprep.subr.bf16.mxu0 %v12000_v23  ;;  %v12028_v23 = vld [vmem:[#allocation8 + $0x160] ss:$16 sps:$4 sm:$0xff]   ;;  %v12054_v16 = vld [vmem:[#allocation8 + $0x4e4] ss:$16 sps:$4 sm:$0xff]  }
 0x487   :  { %9770 = vmatpush1.bf16.msra.mxu1 %v11995_v33  ;;  %v7344_v33 = vadd.f32 %v13584_v54, %v7291_v27  ;;  %v13593_v17 = vld [vmem:[#allocation46_spill] sm:$0xff]  ;;  %v13594_v27 = vld [vmem:[#allocation73_spill] sm:$0xff] }
 0x488   :  { %9771 = vmatprep.subr.bf16.mxu1 %v12003_v62  ;;  %v13585_v62 = vld [vmem:[#allocation64_spill] sm:$0xff] }
 0x489   :  { %9719 = vmatpush1.bf16.msra.mxu0 %v11998_v53  ;;  %v7089_v53 = vadd.f32 %v13585_v62, %v7036_v29  ;;  %v7397_v12 = vadd.f32 %v13096_v57, %v7344_v33  ;;  %v12045_v57 = vld [vmem:[#allocation8 + $0x324] ss:$16 sps:$4 sm:$0xff]   ;;  %v12049_v35 = vld [vmem:[#allocation8 + $0x300] ss:$16 sps:$4 sm:$0xff]  }
 0x48a   :  { %9720 = vmatprep.subr.bf16.mxu0 %v12006_v14  ;;  %v12036_v14 = vld [vmem:[#allocation8 + $0x144] ss:$16 sps:$4 sm:$0xff]   ;;  %v12052_v54 = vld [vmem:[#allocation8 + $0x4e0] ss:$16 sps:$4 sm:$0xff]  }
 0x48b   :  { %9772 = vmatpush1.bf16.msra.mxu1 %v12001_v63  ;;  %v12031_v63 = vld [vmem:[#allocation8 + $0x360] ss:$16 sps:$4 sm:$0xff]   ;;  %v7450_v22 = vadd.f32 %v13100_v36, %v7397_v12  ;;  %v13596_v29 = vld [vmem:[#allocation43_spill] sm:$0xff] }
 0x48c   :  { %9773 = vmatprep.subr.bf16.mxu1 %v12009_v40  ;;  %v13586_v40 = vld [vmem:[#allocation75_spill] sm:$0xff]  ;;  %v8115_v21 = vmax.f32 %v13596_v29, 0.0  ;;  %v12118_v12 = vld [vmem:[#allocation8 + $0x6c0] ss:$16 sps:$4 sm:$0xff]  }
 0x48d   :  { %9721 = vmatpush2.bf16.msra.mxu0 %v12004_v25  ;;  %v7340_v25 = vadd.f32 %v13586_v40, %v7287_v28  ;;  %v12057_v62 = vld [vmem:[#allocation8 + $0x4c4] ss:$16 sps:$4 sm:$0xff]  }
 0x48e   :  { %9722 = vmatprep.subr.bf16.mxu0 %v12012_v7  ;;  %v13587_v7 = vld [vmem:[#allocation38_spill] sm:$0xff] }
 0x48f   :  { %9774 = vmatpush2.bf16.msra.mxu1 %v12007_v61  ;;  %v12039_v61 = vld [vmem:[#allocation8 + $0x344] ss:$16 sps:$4 sm:$0xff]   ;;  %v7393_v32 = vadd.f32 %v13087_v10, %v7340_v25  ;;  %v7503_v10 = vadd.f32 %v13130_v37, %v7450_v22  ;;  %v12046_v37 = vld [vmem:[#allocation8 + $0x100] ss:$16 sps:$4 sm:$0xff]  }
 0x490   :  { %9775 = vmatprep.subr.bf16.mxu1 %v12015_v48  ;;  %v6718_v48 = vadd.f32 %v13587_v7, %v6665_v46  ;;  %v12060_v25 = vld [vmem:[#allocation8 + $0x4a4] ss:$16 sps:$4 sm:$0xff]  }
 0x491   :  { %9723 = vmatpush2.bf16.msra.mxu0 %v12010_v56  ;;  %v13588_v56 = vld [vmem:[#allocation65_spill] sm:$0xff]  ;;  %v7446_v31 = vadd.f32 %v13091_v15, %v7393_v32  ;;  %v7556_v15 = vadd.f32 %v13134_v4, %v7503_v10  ;;  %v12067_v10 = vld [vmem:[#allocation8 + $0x440] ss:$16 sps:$4 sm:$0xff]  }
 0x492   :  { %9724 = vmatprep.subr.bf16.mxu0 %v12018_v6  ;;  %v7142_v0 = vadd.f32 %v13588_v56, %v7089_v53  ;;  %v13589_v6 = vld [vmem:[#allocation45_spill] sm:$0xff]  ;;  %v13598_v53 = vld [vmem:[#allocation42_spill] sm:$0xff]  ;;  %v13600_v56 = vld [vmem:[#allocation44_spill] sm:$0xff] }
 0x493   :  { %9776 = vmatpush2.bf16.msra.mxu1 %v12013_v55  ;;  %v12042_v55 = vld [vmem:[#allocation8 + $0x124] ss:$16 sps:$4 sm:$0xff]   ;;  %v7499_v36 = vadd.f32 %v13121_v50, %v7446_v31 }
 0x494   :  { %9777 = vmatprep.subr.bf16.mxu1 %v12021_v19  ;;  %v6771_v19 = vadd.f32 %v13589_v6, %v6718_v48  ;;  %v12114_v50 = vld [vmem:[#allocation8 + $0x6e4] ss:$16 sps:$4 sm:$0xff]   ;;  %v12058_v48 = vld [vmem:[#allocation8 + $0x4a0] ss:$16 sps:$4 sm:$0xff]  }
 0x495   :  { %9725 = vmatpush2.bf16.msra.mxu0 %v12016_v20  ;;  %v7195_v20 = vadd.f32 %v13590_v44, %v7142_v0  ;;  %v7552_v28 = vadd.f32 %v13125_v5, %v7499_v36  ;;  %v12112_v5 = vld [vmem:[#allocation8 + $0x6e0] ss:$16 sps:$4 sm:$0xff]   ;;  %v12132_v0 = vld [vmem:[#allocation8 + $0x684] ss:$16 sps:$4 sm:$0xff]  }
 0x496   :  { %9726 = vmatprep.subr.bf16.mxu0 %v12024_v30  ;;  %v13592_v30 = vld [vmem:[#allocation68_spill] sm:$0xff]  ;;  %v6824_v60 = vadd.f32 %v13593_v17, %v6771_v19 }
 0x497   :  { %9778 = vmatpush2.bf16.msra.mxu1 %v12019_v43  ;;  %v13591_v43 = vld [vmem:[#allocation63_spill] sm:$0xff]  ;;  %v7605_v4 = vadd.f32 %v13154_v45, %v7552_v28  ;;  %v13599_v45 = vld [vmem:[#allocation69_spill] sm:$0xff]  ;;  %v12130_v19 = vld [vmem:[#allocation8 + $0x680] ss:$16 sps:$4 sm:$0xff]  }
 0x498   :  { %9779 = vmatprep.subr.bf16.mxu1 %v12027_v47  ;;  %v7191_v59 = vadd.f32 %v13592_v30, %v13591_v43  ;;  %v12048_v47 = vld [vmem:[#allocation8 + $0x104] ss:$16 sps:$4 sm:$0xff]   ;;  %v8123_v2 = vmax.f32 %v6824_v60, 0.0  ;;  %v12142_v43 = vld [vmem:[#allocation8 + $0x640] ss:$16 sps:$4 sm:$0xff]  }
 0x499   :  { %9727 = vmatpush2.bf16.msra.mxu0 %v12022_v39  ;;  %v7248_v39 = vadd.f32 %v13594_v27, %v7195_v20  ;;  %v12066_v6 = vld [vmem:[#allocation8 + $0x464] ss:$16 sps:$4 sm:$0xff]   ;;  %v12136_v20 = vld [vmem:[#allocation8 + $0x660] ss:$16 sps:$4 sm:$0xff]  }
 0x49a   :  { %9728 = vmatprep.subr.bf16.mxu0 %v12030_v8  ;;  %v12138_v22 = vld [vmem:[#allocation8 + $0x664] ss:$16 sps:$4 sm:$0xff]   ;;  %v12073_v60 = vld [vmem:[#allocation8 + $0x400] ss:$16 sps:$4 sm:$0xff]  }
 0x49b   :  { %9780 = vmatpush2.bf16.msra.mxu1 %v12025_v3  ;;  %v13595_v3 = vld [vmem:[#allocation70_spill] sm:$0xff]  ;;  %v8125_v9 = vmax.f32 %v7248_v39, 0.0 }
 0x49c   :  { %9781 = vmatprep.subr.bf16.mxu1 %v12033_v26  ;;  %v7244_v8 = vadd.f32 %v13595_v3, %v7191_v59  ;;  %v7609_v26 = vadd.f32 %v13161_v1, %v7556_v15  ;;  %v12069_v44 = vld [vmem:[#allocation8 + $0x444] ss:$16 sps:$4 sm:$0xff]   ;;  %v12070_v59 = vld [vmem:[#allocation8 + $0x420] ss:$16 sps:$4 sm:$0xff]  }
 0x49d   :  { %9729 = vmatpush2.bf16.msra.mxu0 %v12028_v23  ;;  %v13259_v23 = vpack.c.bf16 %v8123_v2, %v8115_v21  ;;  %v12144_v31 = vld [vmem:[#allocation8 + $0x644] ss:$16 sps:$4 sm:$0xff]   ;;  %v12076_v39 = vld [vmem:[#allocation8 + $0x5e0] ss:$16 sps:$4 sm:$0xff]  }
 0x49e   :  { %9730 = vmatprep.subr.bf16.mxu0 %v12036_v14  ;;  %v8117_v46 = vmax.f32 %v7244_v8, 0.0  ;;  %v7662_v33 = vadd.f32 %v13163_v38, %v7609_v26  ;;  %v7658_v14 = vadd.f32 %v13156_v41, %v7605_v4  ;;  %v12055_v38 = vld [vmem:[#allocation8 + $0x4c0] ss:$16 sps:$4 sm:$0xff]   ;;  %v12063_v41 = vld [vmem:[#allocation8 + $0x484] ss:$16 sps:$4 sm:$0xff]  }
 0x49f   :  { %9782 = vmatpush2.bf16.msra.mxu1 %v12031_v63  ;;  %v12120_v63 = vld [vmem:[#allocation8 + $0x6c4] ss:$16 sps:$4 sm:$0xff]   ;;  %v12079_v8 = vld [vmem:[#allocation8 + $0x5c0] ss:$16 sps:$4 sm:$0xff]  }
 0x4a0   :  { %9783 = vmatprep.subr.bf16.mxu1 %v12039_v61  ;;  %v13261_v1 = vpack.c.bf16 %v8125_v9, %v8117_v46  ;;  %v8111_v40 = vmax.f32 %v7662_v33, 0.0  ;;  %v12126_v61 = vld [vmem:[#allocation8 + $0x6a4] ss:$16 sps:$4 sm:$0xff]   ;;  %v8103_v7 = vmax.f32 %v7658_v14, 0.0  ;;  %v12082_v28 = vld [vmem:[#allocation8 + $0x5a0] ss:$16 sps:$4 sm:$0xff]   ;;  %v13273_v9 = vpop.f32.mrf.mxu0 }
 0x4a1   :  { %9731 = vmatpush2.bf16.msra.mxu0 %v12034_v34  ;;  %v12124_v34 = vld [vmem:[#allocation8 + $0x6a0] ss:$16 sps:$4 sm:$0xff]   ;;  %v12150_v30 = vld [vmem:[#allocation8 + $0x624] ss:$16 sps:$4 sm:$0xff]  }
 0x4a2   :  { %9732 = vmatprep.subr.bf16.mxu0 %v12042_v55  ;;  %13597 = vst [vmem:[#allocation24_spill] sm:$0xff] %v13261_v1  ;;  %v13268_v32 = vpack.c.bf16 %v8111_v40, %v8103_v7  ;;  %v12061_v55 = vld [vmem:[#allocation8 + $0x480] ss:$16 sps:$4 sm:$0xff]   ;;  %v12156_v17 = vld [vmem:[#allocation8 + $0x604] ss:$16 sps:$4 sm:$0xff]  }
 0x4a3   :  { %9784 = vmatpush2.bf16.msra.mxu1 %v12037_v42  ;;  %v13601_v42 = vld [vmem:[#allocation71_spill] sm:$0xff]  ;;  %v12085_v21 = vld [vmem:[#allocation8 + $0x580] ss:$16 sps:$4 sm:$0xff]  }
 0x4a4   :  { %9785 = vmatprep.subr.bf16.mxu1 %v12045_v57  ;;  %v12064_v57 = vld [vmem:[#allocation8 + $0x460] ss:$16 sps:$4 sm:$0xff]   ;;  %v12078_v36 = vld [vmem:[#allocation8 + $0x5e4] ss:$16 sps:$4 sm:$0xff]  }
 0x4a5   :  { %9733 = vmatpush2.bf16.msra.mxu0 %v12040_v11  ;;  %v12072_v11 = vld [vmem:[#allocation8 + $0x424] ss:$16 sps:$4 sm:$0xff]   ;;  %v12178_v46 = vld [vmem:[#allocation8 + $0x780] ss:$16 sps:$4 sm:$0xff]  }
 0x4a6   :  { %9734 = vmatprep.subr.bf16.mxu0 %v12048_v47  ;;  %v12148_v47 = vld [vmem:[#allocation8 + $0x620] ss:$16 sps:$4 sm:$0xff]   ;;  %v12162_v27 = vld [vmem:[#allocation8 + $0x7e4] ss:$16 sps:$4 sm:$0xff]  }
 0x4a7   :  { %9786 = vmatpush2.bf16.msra.mxu1 %v12043_v13  ;;  %v12075_v13 = vld [vmem:[#allocation8 + $0x404] ss:$16 sps:$4 sm:$0xff]   ;;  %v12184_v14 = vld [vmem:[#allocation8 + $0x760] ss:$16 sps:$4 sm:$0xff]  }
 0x4a8   :  { %9787 = vmatprep.subr.bf16.mxu1 %v12051_v51  ;;  %v12154_v51 = vld [vmem:[#allocation8 + $0x600] ss:$16 sps:$4 sm:$0xff]   ;;  %v12081_v15 = vld [vmem:[#allocation8 + $0x5c4] ss:$16 sps:$4 sm:$0xff]  }
 0x4a9   :  { %9735 = vmatpush2.bf16.msra.mxu0 %v12046_v37  ;;  %v12160_v37 = vld [vmem:[#allocation8 + $0x7e0] ss:$16 sps:$4 sm:$0xff]   ;;  %v12168_v3 = vld [vmem:[#allocation8 + $0x7c4] ss:$16 sps:$4 sm:$0xff]  }
 0x4aa   :  { %9810 = vmatprep.subr.bf16.mxu0 %v12054_v16  ;;  %v12166_v16 = vld [vmem:[#allocation8 + $0x7c0] ss:$16 sps:$4 sm:$0xff]   ;;  %v12174_v2 = vld [vmem:[#allocation8 + $0x7a4] ss:$16 sps:$4 sm:$0xff]  }
 0x4ab   :  { %9788 = vmatpush2.bf16.msra.mxu1 %v12049_v35  ;;  %v12084_v35 = vld [vmem:[#allocation8 + $0x5a4] ss:$16 sps:$4 sm:$0xff]   ;;  %v12190_v7 = vld [vmem:[#allocation8 + $0x740] ss:$16 sps:$4 sm:$0xff]  }
 0x4ac   :  { %9863 = vmatprep.subr.bf16.mxu1 %v12114_v50  ;;  %9737 = vmatmul.mubr.bf16.vlgmr.msra.gmra.mxu0 %v13598_v53  ;;  %v12087_v26 = vld [vmem:[#allocation8 + $0x584] ss:$16 sps:$4 sm:$0xff]   ;;  %v12172_v50 = vld [vmem:[#allocation8 + $0x7a0] ss:$16 sps:$4 sm:$0xff]  }
 0x4ad   :  { %9746 = vmatprep.mubr.bf16.mxu0 %v13259_v23  ;;  %9811 = vmatpush1.bf16.msra.mxu0 %v12052_v54  ;;  %v12180_v29 = vld [vmem:[#allocation8 + $0x784] ss:$16 sps:$4 sm:$0xff]   ;;  %v13275_v54 = vpop.f32.mrf.mxu0 }
 0x4ae   :  { %9790 = vmatmul.mubr.bf16.vlgmr.msra.gmra.mxu1 %v13599_v45  ;;  %9812 = vmatprep.subr.bf16.mxu0 %v12057_v62  ;;  %v12090_v4 = vld [vmem:[#allocation8 + $0x564] ss:$16 sps:$4 sm:$0xff]   ;;  %v13277_v62 = vpop.f32.mrf.mxu1 }
 0x4af   :  { %9799 = vmatprep.mubr.bf16.mxu1 %v13261_v1  ;;  %9864 = vmatpush1.bf16.msra.mxu1 %v12112_v5  ;;  %v12186_v33 = vld [vmem:[#allocation8 + $0x764] ss:$16 sps:$4 sm:$0xff]   ;;  %v12088_v5 = vld [vmem:[#allocation8 + $0x560] ss:$16 sps:$4 sm:$0xff]  }
 0x4b0   :  { %9865 = vmatprep.subr.bf16.mxu1 %v12120_v63  ;;  %v12093_v63 = vld [vmem:[#allocation8 + $0x544] ss:$16 sps:$4 sm:$0xff]  }
 0x4b1   :  { %9813 = vmatpush1.bf16.msra.mxu0 %v12055_v38  ;;  %v13279_v38 = vpop.f32.mrf.mxu0  ;;  %v12192_v40 = vld [vmem:[#allocation8 + $0x744] ss:$16 sps:$4 sm:$0xff]  }
 0x4b2   :  { %9814 = vmatprep.subr.bf16.mxu0 %v12060_v25  ;;  %v13281_v25 = vpop.f32.mrf.mxu1 }
 0x4b3   :  { %9866 = vmatpush1.bf16.msra.mxu1 %v12118_v12  ;;  %v12091_v12 = vld [vmem:[#allocation8 + $0x540] ss:$16 sps:$4 sm:$0xff]  }
 0x4b4   :  { %9747 = vmatmul.mubr.bf16.gmra.mxu0 %v13600_v56  ;;  %9867 = vmatprep.subr.bf16.mxu1 %v12126_v61  ;;  %v12096_v61 = vld [vmem:[#allocation8 + $0x524] ss:$16 sps:$4 sm:$0xff]  }
 0x4b5   :  { %9842 = vmatprep.mubr.bf16.mxu0 %v13268_v32  ;;  %9815 = vmatpush1.bf16.msra.mxu0 %v12058_v48  ;;  %v13283_v48 = vpop.f32.mrf.mxu0 }
 0x4b6   :  { %9800 = vmatmul.mubr.bf16.gmra.mxu1 %v13601_v42  ;;  %9816 = vmatprep.subr.bf16.mxu0 %v12063_v41  ;;  %v12198_v41 = vld [vmem:[#allocation8 + $0x724] ss:$16 sps:$4 sm:$0xff]  }
 0x4b7   :  { %9868 = vmatpush1.bf16.msra.mxu1 %v12124_v34  ;;  %v13285_v34 = vpop.f32.mrf.mxu1 }
 0x4b8   :  { %9869 = vmatprep.subr.bf16.mxu1 %v12132_v0  ;;  %v13287_v0 = vpop.f32.mrf.mxu0 }
 0x4b9   :  { %9817 = vmatpush1.bf16.msra.mxu0 %v12061_v55  ;;  %v12094_v55 = vld [vmem:[#allocation8 + $0x520] ss:$16 sps:$4 sm:$0xff]  }
 0x4ba   :  { %9818 = vmatprep.subr.bf16.mxu0 %v12066_v6  ;;  %v12099_v6 = vld [vmem:[#allocation8 + $0x504] ss:$16 sps:$4 sm:$0xff]  }
 0x4bb   :  { %9870 = vmatpush1.bf16.msra.mxu1 %v12130_v19  ;;  %v12196_v19 = vld [vmem:[#allocation8 + $0x720] ss:$16 sps:$4 sm:$0xff]  }
 0x4bc   :  { %9871 = vmatprep.subr.bf16.mxu1 %v12138_v22  ;;  %v12204_v22 = vld [vmem:[#allocation8 + $0x704] ss:$16 sps:$4 sm:$0xff]  }
 0x4bd   :  { %9819 = vmatpush1.bf16.msra.mxu0 %v12064_v57  ;;  %v13289_v57 = vpop.f32.mrf.mxu1 }
 0x4be   :  { %9820 = vmatprep.subr.bf16.mxu0 %v12069_v44  ;;  %v13291_v44 = vpop.f32.mrf.mxu0 }
 0x4bf   :  { %9872 = vmatpush1.bf16.msra.mxu1 %v12136_v20  ;;  %v12097_v20 = vld [vmem:[#allocation8 + $0x500] ss:$16 sps:$4 sm:$0xff]  }
 0x4c0   :  { %9873 = vmatprep.subr.bf16.mxu1 %v12144_v31  ;;  %v13293_v31 = vpop.f32.mrf.mxu1 }
 0x4c1   :  { %9821 = vmatpush1.bf16.msra.mxu0 %v12067_v10  ;;  %v12102_v10 = vld [vmem:[#allocation8 + $0xec] ss:$16 sps:$4 sm:$0xff]  }
 0x4c2   :  { %9822 = vmatprep.subr.bf16.mxu0 %v12072_v11  ;;  %v12202_v11 = vld [vmem:[#allocation8 + $0x700] ss:$16 sps:$4 sm:$0xff]  }
 0x4c3   :  { %9874 = vmatpush1.bf16.msra.mxu1 %v12142_v43  ;;  %v12210_v43 = vld [vmem:[#allocation8 + $0x2ec] ss:$16 sps:$4 sm:$0xff]  }
 0x4c4   :  { %9875 = vmatprep.subr.bf16.mxu1 %v12150_v30  ;;  %v13295_v30 = vpop.f32.mrf.mxu0 }
 0x4c5   :  { %9823 = vmatpush1.bf16.msra.mxu0 %v12070_v59  ;;  %v12100_v59 = vld [vmem:[#allocation8 + $0xe8] ss:$16 sps:$4 sm:$0xff]  }
 0x4c6   :  { %9824 = vmatprep.subr.bf16.mxu0 %v12075_v13  ;;  %v13297_v13 = vpop.f32.mrf.mxu1 }
 0x4c7   :  { %9876 = vmatpush1.bf16.msra.mxu1 %v12148_v47  ;;  %v12105_v47 = vld [vmem:[#allocation8 + $0xcc] ss:$16 sps:$4 sm:$0xff]  }
 0x4c8   :  { %9877 = vmatprep.subr.bf16.mxu1 %v12156_v17  ;;  %v13300_v17 = vpop.f32.mrf.mxu0 }
 0x4c9   :  { %9825 = vmatpush1.bf16.msra.mxu0 %v12073_v60  ;;  %v12103_v60 = vld [vmem:[#allocation8 + $0xc8] ss:$16 sps:$4 sm:$0xff]  }
 0x4ca   :  { %9826 = vmatprep.subr.bf16.mxu0 %v12078_v36  ;;  %v13303_v36 = vpop.f32.mrf.mxu1 }
 0x4cb   :  { %9878 = vmatpush1.bf16.msra.mxu1 %v12154_v51  ;;  %v12108_v51 = vld [vmem:[#allocation8 + $0xac] ss:$16 sps:$4 sm:$0xff]  }
 0x4cc   :  { %9879 = vmatprep.subr.bf16.mxu1 %v12162_v27  ;;  %v13305_v27 = vpop.f32.mrf.mxu0 }
 0x4cd   :  { %9827 = vmatpush2.bf16.msra.mxu0 %v12076_v39  ;;  %v12106_v39 = vld [vmem:[#allocation8 + $0xa8] ss:$16 sps:$4 sm:$0xff]  }
 0x4ce   :  { %9828 = vmatprep.subr.bf16.mxu0 %v12081_v15  ;;  %v13307_v15 = vpop.f32.mrf.mxu1 }
 0x4cf   :  { %9880 = vmatpush2.bf16.msra.mxu1 %v12160_v37  ;;  %v12111_v37 = vld [vmem:[#allocation8 + $0x8c] ss:$16 sps:$4 sm:$0xff]  }
 0x4d0   :  { %9881 = vmatprep.subr.bf16.mxu1 %v12168_v3  ;;  %v13309_v3 = vpop.f32.mrf.mxu0 }
 0x4d1   :  { %9829 = vmatpush2.bf16.msra.mxu0 %v12079_v8  ;;  %v13311_v8 = vpop.f32.mrf.mxu1 }
 0x4d2   :  { %9830 = vmatprep.subr.bf16.mxu0 %v12084_v35  ;;  %v12109_v35 = vld [vmem:[#allocation8 + $0x88] ss:$16 sps:$4 sm:$0xff]  }
 0x4d3   :  { %9882 = vmatpush2.bf16.msra.mxu1 %v12166_v16  ;;  %v12117_v16 = vld [vmem:[#allocation8 + $0x6c] ss:$16 sps:$4 sm:$0xff]  }
 0x4d4   :  { %9883 = vmatprep.subr.bf16.mxu1 %v12174_v2  ;;  %v13315_v2 = vpop.f32.mrf.mxu0 }
 0x4d5   :  { %9831 = vmatpush2.bf16.msra.mxu0 %v12082_v28  ;;  %v13317_v28 = vpop.f32.mrf.mxu1 }
 0x4d6   :  { %9832 = vmatprep.subr.bf16.mxu0 %v12087_v26  ;;  %v12115_v26 = vld [vmem:[#allocation8 + $0x68] ss:$16 sps:$4 sm:$0xff]  }
 0x4d7   :  { %9884 = vmatpush2.bf16.msra.mxu1 %v12172_v50  ;;  %v12123_v50 = vld [vmem:[#allocation8 + $0x4c] ss:$16 sps:$4 sm:$0xff]  }
 0x4d8   :  { %9885 = vmatprep.subr.bf16.mxu1 %v12180_v29  ;;  %v13319_v29 = vpop.f32.mrf.mxu0 }
 0x4d9   :  { %9833 = vmatpush2.bf16.msra.mxu0 %v12085_v21  ;;  %v13321_v21 = vpop.f32.mrf.mxu1 }
 0x4da   :  { %9834 = vmatprep.subr.bf16.mxu0 %v12090_v4  ;;  %v12121_v4 = vld [vmem:[#allocation8 + $0x48] ss:$16 sps:$4 sm:$0xff]  }
 0x4db   :  { %9886 = vmatpush2.bf16.msra.mxu1 %v12178_v46  ;;  %v12129_v46 = vld [vmem:[#allocation8 + $0x2c] ss:$16 sps:$4 sm:$0xff]  }
 0x4dc   :  { %9887 = vmatprep.subr.bf16.mxu1 %v12186_v33  ;;  %v13325_v33 = vpop.f32.mrf.mxu1 }
 0x4dd   :  { %9835 = vmatpush2.bf16.msra.mxu0 %v12088_v5  ;;  %v12127_v5 = vld [vmem:[#allocation8 + $0x28] ss:$16 sps:$4 sm:$0xff]  }
 0x4de   :  { %9836 = vmatprep.subr.bf16.mxu0 %v12093_v63  ;;  %v13327_v63 = vpop.f32.mrf.mxu1 }
 0x4df   :  { %9888 = vmatpush2.bf16.msra.mxu1 %v12184_v14  ;;  %v12135_v14 = vld [vmem:[#allocation8 + $0xc] ss:$16 sps:$4 sm:$0xff]  }
 0x4e0   :  { %9889 = vmatprep.subr.bf16.mxu1 %v12192_v40 }
 0x4e1   :  { %9837 = vmatpush2.bf16.msra.mxu0 %v12091_v12  ;;  %v12133_v12 = vld [vmem:[#allocation8 + $0x8] ss:$16 sps:$4 sm:$0xff]  }
 0x4e2   :  { %9838 = vmatprep.subr.bf16.mxu0 %v12096_v61  ;;  %v13331_v61 = vpop.f32.mrf.mxu1 }
 0x4e3   :  { %9890 = vmatpush2.bf16.msra.mxu1 %v12190_v7  ;;  %v12141_v7 = vld [vmem:[#allocation8 + $0x1ec] ss:$16 sps:$4 sm:$0xff]  }
 0x4e4   :  { %9891 = vmatprep.subr.bf16.mxu1 %v12198_v41 }
 0x4e5   :  { %9839 = vmatpush2.bf16.msra.mxu0 %v12094_v55  ;;  %v12139_v55 = vld [vmem:[#allocation8 + $0x1e8] ss:$16 sps:$4 sm:$0xff]  }
 0x4e6   :  { %9840 = vmatprep.subr.bf16.mxu0 %v12099_v6  ;;  %v13335_v6 = vpop.f32.mrf.mxu1 }
 0x4e7   :  { %9892 = vmatpush2.bf16.msra.mxu1 %v12196_v19  ;;  %v12147_v19 = vld [vmem:[#allocation8 + $0x1cc] ss:$16 sps:$4 sm:$0xff]  }
 0x4e8   :  { %9893 = vmatprep.subr.bf16.mxu1 %v12204_v22 }
 0x4e9   :  { %9841 = vmatpush2.bf16.msra.mxu0 %v12097_v20 }
 0x4ea   :  { %9916 = vmatprep.subr.bf16.mxu0 %v12102_v10  ;;  %v12145_v10 = vld [vmem:[#allocation8 + $0x1c8] ss:$16 sps:$4 sm:$0xff]  }
 0x4eb   :  { %9894 = vmatpush2.bf16.msra.mxu1 %v12202_v11  ;;  %v13341_v11 = vpop.f32.mrf.mxu1 }
 0x4ec   :  { %9969 = vmatprep.subr.bf16.mxu1 %v12210_v43  ;;  %9843 = vmatmul.mubr.bf16.vlgmr.msra.gmra.mxu0 %v13169_v52  ;;  %v12153_v43 = vld [vmem:[#allocation8 + $0x1ac] ss:$16 sps:$4 sm:$0xff]  }
 0x4ed   :  { %9852 = vmatprep.mubr.bf16.mxu0 %v13178_v49  ;;  %9917 = vmatpush1.bf16.msra.mxu0 %v12100_v59 }
 0x4ee   :  { %9918 = vmatprep.subr.bf16.mxu0 %v12105_v47  ;;  %v13343_v59 = vpop.f32.mrf.mxu1 }
 0x4f1   :  { %9919 = vmatpush1.bf16.msra.mxu0 %v12103_v60  ;;  %v12151_v60 = vld [vmem:[#allocation8 + $0x1a8] ss:$16 sps:$4 sm:$0xff]  }
 0x4f2   :  { %9920 = vmatprep.subr.bf16.mxu0 %v12108_v51  ;;  %v12159_v51 = vld [vmem:[#allocation8 + $0x18c] ss:$16 sps:$4 sm:$0xff]  }
 0x4f4   :  { %9853 = vmatmul.mubr.bf16.gmra.mxu0 %v13176_v24 }
 0x4f5   :  { %9921 = vmatpush1.bf16.msra.mxu0 %v12106_v39  ;;  %9948 = vmatprep.mubr.bf16.mxu0 %v13213_v18  ;;  %v13323_v18 = vpop.f32.mrf.mxu0  ;;  %v13602_v39 = vld [vmem:[#allocation25_spill] sm:$0xff] }
 0x4f6   :  { %9922 = vmatprep.subr.bf16.mxu0 %v12111_v37  ;;  %v1272_v37 = vsub.s32 7, %v13602_v39 }
 0x4f7   :  { %v13329_v40 = vpop.f32.mrf.mxu0 }
 0x4f9   :  { %9923 = vmatpush1.bf16.msra.mxu0 %v12109_v35  ;;  %v13333_v41 = vpop.f32.mrf.mxu0  ;;  %v13346_v35 = vpop.f32.mrf.mxu1 }
 0x4fa   :  { %9924 = vmatprep.subr.bf16.mxu0 %v12117_v16  ;;  %v1268_v16 = vsub.s32 6, %v13602_v39 }
 0x4fb   :  { %v13337_v22 = vpop.f32.mrf.mxu0 }
 0x4fd   :  { %9925 = vmatpush1.bf16.msra.mxu0 %v12115_v26  ;;  %v13339_v20 = vpop.f32.mrf.mxu0 }
 0x4fe   :  { %9926 = vmatprep.subr.bf16.mxu0 %v12123_v50  ;;  %v12157_v50 = vld [vmem:[#allocation8 + $0x188] ss:$16 sps:$4 sm:$0xff]  }
 0x4ff   :  { %v7922_v47 = vpop.f32.mrf.mxu0 }
 0x501   :  { %9927 = vmatpush1.bf16.msra.mxu0 %v12121_v4  ;;  %v7924_v26 = vpop.f32.mrf.mxu0  ;;  %v12165_v4 = vld [vmem:[#allocation8 + $0x16c] ss:$16 sps:$4 sm:$0xff]  }
 0x502   :  { %9928 = vmatprep.subr.bf16.mxu0 %v12129_v46  ;;  %v12374_v46 = vld [vmem:[#allocation7] sm:$0xff] }
 0x505   :  { %9929 = vmatpush1.bf16.msra.mxu0 %v12127_v5  ;;  %v1273_v5 = vrot.slane %v12374_v46, %v1272_v37 }
 0x506   :  { %9930 = vmatprep.subr.bf16.mxu0 %v12135_v14  ;;  %v13349_v14 = vpop.f32.mrf.mxu1 }
 0x509   :  { %9931 = vmatpush1.bf16.msra.mxu0 %v12133_v12  ;;  %v1269_v12 = vrot.slane %v12374_v46, %v1268_v16  ;;  %v12177_v16 = vld [vmem:[#allocation8 + $0x12c] ss:$16 sps:$4 sm:$0xff]  }
 0x50a   :  { %9932 = vmatprep.subr.bf16.mxu0 %v12141_v7  ;;  %v7926_v7 = vpop.f32.mrf.mxu0 }
 0x50b   :  { %v7709_v39 = vadd.f32 %v13273_v9, %v1269_v12  ;;  %v7713_v37 = vadd.f32 %v13279_v38, %v1269_v12  ;;  %v12175_v9 = vld [vmem:[#allocation8 + $0x128] ss:$16 sps:$4 sm:$0xff]   ;;  %v12183_v38 = vld [vmem:[#allocation8 + $0x10c] ss:$16 sps:$4 sm:$0xff]  }
 0x50d   :  { %9933 = vmatpush2.bf16.msra.mxu0 %v12139_v55  ;;  %v12163_v55 = vld [vmem:[#allocation8 + $0x168] ss:$16 sps:$4 sm:$0xff]   ;;  %v7766_v1 = vadd.f32 %v13285_v34, %v7713_v37  ;;  %v7723_v34 = vadd.f32 %v13295_v30, %v1269_v12 }
 0x50e   :  { %9934 = vmatprep.subr.bf16.mxu0 %v12147_v19  ;;  %v12171_v19 = vld [vmem:[#allocation8 + $0x14c] ss:$16 sps:$4 sm:$0xff]  }
 0x511   :  { %9935 = vmatpush2.bf16.msra.mxu0 %v12145_v10  ;;  %v7711_v10 = vadd.f32 %v13275_v54, %v1273_v5  ;;  %v7762_v54 = vadd.f32 %v13277_v62, %v7709_v39  ;;  %v7819_v62 = vadd.f32 %v13315_v2, %v7766_v1  ;;  %v7719_v39 = vadd.f32 %v13287_v0, %v1269_v12 }
 0x512   :  { %9936 = vmatprep.subr.bf16.mxu0 %v12153_v43  ;;  %v13352_v43 = vpop.f32.mrf.mxu1  ;;  %v7776_v12 = vadd.f32 %v13303_v36, %v7723_v34 }
 0x513   :  { %v7872_v0 = vadd.f32 %v13321_v21, %v7819_v62 }
 0x514   :  { %v13358_v42 = vpop.f32.mrf.mxu1 }
 0x515   :  { %9937 = vmatpush2.bf16.msra.mxu0 %v12151_v60  ;;  %v13355_v60 = vpop.f32.mrf.mxu0 }
 0x516   :  { %9938 = vmatprep.subr.bf16.mxu0 %v12159_v51  ;;  %v12169_v51 = vld [vmem:[#allocation8 + $0x148] ss:$16 sps:$4 sm:$0xff]   ;;  %v13367_v45 = vpop.f32.mrf.mxu1 }
 0x517   :  { %v13363_v46 = vpop.f32.mrf.mxu0 }
 0x519   :  { %9939 = vmatpush2.bf16.msra.mxu0 %v12157_v50  ;;  %v7764_v50 = vadd.f32 %v13281_v25, %v7711_v10  ;;  %v7934_v10 = vpop.f32.mrf.mxu0 }
 0x51a   :  { %9940 = vmatprep.subr.bf16.mxu0 %v12165_v4  ;;  %v7715_v4 = vadd.f32 %v13283_v48, %v1273_v5  ;;  %v7721_v48 = vadd.f32 %v13291_v44, %v1273_v5 }
 0x51c   :  { %v7768_v25 = vadd.f32 %v13289_v57, %v7715_v4  ;;  %v7725_v57 = vadd.f32 %v13300_v17, %v1273_v5  ;;  %v7774_v1 = vadd.f32 %v13297_v13, %v7721_v48  ;;  %v7925_v5 = vadd.f32 %v7924_v26, %v7872_v0  ;;  %v12195_v13 = vld [vmem:[#allocation8 + $0x4cc] ss:$16 sps:$4 sm:$0xff]   ;;  %v12205_v0 = vld [vmem:[#allocation8 + $0x488] ss:$16 sps:$4 sm:$0xff]  }
 0x51d   :  { %9941 = vmatpush2.bf16.msra.mxu0 %v12163_v55  ;;  %v7817_v55 = vadd.f32 %v13309_v3, %v7764_v50  ;;  %v7772_v50 = vadd.f32 %v13293_v31, %v7719_v39  ;;  %v12199_v39 = vld [vmem:[#allocation8 + $0x4a8] ss:$16 sps:$4 sm:$0xff]  }
 0x51e   :  { %9942 = vmatprep.subr.bf16.mxu0 %v12171_v19  ;;  %v7815_v19 = vadd.f32 %v13305_v27, %v7762_v54  ;;  %v7821_v37 = vadd.f32 %v13319_v29, %v7768_v25  ;;  %v12189_v27 = vld [vmem:[#allocation8 + $0x4ec] ss:$16 sps:$4 sm:$0xff]   ;;  %v12187_v29 = vld [vmem:[#allocation8 + $0x4e8] ss:$16 sps:$4 sm:$0xff]   ;;  %v7827_v17 = vadd.f32 %v13329_v40, %v7774_v1  ;;  %v7778_v21 = vadd.f32 %v13307_v15, %v7725_v57 }
 0x51f   :  { %v7870_v3 = vadd.f32 %v13317_v28, %v7817_v55  ;;  %v7936_v28 = vpop.f32.mrf.mxu0  ;;  %v7825_v31 = vadd.f32 %v13323_v18, %v7772_v50  ;;  %v12193_v15 = vld [vmem:[#allocation8 + $0x4c8] ss:$16 sps:$4 sm:$0xff]   ;;  %v7978_v55 = vadd.f32 %v13349_v14, %v7925_v5 }
 0x520   :  { %v7868_v44 = vadd.f32 %v13311_v8, %v7815_v19  ;;  %v7874_v4 = vadd.f32 %v13325_v33, %v7821_v37  ;;  %v7831_v33 = vadd.f32 %v13337_v22, %v7778_v21  ;;  %v7880_v18 = vadd.f32 %v13331_v61, %v7827_v17 }
 0x521   :  { %9943 = vmatpush2.bf16.msra.mxu0 %v12169_v51  ;;  %v12181_v51 = vld [vmem:[#allocation8 + $0x108] ss:$16 sps:$4 sm:$0xff]   ;;  %v7923_v2 = vadd.f32 %v7922_v47, %v7870_v3 }
 0x522   :  { %9944 = vmatprep.subr.bf16.mxu0 %v12177_v16  ;;  %v13377_v16 = vpop.f32.mrf.mxu1  ;;  %v7921_v30 = vadd.f32 %v13339_v20, %v7868_v44  ;;  %v7829_v20 = vadd.f32 %v13333_v41, %v7776_v12  ;;  %v7884_v61 = vadd.f32 %v13341_v11, %v7831_v33  ;;  %v12219_v33 = vld [vmem:[#allocation8 + $0x44c] ss:$16 sps:$4 sm:$0xff]  }
 0x523   :  { %v7976_v54 = vadd.f32 %v13346_v35, %v7923_v2  ;;  %v12201_v35 = vld [vmem:[#allocation8 + $0x4ac] ss:$16 sps:$4 sm:$0xff]  }
 0x524   :  { %v13388_v8 = vpop.f32.mrf.mxu1  ;;  %v7974_v40 = vadd.f32 %v13343_v59, %v7921_v30  ;;  %v7882_v22 = vadd.f32 %v13335_v6, %v7829_v20  ;;  %v12207_v6 = vld [vmem:[#allocation8 + $0x48c] ss:$16 sps:$4 sm:$0xff]   ;;  %v7937_v57 = vadd.f32 %v7936_v28, %v7884_v61  ;;  %v12229_v61 = vld [vmem:[#allocation8 + $0x408] ss:$16 sps:$4 sm:$0xff]  }
 0x525   :  { %9945 = vmatpush2.bf16.msra.mxu0 %v12175_v9  ;;  %v7927_v9 = vadd.f32 %v7926_v7, %v7874_v4  ;;  %v7878_v7 = vadd.f32 %v13327_v63, %v7825_v31  ;;  %v12211_v31 = vld [vmem:[#allocation8 + $0x468] ss:$16 sps:$4 sm:$0xff]  }
 0x526   :  { %9946 = vmatprep.subr.bf16.mxu0 %v12183_v38  ;;  %v7990_v17 = vadd.f32 %v13388_v8, %v7937_v57  ;;  %v12255_v57 = vld [vmem:[#allocation8 + $0x58c] ss:$16 sps:$4 sm:$0xff]  }
 0x527   :  { %v7980_v59 = vadd.f32 %v13352_v43, %v7927_v9  ;;  %v7931_v14 = vadd.f32 %v13355_v60, %v7878_v7 }
 0x529   :  { %9947 = vmatpush2.bf16.msra.mxu0 %v12181_v51  ;;  %v7935_v51 = vadd.f32 %v7934_v10, %v7882_v22  ;;  %v7984_v60 = vadd.f32 %v13358_v42, %v7931_v14  ;;  %v12234_v14 = vld [vmem:[#allocation8 + $0x26c] ss:$16 sps:$4 sm:$0xff]  }
 0x52a   :  { %10022 = vmatprep.subr.bf16.mxu0 %v12189_v27 }
 0x52b   :  { %v7988_v2 = vadd.f32 %v13377_v16, %v7935_v51  ;;  %v12235_v51 = vld [vmem:[#allocation8 + $0x5e8] ss:$16 sps:$4 sm:$0xff]  }
 0x52c   :  { %v8026_v47 = vpop.f32.mrf.mxu0  ;;  %9949 = vmatmul.mubr.bf16.vlgmr.msra.gmra.mxu0 %v13598_v53 }
 0x52d   :  { %9958 = vmatprep.mubr.bf16.mxu0 %v13259_v23  ;;  %10023 = vmatpush1.bf16.msra.mxu0 %v12187_v29  ;;  %v8027_v53 = vadd.f32 %v8026_v47, %v7974_v40  ;;  %v7933_v23 = vadd.f32 %v13363_v46, %v7880_v18  ;;  %v12216_v47 = vld [vmem:[#allocation8 + $0x2cc] ss:$16 sps:$4 sm:$0xff]   ;;  %v12217_v18 = vld [vmem:[#allocation8 + $0x448] ss:$16 sps:$4 sm:$0xff]  }
 0x52e   :  { %v8079_v36 = vpop.f32.mrf.mxu1  ;;  %v8028_v26 = vpop.f32.mrf.mxu0  ;;  %10024 = vmatprep.subr.bf16.mxu0 %v12195_v13 }
 0x52f   :  { %v8029_v41 = vadd.f32 %v8028_v26, %v7976_v54  ;;  %v8080_v27 = vadd.f32 %v8079_v36, %v8027_v53  ;;  %v7986_v46 = vadd.f32 %v13367_v45, %v7933_v23  ;;  %v12213_v45 = vld [vmem:[#allocation8 + $0x46c] ss:$16 sps:$4 sm:$0xff]   ;;  %v12214_v26 = vld [vmem:[#allocation8 + $0x2c8] ss:$16 sps:$4 sm:$0xff]  }
 0x530   :  { %v8081_v38 = vpop.f32.mrf.mxu1  ;;  %v8030_v19 = vpop.f32.mrf.mxu0  ;;  %v12228_v23 = vld [vmem:[#allocation8 + $0x28c] ss:$16 sps:$4 sm:$0xff]  }
 0x531   :  { %v8031_v25 = vadd.f32 %v8030_v19, %v7978_v55  ;;  %10025 = vmatpush1.bf16.msra.mxu0 %v12193_v15  ;;  %v8082_v34 = vadd.f32 %v8081_v38, %v8029_v41  ;;  %v8104_v28 = vmax.f32 %v8080_v27, 0.0  ;;  %v12222_v55 = vld [vmem:[#allocation8 + $0x2ac] ss:$16 sps:$4 sm:$0xff]   ;;  %v12220_v19 = vld [vmem:[#allocation8 + $0x2a8] ss:$16 sps:$4 sm:$0xff]  }
 0x532   :  { %v8083_v48 = vpop.f32.mrf.mxu1  ;;  %v8032_v62 = vpop.f32.mrf.mxu0  ;;  %10026 = vmatprep.subr.bf16.mxu0 %v12201_v35  ;;  %v12225_v35 = vld [vmem:[#allocation8 + $0x42c] ss:$16 sps:$4 sm:$0xff]   ;;  %v12244_v27 = vld [vmem:[#allocation8 + $0x228] ss:$16 sps:$4 sm:$0xff]  }
 0x533   :  { %v8084_v63 = vadd.f32 %v8083_v48, %v8031_v25  ;;  %v8033_v3 = vadd.f32 %v8032_v62, %v7980_v59  ;;  %v8105_v50 = vmax.f32 %v8082_v34, 0.0  ;;  %v12223_v59 = vld [vmem:[#allocation8 + $0x428] ss:$16 sps:$4 sm:$0xff]   ;;  %v12231_v25 = vld [vmem:[#allocation8 + $0x40c] ss:$16 sps:$4 sm:$0xff]  }
 0x534   :  { %v8085_v37 = vpop.f32.mrf.mxu1  ;;  %v8036_v43 = vpop.f32.mrf.mxu0  ;;  %9959 = vmatmul.mubr.bf16.gmra.mxu0 %v13600_v56  ;;  %v12226_v48 = vld [vmem:[#allocation8 + $0x288] ss:$16 sps:$4 sm:$0xff]   ;;  %v12237_v62 = vld [vmem:[#allocation8 + $0x5ec] ss:$16 sps:$4 sm:$0xff]  }
 0x535   :  { %v8086_v44 = vadd.f32 %v8085_v37, %v8033_v3  ;;  %v8112_v1 = vmax.f32 %v8084_v63, 0.0  ;;  %10027 = vmatpush1.bf16.msra.mxu0 %v12199_v39  ;;  %10054 = vmatprep.mubr.bf16.mxu0 %v13268_v32  ;;  %v8037_v4 = vadd.f32 %v8036_v43, %v7984_v60  ;;  %v12208_v32 = vld [vmem:[#allocation8 + $0x2e8] ss:$16 sps:$4 sm:$0xff]   ;;  %v12240_v34 = vld [vmem:[#allocation8 + $0x24c] ss:$16 sps:$4 sm:$0xff]  }
 0x536   :  { %v8089_v11 = vpop.f32.mrf.mxu1  ;;  %v8038_v10 = vpop.f32.mrf.mxu0  ;;  %10028 = vmatprep.subr.bf16.mxu0 %v12207_v6  ;;  %v12232_v39 = vld [vmem:[#allocation8 + $0x268] ss:$16 sps:$4 sm:$0xff]   ;;  %v12243_v63 = vld [vmem:[#allocation8 + $0x5cc] ss:$16 sps:$4 sm:$0xff]  }
 0x537   :  { %v8113_v30 = vmax.f32 %v8086_v44, 0.0  ;;  %v8039_v29 = vadd.f32 %v8038_v10, %v7986_v46  ;;  %v13414_v21 = vpack.c.bf16 %v8112_v1, %v8104_v28  ;;  %v8090_v8 = vadd.f32 %v8089_v11, %v8037_v4  ;;  %v12238_v3 = vld [vmem:[#allocation8 + $0x248] ss:$16 sps:$4 sm:$0xff]   ;;  %v12246_v37 = vld [vmem:[#allocation8 + $0x22c] ss:$16 sps:$4 sm:$0xff]  }
 0x538   :  { %v8091_v12 = vpop.f32.mrf.mxu1  ;;  %v8040_v56 = vpop.f32.mrf.mxu0  ;;  %v12249_v6 = vld [vmem:[#allocation8 + $0x5ac] ss:$16 sps:$4 sm:$0xff]   ;;  %v12247_v43 = vld [vmem:[#allocation8 + $0x5a8] ss:$16 sps:$4 sm:$0xff]  }
 0x539   :  { %v13412_v42 = vpack.c.bf16 %v8113_v30, %v8105_v50  ;;  %v8041_v5 = vadd.f32 %v8040_v56, %v7988_v2  ;;  %10029 = vmatpush1.bf16.msra.mxu0 %v12205_v0  ;;  %v8092_v20 = vadd.f32 %v8091_v12, %v8039_v29  ;;  %v8120_v7 = vmax.f32 %v8090_v8, 0.0  ;;  %v12252_v46 = vld [vmem:[#allocation8 + $0x20c] ss:$16 sps:$4 sm:$0xff]   ;;  %v12250_v44 = vld [vmem:[#allocation8 + $0x208] ss:$16 sps:$4 sm:$0xff]  }
 0x53a   :  { %v8093_v13 = vpop.f32.mrf.mxu1  ;;  %v8042_v16 = vpop.f32.mrf.mxu0  ;;  %10030 = vmatprep.subr.bf16.mxu0 %v12213_v45  ;;  %v12253_v11 = vld [vmem:[#allocation8 + $0x588] ss:$16 sps:$4 sm:$0xff]   ;;  %v12258_v60 = vld [vmem:[#allocation8 + $0x3ec] ss:$16 sps:$4 sm:$0xff]  }
 0x53b   :  { %v8043_v54 = vadd.f32 %v8042_v16, %v7990_v17  ;;  %v8094_v9 = vadd.f32 %v8093_v13, %v8041_v5  ;;  %9895 = vmatprep.mubr.bf16.mxu1 %v13412_v42  ;;  %v8121_v41 = vmax.f32 %v8092_v20, 0.0  ;;  %v12261_v1 = vld [vmem:[#allocation8 + $0x56c] ss:$16 sps:$4 sm:$0xff]   ;;  %v12256_v10 = vld [vmem:[#allocation8 + $0x3e8] ss:$16 sps:$4 sm:$0xff]  }
 0x53c   :  { %v8095_v36 = vpop.f32.mrf.mxu1  ;;  %9896 = vmatmul.mubr.bf16.vlgmr.msra.gmra.mxu1 %v13414_v21  ;;  %v12259_v0 = vld [vmem:[#allocation8 + $0x568] ss:$16 sps:$4 sm:$0xff]   ;;  %v12264_v2 = vld [vmem:[#allocation8 + $0x3cc] ss:$16 sps:$4 sm:$0xff]  }
 0x53d   :  { %v8096_v40 = vadd.f32 %v8095_v36, %v8043_v54  ;;  %9970 = vmatpush1.bf16.msra.mxu1 %v12208_v32  ;;  %v8128_v15 = vmax.f32 %v8094_v9, 0.0  ;;  %10031 = vmatpush1.bf16.msra.mxu0 %v12211_v31  ;;  %v12267_v50 = vld [vmem:[#allocation8 + $0x54c] ss:$16 sps:$4 sm:$0xff]   ;;  %v12262_v30 = vld [vmem:[#allocation8 + $0x3c8] ss:$16 sps:$4 sm:$0xff]  }
 0x53e   :  { %9971 = vmatprep.subr.bf16.mxu1 %v12216_v47  ;;  %10032 = vmatprep.subr.bf16.mxu0 %v12219_v33  ;;  %v12265_v29 = vld [vmem:[#allocation8 + $0x548] ss:$16 sps:$4 sm:$0xff]   ;;  %v12270_v12 = vld [vmem:[#allocation8 + $0x3ac] ss:$16 sps:$4 sm:$0xff]  }
 0x53f   :  { %v8129_v38 = vmax.f32 %v8096_v40, 0.0  ;;  %v13420_v22 = vpack.c.bf16 %v8128_v15, %v8120_v7  ;;  %v12273_v45 = vld [vmem:[#allocation8 + $0x52c] ss:$16 sps:$4 sm:$0xff]   ;;  %v12268_v28 = vld [vmem:[#allocation8 + $0x3a8] ss:$16 sps:$4 sm:$0xff]  }
 0x540   :  { %v12271_v4 = vld [vmem:[#allocation8 + $0x528] ss:$16 sps:$4 sm:$0xff]   ;;  %v12276_v56 = vld [vmem:[#allocation8 + $0x38c] ss:$16 sps:$4 sm:$0xff]  }
 0x541   :  { %v13418_v53 = vpack.c.bf16 %v8129_v38, %v8121_v41  ;;  %9972 = vmatpush1.bf16.msra.mxu1 %v12214_v26  ;;  %10033 = vmatpush1.bf16.msra.mxu0 %v12217_v18  ;;  %v12279_v17 = vld [vmem:[#allocation8 + $0x50c] ss:$16 sps:$4 sm:$0xff]   ;;  %v12274_v5 = vld [vmem:[#allocation8 + $0x388] ss:$16 sps:$4 sm:$0xff]  }
 0x542   :  { %9973 = vmatprep.subr.bf16.mxu1 %v12222_v55  ;;  %10034 = vmatprep.subr.bf16.mxu0 %v12225_v35  ;;  %v12277_v13 = vld [vmem:[#allocation8 + $0x508] ss:$16 sps:$4 sm:$0xff]   ;;  %v12282_v32 = vld [vmem:[#allocation8 + $0x36c] ss:$16 sps:$4 sm:$0xff]  }
 0x543   :  { %9905 = vmatprep.mubr.bf16.mxu1 %v13418_v53  ;;  %v12340_v16 = vld [vmem:[#allocation11 + $0x78] sm:$0xff]   ;;  %v12280_v31 = vld [vmem:[#allocation8 + $0x368] ss:$16 sps:$4 sm:$0xff]   ;;  %v12344_v26 = vld [vmem:[#allocation11 + $0x68] sm:$0xff]  }
 0x544   :  { %9906 = vmatmul.mubr.bf16.gmra.mxu1 %v13420_v22  ;;  %v12285_v47 = vld [vmem:[#allocation8 + $0x34c] ss:$16 sps:$4 sm:$0xff]   ;;  %v12283_v54 = vld [vmem:[#allocation8 + $0x348] ss:$16 sps:$4 sm:$0xff]  }
 0x545   :  { %9974 = vmatpush1.bf16.msra.mxu1 %v12220_v19  ;;  %10001 = vmatprep.mubr.bf16.mxu1 %v13215_v58  ;;  %v12241_v58 = vld [vmem:[#allocation8 + $0x5c8] ss:$16 sps:$4 sm:$0xff]   ;;  %v12341_v20 = vld [vmem:[#allocation11 + $0x38] sm:$0xff]   ;;  %v12345_v15 = vld [vmem:[#allocation11 + $0x28] sm:$0xff]  }
 0x546   :  { %10035 = vmatpush1.bf16.msra.mxu0 %v12223_v59  ;;  %9975 = vmatprep.subr.bf16.mxu1 %v12228_v23  ;;  %v12288_v9 = vld [vmem:[#allocation8 + $0x32c] ss:$16 sps:$4 sm:$0xff]   ;;  %v12342_v36 = vld [vmem:[#allocation11 + $0x70] sm:$0xff]   ;;  %v12346_v18 = vld [vmem:[#allocation11 + $0x60] sm:$0xff]  }
 0x547   :  { %10036 = vmatprep.subr.bf16.mxu0 %v12231_v25  ;;  %v12343_v33 = vld [vmem:[#allocation11 + $0x30] sm:$0xff]   ;;  %v12291_v40 = vld [vmem:[#allocation8 + $0x30c] ss:$16 sps:$4 sm:$0xff]   ;;  %v12347_v55 = vld [vmem:[#allocation11 + $0x20] sm:$0xff]  }
 0x548   :  { %v12286_v8 = vld [vmem:[#allocation8 + $0x328] ss:$16 sps:$4 sm:$0xff]   ;;  %v12297_v38 = vld [vmem:[#allocation8 + $0x6cc] ss:$16 sps:$4 sm:$0xff]  }
 0x549   :  { %9976 = vmatpush1.bf16.msra.mxu1 %v12226_v48  ;;  %v12292_v41 = vld [vmem:[#allocation8 + $0x6e8] ss:$16 sps:$4 sm:$0xff]   ;;  %v12348_v35 = vld [vmem:[#allocation11 + $0x58] sm:$0xff]   ;;  %v13604_v59 = vld [vmem:[#allocation24_spill] sm:$0xff] }
 0x54a   :  { %10037 = vmatpush1.bf16.msra.mxu0 %v12229_v61  ;;  %9977 = vmatprep.subr.bf16.mxu1 %v12234_v14  ;;  %v12349_v7 = vld [vmem:[#allocation11 + $0x18] sm:$0xff]   ;;  %v12350_v25 = vld [vmem:[#allocation11 + $0x50] sm:$0xff]  }
 0x54b   :  { %10038 = vmatprep.subr.bf16.mxu0 %v12237_v62  ;;  %v13603_v19 = vld [vmem:[#allocation69_spill] sm:$0xff]  ;;  %v12352_v62 = vld [vmem:[#allocation11 + $0x48] sm:$0xff]  }
 0x54c   :  { %v12300_v23 = vld [vmem:[#allocation8 + $0x6ac] ss:$16 sps:$4 sm:$0xff]   ;;  %v12351_v48 = vld [vmem:[#allocation11 + $0x10] sm:$0xff]  }
 0x54d   :  { %9978 = vmatpush1.bf16.msra.mxu1 %v12232_v39  ;;  %v12298_v61 = vld [vmem:[#allocation8 + $0x6a8] ss:$16 sps:$4 sm:$0xff]   ;;  %v12303_v14 = vld [vmem:[#allocation8 + $0x68c] ss:$16 sps:$4 sm:$0xff]  }
 0x54e   :  { %10039 = vmatpush2.bf16.msra.mxu0 %v12235_v51  ;;  %9979 = vmatprep.subr.bf16.mxu1 %v12240_v34  ;;  %v12353_v39 = vld [vmem:[#allocation11 + $0x8] sm:$0xff]   ;;  %v12301_v34 = vld [vmem:[#allocation8 + $0x688] ss:$16 sps:$4 sm:$0xff]  }
 0x54f   :  { %10040 = vmatprep.subr.bf16.mxu0 %v12243_v63  ;;  %v13605_v51 = vld [vmem:[#allocation71_spill] sm:$0xff] }
 0x550   :  { %v12306_v63 = vld [vmem:[#allocation8 + $0x66c] ss:$16 sps:$4 sm:$0xff]  }
 0x551   :  { %9980 = vmatpush1.bf16.msra.mxu1 %v12238_v3  ;;  %v12354_v3 = vld [vmem:[#allocation11 + $0x40] sm:$0xff]  }
 0x552   :  { %10041 = vmatpush2.bf16.msra.mxu0 %v12241_v58  ;;  %9981 = vmatprep.subr.bf16.mxu1 %v12246_v37  ;;  %v12355_v58 = vld [vmem:[#allocation11] sm:$0xff]  }
 0x553   :  { %10042 = vmatprep.subr.bf16.mxu0 %v12249_v6  ;;  %v12304_v37 = vld [vmem:[#allocation8 + $0x668] ss:$16 sps:$4 sm:$0xff]   ;;  %v12309_v6 = vld [vmem:[#allocation8 + $0x64c] ss:$16 sps:$4 sm:$0xff]  }
 0x555   :  { %9982 = vmatpush1.bf16.msra.mxu1 %v12244_v27  ;;  %v12307_v27 = vld [vmem:[#allocation8 + $0x648] ss:$16 sps:$4 sm:$0xff]  }
 0x556   :  { %10043 = vmatpush2.bf16.msra.mxu0 %v12247_v43  ;;  %9983 = vmatprep.subr.bf16.mxu1 %v12252_v46  ;;  %v12312_v43 = vld [vmem:[#allocation8 + $0x62c] ss:$16 sps:$4 sm:$0xff]   ;;  %v12310_v46 = vld [vmem:[#allocation8 + $0x628] ss:$16 sps:$4 sm:$0xff]  }
 0x557   :  { %10044 = vmatprep.subr.bf16.mxu0 %v12255_v57  ;;  %v12313_v57 = vld [vmem:[#allocation8 + $0x608] ss:$16 sps:$4 sm:$0xff]  }
 0x559   :  { %9984 = vmatpush1.bf16.msra.mxu1 %v12250_v44  ;;  %v12318_v44 = vld [vmem:[#allocation8 + $0x7ec] ss:$16 sps:$4 sm:$0xff]  }
 0x55a   :  { %10045 = vmatpush2.bf16.msra.mxu0 %v12253_v11  ;;  %9985 = vmatprep.subr.bf16.mxu1 %v12258_v60  ;;  %v12316_v11 = vld [vmem:[#allocation8 + $0x7e8] ss:$16 sps:$4 sm:$0xff]   ;;  %v12321_v60 = vld [vmem:[#allocation8 + $0x7cc] ss:$16 sps:$4 sm:$0xff]  }
 0x55b   :  { %10046 = vmatprep.subr.bf16.mxu0 %v12261_v1  ;;  %v12319_v1 = vld [vmem:[#allocation8 + $0x7c8] ss:$16 sps:$4 sm:$0xff]  }
 0x55d   :  { %9986 = vmatpush2.bf16.msra.mxu1 %v12256_v10  ;;  %v12324_v10 = vld [vmem:[#allocation8 + $0x7ac] ss:$16 sps:$4 sm:$0xff]  }
 0x55e   :  { %10047 = vmatpush2.bf16.msra.mxu0 %v12259_v0  ;;  %9987 = vmatprep.subr.bf16.mxu1 %v12264_v2  ;;  %v12322_v0 = vld [vmem:[#allocation8 + $0x7a8] ss:$16 sps:$4 sm:$0xff]   ;;  %v12327_v2 = vld [vmem:[#allocation8 + $0x78c] ss:$16 sps:$4 sm:$0xff]  }
 0x55f   :  { %10048 = vmatprep.subr.bf16.mxu0 %v12267_v50  ;;  %v12325_v50 = vld [vmem:[#allocation8 + $0x788] ss:$16 sps:$4 sm:$0xff]  }
 0x561   :  { %9988 = vmatpush2.bf16.msra.mxu1 %v12262_v30  ;;  %v12330_v30 = vld [vmem:[#allocation8 + $0x76c] ss:$16 sps:$4 sm:$0xff]  }
 0x562   :  { %10049 = vmatpush2.bf16.msra.mxu0 %v12265_v29  ;;  %9989 = vmatprep.subr.bf16.mxu1 %v12270_v12  ;;  %v12328_v29 = vld [vmem:[#allocation8 + $0x768] ss:$16 sps:$4 sm:$0xff]   ;;  %v12333_v12 = vld [vmem:[#allocation8 + $0x74c] ss:$16 sps:$4 sm:$0xff]  }
 0x563   :  { %10050 = vmatprep.subr.bf16.mxu0 %v12273_v45  ;;  %v12331_v45 = vld [vmem:[#allocation8 + $0x748] ss:$16 sps:$4 sm:$0xff]  }
 0x565   :  { %9990 = vmatpush2.bf16.msra.mxu1 %v12268_v28  ;;  %v12336_v28 = vld [vmem:[#allocation8 + $0x72c] ss:$16 sps:$4 sm:$0xff]  }
 0x566   :  { %10051 = vmatpush2.bf16.msra.mxu0 %v12271_v4  ;;  %9991 = vmatprep.subr.bf16.mxu1 %v12276_v56  ;;  %v12334_v4 = vld [vmem:[#allocation8 + $0x728] ss:$16 sps:$4 sm:$0xff]   ;;  %v12339_v56 = vld [vmem:[#allocation8 + $0x70c] ss:$16 sps:$4 sm:$0xff]  }
 0x567   :  { %10052 = vmatprep.subr.bf16.mxu0 %v12279_v17  ;;  %v12337_v17 = vld [vmem:[#allocation8 + $0x708] ss:$16 sps:$4 sm:$0xff]  }
 0x569   :  { %9992 = vmatpush2.bf16.msra.mxu1 %v12274_v5  ;;  %v12356_v5 = vld [vmem:[#allocation11 + $0xf8] sm:$0xff]  }
 0x56a   :  { %10053 = vmatpush2.bf16.msra.mxu0 %v12277_v13  ;;  %9993 = vmatprep.subr.bf16.mxu1 %v12282_v32  ;;  %v12357_v13 = vld [vmem:[#allocation11 + $0xb8] sm:$0xff]   ;;  %v12358_v32 = vld [vmem:[#allocation11 + $0xf0] sm:$0xff]  }
 0x56b   :  { %11882 = vmatprep.subr.bf16.mxu0 %v12340_v16 }
 0x56c   :  { %v9738_v16 = vpop.f32.mrf.mxu0 }
 0x56d   :  { %9994 = vmatpush2.bf16.msra.mxu1 %v12280_v31  ;;  %10055 = vmatmul.mubr.bf16.vlgmr.msra.gmra.mxu0 %v13169_v52  ;;  %v12289_v52 = vld [vmem:[#allocation8 + $0x308] ss:$16 sps:$4 sm:$0xff]  }
 0x56e   :  { %10064 = vmatprep.mubr.bf16.mxu0 %v13178_v49  ;;  %9995 = vmatprep.subr.bf16.mxu1 %v12285_v47  ;;  %v12294_v49 = vld [vmem:[#allocation8 + $0x6ec] ss:$16 sps:$4 sm:$0xff]   ;;  %v12359_v31 = vld [vmem:[#allocation11 + $0xb0] sm:$0xff]  }
 0x56f   :  { %11883 = vmatpush3.bf16.msra.mxu0 %v12341_v20  ;;  %v12360_v47 = vld [vmem:[#allocation11 + $0xe8] sm:$0xff]   ;;  %v9740_v20 = vpop.f32.mrf.mxu0 }
 0x570   :  { %11884 = vmatprep.subr.bf16.mxu0 %v12342_v36 }
 0x571   :  { %9996 = vmatpush2.bf16.msra.mxu1 %v12283_v54  ;;  %v12361_v54 = vld [vmem:[#allocation11 + $0xa8] sm:$0xff]   ;;  %v9742_v36 = vpop.f32.mrf.mxu0 }
 0x572   :  { %9997 = vmatprep.subr.bf16.mxu1 %v12288_v9  ;;  %v12362_v9 = vld [vmem:[#allocation11 + $0xe0] sm:$0xff]  }
 0x573   :  { %11885 = vmatpush3.bf16.msra.mxu0 %v12343_v33  ;;  %v12365_v33 = vld [vmem:[#allocation11 + $0x98] sm:$0xff]  }
 0x574   :  { %11886 = vmatprep.subr.bf16.mxu0 %v12344_v26 }
 0x575   :  { %9998 = vmatpush2.bf16.msra.mxu1 %v12286_v8  ;;  %10065 = vmatmul.mubr.bf16.gmra.mxu0 %v13176_v24  ;;  %v12295_v24 = vld [vmem:[#allocation8 + $0x6c8] ss:$16 sps:$4 sm:$0xff]  }
 0x576   :  { %9999 = vmatprep.subr.bf16.mxu1 %v12291_v40  ;;  %v9791_v40 = vpop.f32.mrf.mxu1 }
 0x577   :  { %11887 = vmatpush3.bf16.msra.mxu0 %v12345_v15 }
 0x578   :  { %11888 = vmatprep.subr.bf16.mxu0 %v12346_v18  ;;  %v9793_v15 = vpop.f32.mrf.mxu1 }
 0x579   :  { %10000 = vmatpush2.bf16.msra.mxu1 %v12289_v52 }
 0x57a   :  { %10075 = vmatprep.subr.bf16.mxu1 %v12294_v49  ;;  %v9795_v49 = vpop.f32.mrf.mxu1 }
 0x57b   :  { %11889 = vmatpush3.bf16.msra.mxu0 %v12347_v55 }
 0x57c   :  { %10002 = vmatmul.mubr.bf16.vlgmr.msra.gmra.mxu1 %v13603_v19  ;;  %11890 = vmatprep.subr.bf16.mxu0 %v12348_v35  ;;  %v9797_v55 = vpop.f32.mrf.mxu1  ;;  %v13606_v19 = vld [vmem:[#allocation25_spill] sm:$0xff] }
 0x57d   :  { %10011 = vmatprep.mubr.bf16.mxu1 %v13604_v59  ;;  %10076 = vmatpush1.bf16.msra.mxu1 %v12292_v41  ;;  %v13607_v59 = vsub.s32 0, %v13606_v19 }
 0x57e   :  { %10077 = vmatprep.subr.bf16.mxu1 %v12297_v38  ;;  %v13435_v38 = vld [vmem:[#allocation10] sm:$0xf]  ;;  %v9801_v35 = vpop.f32.mrf.mxu1 }
 0x57f   :  { %11891 = vmatpush3.bf16.msra.mxu0 %v12349_v7 }
 0x580   :  { %11892 = vmatprep.subr.bf16.mxu0 %v12350_v25 }
 0x581   :  { %10078 = vmatpush1.bf16.msra.mxu1 %v12295_v24  ;;  %v8407_v24 = vrot.slane %v13435_v38, %v13607_v59 }
 0x582   :  { %10079 = vmatprep.subr.bf16.mxu1 %v12300_v23  ;;  %v9803_v23 = vpop.f32.mrf.mxu1 }
 0x583   :  { %11893 = vmatpush3.bf16.msra.mxu0 %v12351_v48  ;;  %v13608_v48 = vsub.s32 1, %v13606_v19 }
 0x584   :  { %10012 = vmatmul.mubr.bf16.gmra.mxu1 %v13605_v51  ;;  %11894 = vmatprep.subr.bf16.mxu0 %v12352_v62  ;;  %v9805_v62 = vpop.f32.mrf.mxu1 }
 0x585   :  { %10080 = vmatpush1.bf16.msra.mxu1 %v12298_v61  ;;  %10107 = vmatprep.mubr.bf16.mxu1 %v13412_v42  ;;  %v12315_v42 = vld [vmem:[#allocation8 + $0x60c] ss:$16 sps:$4 sm:$0xff]   ;;  %v8411_v61 = vrot.slane %v13435_v38, %v13608_v48 }
 0x586   :  { %10081 = vmatprep.subr.bf16.mxu1 %v12303_v14  ;;  %v9739_v14 = vadd.f32 %v9738_v16, %v8407_v24 }
 0x587   :  { %11895 = vmatpush3.bf16.msra.mxu0 %v12353_v39  ;;  %v9741_v51 = vadd.f32 %v9740_v20, %v8411_v61 }
 0x588   :  { %11896 = vmatprep.subr.bf16.mxu0 %v12354_v3 }
 0x589   :  { %10082 = vmatpush1.bf16.msra.mxu1 %v12301_v34  ;;  %v9792_v34 = vadd.f32 %v9791_v40, %v9739_v14 }
 0x58a   :  { %10083 = vmatprep.subr.bf16.mxu1 %v12306_v63  ;;  %v9743_v63 = vadd.f32 %v9742_v36, %v8407_v24 }
 0x58b   :  { %11897 = vmatpush3.bf16.msra.mxu0 %v12355_v58  ;;  %v9807_v58 = vpop.f32.mrf.mxu1 }
 0x58d   :  { %10084 = vmatpush1.bf16.msra.mxu1 %v12304_v37 }
 0x58e   :  { %10085 = vmatprep.subr.bf16.mxu1 %v12309_v6  ;;  %v9794_v6 = vadd.f32 %v9793_v15, %v9741_v51 }
 0x591   :  { %10086 = vmatpush1.bf16.msra.mxu1 %v12307_v27 }
 0x592   :  { %10087 = vmatprep.subr.bf16.mxu1 %v12312_v43 }
 0x595   :  { %10088 = vmatpush1.bf16.msra.mxu1 %v12310_v46 }
 0x596   :  { %10089 = vmatprep.subr.bf16.mxu1 %v12315_v42  ;;  %v9796_v42 = vadd.f32 %v9795_v49, %v9743_v63 }
 0x599   :  { %10090 = vmatpush1.bf16.msra.mxu1 %v12313_v57 }
 0x59a   :  { %10091 = vmatprep.subr.bf16.mxu1 %v12318_v44 }
 0x59d   :  { %10092 = vmatpush2.bf16.msra.mxu1 %v12316_v11  ;;  %v12366_v11 = vld [vmem:[#allocation11 + $0xd0] sm:$0xff]  }
 0x59e   :  { %10093 = vmatprep.subr.bf16.mxu1 %v12321_v60 }
 0x5a1   :  { %10094 = vmatpush2.bf16.msra.mxu1 %v12319_v1 }
 0x5a2   :  { %10095 = vmatprep.subr.bf16.mxu1 %v12324_v10 }
 0x5a5   :  { %10096 = vmatpush2.bf16.msra.mxu1 %v12322_v0  ;;  %v12367_v0 = vld [vmem:[#allocation11 + $0x90] sm:$0xff]  }
 0x5a6   :  { %10097 = vmatprep.subr.bf16.mxu1 %v12327_v2 }
 0x5a9   :  { %10098 = vmatpush2.bf16.msra.mxu1 %v12325_v50 }
 0x5aa   :  { %10099 = vmatprep.subr.bf16.mxu1 %v12330_v30 }
 0x5ad   :  { %10100 = vmatpush2.bf16.msra.mxu1 %v12328_v29 }
 0x5ae   :  { %10101 = vmatprep.subr.bf16.mxu1 %v12333_v12 }
 0x5b1   :  { %10102 = vmatpush2.bf16.msra.mxu1 %v12331_v45 }
 0x5b2   :  { %10103 = vmatprep.subr.bf16.mxu1 %v12336_v28 }
 0x5b5   :  { %10104 = vmatpush2.bf16.msra.mxu1 %v12334_v4 }
 0x5b6   :  { %10105 = vmatprep.subr.bf16.mxu1 %v12339_v56 }
 0x5b9   :  { %10106 = vmatpush2.bf16.msra.mxu1 %v12337_v17 }
 0x5ba   :  { %11910 = vmatprep.subr.bf16.mxu1 %v12356_v5  ;;  %v12368_v5 = vld [vmem:[#allocation11 + $0xc8] sm:$0xff]  }
 0x5bc   :  { %10108 = vmatmul.mubr.bf16.vlgmr.msra.gmra.mxu1 %v13414_v21  ;;  %v12363_v21 = vld [vmem:[#allocation11 + $0xa0] sm:$0xff]  }
 0x5bd   :  { %10117 = vmatprep.mubr.bf16.mxu1 %v13418_v53  ;;  %11911 = vmatpush3.bf16.msra.mxu1 %v12357_v13  ;;  %v12364_v53 = vld [vmem:[#allocation11 + $0xd8] sm:$0xff]  }
 0x5be   :  { %11912 = vmatprep.subr.bf16.mxu1 %v12358_v32 }
 0x5c1   :  { %11913 = vmatpush3.bf16.msra.mxu1 %v12359_v31  ;;  %v12369_v31 = vld [vmem:[#allocation11 + $0x88] sm:$0xff]  }
 0x5c2   :  { %11914 = vmatprep.subr.bf16.mxu1 %v12360_v47 }
 0x5c4   :  { %10118 = vmatmul.mubr.bf16.gmra.mxu1 %v13420_v22  ;;  %v9744_v22 = vpop.f32.mrf.mxu0 }
 0x5c5   :  { %11915 = vmatpush3.bf16.msra.mxu1 %v12361_v54  ;;  %v9745_v3 = vadd.f32 %v9744_v22, %v8411_v61 }
 0x5c6   :  { %11916 = vmatprep.subr.bf16.mxu1 %v12362_v9  ;;  %v9748_v8 = vpop.f32.mrf.mxu0 }
 0x5c7   :  { %v9749_v43 = vadd.f32 %v9748_v8, %v8407_v24  ;;  %v9798_v60 = vadd.f32 %v9797_v55, %v9745_v3  ;;  %v12370_v8 = vld [vmem:[#allocation11 + $0xc0] sm:$0xff]  }
 0x5c8   :  { %v9750_v26 = vpop.f32.mrf.mxu0 }
 0x5c9   :  { %11917 = vmatpush3.bf16.msra.mxu1 %v12363_v21  ;;  %v9751_v2 = vadd.f32 %v9750_v26, %v8411_v61  ;;  %v9802_v12 = vadd.f32 %v9801_v35, %v9749_v43 }
 0x5ca   :  { %11918 = vmatprep.subr.bf16.mxu1 %v12364_v53  ;;  %v9752_v52 = vpop.f32.mrf.mxu0 }
 0x5cb   :  { %v9753_v28 = vadd.f32 %v9752_v52, %v8407_v24  ;;  %v9804_v47 = vadd.f32 %v9803_v23, %v9751_v2  ;;  %v12371_v52 = vld [vmem:[#allocation11 + $0x80] sm:$0xff]   ;;  %v13610_v2 = vsub.s32 3, %v13606_v19 }
 0x5cc   :  { %v9754_v18 = vpop.f32.mrf.mxu0 }
 0x5cd   :  { %11919 = vmatpush3.bf16.msra.mxu1 %v12365_v33  ;;  %v9755_v13 = vadd.f32 %v9754_v18, %v8411_v61  ;;  %v9806_v21 = vadd.f32 %v9805_v62, %v9753_v28 }
 0x5ce   :  { %v9844_v41 = vpop.f32.mrf.mxu0  ;;  %11920 = vmatprep.subr.bf16.mxu1 %v12366_v11 }
 0x5cf   :  { %v9845_v27 = vadd.f32 %v9844_v41, %v9792_v34  ;;  %v9808_v40 = vadd.f32 %v9807_v58, %v9755_v13 }
 0x5d0   :  { %v9846_v7 = vpop.f32.mrf.mxu0 }
 0x5d1   :  { %v9847_v57 = vadd.f32 %v9846_v7, %v9794_v6  ;;  %11921 = vmatpush3.bf16.msra.mxu1 %v12367_v0 }
 0x5d2   :  { %v9848_v25 = vpop.f32.mrf.mxu0  ;;  %11922 = vmatprep.subr.bf16.mxu1 %v12368_v5 }
 0x5d3   :  { %v9849_v50 = vadd.f32 %v9848_v25, %v9796_v42 }
 0x5d4   :  { %v9850_v39 = vpop.f32.mrf.mxu0 }
 0x5d5   :  { %v9851_v4 = vadd.f32 %v9850_v39, %v9798_v60  ;;  %11923 = vmatpush3.bf16.msra.mxu1 %v12369_v31 }
 0x5d6   :  { %v9854_v37 = vpop.f32.mrf.mxu0  ;;  %11924 = vmatprep.subr.bf16.mxu1 %v12370_v8 }
 0x5d7   :  { %v9855_v20 = vadd.f32 %v9854_v37, %v9802_v12 }
 0x5d8   :  { %v9856_v1 = vpop.f32.mrf.mxu0 }
 0x5d9   :  { %v9857_v53 = vadd.f32 %v9856_v1, %v9804_v47  ;;  %11925 = vmatpush3.bf16.msra.mxu1 %v12371_v52  ;;  %v13609_v1 = vsub.s32 2, %v13606_v19 }
 0x5da   :  { %v9858_v32 = vpop.f32.mrf.mxu0 }
 0x5db   :  { %v9859_v49 = vadd.f32 %v9858_v32, %v9806_v21 }
 0x5dc   :  { %v9860_v26 = vpop.f32.mrf.mxu0 }
 0x5dd   :  { %v9861_v59 = vadd.f32 %v9860_v26, %v9808_v40 }
 0x5ec   :  { %v9950_v51 = vpop.f32.mrf.mxu0 }
 0x5ee   :  { %v9952_v34 = vpop.f32.mrf.mxu0 }
 0x5f0   :  { %v9954_v63 = vpop.f32.mrf.mxu0 }
 0x5f2   :  { %v9956_v3 = vpop.f32.mrf.mxu0 }
 0x5f4   :  { %v9960_v58 = vpop.f32.mrf.mxu0 }
 0x5f6   :  { %v9962_v6 = vpop.f32.mrf.mxu0 }
 0x5f8   :  { %v9964_v43 = vpop.f32.mrf.mxu0 }
 0x5fa   :  { %v9966_v42 = vpop.f32.mrf.mxu0 }
 0x5fc   :  { %v9897_v46 = vpop.f32.mrf.mxu1 }
 0x5fd   :  { %v9898_v44 = vadd.f32 %v9897_v46, %v9845_v27 }
 0x5fe   :  { %v9899_v10 = vpop.f32.mrf.mxu1 }
 0x5ff   :  { %v10128_v30 = vmax.f32 %v9898_v44, 0.0  ;;  %v9900_v29 = vadd.f32 %v9899_v10, %v9847_v57  ;;  %v8415_v10 = vrot.slane %v13435_v38, %v13609_v1 }
 0x600   :  { %v9901_v45 = vpop.f32.mrf.mxu1 }
 0x601   :  { %10144 = vst [vmem:[#allocation15] sm:$0xff] %v10128_v30  ;;  %v10129_v56 = vmax.f32 %v9900_v29, 0.0  ;;  %v9902_v17 = vadd.f32 %v9901_v45, %v9849_v50  ;;  %v8419_v50 = vrot.slane %v13435_v38, %v13610_v2  ;;  %v9951_v29 = vadd.f32 %v9950_v51, %v8415_v10 }
 0x602   :  { %v9903_v16 = vpop.f32.mrf.mxu1  ;;  %v9965_v8 = vadd.f32 %v9964_v43, %v8415_v10 }
 0x603   :  { %10145 = vst [vmem:[#allocation15 + $0x8] sm:$0xff] %v10129_v56  ;;  %v10132_v54 = vmax.f32 %v9902_v17, 0.0  ;;  %v9904_v9 = vadd.f32 %v9903_v16, %v9851_v4  ;;  %v9953_v45 = vadd.f32 %v9952_v34, %v8419_v50  ;;  %v9957_v13 = vadd.f32 %v9956_v3, %v8419_v50 }
 0x604   :  { %v9907_v36 = vpop.f32.mrf.mxu1 }
 0x605   :  { %10148 = vst [vmem:[#allocation15 + $0x20] sm:$0xff] %v10132_v54  ;;  %v10133_v22 = vmax.f32 %v9904_v9, 0.0  ;;  %v9908_v33 = vadd.f32 %v9907_v36, %v9855_v20  ;;  %v10160_v35 = vpack.c.bf16 %v10132_v54, %v10128_v30  ;;  %v9961_v20 = vadd.f32 %v9960_v58, %v8415_v10 }
 0x606   :  { %v9909_v15 = vpop.f32.mrf.mxu1  ;;  %v9963_v36 = vadd.f32 %v9962_v6, %v8419_v50 }
 0x607   :  { %10149 = vst [vmem:[#allocation15 + $0x28] sm:$0xff] %v10133_v22  ;;  %v10161_v18 = vpack.c.bf16 %v10133_v22, %v10129_v56  ;;  %v10136_v55 = vmax.f32 %v9908_v33, 0.0  ;;  %v9910_v41 = vadd.f32 %v9909_v15, %v9857_v53  ;;  %v9955_v56 = vadd.f32 %v9954_v63, %v8415_v10 }
 0x608   :  { %v9911_v7 = vpop.f32.mrf.mxu1 }
 0x609   :  { %10152 = vst [vmem:[#allocation15 + $0x40] sm:$0xff] %v10136_v55  ;;  %v10137_v24 = vmax.f32 %v9910_v41, 0.0  ;;  %v9912_v23 = vadd.f32 %v9911_v7, %v9859_v49  ;;  %10463 = vmatprep.mubr.bf16.mxu0 %v10161_v18 }
 0x60a   :  { %v9913_v25 = vpop.f32.mrf.mxu1  ;;  %10464 = vmatmul.mubr.bf16.vlgmr.msra.gmra.mxu0 %v10160_v35 }
 0x60b   :  { %10153 = vst [vmem:[#allocation15 + $0x48] sm:$0xff] %v10137_v24  ;;  %v10140_v48 = vmax.f32 %v9912_v23, 0.0  ;;  %v9914_v61 = vadd.f32 %v9913_v25, %v9861_v59 }
 0x60d   :  { %10156 = vst [vmem:[#allocation15 + $0x60] sm:$0xff] %v10140_v48  ;;  %v10141_v14 = vmax.f32 %v9914_v61, 0.0  ;;  %v10164_v39 = vpack.c.bf16 %v10140_v48, %v10136_v55  ;;  %v9967_v55 = vadd.f32 %v9966_v42, %v8419_v50 }
 0x60f   :  { %10157 = vst [vmem:[#allocation15 + $0x68] sm:$0xff] %v10141_v14  ;;  %v10165_v62 = vpack.c.bf16 %v10141_v14, %v10137_v24 }
 0x611   :  { %10471 = vmatprep.mubr.bf16.mxu0 %v10165_v62 }
 0x612   :  { %10472 = vmatmul.mubr.bf16.gmra.mxu0 %v10164_v39 }
 0x62d   :  { %v10056_v44 = vpop.f32.mrf.mxu0 }
 0x62f   :  { %v10058_v60 = vpop.f32.mrf.mxu0 }
 0x631   :  { %v10060_v30 = vpop.f32.mrf.mxu0 }
 0x633   :  { %v10062_v4 = vpop.f32.mrf.mxu0 }
 0x635   :  { %v10066_v31 = vpop.f32.mrf.mxu0 }
 0x637   :  { %v10068_v40 = vpop.f32.mrf.mxu0 }
 0x639   :  { %v10070_v23 = vpop.f32.mrf.mxu0 }
 0x63b   :  { %v10072_v58 = vpop.f32.mrf.mxu0 }
 0x63c   :  { %v10003_v37 = vpop.f32.mrf.mxu1 }
 0x63d   :  { %v10004_v28 = vadd.f32 %v10003_v37, %v9951_v29 }
 0x63e   :  { %v10005_v27 = vpop.f32.mrf.mxu1 }
 0x63f   :  { %v10006_v17 = vadd.f32 %v10005_v27, %v9953_v45  ;;  %v10057_v16 = vadd.f32 %v10056_v44, %v10004_v28 }
 0x640   :  { %v10007_v46 = vpop.f32.mrf.mxu1 }
 0x641   :  { %v10008_v32 = vadd.f32 %v10007_v46, %v9955_v56  ;;  %v10059_v19 = vadd.f32 %v10058_v60, %v10006_v17 }
 0x642   :  { %v10009_v57 = vpop.f32.mrf.mxu1 }
 0x643   :  { %v10010_v54 = vadd.f32 %v10009_v57, %v9957_v13  ;;  %v10061_v33 = vadd.f32 %v10060_v30, %v10008_v32 }
 0x644   :  { %v10013_v11 = vpop.f32.mrf.mxu1 }
 0x645   :  { %v10014_v21 = vadd.f32 %v10013_v11, %v9961_v20  ;;  %v10063_v18 = vadd.f32 %v10062_v4, %v10010_v54 }
 0x646   :  { %v10015_v0 = vpop.f32.mrf.mxu1 }
 0x647   :  { %v10016_v15 = vadd.f32 %v10015_v0, %v9963_v36  ;;  %v10067_v24 = vadd.f32 %v10066_v31, %v10014_v21 }
 0x648   :  { %v10017_v12 = vpop.f32.mrf.mxu1 }
 0x649   :  { %v10018_v35 = vadd.f32 %v10017_v12, %v9965_v8  ;;  %v10069_v62 = vadd.f32 %v10068_v40, %v10016_v15 }
 0x64a   :  { %v10019_v5 = vpop.f32.mrf.mxu1 }
 0x64b   :  { %v10020_v48 = vadd.f32 %v10019_v5, %v9967_v55  ;;  %v10071_v3 = vadd.f32 %v10070_v23, %v10018_v35 }
 0x64d   :  { %v10073_v46 = vadd.f32 %v10072_v58, %v10020_v48 }
 0x67c   :  { %v10109_v47 = vpop.f32.mrf.mxu1 }
 0x67d   :  { %v10110_v9 = vadd.f32 %v10109_v47, %v10057_v16 }
 0x67e   :  { %v10111_v38 = vpop.f32.mrf.mxu1 }
 0x67f   :  { %v10130_v53 = vmax.f32 %v10110_v9, 0.0  ;;  %v10112_v22 = vadd.f32 %v10111_v38, %v10059_v19 }
 0x680   :  { %v10113_v26 = vpop.f32.mrf.mxu1 }
 0x681   :  { %10146 = vst [vmem:[#allocation15 + $0x10] sm:$0xff] %v10130_v53  ;;  %v10131_v52 = vmax.f32 %v10112_v22, 0.0  ;;  %v10114_v49 = vadd.f32 %v10113_v26, %v10061_v33 }
 0x682   :  { %v10115_v41 = vpop.f32.mrf.mxu1 }
 0x683   :  { %10147 = vst [vmem:[#allocation15 + $0x18] sm:$0xff] %v10131_v52  ;;  %v10134_v7 = vmax.f32 %v10114_v49, 0.0  ;;  %v10116_v59 = vadd.f32 %v10115_v41, %v10063_v18 }
 0x684   :  { %v10119_v25 = vpop.f32.mrf.mxu1 }
 0x685   :  { %10150 = vst [vmem:[#allocation15 + $0x30] sm:$0xff] %v10134_v7  ;;  %v10135_v61 = vmax.f32 %v10116_v59, 0.0  ;;  %v10120_v14 = vadd.f32 %v10119_v25, %v10067_v24  ;;  %v10162_v37 = vpack.c.bf16 %v10134_v7, %v10130_v53 }
 0x686   :  { %v10121_v39 = vpop.f32.mrf.mxu1 }
 0x687   :  { %10151 = vst [vmem:[#allocation15 + $0x38] sm:$0xff] %v10135_v61  ;;  %v10163_v51 = vpack.c.bf16 %v10135_v61, %v10131_v52  ;;  %v10138_v34 = vmax.f32 %v10120_v14, 0.0  ;;  %v10122_v63 = vadd.f32 %v10121_v39, %v10069_v62 }
 0x688   :  { %v10123_v6 = vpop.f32.mrf.mxu1 }
 0x689   :  { %10154 = vst [vmem:[#allocation15 + $0x50] sm:$0xff] %v10138_v34  ;;  %v10139_v27 = vmax.f32 %v10122_v63, 0.0  ;;  %v10124_v43 = vadd.f32 %v10123_v6, %v10071_v3  ;;  %10512 = vmatprep.mubr.bf16.mxu1 %v10163_v51 }
 0x68a   :  { %v10125_v42 = vpop.f32.mrf.mxu1  ;;  %10513 = vmatmul.mubr.bf16.vlgmr.msra.gmra.mxu1 %v10162_v37 }
 0x68b   :  { %10155 = vst [vmem:[#allocation15 + $0x58] sm:$0xff] %v10139_v27  ;;  %v10142_v57 = vmax.f32 %v10124_v43, 0.0  ;;  %v10126_v44 = vadd.f32 %v10125_v42, %v10073_v46 }
 0x68d   :  { %10158 = vst [vmem:[#allocation15 + $0x70] sm:$0xff] %v10142_v57  ;;  %v10143_v11 = vmax.f32 %v10126_v44, 0.0  ;;  %v10166_v1 = vpack.c.bf16 %v10142_v57, %v10138_v34 }
 0x68f   :  { %10159 = vst [vmem:[#allocation15 + $0x78] sm:$0xff] %v10143_v11  ;;  %v10167_v60 = vpack.c.bf16 %v10143_v11, %v10139_v27 }
 0x691   :  { %10520 = vmatprep.mubr.bf16.mxu1 %v10167_v60 }
 0x692   :  { %10521 = vmatmul.mubr.bf16.gmra.mxu1 %v10166_v1 }
 0x693   :  { %12526 = shalt.err (!%p12523_p11)
}
 0x694   :  { %10556 = dma.vmem_to_hbm [thread:$0]  %s10551_s6, 2048, %s13468_s8, [#allocation16], %s12568_s30, %s12568_s30, %s12569_s9   ;;  %v11849_v12 = vld [vmem:[#allocation13] ss:$0 sm:$0xff] }
 0x695   :  { %s12583_s8 = smov [#allocation14]  }
 0x696   :  { %s10538_s30 = sshll.u32 %s12583_s8, 4  ;;  %s10539_s30 = int_to_ptr.vmem [resolvable:$true] %s10538_s30 }
 0x697   :  { %s12535_s9 = scalar_lea.vmem %s10539_s30, 512  ;;  %p12540_p13 = scmp.lt.s32.totalorder %s10539_s30, %s10539_s30 }
 0x698   :  { %p12536_p12 = scmp.ne.s32.totalorder %s10539_s30, %s12535_s9  ;;  %p12541_p0 = scmp.lt.s32.totalorder %s12535_s9, %s12535_s9 }
 0x69a   :  { %p12542_p1 = por %p12541_p0, %p12540_p13 }
 0x69c   :  { %p12543_p2 = pnand %p12542_p1, %p12536_p12 }
 0x6ca   :  { %v11898_v10 = vpop.f32.mrf.mxu0 }
 0x6cc   :  { %v11899_v0 = vpop.f32.mrf.mxu0 }
 0x6cd   :  { %v11900_v29 = vadd.f32 %v11899_v0, %v11898_v10 }
 0x6ce   :  { %v11901_v2 = vpop.f32.mrf.mxu0 }
 0x6cf   :  { %v10466_v56 = vadd.f32 %v11900_v29, %v11849_v12 }
 0x6d0   :  { %v11902_v50 = vpop.f32.mrf.mxu0 }
 0x6d1   :  { %v11903_v17 = vadd.f32 %v11902_v50, %v11901_v2 }
 0x6d2   :  { %v11904_v30 = vpop.f32.mrf.mxu0 }
 0x6d3   :  { %v10469_v47 = vadd.f32 %v11903_v17, %v11849_v12 }
 0x6d4   :  { %v11905_v45 = vpop.f32.mrf.mxu0 }
 0x6d5   :  { %v11906_v20 = vadd.f32 %v11905_v45, %v11904_v30 }
 0x6d6   :  { %v11907_v13 = vpop.f32.mrf.mxu0 }
 0x6d7   :  { %v10474_v21 = vadd.f32 %v11906_v20, %v11849_v12 }
 0x6d8   :  { %v11908_v9 = vpop.f32.mrf.mxu0 }
 0x6d9   :  { %v11909_v53 = vadd.f32 %v11908_v9, %v11907_v13 }
 0x6db   :  { %v10477_v26 = vadd.f32 %v11909_v53, %v11849_v12 }
 0x74a   :  { %v11926_v28 = vpop.f32.mrf.mxu1 }
 0x74c   :  { %v11927_v4 = vpop.f32.mrf.mxu1 }
 0x74d   :  { %v11928_v5 = vadd.f32 %v11927_v4, %v11926_v28 }
 0x74e   :  { %v11929_v32 = vpop.f32.mrf.mxu1 }
 0x74f   :  { %v10515_v16 = vadd.f32 %v11928_v5, %v10466_v56 }
 0x750   :  { %v11930_v31 = vpop.f32.mrf.mxu1 }
 0x751   :  { %10529 = vst [vmem:[#allocation14] sm:$0xff] %v10515_v16  ;;  %v11931_v54 = vadd.f32 %v11930_v31, %v11929_v32 }
 0x752   :  { %v11932_v19 = vpop.f32.mrf.mxu1 }
 0x753   :  { %v10518_v36 = vadd.f32 %v11931_v54, %v10469_v47 }
 0x754   :  { %v11933_v38 = vpop.f32.mrf.mxu1 }
 0x755   :  { %10530 = vst [vmem:[#allocation14 + $0x8] sm:$0xff] %v10518_v36  ;;  %v11934_v22 = vadd.f32 %v11933_v38, %v11932_v19 }
 0x756   :  { %v11935_v33 = vpop.f32.mrf.mxu1 }
 0x757   :  { %v10523_v8 = vadd.f32 %v11934_v22, %v10474_v21 }
 0x758   :  { %v11936_v40 = vpop.f32.mrf.mxu1 }
 0x759   :  { %10531 = vst [vmem:[#allocation14 + $0x10] sm:$0xff] %v10523_v8  ;;  %v11937_v15 = vadd.f32 %v11936_v40, %v11935_v33 }
 0x75b   :  { %v10526_v52 = vadd.f32 %v11937_v15, %v10477_v26 }
 0x75d   :  { %10532 = vst [vmem:[#allocation14 + $0x18] sm:$0xff] %v10526_v52 }
 0x75e   :  { %12546 = shalt.err (!%p12543_p2)
}
 0x75f   :  { %s12584_s26 = smov 8  }
 0x760   :  { %10544 = dma.vmem_to_hbm [thread:$0]  %s10539_s30, 512, %s13467_s7, [#allocation4], %s12578_s28, %s12578_s28, %s12584_s26  }
 0x761   :  { %12563 = dma.done.wait [#allocation4], 512  }
 0x762   :  { %12564 = vsyncadd [#allocation4], 4294966784 }
 0x763   :  { %12565 = dma.done.wait [#allocation16], 2048  }
 0x764   :  { %12566 = vsyncadd [#allocation16], 4294965248 }
 0x765   :  { %10563 = vsyncpa [#allocation3], 1 }
 0x766   :  { %10564 = vsyncpa [#allocation6], 1 }
 0x767   :  { %10565 = vsyncpa [#allocation9], 1 }
 0x768   :  { %10566 = vsyncpa [#allocation12], 1 }
 0x769   :  { %10567 = vsyncpa [#allocation4], 1 }
 0x76a   :  { %10568 = vsyncpa [#allocation16], 1 }

</bundles_post_ra>
